<compile_context>
chip_gen: v7x
topology: tpu7x:2x2x1
jax: 0.10.0
libtpu: 0.0.40
codegen_flags: <defaults>
</compile_context>

<pallas_src>
import math
import functools
import jax
import jax.numpy as jnp
from jax.experimental import pallas as pl
from jax.experimental.pallas import tpu as pltpu


def _round_up(x, m):
    return ((x + m - 1) // m) * m


def _reorg_conv_weight(w_hwio):
    """(ky, kx, Cin, Cout) HWIO -> (3[dy], Cin, 3*Cout).

    dx is folded into the output (lane) axis: column block d holds the dx=d
    tap.  The kernel then runs one wide matmul per dy row-slab and recombines
    the three dx groups with sublane shifts.
    """
    ky, kx, cin, cout = w_hwio.shape
    return jnp.transpose(w_hwio, (0, 2, 1, 3)).reshape(ky, cin, kx * cout)


# ---------------------------------------------------------------------------
# pltpu.roll convention probe (tiny one-off kernel, cached).
# ---------------------------------------------------------------------------
_ROLL_MODE = None


def _roll_convention():
    """+1 if pltpu.roll matches jnp.roll (out[i] = x[i-shift]); -1 if the
    rotation direction is reversed; 0 -> use the slice+concat fallback."""
    global _ROLL_MODE
    if _ROLL_MODE is not None:
        return _ROLL_MODE

    def probe(x_ref, o_ref):
        o_ref[...] = pltpu.roll(x_ref[...], shift=1, axis=0)

    try:
        x = jnp.arange(8 * 128, dtype=jnp.float32).reshape(8, 128)
        y = jax.device_get(pl.pallas_call(
            probe, out_shape=jax.ShapeDtypeStruct((8, 128), jnp.float32))(x))
        if float(y[1, 0]) == 0.0:       # x[0,0] landed on row 1 -> jnp.roll
            _ROLL_MODE = 1
        elif float(y[0, 0]) == 128.0:   # x[1,0] landed on row 0 -> reversed
            _ROLL_MODE = -1
        else:
            _ROLL_MODE = 0
    except Exception:
        _ROLL_MODE = 0
    return _ROLL_MODE


def _row_shift(y, amount, roll_mode):
    """z[r] = y[r - amount] (circular along sublane axis 0), amount in {+1,-1}."""
    n = y.shape[0]
    if roll_mode != 0:
        return pltpu.roll(y, shift=(amount * roll_mode) % n, axis=0)
    # Fallback: explicit slice + concat (unaligned but always correct).
    if amount == 1:
        return jnp.concatenate([y[n - 1:n], y[:n - 1]], axis=0)
    return jnp.concatenate([y[1:], y[:1]], axis=0)


# ---------------------------------------------------------------------------
# Fused per-level kernel
# ---------------------------------------------------------------------------
def _make_level_kernel(H, W, Cin, num_convs, num_groups, nc, A,
                       norm_reg_targets, CH, roll_mode, eps=1e-5):
    C2 = 2 * Cin                    # [cls_tower | bbox_tower] channels (128)
    cg = Cin // num_groups          # channels per GroupNorm group
    W0 = 8                          # aligned interior column offset
    Hp = H + 2
    Wpp = _round_up(W + W0 + 1, 16)  # sublane axis, bf16-tile friendly
    inv_cnt = 1.0 / float(H * W * cg)

    shift = functools.partial(_row_shift, roll_mode=roll_mode)

    def conv3x3(pbuf, w_dy, cout):
        # 3x3 conv = 3 accumulated MXU matmuls (one per dy row-slab), each
        # with N = 3*cout (dx folded into lanes); recombine dx groups with
        # +-1 sublane shifts and slice the valid columns from the aligned
        # offset W0.  bf16 operands, f32 accumulation.
        y = None
        for dy in range(3):
            xs = pbuf[dy:dy + H, :, :].reshape(H * Wpp, C2)
            p = jnp.dot(xs, w_dy(dy), preferred_element_type=jnp.float32)
            y = p if y is None else y + p
        z = (shift(y[:, :cout], 1)
             + y[:, cout:2 * cout]
             + shift(y[:, 2 * cout:], -1))
        return z.reshape(H, Wpp, cout)[:, W0:W0 + W, :]

    def kernel(x_ref, wt_ref, bt_ref, ga_ref, be_ref, wh_ref, bh_ref,
               gmat_ref, sc_ref, o_ref, pbuf):
        # Zero ONLY the halo strips; the interior is fully overwritten every
        # step.  Not gated on program_id (megacore cores own separate scratch
        # and start at nonzero grid indices).
        pbuf[:, 0:W0, :] = jnp.zeros((Hp, W0, C2), jnp.bfloat16)
        pbuf[:, W0 + W:Wpp, :] = jnp.zeros((Hp, Wpp - W0 - W, C2), jnp.bfloat16)
        zrow = jnp.zeros((1, Wpp, C2), jnp.bfloat16)
        pbuf[0:1, :, :] = zrow
        pbuf[H + 1:H + 2, :, :] = zrow

        x = x_ref[0]                                      # (H, W, Cin) f32
        pbuf[1:H + 1, W0:W0 + W, :] = (
            jnp.concatenate([x, x], axis=-1).astype(jnp.bfloat16))

        gmat = gmat_ref[...]                              # (C2, C2) f32

        # Tower: num_convs x (conv3x3 -> GroupNorm -> ReLU); cls and bbox
        # towers fused along channels via block-diagonal weights.
        for i in range(num_convs):
            acc = conv3x3(pbuf, lambda dy: wt_ref[i, dy], C2) + bt_ref[i]
            # GroupNorm: reduce over HW, one M=2 matmul spreads per-group
            # stats back to channels (no (HW, groups, 2) relayouts).
            s = jnp.sum(acc, axis=(0, 1), keepdims=True).reshape(1, C2)
            ss = jnp.sum(acc * acc, axis=(0, 1), keepdims=True).reshape(1, C2)
            g = jnp.dot(jnp.concatenate([s, ss], axis=0), gmat,
                        preferred_element_type=jnp.float32)      # (2, C2)
            mean_c = g[0:1, :] * inv_cnt
            var_c = jnp.maximum(g[1:2, :] * inv_cnt - mean_c * mean_c, 0.0)
            inv_c = jax.lax.rsqrt(var_c + eps)
            sc = ga_ref[i] * inv_c
            sh = be_ref[i] - mean_c * sc
            y = jnp.maximum(acc * sc + sh, 0.0)
            pbuf[1:H + 1, W0:W0 + W, :] = y.astype(jnp.bfloat16)

        # Heads: cls_logits | shape_logits | bbox_pred | centerness as one
        # lane-dense conv (Cout padded to CH = 128).
        acc_h = conv3x3(pbuf, lambda dy: wh_ref[dy], CH) + bh_ref[...]
        lane = jax.lax.broadcasted_iota(jnp.int32, (1, 1, CH), 2)
        is_sig = jnp.logical_and(lane >= nc, lane < nc + A)       # shape_logits
        is_bbox = jnp.logical_and(lane >= nc + A, lane < nc + 5 * A)
        y_bb = acc_h * sc_ref[0]                                  # Scale module
        if norm_reg_targets:
            # Spec forward: relu(scale(bbox_pred)) * fpn_stride.
            y_bb = jnp.maximum(y_bb, 0.0) * sc_ref[1]
        out = jnp.where(is_bbox, y_bb,
                        jnp.where(is_sig, jax.nn.sigmoid(acc_h), acc_h))
        o_ref[0] = out.astype(jnp.bfloat16)

    return kernel, Hp, Wpp


class FCOSAnchorHeadPallas:
    def __init__(self, key, in_channels=64, num_classes=8, num_anchors=1,
                 num_convs=2, fpn_strides=(8, 16), norm_reg_targets=True,
                 centerness_on_reg=True, prior_prob=0.01, num_groups=32):
        assert in_channels % num_groups == 0
        self.in_channels = in_channels
        self.num_classes = num_classes
        self.num_anchors = num_anchors
        self.num_convs = num_convs
        self.fpn_strides = fpn_strides
        self.norm_reg_targets = norm_reg_targets
        self.centerness_on_reg = centerness_on_reg
        self.num_groups = num_groups

        def conv_init(k, cin, cout):
            # torch.nn.init.normal_(weight, std=0.01); biases set below (HWIO)
            return 0.01 * jax.random.normal(k, (3, 3, cin, cout), jnp.float32)

        keys = jax.random.split(key, 2 * num_convs + 4)
        ki = iter(keys)

        self.cls_tower, self.bbox_tower = [], []
        for _ in range(num_convs):
            self.cls_tower.append(dict(
                w=conv_init(next(ki), in_channels, in_channels),
                b=jnp.zeros((in_channels,), jnp.float32),
                gamma=jnp.ones((in_channels,), jnp.float32),
                beta=jnp.zeros((in_channels,), jnp.float32)))
            self.bbox_tower.append(dict(
                w=conv_init(next(ki), in_channels, in_channels),
                b=jnp.zeros((in_channels,), jnp.float32),
                gamma=jnp.ones((in_channels,), jnp.float32),
                beta=jnp.zeros((in_channels,), jnp.float32)))

        bias_value = -math.log((1 - prior_prob) / prior_prob)
        nc = num_classes * num_anchors
        self.cls_logits = dict(w=conv_init(next(ki), in_channels, nc),
                               b=jnp.full((nc,), bias_value, jnp.float32))
        self.bbox_pred = dict(w=conv_init(next(ki), in_channels, 4 * num_anchors),
                              b=jnp.zeros((4 * num_anchors,), jnp.float32))
        self.centerness = dict(w=conv_init(next(ki), in_channels, 1),
                               b=jnp.zeros((1,), jnp.float32))
        self.shape_logits = dict(w=conv_init(next(ki), in_channels, num_anchors),
                                 b=jnp.full((num_anchors,), bias_value,
                                            jnp.float32))
        self.scales = [1.0] * 5  # Scale(init_value=1.0) per FPN level

        self._build_fused_params()

    # ---- build fused (block-diagonal / concatenated) parameter tensors ----
    def _build_fused_params(self):
        Cin = self.in_channels
        C2 = 2 * Cin
        A = self.num_anchors
        nc = self.num_classes * A
        ctot = nc + A + 4 * A + 1
        CH = max(128, _round_up(ctot, 128))     # lane-dense head output width
        self.C2, self.CH, self.nc, self.ctot = C2, CH, nc, ctot

        wt, bt, ga, be = [], [], [], []
        for i in range(self.num_convs):
            wc = jnp.zeros((3, 3, C2, C2), jnp.float32)
            wc = wc.at[:, :, :Cin, :Cin].set(self.cls_tower[i]["w"])
            wc = wc.at[:, :, Cin:, Cin:].set(self.bbox_tower[i]["w"])
            wt.append(_reorg_conv_weight(wc))
            bt.append(jnp.concatenate(
                [self.cls_tower[i]["b"], self.bbox_tower[i]["b"]]).reshape(1, C2))
            ga.append(jnp.concatenate(
                [self.cls_tower[i]["gamma"],
                 self.bbox_tower[i]["gamma"]]).reshape(1, C2))
            be.append(jnp.concatenate(
                [self.cls_tower[i]["beta"],
                 self.bbox_tower[i]["beta"]]).reshape(1, C2))
        # bf16 MXU operands (accumulation stays f32 in-kernel).
        self._wt = jnp.stack(wt).astype(jnp.bfloat16)   # (nct, 3, C2, 3*C2)
        self._bt = jnp.stack(bt)                        # (nct, 1, C2) f32
        self._ga = jnp.stack(ga)
        self._be = jnp.stack(be)

        # All four heads concatenated along Cout, padded to CH (>=128).
        wh = jnp.zeros((3, 3, C2, CH), jnp.float32)
        wh = wh.at[:, :, :Cin, 0:nc].set(self.cls_logits["w"])            # cls tower
        wh = wh.at[:, :, :Cin, nc:nc + A].set(self.shape_logits["w"])     # cls tower
        wh = wh.at[:, :, Cin:, nc + A:nc + 5 * A].set(self.bbox_pred["w"])  # box tower
        c0 = Cin if self.centerness_on_reg else 0
        wh = wh.at[:, :, c0:c0 + Cin,
                   nc + 5 * A:nc + 5 * A + 1].set(self.centerness["w"])
        self._wh = _reorg_conv_weight(wh).astype(jnp.bfloat16)  # (3, C2, 3*CH)

        bh = jnp.zeros((CH,), jnp.float32)
        bh = bh.at[0:nc].set(self.cls_logits["b"])
        bh = bh.at[nc:nc + A].set(self.shape_logits["b"])
        bh = bh.at[nc + A:nc + 5 * A].set(self.bbox_pred["b"])
        bh = bh.at[nc + 5 * A:nc + 5 * A + 1].set(self.centerness["b"])
        self._bh = bh.reshape(1, CH)

        # Group-membership matrix: gmat[c, c'] = 1 iff same GroupNorm group.
        cg = Cin // self.num_groups
        gid = jnp.arange(C2) // cg
        self._gmat = (gid[:, None] == gid[None, :]).astype(jnp.float32)

    # ---- one fused pallas_call per FPN level ----
    def _run_level(self, f_nhwc, level):
        N, H, W, Cin = f_nhwc.shape
        C2, CH, A, nc = self.C2, self.CH, self.num_anchors, self.nc
        nct = self.num_convs
        roll_mode = _roll_convention()
        kernel, Hp, Wpp = _make_level_kernel(
            H, W, Cin, nct, self.num_groups, nc, A, self.norm_reg_targets,
            CH, roll_mode)
        scale_stride = jnp.array(
            [float(self.scales[level]), float(self.fpn_strides[level])],
            jnp.float32)
        # TODO(synk): for production FPN resolutions add an H row-block grid
        # axis (1-row halo) so per-step blocks fit v7x's 64 MiB VMEM and both
        # of its TensorCores get work even when N is small.
        return pl.pallas_call(
            kernel,
            out_shape=jax.ShapeDtypeStruct((N, H, W, CH), jnp.bfloat16),
            grid=(N,),
            in_specs=[
                pl.BlockSpec((1, H, W, Cin), lambda n: (n, 0, 0, 0)),
                pl.BlockSpec((nct, 3, C2, 3 * C2), lambda n: (0, 0, 0, 0)),
                pl.BlockSpec((nct, 1, C2), lambda n: (0, 0, 0)),
                pl.BlockSpec((nct, 1, C2), lambda n: (0, 0, 0)),
                pl.BlockSpec((nct, 1, C2), lambda n: (0, 0, 0)),
                pl.BlockSpec((3, C2, 3 * CH), lambda n: (0, 0, 0)),
                pl.BlockSpec((1, CH), lambda n: (0, 0)),
                pl.BlockSpec((C2, C2), lambda n: (0, 0)),
                pl.BlockSpec(memory_space=pltpu.MemorySpace.SMEM),
            ],
            out_specs=pl.BlockSpec((1, H, W, CH), lambda n: (n, 0, 0, 0)),
            scratch_shapes=[pltpu.VMEM((Hp, Wpp, C2), jnp.bfloat16)],
            compiler_params=pltpu.CompilerParams(
                dimension_semantics=("parallel",),
                vmem_limit_bytes=32 * 1024 * 1024),
        )(f_nhwc, self._wt, self._bt, self._ga, self._be,
          self._wh, self._bh, self._gmat, scale_stride)

    def forward(self, x):
        """x: list of NCHW feature maps (one per FPN level)."""
        A, nc, ctot = self.num_anchors, self.nc, self.ctot
        logits, bbox_reg, centerness, shape_logits = [], [], [], []
        for l, feature in enumerate(x):
            f = jnp.transpose(feature, (0, 2, 3, 1))   # NCHW -> NHWC
            out = self._run_level(f, l)                # (N, H, W, CH) bf16
            # Single trim + transpose (not 4 slice+transpose pairs).
            nchw = jnp.transpose(out[..., :ctot],
                                 (0, 3, 1, 2)).astype(jnp.float32)
            logits.append(nchw[:, 0:nc])
            shape_logits.append(nchw[:, nc:nc + A])
            bbox_reg.append(nchw[:, nc + A:nc + 5 * A])
            centerness.append(nchw[:, nc + 5 * A:nc + 5 * A + 1])
        return logits, bbox_reg, centerness, shape_logits


# ---------------------------------------------------------------------------
# Pure-JAX reference of the same module (for correctness validation)
# ---------------------------------------------------------------------------
def _reference_forward(head, features):
    def conv(x, w, b):
        y = jax.lax.conv_general_dilated(
            x, w, window_strides=(1, 1), padding=((1, 1), (1, 1)),
            dimension_numbers=("NHWC", "HWIO", "NHWC"),
            precision=jax.lax.Precision.HIGHEST)
        return y + b.reshape(1, 1, 1, -1)

    def gn_relu(x, gamma, beta, groups, eps=1e-5):
        N, H, W, C = x.shape
        xg = x.reshape(N, H, W, groups, C // groups)
        mean = xg.mean(axis=(1, 2, 4), keepdims=True)
        var = jnp.mean((xg - mean) ** 2, axis=(1, 2, 4), keepdims=True)
        y = (xg - mean) / jnp.sqrt(var + eps)
        y = y.reshape(N, H, W, C) * gamma.reshape(1, 1, 1, -1) \
            + beta.reshape(1, 1, 1, -1)
        return jnp.maximum(y, 0.0)

    to_nchw = lambda t: jnp.transpose(t, (0, 3, 1, 2))
    logits, bbox_reg, centerness, shape_logits = [], [], [], []
    for l, feat in enumerate(features):
        f = jnp.transpose(feat, (0, 2, 3, 1))
        ct = f
        for p in head.cls_tower:
            ct = gn_relu(conv(ct, p["w"], p["b"]), p["gamma"], p["beta"],
                         head.num_groups)
        bt = f
        for p in head.bbox_tower:
            bt = gn_relu(conv(bt, p["w"], p["b"]), p["gamma"], p["beta"],
                         head.num_groups)
        cls_o = conv(ct, head.cls_logits["w"], head.cls_logits["b"])
        shp_o = jax.nn.sigmoid(conv(ct, head.shape_logits["w"],
                                    head.shape_logits["b"]))
        src = bt if head.centerness_on_reg else ct
        ctr_o = conv(src, head.centerness["w"], head.centerness["b"])
        bb = conv(bt, head.bbox_pred["w"], head.bbox_pred["b"]) * head.scales[l]
        if head.norm_reg_targets:
            bb = jnp.maximum(bb, 0.0) * float(head.fpn_strides[l])
        logits.append(to_nchw(cls_o))
        bbox_reg.append(to_nchw(bb))
        centerness.append(to_nchw(ctr_o))
        shape_logits.append(to_nchw(shp_o))
    return logits, bbox_reg, centerness, shape_logits


if __name__ == "__main__":
    key = jax.random.PRNGKey(0)
    k_param, k_x0, k_x1 = jax.random.split(key, 3)

    N, C = 2, 64
    head = FCOSAnchorHeadPallas(
        k_param, in_channels=C, num_classes=8, num_anchors=1, num_convs=2,
        fpn_strides=(8, 16), norm_reg_targets=True, centerness_on_reg=True,
        prior_prob=0.01, num_groups=32)

    # Two FPN levels, NCHW like the PyTorch module
    features = [
        jax.random.normal(k_x0, (N, C, 16, 16), jnp.float32),
        jax.random.normal(k_x1, (N, C, 8, 8), jnp.float32),
    ]

    outs = head.forward(features)
    for group in outs:
        for t in group:
            jax.block_until_ready(t)

    logits, bbox_reg, centerness, shape_logits = outs
    assert logits[0].shape == (N, 8, 16, 16)
    assert bbox_reg[0].shape == (N, 4, 16, 16)
    assert centerness[1].shape == (N, 1, 8, 8)
    assert shape_logits[1].shape == (N, 1, 8, 8)

    # Correctness check against a pure-JAX f32 reference.  The kernel uses
    # bf16 MXU operands and bf16 output storage (f32 accumulation), so the
    # tolerance is normalized by each tensor's magnitude.
    refs = _reference_forward(head, features)
    names = ("logits", "bbox_reg", "centerness", "shape_logits")
    for name, got_g, ref_g in zip(names, outs, refs):
        for got, ref in zip(got_g, ref_g):
            err = float(jnp.max(jnp.abs(got - ref)))
            mag = max(1.0, float(jnp.max(jnp.abs(ref))))
            assert err <= 4e-2 * mag, (name, err, mag)

    print("KERNEL_OK")
</pallas_src>

<mosaic_0001>
module attributes {stable_mosaic.version = 11 : i64} {
  func.func @probe(%arg0: memref<8x128xf32, #tpu.memory_space<vmem>>, %arg1: memref<8x128xf32, #tpu.memory_space<vmem>>) attributes {dimension_semantics = [], scalar_prefetch = 0 : i64, scratch_operands = 0 : i64, tpu.core_type = #tpu.core_type<tc>} {
    %c0 = arith.constant 0 : index
    %c0_0 = arith.constant 0 : index
    %0 = vector.load %arg0[%c0, %c0_0] : memref<8x128xf32, #tpu.memory_space<vmem>>, vector<8x128xf32>
    %c1_i32 = arith.constant 1 : i32
    %1 = tpu.dynamic_rotate %0 by %c1_i32 dim 0 : vector<8x128xf32>, i32 -> vector<8x128xf32>
    %c0_1 = arith.constant 0 : index
    %c0_2 = arith.constant 0 : index
    %2 = vector.load %arg1[%c0_1, %c0_2] : memref<8x128xf32, #tpu.memory_space<vmem>>, vector<8x128xf32>
    tpu.vector_store %arg1[%c0_1, %c0_2], %1 {strides = array<i32>} : memref<8x128xf32, #tpu.memory_space<vmem>>, vector<8x128xf32>,
    return
  }
}

module attributes {stable_mosaic.version = 11 : i64} {
  func.func @kernel(%arg0: i32, %arg1: memref<1x16x16x64xf32, #tpu.memory_space<vmem>>, %arg2: memref<2x3x128x384xbf16, #tpu.memory_space<vmem>>, %arg3: memref<2x1x128xf32, #tpu.memory_space<vmem>>, %arg4: memref<2x1x128xf32, #tpu.memory_space<vmem>>, %arg5: memref<2x1x128xf32, #tpu.memory_space<vmem>>, %arg6: memref<3x128x384xbf16, #tpu.memory_space<vmem>>, %arg7: memref<1x128xf32, #tpu.memory_space<vmem>>, %arg8: memref<128x128xf32, #tpu.memory_space<vmem>>, %arg9: memref<2xf32, #tpu.memory_space<smem>>, %arg10: memref<1x16x16x128xbf16, #tpu.memory_space<vmem>>, %arg11: memref<18x32x128xbf16, #tpu.memory_space<vmem>>) attributes {dimension_semantics = [#tpu.dimension_semantics<parallel>], iteration_bounds = array<i64: 2>, scalar_prefetch = 0 : i64, scratch_operands = 1 : i64, tpu.core_type = #tpu.core_type<tc>, window_params = [{transform_indices = @transform_0, window_bounds = array<i64: 1, 16, 16, 64>}, {pipeline_mode = #tpu.pipeline_mode<synchronous>, transform_indices = @transform_1, window_bounds = array<i64: 2, 3, 128, 384>}, {pipeline_mode = #tpu.pipeline_mode<synchronous>, transform_indices = @transform_2, window_bounds = array<i64: 2, 1, 128>}, {pipeline_mode = #tpu.pipeline_mode<synchronous>, transform_indices = @transform_3, window_bounds = array<i64: 2, 1, 128>}, {pipeline_mode = #tpu.pipeline_mode<synchronous>, transform_indices = @transform_4, window_bounds = array<i64: 2, 1, 128>}, {pipeline_mode = #tpu.pipeline_mode<synchronous>, transform_indices = @transform_5, window_bounds = array<i64: 3, 128, 384>}, {pipeline_mode = #tpu.pipeline_mode<synchronous>, transform_indices = @transform_6, window_bounds = array<i64: 1, 128>}, {pipeline_mode = #tpu.pipeline_mode<synchronous>, transform_indices = @transform_7, window_bounds = array<i64: 128, 128>}, {transform_indices = @transform_8, window_bounds = array<i64: 2>}, {transform_indices = @transform_9, window_bounds = array<i64: 1, 16, 16, 128>}]} {
    %cst = arith.constant 0.000000e+00 : bf16
    %0 = vector.broadcast %cst : bf16 to vector<18x8x128xbf16>
    %c0 = arith.constant 0 : index
    %c0_0 = arith.constant 0 : index
    %c0_1 = arith.constant 0 : index
    %1 = vector.load %arg11[%c0, %c0_0, %c0_1] : memref<18x32x128xbf16, #tpu.memory_space<vmem>>, vector<18x8x128xbf16>
    tpu.vector_store %arg11[%c0, %c0_0, %c0_1], %0 {strides = array<i32>} : memref<18x32x128xbf16, #tpu.memory_space<vmem>>, vector<18x8x128xbf16>,
    %cst_2 = arith.constant 0.000000e+00 : bf16
    %2 = vector.broadcast %cst_2 : bf16 to vector<18x8x128xbf16>
    %c0_3 = arith.constant 0 : index
    %c24 = arith.constant 24 : index
    %c0_4 = arith.constant 0 : index
    %3 = vector.load %arg11[%c0_3, %c24, %c0_4] : memref<18x32x128xbf16, #tpu.memory_space<vmem>>, vector<18x8x128xbf16>
    tpu.vector_store %arg11[%c0_3, %c24, %c0_4], %2 {strides = array<i32>} : memref<18x32x128xbf16, #tpu.memory_space<vmem>>, vector<18x8x128xbf16>,
    %cst_5 = arith.constant 0.000000e+00 : bf16
    %4 = vector.broadcast %cst_5 : bf16 to vector<1x32x128xbf16>
    %c0_6 = arith.constant 0 : index
    %c0_7 = arith.constant 0 : index
    %c0_8 = arith.constant 0 : index
    %5 = vector.load %arg11[%c0_6, %c0_7, %c0_8] : memref<18x32x128xbf16, #tpu.memory_space<vmem>>, vector<1x32x128xbf16>
    tpu.vector_store %arg11[%c0_6, %c0_7, %c0_8], %4 {strides = array<i32>} : memref<18x32x128xbf16, #tpu.memory_space<vmem>>, vector<1x32x128xbf16>,
    %c17 = arith.constant 17 : index
    %c0_9 = arith.constant 0 : index
    %c0_10 = arith.constant 0 : index
    %6 = vector.load %arg11[%c17, %c0_9, %c0_10] : memref<18x32x128xbf16, #tpu.memory_space<vmem>>, vector<1x32x128xbf16>
    tpu.vector_store %arg11[%c17, %c0_9, %c0_10], %4 {strides = array<i32>} : memref<18x32x128xbf16, #tpu.memory_space<vmem>>, vector<1x32x128xbf16>,
    %c0_11 = arith.constant 0 : index
    %c0_12 = arith.constant 0 : index
    %c0_13 = arith.constant 0 : index
    %c0_14 = arith.constant 0 : index
    %7 = vector.load %arg1[%c0_11, %c0_12, %c0_13, %c0_14] : memref<1x16x16x64xf32, #tpu.memory_space<vmem>>, vector<1x16x16x64xf32>
    %8 = vector.shape_cast %7 : vector<1x16x16x64xf32> to vector<16x16x64xf32>
    %9 = tpu.concatenate %8, %8 in 2 : vector<16x16x64xf32>, vector<16x16x64xf32> -> vector<16x16x128xf32>
    %10 = arith.truncf %9 : vector<16x16x128xf32> to vector<16x16x128xbf16>
    %c1 = arith.constant 1 : index
    %c8 = arith.constant 8 : index
    %c0_15 = arith.constant 0 : index
    %11 = vector.load %arg11[%c1, %c8, %c0_15] : memref<18x32x128xbf16, #tpu.memory_space<vmem>>, vector<16x16x128xbf16>
    tpu.vector_store %arg11[%c1, %c8, %c0_15], %10 {strides = array<i32>} : memref<18x32x128xbf16, #tpu.memory_space<vmem>>, vector<16x16x128xbf16>,
    %c0_16 = arith.constant 0 : index
    %c0_17 = arith.constant 0 : index
    %12 = vector.load %arg8[%c0_16, %c0_17] : memref<128x128xf32, #tpu.memory_space<vmem>>, vector<128x128xf32>
    %c0_18 = arith.constant 0 : index
    %c0_19 = arith.constant 0 : index
    %c0_20 = arith.constant 0 : index
    %13 = vector.load %arg11[%c0_18, %c0_19, %c0_20] : memref<18x32x128xbf16, #tpu.memory_space<vmem>>, vector<16x32x128xbf16>
    %14 = vector.shape_cast %13 : vector<16x32x128xbf16> to vector<512x128xbf16>
    %c0_21 = arith.constant 0 : index
    %c0_22 = arith.constant 0 : index
    %c0_23 = arith.constant 0 : index
    %c0_24 = arith.constant 0 : index
    %15 = vector.load %arg2[%c0_21, %c0_22, %c0_23, %c0_24] : memref<2x3x128x384xbf16, #tpu.memory_space<vmem>>, vector<1x1x128x384xbf16>
    %16 = vector.shape_cast %15 : vector<1x1x128x384xbf16> to vector<128x384xbf16>
    %cst_25 = arith.constant dense<0.000000e+00> : vector<512x384xf32>
    %17 = tpu.matmul %14, %16, %cst_25 {dimension_numbers = #tpu.dot_dimension_numbers<[1], [0], [0], [1], [0, 0, 1, 1], [], []>} : vector<512x128xbf16>, vector<128x384xbf16>, vector<512x384xf32> -> vector<512x384xf32>
    %c1_26 = arith.constant 1 : index
    %c0_27 = arith.constant 0 : index
    %c0_28 = arith.constant 0 : index
    %18 = vector.load %arg11[%c1_26, %c0_27, %c0_28] : memref<18x32x128xbf16, #tpu.memory_space<vmem>>, vector<16x32x128xbf16>
    %19 = vector.shape_cast %18 : vector<16x32x128xbf16> to vector<512x128xbf16>
    %c0_29 = arith.constant 0 : index
    %c1_30 = arith.constant 1 : index
    %c0_31 = arith.constant 0 : index
    %c0_32 = arith.constant 0 : index
    %20 = vector.load %arg2[%c0_29, %c1_30, %c0_31, %c0_32] : memref<2x3x128x384xbf16, #tpu.memory_space<vmem>>, vector<1x1x128x384xbf16>
    %21 = vector.shape_cast %20 : vector<1x1x128x384xbf16> to vector<128x384xbf16>
    %cst_33 = arith.constant dense<0.000000e+00> : vector<512x384xf32>
    %22 = tpu.matmul %19, %21, %cst_33 {dimension_numbers = #tpu.dot_dimension_numbers<[1], [0], [0], [1], [0, 0, 1, 1], [], []>} : vector<512x128xbf16>, vector<128x384xbf16>, vector<512x384xf32> -> vector<512x384xf32>
    %23 = arith.addf %17, %22 : vector<512x384xf32>
    %c2 = arith.constant 2 : index
    %c0_34 = arith.constant 0 : index
    %c0_35 = arith.constant 0 : index
    %24 = vector.load %arg11[%c2, %c0_34, %c0_35] : memref<18x32x128xbf16, #tpu.memory_space<vmem>>, vector<16x32x128xbf16>
    %25 = vector.shape_cast %24 : vector<16x32x128xbf16> to vector<512x128xbf16>
    %c0_36 = arith.constant 0 : index
    %c2_37 = arith.constant 2 : index
    %c0_38 = arith.constant 0 : index
    %c0_39 = arith.constant 0 : index
    %26 = vector.load %arg2[%c0_36, %c2_37, %c0_38, %c0_39] : memref<2x3x128x384xbf16, #tpu.memory_space<vmem>>, vector<1x1x128x384xbf16>
    %27 = vector.shape_cast %26 : vector<1x1x128x384xbf16> to vector<128x384xbf16>
    %cst_40 = arith.constant dense<0.000000e+00> : vector<512x384xf32>
    %28 = tpu.matmul %25, %27, %cst_40 {dimension_numbers = #tpu.dot_dimension_numbers<[1], [0], [0], [1], [0, 0, 1, 1], [], []>} : vector<512x128xbf16>, vector<128x384xbf16>, vector<512x384xf32> -> vector<512x384xf32>
    %29 = arith.addf %23, %28 : vector<512x384xf32>
    %30 = vector.extract_strided_slice %29 {offsets = [0, 0], sizes = [512, 128], strides = [1, 1]} : vector<512x384xf32> to vector<512x128xf32>
    %31 = vector.extract_strided_slice %30 {offsets = [511, 0], sizes = [1, 128], strides = [1, 1]} : vector<512x128xf32> to vector<1x128xf32>
    %32 = vector.extract_strided_slice %30 {offsets = [0, 0], sizes = [511, 128], strides = [1, 1]} : vector<512x128xf32> to vector<511x128xf32>
    %33 = tpu.concatenate %31, %32 in 0 : vector<1x128xf32>, vector<511x128xf32> -> vector<512x128xf32>
    %34 = vector.extract_strided_slice %29 {offsets = [0, 128], sizes = [512, 128], strides = [1, 1]} : vector<512x384xf32> to vector<512x128xf32>
    %35 = arith.addf %33, %34 : vector<512x128xf32>
    %36 = vector.extract_strided_slice %29 {offsets = [0, 256], sizes = [512, 128], strides = [1, 1]} : vector<512x384xf32> to vector<512x128xf32>
    %37 = vector.extract_strided_slice %36 {offsets = [1, 0], sizes = [511, 128], strides = [1, 1]} : vector<512x128xf32> to vector<511x128xf32>
    %38 = vector.extract_strided_slice %36 {offsets = [0, 0], sizes = [1, 128], strides = [1, 1]} : vector<512x128xf32> to vector<1x128xf32>
    %39 = tpu.concatenate %37, %38 in 0 : vector<511x128xf32>, vector<1x128xf32> -> vector<512x128xf32>
    %40 = arith.addf %35, %39 : vector<512x128xf32>
    %41 = vector.shape_cast %40 : vector<512x128xf32> to vector<16x32x128xf32>
    %42 = vector.extract_strided_slice %41 {offsets = [0, 8, 0], sizes = [16, 16, 128], strides = [1, 1, 1]} : vector<16x32x128xf32> to vector<16x16x128xf32>
    %c0_41 = arith.constant 0 : index
    %c0_42 = arith.constant 0 : index
    %c0_43 = arith.constant 0 : index
    %43 = vector.load %arg3[%c0_41, %c0_42, %c0_43] : memref<2x1x128xf32, #tpu.memory_space<vmem>>, vector<1x1x128xf32>
    %44 = vector.shape_cast %43 : vector<1x1x128xf32> to vector<1x128xf32>
    %45 = vector.shape_cast %44 : vector<1x128xf32> to vector<1x1x128xf32>
    %46 = vector.broadcast %45 : vector<1x1x128xf32> to vector<16x16x128xf32>
    %47 = arith.addf %42, %46 : vector<16x16x128xf32>
    %cst_44 = arith.constant dense<0.000000e+00> : vector<128xf32>
    %48 = vector.multi_reduction <add>, %47, %cst_44 [0, 1] : vector<16x16x128xf32> to vector<128xf32>
    %49 = vector.shape_cast %48 : vector<128xf32> to vector<1x1x128xf32>
    %50 = vector.shape_cast %49 : vector<1x1x128xf32> to vector<1x128xf32>
    %51 = arith.mulf %47, %47 : vector<16x16x128xf32>
    %cst_45 = arith.constant dense<0.000000e+00> : vector<128xf32>
    %52 = vector.multi_reduction <add>, %51, %cst_45 [0, 1] : vector<16x16x128xf32> to vector<128xf32>
    %53 = vector.shape_cast %52 : vector<128xf32> to vector<1x1x128xf32>
    %54 = vector.shape_cast %53 : vector<1x1x128xf32> to vector<1x128xf32>
    %55 = tpu.concatenate %50, %54 in 0 : vector<1x128xf32>, vector<1x128xf32> -> vector<2x128xf32>
    %cst_46 = arith.constant dense<0.000000e+00> : vector<2x128xf32>
    %56 = tpu.matmul %55, %12, %cst_46 {dimension_numbers = #tpu.dot_dimension_numbers<[1], [0], [0], [1], [0, 0, 1, 1], [], []>} : vector<2x128xf32>, vector<128x128xf32>, vector<2x128xf32> -> vector<2x128xf32>
    %57 = vector.extract_strided_slice %56 {offsets = [0, 0], sizes = [1, 128], strides = [1, 1]} : vector<2x128xf32> to vector<1x128xf32>
    %cst_47 = arith.constant 0.001953125 : f32
    %58 = vector.broadcast %cst_47 : f32 to vector<1x128xf32>
    %59 = arith.mulf %57, %58 : vector<1x128xf32>
    %60 = vector.extract_strided_slice %56 {offsets = [1, 0], sizes = [1, 128], strides = [1, 1]} : vector<2x128xf32> to vector<1x128xf32>
    %cst_48 = arith.constant 0.001953125 : f32
    %61 = vector.broadcast %cst_48 : f32 to vector<1x128xf32>
    %62 = arith.mulf %60, %61 : vector<1x128xf32>
    %63 = arith.mulf %59, %59 : vector<1x128xf32>
    %64 = arith.subf %62, %63 : vector<1x128xf32>
    %cst_49 = arith.constant 0.000000e+00 : f32
    %65 = vector.broadcast %cst_49 : f32 to vector<1x128xf32>
    %66 = arith.maximumf %64, %65 : vector<1x128xf32>
    %cst_50 = arith.constant 9.99999974E-6 : f32
    %67 = vector.broadcast %cst_50 : f32 to vector<1x128xf32>
    %68 = arith.addf %66, %67 : vector<1x128xf32>
    %69 = math.rsqrt %68 : vector<1x128xf32>
    %c0_51 = arith.constant 0 : index
    %c0_52 = arith.constant 0 : index
    %c0_53 = arith.constant 0 : index
    %70 = vector.load %arg4[%c0_51, %c0_52, %c0_53] : memref<2x1x128xf32, #tpu.memory_space<vmem>>, vector<1x1x128xf32>
    %71 = vector.shape_cast %70 : vector<1x1x128xf32> to vector<1x128xf32>
    %72 = arith.mulf %71, %69 : vector<1x128xf32>
    %c0_54 = arith.constant 0 : index
    %c0_55 = arith.constant 0 : index
    %c0_56 = arith.constant 0 : index
    %73 = vector.load %arg5[%c0_54, %c0_55, %c0_56] : memref<2x1x128xf32, #tpu.memory_space<vmem>>, vector<1x1x128xf32>
    %74 = vector.shape_cast %73 : vector<1x1x128xf32> to vector<1x128xf32>
    %75 = arith.mulf %59, %72 : vector<1x128xf32>
    %76 = arith.subf %74, %75 : vector<1x128xf32>
    %77 = vector.shape_cast %72 : vector<1x128xf32> to vector<1x1x128xf32>
    %78 = vector.broadcast %77 : vector<1x1x128xf32> to vector<16x16x128xf32>
    %79 = arith.mulf %47, %78 : vector<16x16x128xf32>
    %80 = vector.shape_cast %76 : vector<1x128xf32> to vector<1x1x128xf32>
    %81 = vector.broadcast %80 : vector<1x1x128xf32> to vector<16x16x128xf32>
    %82 = arith.addf %79, %81 : vector<16x16x128xf32>
    %cst_57 = arith.constant 0.000000e+00 : f32
    %83 = vector.broadcast %cst_57 : f32 to vector<16x16x128xf32>
    %84 = arith.maximumf %82, %83 : vector<16x16x128xf32>
    %85 = arith.truncf %84 : vector<16x16x128xf32> to vector<16x16x128xbf16>
    %c1_58 = arith.constant 1 : index
    %c8_59 = arith.constant 8 : index
    %c0_60 = arith.constant 0 : index
    %86 = vector.load %arg11[%c1_58, %c8_59, %c0_60] : memref<18x32x128xbf16, #tpu.memory_space<vmem>>, vector<16x16x128xbf16>
    tpu.vector_store %arg11[%c1_58, %c8_59, %c0_60], %85 {strides = array<i32>} : memref<18x32x128xbf16, #tpu.memory_space<vmem>>, vector<16x16x128xbf16>,
    %c0_61 = arith.constant 0 : index
    %c0_62 = arith.constant 0 : index
    %c0_63 = arith.constant 0 : index
    %87 = vector.load %arg11[%c0_61, %c0_62, %c0_63] : memref<18x32x128xbf16, #tpu.memory_space<vmem>>, vector<16x32x128xbf16>
    %88 = vector.shape_cast %87 : vector<16x32x128xbf16> to vector<512x128xbf16>
    %c1_64 = arith.constant 1 : index
    %c0_65 = arith.constant 0 : index
    %c0_66 = arith.constant 0 : index
    %c0_67 = arith.constant 0 : index
    %89 = vector.load %arg2[%c1_64, %c0_65, %c0_66, %c0_67] : memref<2x3x128x384xbf16, #tpu.memory_space<vmem>>, vector<1x1x128x384xbf16>
    %90 = vector.shape_cast %89 : vector<1x1x128x384xbf16> to vector<128x384xbf16>
    %cst_68 = arith.constant dense<0.000000e+00> : vector<512x384xf32>
    %91 = tpu.matmul %88, %90, %cst_68 {dimension_numbers = #tpu.dot_dimension_numbers<[1], [0], [0], [1], [0, 0, 1, 1], [], []>} : vector<512x128xbf16>, vector<128x384xbf16>, vector<512x384xf32> -> vector<512x384xf32>
    %c1_69 = arith.constant 1 : index
    %c0_70 = arith.constant 0 : index
    %c0_71 = arith.constant 0 : index
    %92 = vector.load %arg11[%c1_69, %c0_70, %c0_71] : memref<18x32x128xbf16, #tpu.memory_space<vmem>>, vector<16x32x128xbf16>
    %93 = vector.shape_cast %92 : vector<16x32x128xbf16> to vector<512x128xbf16>
    %c1_72 = arith.constant 1 : index
    %c1_73 = arith.constant 1 : index
    %c0_74 = arith.constant 0 : index
    %c0_75 = arith.constant 0 : index
    %94 = vector.load %arg2[%c1_72, %c1_73, %c0_74, %c0_75] : memref<2x3x128x384xbf16, #tpu.memory_space<vmem>>, vector<1x1x128x384xbf16>
    %95 = vector.shape_cast %94 : vector<1x1x128x384xbf16> to vector<128x384xbf16>
    %cst_76 = arith.constant dense<0.000000e+00> : vector<512x384xf32>
    %96 = tpu.matmul %93, %95, %cst_76 {dimension_numbers = #tpu.dot_dimension_numbers<[1], [0], [0], [1], [0, 0, 1, 1], [], []>} : vector<512x128xbf16>, vector<128x384xbf16>, vector<512x384xf32> -> vector<512x384xf32>
    %97 = arith.addf %91, %96 : vector<512x384xf32>
    %c2_77 = arith.constant 2 : index
    %c0_78 = arith.constant 0 : index
    %c0_79 = arith.constant 0 : index
    %98 = vector.load %arg11[%c2_77, %c0_78, %c0_79] : memref<18x32x128xbf16, #tpu.memory_space<vmem>>, vector<16x32x128xbf16>
    %99 = vector.shape_cast %98 : vector<16x32x128xbf16> to vector<512x128xbf16>
    %c1_80 = arith.constant 1 : index
    %c2_81 = arith.constant 2 : index
    %c0_82 = arith.constant 0 : index
    %c0_83 = arith.constant 0 : index
    %100 = vector.load %arg2[%c1_80, %c2_81, %c0_82, %c0_83] : memref<2x3x128x384xbf16, #tpu.memory_space<vmem>>, vector<1x1x128x384xbf16>
    %101 = vector.shape_cast %100 : vector<1x1x128x384xbf16> to vector<128x384xbf16>
    %cst_84 = arith.constant dense<0.000000e+00> : vector<512x384xf32>
    %102 = tpu.matmul %99, %101, %cst_84 {dimension_numbers = #tpu.dot_dimension_numbers<[1], [0], [0], [1], [0, 0, 1, 1], [], []>} : vector<512x128xbf16>, vector<128x384xbf16>, vector<512x384xf32> -> vector<512x384xf32>
    %103 = arith.addf %97, %102 : vector<512x384xf32>
    %104 = vector.extract_strided_slice %103 {offsets = [0, 0], sizes = [512, 128], strides = [1, 1]} : vector<512x384xf32> to vector<512x128xf32>
    %105 = vector.extract_strided_slice %104 {offsets = [511, 0], sizes = [1, 128], strides = [1, 1]} : vector<512x128xf32> to vector<1x128xf32>
    %106 = vector.extract_strided_slice %104 {offsets = [0, 0], sizes = [511, 128], strides = [1, 1]} : vector<512x128xf32> to vector<511x128xf32>
    %107 = tpu.concatenate %105, %106 in 0 : vector<1x128xf32>, vector<511x128xf32> -> vector<512x128xf32>
    %108 = vector.extract_strided_slice %103 {offsets = [0, 128], sizes = [512, 128], strides = [1, 1]} : vector<512x384xf32> to vector<512x128xf32>
    %109 = arith.addf %107, %108 : vector<512x128xf32>
    %110 = vector.extract_strided_slice %103 {offsets = [0, 256], sizes = [512, 128], strides = [1, 1]} : vector<512x384xf32> to vector<512x128xf32>
    %111 = vector.extract_strided_slice %110 {offsets = [1, 0], sizes = [511, 128], strides = [1, 1]} : vector<512x128xf32> to vector<511x128xf32>
    %112 = vector.extract_strided_slice %110 {offsets = [0, 0], sizes = [1, 128], strides = [1, 1]} : vector<512x128xf32> to vector<1x128xf32>
    %113 = tpu.concatenate %111, %112 in 0 : vector<511x128xf32>, vector<1x128xf32> -> vector<512x128xf32>
    %114 = arith.addf %109, %113 : vector<512x128xf32>
    %115 = vector.shape_cast %114 : vector<512x128xf32> to vector<16x32x128xf32>
    %116 = vector.extract_strided_slice %115 {offsets = [0, 8, 0], sizes = [16, 16, 128], strides = [1, 1, 1]} : vector<16x32x128xf32> to vector<16x16x128xf32>
    %c1_85 = arith.constant 1 : index
    %c0_86 = arith.constant 0 : index
    %c0_87 = arith.constant 0 : index
    %117 = vector.load %arg3[%c1_85, %c0_86, %c0_87] : memref<2x1x128xf32, #tpu.memory_space<vmem>>, vector<1x1x128xf32>
    %118 = vector.shape_cast %117 : vector<1x1x128xf32> to vector<1x128xf32>
    %119 = vector.shape_cast %118 : vector<1x128xf32> to vector<1x1x128xf32>
    %120 = vector.broadcast %119 : vector<1x1x128xf32> to vector<16x16x128xf32>
    %121 = arith.addf %116, %120 : vector<16x16x128xf32>
    %cst_88 = arith.constant dense<0.000000e+00> : vector<128xf32>
    %122 = vector.multi_reduction <add>, %121, %cst_88 [0, 1] : vector<16x16x128xf32> to vector<128xf32>
    %123 = vector.shape_cast %122 : vector<128xf32> to vector<1x1x128xf32>
    %124 = vector.shape_cast %123 : vector<1x1x128xf32> to vector<1x128xf32>
    %125 = arith.mulf %121, %121 : vector<16x16x128xf32>
    %cst_89 = arith.constant dense<0.000000e+00> : vector<128xf32>
    %126 = vector.multi_reduction <add>, %125, %cst_89 [0, 1] : vector<16x16x128xf32> to vector<128xf32>
    %127 = vector.shape_cast %126 : vector<128xf32> to vector<1x1x128xf32>
    %128 = vector.shape_cast %127 : vector<1x1x128xf32> to vector<1x128xf32>
    %129 = tpu.concatenate %124, %128 in 0 : vector<1x128xf32>, vector<1x128xf32> -> vector<2x128xf32>
    %cst_90 = arith.constant dense<0.000000e+00> : vector<2x128xf32>
    %130 = tpu.matmul %129, %12, %cst_90 {dimension_numbers = #tpu.dot_dimension_numbers<[1], [0], [0], [1], [0, 0, 1, 1], [], []>} : vector<2x128xf32>, vector<128x128xf32>, vector<2x128xf32> -> vector<2x128xf32>
    %131 = vector.extract_strided_slice %130 {offsets = [0, 0], sizes = [1, 128], strides = [1, 1]} : vector<2x128xf32> to vector<1x128xf32>
    %cst_91 = arith.constant 0.001953125 : f32
    %132 = vector.broadcast %cst_91 : f32 to vector<1x128xf32>
    %133 = arith.mulf %131, %132 : vector<1x128xf32>
    %134 = vector.extract_strided_slice %130 {offsets = [1, 0], sizes = [1, 128], strides = [1, 1]} : vector<2x128xf32> to vector<1x128xf32>
    %cst_92 = arith.constant 0.001953125 : f32
    %135 = vector.broadcast %cst_92 : f32 to vector<1x128xf32>
    %136 = arith.mulf %134, %135 : vector<1x128xf32>
    %137 = arith.mulf %133, %133 : vector<1x128xf32>
    %138 = arith.subf %136, %137 : vector<1x128xf32>
    %cst_93 = arith.constant 0.000000e+00 : f32
    %139 = vector.broadcast %cst_93 : f32 to vector<1x128xf32>
    %140 = arith.maximumf %138, %139 : vector<1x128xf32>
    %cst_94 = arith.constant 9.99999974E-6 : f32
    %141 = vector.broadcast %cst_94 : f32 to vector<1x128xf32>
    %142 = arith.addf %140, %141 : vector<1x128xf32>
    %143 = math.rsqrt %142 : vector<1x128xf32>
    %c1_95 = arith.constant 1 : index
    %c0_96 = arith.constant 0 : index
    %c0_97 = arith.constant 0 : index
    %144 = vector.load %arg4[%c1_95, %c0_96, %c0_97] : memref<2x1x128xf32, #tpu.memory_space<vmem>>, vector<1x1x128xf32>
    %145 = vector.shape_cast %144 : vector<1x1x128xf32> to vector<1x128xf32>
    %146 = arith.mulf %145, %143 : vector<1x128xf32>
    %c1_98 = arith.constant 1 : index
    %c0_99 = arith.constant 0 : index
    %c0_100 = arith.constant 0 : index
    %147 = vector.load %arg5[%c1_98, %c0_99, %c0_100] : memref<2x1x128xf32, #tpu.memory_space<vmem>>, vector<1x1x128xf32>
    %148 = vector.shape_cast %147 : vector<1x1x128xf32> to vector<1x128xf32>
    %149 = arith.mulf %133, %146 : vector<1x128xf32>
    %150 = arith.subf %148, %149 : vector<1x128xf32>
    %151 = vector.shape_cast %146 : vector<1x128xf32> to vector<1x1x128xf32>
    %152 = vector.broadcast %151 : vector<1x1x128xf32> to vector<16x16x128xf32>
    %153 = arith.mulf %121, %152 : vector<16x16x128xf32>
    %154 = vector.shape_cast %150 : vector<1x128xf32> to vector<1x1x128xf32>
    %155 = vector.broadcast %154 : vector<1x1x128xf32> to vector<16x16x128xf32>
    %156 = arith.addf %153, %155 : vector<16x16x128xf32>
    %cst_101 = arith.constant 0.000000e+00 : f32
    %157 = vector.broadcast %cst_101 : f32 to vector<16x16x128xf32>
    %158 = arith.maximumf %156, %157 : vector<16x16x128xf32>
    %159 = arith.truncf %158 : vector<16x16x128xf32> to vector<16x16x128xbf16>
    %c1_102 = arith.constant 1 : index
    %c8_103 = arith.constant 8 : index
    %c0_104 = arith.constant 0 : index
    %160 = vector.load %arg11[%c1_102, %c8_103, %c0_104] : memref<18x32x128xbf16, #tpu.memory_space<vmem>>, vector<16x16x128xbf16>
    tpu.vector_store %arg11[%c1_102, %c8_103, %c0_104], %159 {strides = array<i32>} : memref<18x32x128xbf16, #tpu.memory_space<vmem>>, vector<16x16x128xbf16>,
    %c0_105 = arith.constant 0 : index
    %c0_106 = arith.constant 0 : index
    %c0_107 = arith.constant 0 : index
    %161 = vector.load %arg11[%c0_105, %c0_106, %c0_107] : memref<18x32x128xbf16, #tpu.memory_space<vmem>>, vector<16x32x128xbf16>
    %162 = vector.shape_cast %161 : vector<16x32x128xbf16> to vector<512x128xbf16>
    %c0_108 = arith.constant 0 : index
    %c0_109 = arith.constant 0 : index
    %c0_110 = arith.constant 0 : index
    %163 = vector.load %arg6[%c0_108, %c0_109, %c0_110] : memref<3x128x384xbf16, #tpu.memory_space<vmem>>, vector<1x128x384xbf16>
    %164 = vector.shape_cast %163 : vector<1x128x384xbf16> to vector<128x384xbf16>
    %cst_111 = arith.constant dense<0.000000e+00> : vector<512x384xf32>
    %165 = tpu.matmul %162, %164, %cst_111 {dimension_numbers = #tpu.dot_dimension_numbers<[1], [0], [0], [1], [0, 0, 1, 1], [], []>} : vector<512x128xbf16>, vector<128x384xbf16>, vector<512x384xf32> -> vector<512x384xf32>
    %c1_112 = arith.constant 1 : index
    %c0_113 = arith.constant 0 : index
    %c0_114 = arith.constant 0 : index
    %166 = vector.load %arg11[%c1_112, %c0_113, %c0_114] : memref<18x32x128xbf16, #tpu.memory_space<vmem>>, vector<16x32x128xbf16>
    %167 = vector.shape_cast %166 : vector<16x32x128xbf16> to vector<512x128xbf16>
    %c1_115 = arith.constant 1 : index
    %c0_116 = arith.constant 0 : index
    %c0_117 = arith.constant 0 : index
    %168 = vector.load %arg6[%c1_115, %c0_116, %c0_117] : memref<3x128x384xbf16, #tpu.memory_space<vmem>>, vector<1x128x384xbf16>
    %169 = vector.shape_cast %168 : vector<1x128x384xbf16> to vector<128x384xbf16>
    %cst_118 = arith.constant dense<0.000000e+00> : vector<512x384xf32>
    %170 = tpu.matmul %167, %169, %cst_118 {dimension_numbers = #tpu.dot_dimension_numbers<[1], [0], [0], [1], [0, 0, 1, 1], [], []>} : vector<512x128xbf16>, vector<128x384xbf16>, vector<512x384xf32> -> vector<512x384xf32>
    %171 = arith.addf %165, %170 : vector<512x384xf32>
    %c2_119 = arith.constant 2 : index
    %c0_120 = arith.constant 0 : index
    %c0_121 = arith.constant 0 : index
    %172 = vector.load %arg11[%c2_119, %c0_120, %c0_121] : memref<18x32x128xbf16, #tpu.memory_space<vmem>>, vector<16x32x128xbf16>
    %173 = vector.shape_cast %172 : vector<16x32x128xbf16> to vector<512x128xbf16>
    %c2_122 = arith.constant 2 : index
    %c0_123 = arith.constant 0 : index
    %c0_124 = arith.constant 0 : index
    %174 = vector.load %arg6[%c2_122, %c0_123, %c0_124] : memref<3x128x384xbf16, #tpu.memory_space<vmem>>, vector<1x128x384xbf16>
    %175 = vector.shape_cast %174 : vector<1x128x384xbf16> to vector<128x384xbf16>
    %cst_125 = arith.constant dense<0.000000e+00> : vector<512x384xf32>
    %176 = tpu.matmul %173, %175, %cst_125 {dimension_numbers = #tpu.dot_dimension_numbers<[1], [0], [0], [1], [0, 0, 1, 1], [], []>} : vector<512x128xbf16>, vector<128x384xbf16>, vector<512x384xf32> -> vector<512x384xf32>
    %177 = arith.addf %171, %176 : vector<512x384xf32>
    %178 = vector.extract_strided_slice %177 {offsets = [0, 0], sizes = [512, 128], strides = [1, 1]} : vector<512x384xf32> to vector<512x128xf32>
    %179 = vector.extract_strided_slice %178 {offsets = [511, 0], sizes = [1, 128], strides = [1, 1]} : vector<512x128xf32> to vector<1x128xf32>
    %180 = vector.extract_strided_slice %178 {offsets = [0, 0], sizes = [511, 128], strides = [1, 1]} : vector<512x128xf32> to vector<511x128xf32>
    %181 = tpu.concatenate %179, %180 in 0 : vector<1x128xf32>, vector<511x128xf32> -> vector<512x128xf32>
    %182 = vector.extract_strided_slice %177 {offsets = [0, 128], sizes = [512, 128], strides = [1, 1]} : vector<512x384xf32> to vector<512x128xf32>
    %183 = arith.addf %181, %182 : vector<512x128xf32>
    %184 = vector.extract_strided_slice %177 {offsets = [0, 256], sizes = [512, 128], strides = [1, 1]} : vector<512x384xf32> to vector<512x128xf32>
    %185 = vector.extract_strided_slice %184 {offsets = [1, 0], sizes = [511, 128], strides = [1, 1]} : vector<512x128xf32> to vector<511x128xf32>
    %186 = vector.extract_strided_slice %184 {offsets = [0, 0], sizes = [1, 128], strides = [1, 1]} : vector<512x128xf32> to vector<1x128xf32>
    %187 = tpu.concatenate %185, %186 in 0 : vector<511x128xf32>, vector<1x128xf32> -> vector<512x128xf32>
    %188 = arith.addf %183, %187 : vector<512x128xf32>
    %189 = vector.shape_cast %188 : vector<512x128xf32> to vector<16x32x128xf32>
    %190 = vector.extract_strided_slice %189 {offsets = [0, 8, 0], sizes = [16, 16, 128], strides = [1, 1, 1]} : vector<16x32x128xf32> to vector<16x16x128xf32>
    %c0_126 = arith.constant 0 : index
    %c0_127 = arith.constant 0 : index
    %191 = vector.load %arg7[%c0_126, %c0_127] : memref<1x128xf32, #tpu.memory_space<vmem>>, vector<1x128xf32>
    %192 = vector.shape_cast %191 : vector<1x128xf32> to vector<1x1x128xf32>
    %193 = vector.broadcast %192 : vector<1x1x128xf32> to vector<16x16x128xf32>
    %194 = arith.addf %190, %193 : vector<16x16x128xf32>
    %195 = tpu.iota {dimensions = array<i32: 2>} : vector<1x1x128xi32>
    %c8_i32 = arith.constant 8 : i32
    %196 = vector.broadcast %c8_i32 : i32 to vector<1x1x128xi32>
    %197 = arith.cmpi sge, %195, %196 : vector<1x1x128xi32>
    %c9_i32 = arith.constant 9 : i32
    %198 = vector.broadcast %c9_i32 : i32 to vector<1x1x128xi32>
    %199 = arith.cmpi slt, %195, %198 : vector<1x1x128xi32>
    %200 = arith.andi %197, %199 : vector<1x1x128xi1>
    %c9_i32_128 = arith.constant 9 : i32
    %201 = vector.broadcast %c9_i32_128 : i32 to vector<1x1x128xi32>
    %202 = arith.cmpi sge, %195, %201 : vector<1x1x128xi32>
    %c13_i32 = arith.constant 13 : i32
    %203 = vector.broadcast %c13_i32 : i32 to vector<1x1x128xi32>
    %204 = arith.cmpi slt, %195, %203 : vector<1x1x128xi32>
    %205 = arith.andi %202, %204 : vector<1x1x128xi1>
    %c0_129 = arith.constant 0 : index
    %206 = memref.load %arg9[%c0_129] : memref<2xf32, #tpu.memory_space<smem>>
    %207 = vector.broadcast %206 : f32 to vector<16x16x128xf32>
    %208 = arith.mulf %194, %207 : vector<16x16x128xf32>
    %cst_130 = arith.constant 0.000000e+00 : f32
    %209 = vector.broadcast %cst_130 : f32 to vector<16x16x128xf32>
    %210 = arith.maximumf %208, %209 : vector<16x16x128xf32>
    %c1_131 = arith.constant 1 : index
    %211 = memref.load %arg9[%c1_131] : memref<2xf32, #tpu.memory_space<smem>>
    %212 = vector.broadcast %211 : f32 to vector<16x16x128xf32>
    %213 = arith.mulf %210, %212 : vector<16x16x128xf32>
    %214 = arith.negf %194 : vector<16x16x128xf32>
    %215 = math.exp %214 : vector<16x16x128xf32>
    %cst_132 = arith.constant 1.000000e+00 : f32
    %216 = vector.broadcast %cst_132 : f32 to vector<16x16x128xf32>
    %217 = arith.addf %216, %215 : vector<16x16x128xf32>
    %218 = arith.divf %216, %217 : vector<16x16x128xf32>
    %219 = vector.shape_cast %200 : vector<1x1x128xi1> to vector<1x1x128xi1>
    %220 = vector.broadcast %219 : vector<1x1x128xi1> to vector<16x16x128xi1>
    %221 = arith.select %220, %218, %194 : vector<16x16x128xi1>, vector<16x16x128xf32>
    %222 = vector.shape_cast %205 : vector<1x1x128xi1> to vector<1x1x128xi1>
    %223 = vector.broadcast %222 : vector<1x1x128xi1> to vector<16x16x128xi1>
    %224 = arith.select %223, %213, %221 : vector<16x16x128xi1>, vector<16x16x128xf32>
    %225 = arith.truncf %224 : vector<16x16x128xf32> to vector<16x16x128xbf16>
    %c0_133 = arith.constant 0 : index
    %c0_134 = arith.constant 0 : index
    %c0_135 = arith.constant 0 : index
    %c0_136 = arith.constant 0 : index
    %226 = vector.load %arg10[%c0_133, %c0_134, %c0_135, %c0_136] : memref<1x16x16x128xbf16, #tpu.memory_space<vmem>>, vector<1x16x16x128xbf16>
    %227 = vector.shape_cast %226 : vector<1x16x16x128xbf16> to vector<16x16x128xbf16>
    %228 = vector.shape_cast %225 : vector<16x16x128xbf16> to vector<1x16x16x128xbf16>
    tpu.vector_store %arg10[%c0_133, %c0_134, %c0_135, %c0_136], %228 {strides = array<i32>} : memref<1x16x16x128xbf16, #tpu.memory_space<vmem>>, vector<1x16x16x128xbf16>,
    return
  }
  func.func @transform_0(%arg0: i32) -> (i32, i32, i32, i32) {
    %c0_i32 = arith.constant 0 : i32
    %c0_i32_0 = arith.constant 0 : i32
    %c0_i32_1 = arith.constant 0 : i32
    %c0_i32_2 = arith.constant 0 : i32
    return %arg0, %c0_i32, %c0_i32_0, %c0_i32_1 : i32, i32, i32, i32
  }
  func.func @transform_1(%arg0: i32) -> (i32, i32, i32, i32) {
    %c0_i32 = arith.constant 0 : i32
    %c0_i32_0 = arith.constant 0 : i32
    %c0_i32_1 = arith.constant 0 : i32
    %c0_i32_2 = arith.constant 0 : i32
    %c0_i32_3 = arith.constant 0 : i32
    return %c0_i32, %c0_i32_0, %c0_i32_1, %c0_i32_2 : i32, i32, i32, i32
  }
  func.func @transform_2(%arg0: i32) -> (i32, i32, i32) {
    %c0_i32 = arith.constant 0 : i32
    %c0_i32_0 = arith.constant 0 : i32
    %c0_i32_1 = arith.constant 0 : i32
    %c0_i32_2 = arith.constant 0 : i32
    return %c0_i32, %c0_i32_0, %c0_i32_1 : i32, i32, i32
  }
  func.func @transform_3(%arg0: i32) -> (i32, i32, i32) {
    %c0_i32 = arith.constant 0 : i32
    %c0_i32_0 = arith.constant 0 : i32
    %c0_i32_1 = arith.constant 0 : i32
    %c0_i32_2 = arith.constant 0 : i32
    return %c0_i32, %c0_i32_0, %c0_i32_1 : i32, i32, i32
  }
  func.func @transform_4(%arg0: i32) -> (i32, i32, i32) {
    %c0_i32 = arith.constant 0 : i32
    %c0_i32_0 = arith.constant 0 : i32
    %c0_i32_1 = arith.constant 0 : i32
    %c0_i32_2 = arith.constant 0 : i32
    return %c0_i32, %c0_i32_0, %c0_i32_1 : i32, i32, i32
  }
  func.func @transform_5(%arg0: i32) -> (i32, i32, i32) {
    %c0_i32 = arith.constant 0 : i32
    %c0_i32_0 = arith.constant 0 : i32
    %c0_i32_1 = arith.constant 0 : i32
    %c0_i32_2 = arith.constant 0 : i32
    return %c0_i32, %c0_i32_0, %c0_i32_1 : i32, i32, i32
  }
  func.func @transform_6(%arg0: i32) -> (i32, i32) {
    %c0_i32 = arith.constant 0 : i32
    %c0_i32_0 = arith.constant 0 : i32
    %c0_i32_1 = arith.constant 0 : i32
    return %c0_i32, %c0_i32_0 : i32, i32
  }
  func.func @transform_7(%arg0: i32) -> (i32, i32) {
    %c0_i32 = arith.constant 0 : i32
    %c0_i32_0 = arith.constant 0 : i32
    %c0_i32_1 = arith.constant 0 : i32
    return %c0_i32, %c0_i32_0 : i32, i32
  }
  func.func @transform_8(%arg0: i32) -> i32 {
    %c0_i32 = arith.constant 0 : i32
    %c0_i32_0 = arith.constant 0 : i32
    return %c0_i32 : i32
  }
  func.func @transform_9(%arg0: i32) -> (i32, i32, i32, i32) {
    %c0_i32 = arith.constant 0 : i32
    %c0_i32_0 = arith.constant 0 : i32
    %c0_i32_1 = arith.constant 0 : i32
    %c0_i32_2 = arith.constant 0 : i32
    return %arg0, %c0_i32, %c0_i32_0, %c0_i32_1 : i32, i32, i32, i32
  }
}

</mosaic_0001>

<bundles_post_ra>
// kernel: tpu_custom_call.1
= control target key start
LH: loop header
LB: loop body
LE: loop exit
PB: predicated region body
PF: predicated region fallthrough
CT: control target
= control target key end

     0   :  { %6 = vsyncpa [#allocation3], 0  ;;  %s125_s0 = inlined_call_operand.hbm [shape: f32[8,128], index: 0, kind: input, shape index: {}]   ;;  %s126_s1 = inlined_call_operand.hbm [shape: f32[8,128], index: 1, kind: output, shape index: {}]  }
   0x1   :  { %7 = vsyncpa [#allocation4], 0  ;;  %s89_s6 = smov [#allocation2]   ;;  %s41_s10 = scalar_lea.hbm %s125_s0, 128 }
   0x2   :  { %s14_s7 = sshll.u32 %s89_s6, 4  ;;  %p42_p0 = scmp.ne.s32.totalorder %s125_s0, %s41_s10  ;;  %s15_s7 = int_to_ptr.vmem [resolvable:$true] %s14_s7 }
   0x3   :  { %p45_p1 = scmp.lt.u32.totalorder %s41_s10, %s125_s0 }
   0x5   :  { %p47_p2 = pnand %p45_p1, %p42_p0 }
   0x7   :  { %50 = shalt.err (!%p47_p2)
}
   0x8   :  { %s51_s15 = scalar_lea.vmem %s15_s7, 128  ;;  %p56_p4 = scmp.lt.s32.totalorder %s15_s7, %s15_s7 }
   0x9   :  { %p52_p3 = scmp.ne.s32.totalorder %s15_s7, %s51_s15  ;;  %p57_p5 = scmp.lt.s32.totalorder %s51_s15, %s51_s15 }
   0xb   :  { %p58_p6 = por %p57_p5, %p56_p4 }
   0xd   :  { %p59_p7 = pnand %p58_p6, %p52_p3 }
   0xf   :  { %62 = shalt.err (!%p59_p7)
}
  0x10   :  { %17 = dma.hbm_to_vmem [thread:$0]  %s125_s0, 128, %s15_s7, [#allocation3]  }
  0x11   :  { %85 = dma.done.wait [#allocation3], 128  }
  0x12   :  { %86 = vsyncadd [#allocation3], 4294967168  ;;  %s90_s18 = smov [#allocation5]   ;;  %v21_v0 = vld [vmem:[#allocation2] sm:$0xff] }
  0x13   :  { %s30_s19 = sshll.u32 %s90_s18, 4  ;;  %v22_v1 = vrot.slane %v21_v0, 7  ;;  %s31_s19 = int_to_ptr.vmem [resolvable:$true] %s30_s19 }
  0x14   :  { %s63_s20 = scalar_lea.vmem %s31_s19, 128  ;;  %p68_p9 = scmp.lt.s32.totalorder %s31_s19, %s31_s19 }
  0x15   :  { %23 = vst [vmem:[#allocation5] sm:$0xff] %v22_v1  ;;  %p64_p8 = scmp.ne.s32.totalorder %s31_s19, %s63_s20  ;;  %p69_p10 = scmp.lt.s32.totalorder %s63_s20, %s63_s20 }
  0x17   :  { %p70_p11 = por %p69_p10, %p68_p9 }
  0x19   :  { %p71_p12 = pnand %p70_p11, %p64_p8 }
  0x1b   :  { %74 = shalt.err (!%p71_p12)
}
  0x1c   :  { %s75_s23 = scalar_lea.hbm %s126_s1, 128 }
  0x1d   :  { %p76_p13 = scmp.ne.s32.totalorder %s126_s1, %s75_s23  ;;  %p79_p0 = scmp.lt.u32.totalorder %s75_s23, %s126_s1 }
  0x1f   :  { %p81_p1 = pnand %p79_p0, %p76_p13 }
  0x21   :  { %84 = shalt.err (!%p81_p1)
}
  0x22   :  { %33 = dma.vmem_to_hbm [thread:$0]  %s31_s19, 128, %s126_s1, [#allocation4]  }
  0x23   :  { %87 = dma.done.wait [#allocation4], 128  }
  0x24   :  { %88 = vsyncadd [#allocation4], 4294967168 }
  0x25   :  { %37 = vsyncpa [#allocation3], 1 }
  0x26   :  { %38 = vsyncpa [#allocation4], 1 }

// kernel: tpu_custom_call.1
= control target key start
LH: loop header
LB: loop body
LE: loop exit
PB: predicated region body
PF: predicated region fallthrough
CT: control target
= control target key end

     0   :  { %s18226_s0 = inlined_call_operand.hbm [shape: f32[2,16,16,64], index: 0, kind: input, shape index: {}]   ;;  %s18227_s1 = inlined_call_operand.hbm [shape: bf16[2,3,128,384], index: 1, kind: input, shape index: {}]   ;;  %s18228_s2 = inlined_call_operand.vmem [shape: f32[2,1,128], index: 2, kind: input, shape index: {}]   ;;  %s18229_s3 = inlined_call_operand.vmem [shape: f32[2,1,128], index: 3, kind: input, shape index: {}]   ;;  %s18230_s4 = inlined_call_operand.vmem [shape: f32[2,1,128], index: 4, kind: input, shape index: {}]   ;;  %s18231_s5 = inlined_call_operand.hbm [shape: bf16[3,128,384], index: 5, kind: input, shape index: {}]   ;;  %s18232_s6 = inlined_call_operand.vmem [shape: f32[1,128], index: 6, kind: input, shape index: {}]   ;;  %s18233_s7 = inlined_call_operand.hbm [shape: f32[128,128], index: 7, kind: input, shape index: {}]   ;;  %s18234_s8 = inlined_call_operand.vmem [shape: f32[2], index: 8, kind: input, shape index: {}]   ;;  %s18235_s9 = inlined_call_operand.hbm [shape: bf16[2,16,16,128], index: 9, kind: output, shape index: {}]  }
   0x1   :  { %18269 = sst [smem:[#allocation80_spill]] %s18235_s9 }
   0x2   :  { %14 = vsyncpa [#allocation4], 0 }
   0x3   :  { %16 = vsyncpa [#allocation4 + $0x1], 0 }
   0x4   :  { %17 = vsyncpa [#allocation8], 0 }
   0x5   :  { %18 = vsyncpa [#allocation11], 0 }
   0x6   :  { %19 = vsyncpa [#allocation6], 0 }
   0x7   :  { %20 = vsyncpa [#allocation5], 0 }
   0x8   :  { %22 = vsyncpa [#allocation5 + $0x1], 0  ;;  %s13840_s30 = smov 0   ;;  %s13842_s10 = smov 0  }
   0x9   :  { %s13844_s11 = smov 0   ;;  %s13846_s12 = smov 0  }
   0xa LB: > { %18270 = sst [smem:[#allocation19_spill]] %s13759_s30  ;;  %s13861_s13 = sadd.s32 4294967295, %s13771_s12   ;;  %s13771_s12 = sphi %s13846_s12, %s18705_s12   ;;  %s13767_s11 = sphi %s13844_s11, %s18704_s11   ;;  %s13763_s10 = sphi %s13842_s10, %s18703_s10   ;;  %s13759_s30 = sphi %s13840_s30, %s18702_s30  }
   0xb   : > { %s10833_s14 = sadd.s32 4294967294, %s13771_s12   ;;  %p48_p0 = scmp.ne.s32.totalorder %s13763_s10, %s13759_s30 }
   0xc   : > { %p18236_p1 = scmp.eq.s32.totalorder %s13861_s13, 0  ;;  %p246_p3 = scmp.eq.s32.totalorder %s10833_s14, 1 }
   0xd   : > { %p10834_p5 = scmp.ge.s32.totalorder %s13771_s12, 1  ;;  %p253_p7 = scmp.lt.s32.totalorder %s13771_s12, 3 }
   0xe   : > { %p13870_p4 = por %p18236_p1, %p48_p0  ;;  %p13875_p6 = por %p246_p3, %p48_p0 }
   0xf   : > { %p13880_p8 = pnand %p10834_p5, %p253_p7  ;;  %s13773_s18 = smov [#allocation7]  }
  0x10   : > { %s18271_s15 = scalar_select %p13870_p4, 1, 0 }
  0x11   : > { %s18272_s16 = scalar_select %p13875_p6, 1, 0 }
  0x12   : > { %s18274_s17 = scalar_select %p13880_p8, 1, 0 }
  0x13   : > { %18273 = sst [smem:[#allocation20_spill]] %s18272_s16  ;;  %s265_s19 = sshll.u32 %s13773_s18, 4  ;;  %s13884_s19 = int_to_ptr.vmem [resolvable:$true] %s265_s19 }
  0x14   : > { %p12923_p9 = pneg %p13880_p8  ;;  %s13774_s21 = smov [#allocation9]  }
  0x15   : > { %s287_s22 = sshll.u32 %s13774_s21, 4  ;;  %s13775_s23 = smov [#allocation10]   ;;  %s13895_s22 = int_to_ptr.vmem [resolvable:$true] %s287_s22 }
  0x16   : > { %p13891_p11 = pnand %p12923_p9, %p18236_p1  ;;  %s13897_s24 = sshll.u32 %s13775_s23, 4  ;;  %s304_s24 = int_to_ptr.vmem [resolvable:$true] %s13897_s24 }
  0x17   : > { %s13564_s27 = scalar_lea.hbm %s18227_s1, 18432 }
  0x18   : > { %p13565_p12 = scmp.ne.s32.totalorder %s18227_s1, %s13564_s27  ;;  %p13907_p13 = pneg %p13891_p11 }
  0x19   : > { %p13571_p5 = scmp.lt.u32.totalorder %s13564_s27, %s18227_s1 }
  0x1a   : > { %p13567_p0 = pnand %p13907_p13, %p13565_p12 }
  0x1c   : > { %p13568_p3 = pneg %p13567_p0 }
  0x1e   : > { %p13573_p7 = pnand %p13571_p5, %p13568_p3 }
  0x20   : > { %13576 = shalt.err (!%p13573_p7)
}
  0x21   : > { %s13577_s23 = scalar_lea.vmem %s13884_s19, 18432  ;;  %p13585_p2 = scmp.lt.s32.totalorder %s13884_s19, %s13884_s19 }
  0x22   : > { %p13578_p9 = scmp.ne.s32.totalorder %s13884_s19, %s13577_s23  ;;  %p13586_p6 = scmp.lt.s32.totalorder %s13577_s23, %s13577_s23 }
  0x24   : > { %p13580_p10 = pnand %p13578_p9, %p13907_p13  ;;  %p13587_p12 = por %p13586_p6, %p13585_p2 }
  0x26   : > { %p13581_p1 = pneg %p13580_p10 }
  0x28   : > { %p13588_p0 = pnand %p13587_p12, %p13581_p1 }
  0x2a   : > { %13591 = shalt.err (!%p13588_p0)
}
  0x2b   : > { %s13776_s25 = smov 192   ;;  %s13777_s26 = smov 12  }
  0x2c   : > { %12926 = dma.hbm_to_vmem [thread:$0]  (!%p13891_p11), %s18227_s1, 18432, %s13884_s19, [#allocation8], %s13776_s25, %s13776_s25, %s13777_s26  }
  0x2d   : > { %s13592_s21 = scalar_lea.hbm %s18231_s5, 9216 }
  0x2e   : > { %p13593_p2 = scmp.ne.s32.totalorder %s18231_s5, %s13592_s21  ;;  %p13599_p10 = scmp.lt.u32.totalorder %s13592_s21, %s18231_s5 }
  0x30   : > { %p13595_p1 = pnand %p13593_p2, %p13907_p13 }
  0x32   : > { %p13596_p6 = pneg %p13595_p1 }
  0x34   : > { %p13601_p3 = pnand %p13599_p10, %p13596_p6 }
  0x36   : > { %13604 = shalt.err (!%p13601_p3)
}
  0x37   : > { %s13605_s19 = scalar_lea.vmem %s13895_s22, 9216  ;;  %p13613_p12 = scmp.lt.s32.totalorder %s13895_s22, %s13895_s22 }
  0x38   : > { %p13606_p5 = scmp.ne.s32.totalorder %s13895_s22, %s13605_s19  ;;  %p13614_p0 = scmp.lt.s32.totalorder %s13605_s19, %s13605_s19 }
  0x3a   : > { %p13608_p7 = pnand %p13606_p5, %p13907_p13  ;;  %p13615_p2 = por %p13614_p0, %p13613_p12 }
  0x3c   : > { %p13609_p9 = pneg %p13608_p7 }
  0x3e   : > { %p13616_p1 = pnand %p13615_p2, %p13609_p9 }
  0x40   : > { %13619 = shalt.err (!%p13616_p1)
}
  0x41   : > { %12929 = dma.hbm_to_vmem [thread:$0]  (!%p13891_p11), %s18231_s5, 9216, %s13895_s22, [#allocation8], %s13776_s25, %s13776_s25, %s13777_s26  }
  0x42   : > { %s317_s28 = sshll.u32 %s18234_s8, 4  ;;  %s13620_s21 = scalar_lea.hbm %s18233_s7, 2048  ;;  %s318_s28 = int_to_ptr.vmem [resolvable:$true] %s317_s28 }
  0x43   : > { %p13621_p6 = scmp.ne.s32.totalorder %s18233_s7, %s13620_s21  ;;  %p13627_p5 = scmp.lt.u32.totalorder %s13620_s21, %s18233_s7 }
  0x45   : > { %p13623_p10 = pnand %p13621_p6, %p13907_p13 }
  0x47   : > { %p13624_p3 = pneg %p13623_p10 }
  0x49   : > { %p13629_p7 = pnand %p13627_p5, %p13624_p3 }
  0x4b   : > { %13632 = shalt.err (!%p13629_p7)
}
  0x4c   : > { %s13633_s22 = scalar_lea.vmem %s304_s24, 2048  ;;  %p13641_p2 = scmp.lt.s32.totalorder %s304_s24, %s304_s24 }
  0x4d   : > { %p13634_p9 = scmp.ne.s32.totalorder %s304_s24, %s13633_s22  ;;  %p13642_p1 = scmp.lt.s32.totalorder %s13633_s22, %s13633_s22 }
  0x4f   : > { %p13636_p12 = pnand %p13634_p9, %p13907_p13  ;;  %p13643_p4 = por %p13642_p1, %p13641_p2 }
  0x51   : > { %p13637_p0 = pneg %p13636_p12 }
  0x53   : > { %p13644_p8 = pnand %p13643_p4, %p13637_p0 }
  0x55   : > { %13647 = shalt.err (!%p13644_p8)
}
  0x56   : > { %s13778_s25 = smov 128   ;;  %s13779_s26 = smov 8  }
  0x57   : > { %12932 = dma.hbm_to_vmem [thread:$0]  (!%p13891_p11), %s18233_s7, 2048, %s304_s24, [#allocation11], %s13778_s25, %s13778_s25, %s13779_s26  }
  0x58   : > { %s13648_s29 = scalar_lea.vmem %s318_s28, 16  ;;  %p13656_p4 = scmp.lt.s32.totalorder %s318_s28, %s318_s28 }
  0x59   : > { %p13649_p6 = scmp.ne.s32.totalorder %s318_s28, %s13648_s29  ;;  %p13657_p8 = scmp.lt.s32.totalorder %s13648_s29, %s13648_s29 }
  0x5b   : > { %p13651_p10 = pnand %p13649_p6, %p13907_p13  ;;  %p13658_p5 = por %p13657_p8, %p13656_p4 }
  0x5d   : > { %p13652_p3 = pneg %p13651_p10 }
  0x5f   : > { %p13659_p7 = pnand %p13658_p5, %p13652_p3 }
  0x61   : > { %13662 = shalt.err (!%p13659_p7)
}
  0x62   : > { %s13780_s18 = smov [#allocation12]   ;;  %s13981_s24 = sadd.s32 1, %s13771_s12  }
  0x63   : > { %12935 = dma.vmem_to_smem (!%p13891_p11), %s318_s28, 16, %s13780_s18, [#allocation6]  }
  0x64   : > { %s32_s14 = ssub.s32 %s13771_s12, %s13981_s24  ;;  %s35_s21 = sadd.s32 1, %s13767_s11 }
  0x65   : > { %p33_p13 = scmp.eq.s32.totalorder %s32_s14, 0  ;;  %p42_p9 = scmp.ne.s32.totalorder %s13767_s11, %s13763_s10 }
  0x66   : > { %p43_p12 = scmp.eq.s32.totalorder %s13771_s12, 0  ;;  %p18277_p2 = scmp.eq.s32.totalorder %s13861_s13, 1 }
  0x67   : > { %s13990_s20 = scalar_select %p33_p13, %s13767_s11, %s35_s21  }
  0x68   : > { %p44_p0 = por %p43_p12, %p42_p9  ;;  %p13994_p1 = por %p18277_p2, %p42_p9 }
  0x69   : > { %p12948_p6 = scmp.lt.s32.totalorder %s13771_s12, 2  ;;  %s328_s19 = sand.u32 1, %s13767_s11  }
  0x6a   : > { %s10840_s9 = sshll.u32 %s328_s19, 8  ;;  %s11142_s28 = sshll.u32 %s13771_s12, 12 }
  0x6b   : > { %s14004_s16 = scalar_lea.hbm %s18226_s0, %s11142_s28  ;;  %s332_s27 = scalar_lea.vmem [#allocation3], %s10840_s9 }
  0x6c   : > { %s339_s29 = sshll.u32 %s332_s27, 4  ;;  %p14008_p11 = pnand %p12948_p6, %p44_p0  ;;  %s14006_s29 = int_to_ptr.vmem [resolvable:$true] %s339_s29 }
  0x6d   : > { %s14012_s14 = scalar_lea.sflag [#allocation4], %s328_s19  ;;  %s13663_s21 = scalar_lea.hbm %s14004_s16, 4096 }
  0x6e   : > { %p13664_p10 = scmp.ne.s32.totalorder %s14004_s16, %s13663_s21  ;;  %p13665_p3 = pneg %p14008_p11 }
  0x6f   : > { %s13668_s30 = scalar_lea.hbm %s18226_s0, 8192  ;;  %p13669_p5 = scmp.lt.u32.totalorder %s14004_s16, %s18226_s0 }
  0x70   : > { %p13666_p4 = pnand %p13665_p3, %p13664_p10  ;;  %p13670_p7 = scmp.lt.u32.totalorder %s13668_s30, %s13663_s21 }
  0x71   : > { %p13672_p9 = scmp.lt.u32.totalorder %s13663_s21, %s14004_s16 }
  0x72   : > { %p13667_p8 = pneg %p13666_p4  ;;  %p13671_p13 = por %p13670_p7, %p13669_p5 }
  0x74   : > { %p13673_p12 = por %p13672_p9, %p13671_p13 }
  0x76   : > { %p13674_p0 = pnand %p13673_p12, %p13667_p8 }
  0x78   : > { %13677 = shalt.err (!%p13674_p0)
}
  0x79   : > { %s13678_s19 = scalar_lea.vmem %s14006_s29, 4096  ;;  %s13781_s9 = smov [#allocation3]  }
  0x7a   : > { %p13679_p2 = scmp.ne.s32.totalorder %s14006_s29, %s13678_s19  ;;  %s13683_s28 = sshll.u32 %s13781_s9, 4  ;;  %s13684_s28 = int_to_ptr.vmem [resolvable:$false] %s13683_s28 }
  0x7b   : > { %s13685_s22 = scalar_lea.vmem %s13684_s28, 8192  ;;  %p13686_p4 = scmp.lt.s32.totalorder %s14006_s29, %s13684_s28 }
  0x7c   : > { %p13681_p6 = pnand %p13679_p2, %p13665_p3  ;;  %p13687_p5 = scmp.lt.s32.totalorder %s13685_s22, %s13678_s19 }
  0x7e   : > { %p13682_p10 = pneg %p13681_p6  ;;  %p13688_p7 = por %p13687_p5, %p13686_p4 }
  0x80   : > { %p13689_p13 = pnand %p13688_p7, %p13682_p10 }
  0x82   : > { %13692 = shalt.err (!%p13689_p13)
}
  0x83   : > { %12939 = dma.hbm_to_vmem [thread:$0]  (!%p14008_p11), %s14004_s16, 4096, %s14006_s29, %s14012_s14, %s13778_s25, %s13778_s25, %s13779_s26  }
  0x84   : > { %p18280_p3 = scmp.ne.s32.totalorder %s18274_s17, 0 }
  0x86   : > { %351 = sbr.rel (%p18280_p3) target bundleno = 3535 (0xdcf), region = 56 }
  0x8d   : > { %s14046_s21 = sand.u32 1, %s13763_s10   ;;  %p18281_p8 = scmp.ne.s32.totalorder %s18271_s15, 0 }
  0x8e   : > { %s10844_s30 = sshll.u32 %s14046_s21, 8  ;;  %s354_s27 = scalar_lea.sflag [#allocation4], %s14046_s21 }
  0x8f   : > { %s14050_s19 = scalar_lea.vmem [#allocation3], %s10844_s30 }
  0x90   : > { %13738 = dma.done.wait (%p18281_p8), %s354_s27, 4096  }
  0x91   : > { %13740 = vsyncadd (%p18281_p8), %s354_s27, 4294963200  ;;  %p18282_p11 = scmp.eq.s32.totalorder %s13861_s13, 0 }
  0x93   : > { %13742 = dma.done.wait (%p18282_p11), [#allocation8], 27648   ;;  %p18283_p9 = pmov %p18282_p11 }
  0x95   : > { %13744 = vsyncadd (%p18283_p9), [#allocation8], 4294939648  ;;  %p18284_p12 = pmov %p18283_p9 }
  0x96   : > { %p18285_p0 = pmov %p18283_p9 }
  0x97   : > { %13746 = dma.done.wait (%p18284_p12), [#allocation11], 2048  }
  0x98   : > { %13748 = vsyncadd (%p18285_p0), [#allocation11], 4294965248  ;;  %p18286_p2 = pmov %p18285_p0 }
  0x99   : > { %p18287_p6 = pmov %p18285_p0 }
  0x9a   : > { %13750 = dma.done.wait (%p18286_p2), [#allocation6], 16  }
  0x9b   : > { %13752 = vsyncadd (%p18287_p6), [#allocation6], 4294967280 }
  0x9c   : > { %378 = sfence }
  0x9d   : > { %v14069_v0 = vld [vmem:[%s14050_s19] sm:$0xff]  ;;  %v14072_v1 = vld [vmem:[%s14050_s19 + $0x8] sm:$0xff]  ;;  %v14075_v2 = vld [vmem:[%s14050_s19 + $0x10] sm:$0xff]  ;;  %v13782_v7 = vmov 0   ;;  %s13783_s15 = smov 64   ;;  %vm611_vm0 = vcmask 523264  }
  0x9e   : > { %v13001_v3 = vpack.i.bf16 %v14072_v1, %v14069_v0  ;;  %v14080_v4 = vld [vmem:[%s14050_s19 + $0x18] sm:$0xff]  ;;  %v14083_v5 = vld [vmem:[%s14050_s19 + $0x20] sm:$0xff]  ;;  %v14086_v6 = vld [vmem:[%s14050_s19 + $0x28] sm:$0xff]  ;;  %1046 = vmatprep.mubr.bf16.mxu0 %v13782_v7  ;;  %410 = vst [vmem:[#allocation2] sm:$0xf] %v13782_v7  ;;  %vm3439_vm1 = vcmask 1046528  }
  0x9f   : > { %411 = vst [vmem:[#allocation2 + $0x10] sm:$0xf] %v13782_v7  ;;  %412 = vst [vmem:[#allocation2 + $0x20] sm:$0xf] %v13782_v7  ;;  %v13011_v8 = vpack.i.bf16 %v14086_v6, %v14083_v5  ;;  %v14125_v9 = vld [vmem:[%s14050_s19 + $0x30] sm:$0xff]  ;;  %v14128_v10 = vld [vmem:[%s14050_s19 + $0x38] sm:$0xff]  ;;  %v13006_v11 = vpack.i.bf16 %v14080_v4, %v14075_v2 }
  0xa0   : > { %413 = vst [vmem:[#allocation2 + $0x30] sm:$0xf] %v13782_v7  ;;  %414 = vst [vmem:[#allocation2 + $0x40] sm:$0xf] %v13782_v7  ;;  %13002 = vrot.lane.b32.xlu0 %v13001_v3, %s13783_s15  ;;  %v13016_v12 = vpack.i.bf16 %v14128_v10, %v14125_v9  ;;  %v14138_v13 = vld [vmem:[%s14050_s19 + $0x40] sm:$0xff]  ;;  %v14141_v14 = vld [vmem:[%s14050_s19 + $0x48] sm:$0xff] }
  0xa1   : > { %415 = vst [vmem:[#allocation2 + $0x50] sm:$0xf] %v13782_v7  ;;  %416 = vst [vmem:[#allocation2 + $0x60] sm:$0xf] %v13782_v7  ;;  %13012 = vrot.lane.b32.xlu1 %v13011_v8, %s13783_s15  ;;  %v14144_v15 = vld [vmem:[%s14050_s19 + $0x50] sm:$0xff]  ;;  %v14147_v16 = vld [vmem:[%s14050_s19 + $0x58] sm:$0xff]  ;;  %v13021_v17 = vpack.i.bf16 %v14141_v14, %v14138_v13 }
  0xa2   : > { %417 = vst [vmem:[#allocation2 + $0x70] sm:$0xf] %v13782_v7  ;;  %418 = vst [vmem:[#allocation2 + $0x80] sm:$0xf] %v13782_v7  ;;  %v14153_v18 = vld [vmem:[%s14050_s19 + $0x60] sm:$0xff]  ;;  %v14156_v19 = vld [vmem:[%s14050_s19 + $0x68] sm:$0xff]  ;;  %v13026_v20 = vpack.i.bf16 %v14147_v16, %v14144_v15 }
  0xa3   : > { %419 = vst [vmem:[#allocation2 + $0x90] sm:$0xf] %v13782_v7  ;;  %420 = vst [vmem:[#allocation2 + $0xa0] sm:$0xf] %v13782_v7  ;;  %v14162_v21 = vld [vmem:[%s14050_s19 + $0x70] sm:$0xff]  ;;  %v14165_v22 = vld [vmem:[%s14050_s19 + $0x78] sm:$0xff]  ;;  %v13031_v28 = vpack.i.bf16 %v14156_v19, %v14153_v18 }
  0xa4   : > { %421 = vst [vmem:[#allocation2 + $0xb0] sm:$0xf] %v13782_v7  ;;  %422 = vst [vmem:[#allocation2 + $0xc0] sm:$0xf] %v13782_v7  ;;  %13007 = vrot.lane.b32.xlu0 %v13006_v11, %s13783_s15  ;;  %v13081_v23 = vld [vmem:[#allocation7 + $0xc4] ss:$12 sps:$4 sm:$0xff]   ;;  %v13036_v30 = vpack.i.bf16 %v14165_v22, %v14162_v21 }
  0xa5   : > { %423 = vst [vmem:[#allocation2 + $0xd0] sm:$0xf] %v13782_v7  ;;  %424 = vst [vmem:[#allocation2 + $0xe0] sm:$0xf] %v13782_v7  ;;  %13017 = vrot.lane.b32.xlu1 %v13016_v12, %s13783_s15  ;;  %v13083_v24 = vld [vmem:[#allocation7 + $0xc0] ss:$12 sps:$4 sm:$0xff]   ;;  %1014 = vmatprep.subr.bf16.mxu0 %v13081_v23 }
  0xa6   : > { %425 = vst [vmem:[#allocation2 + $0xf0] sm:$0xf] %v13782_v7  ;;  %426 = vst [vmem:[#allocation2 + $0x100] sm:$0xf] %v13782_v7  ;;  %v14168_v25 = vld [vmem:[%s14050_s19 + $0x80] sm:$0xff]  ;;  %v14171_v26 = vld [vmem:[%s14050_s19 + $0x88] sm:$0xff]  ;;  %1015 = vmatpush1.bf16.msra.mxu0 %v13083_v24 }
  0xa7   : > { %429 = vst [vmem:[#allocation2 + $0x18] sm:$0xf0] %v13782_v7  ;;  %430 = vst [vmem:[#allocation2 + $0x28] sm:$0xf0] %v13782_v7  ;;  %v13084_v27 = vld [vmem:[#allocation7 + $0xc8] ss:$12 sps:$4 sm:$0xff]   ;;  %v13041_v38 = vpack.i.bf16 %v14171_v26, %v14168_v25 }
  0xa8   : > { %431 = vst [vmem:[#allocation2 + $0x38] sm:$0xf0] %v13782_v7  ;;  %432 = vst [vmem:[#allocation2 + $0x48] sm:$0xf0] %v13782_v7  ;;  %13022 = vrot.lane.b32.xlu0 %v13021_v17, %s13783_s15  ;;  %v13085_v29 = vld [vmem:[#allocation7 + $0xdc] ss:$12 sps:$4 sm:$0xff]   ;;  %11665 = vmatprep.subr.bf16.mxu1 %v13084_v27 }
  0xa9   : > { %433 = vst [vmem:[#allocation2 + $0x58] sm:$0xf0] %v13782_v7  ;;  %434 = vst [vmem:[#allocation2 + $0x68] sm:$0xf0] %v13782_v7  ;;  %13027 = vrot.lane.b32.xlu1 %v13026_v20, %s13783_s15  ;;  %v13087_v31 = vld [vmem:[#allocation7 + $0xd8] ss:$12 sps:$4 sm:$0xff]   ;;  %1016 = vmatprep.subr.bf16.mxu0 %v13085_v29 }
  0xaa   : > { %435 = vst [vmem:[#allocation2 + $0x78] sm:$0xf0] %v13782_v7  ;;  %436 = vst [vmem:[#allocation2 + $0x88] sm:$0xf0] %v13782_v7  ;;  %v14180_v32 = vld [vmem:[%s14050_s19 + $0x90] sm:$0xff]  ;;  %v14183_v33 = vld [vmem:[%s14050_s19 + $0x98] sm:$0xff]  ;;  %11666 = vmatpush3.bf16.msra.mxu1 %v13084_v27  ;;  %1017 = vmatpush1.bf16.msra.mxu0 %v13087_v31 }
  0xab   : > { %437 = vst [vmem:[#allocation2 + $0x98] sm:$0xf0] %v13782_v7  ;;  %438 = vst [vmem:[#allocation2 + $0xa8] sm:$0xf0] %v13782_v7  ;;  %v13088_v34 = vld [vmem:[#allocation7 + $0xe0] ss:$12 sps:$4 sm:$0xff]   ;;  %v13046_v41 = vpack.i.bf16 %v14183_v33, %v14180_v32 }
  0xac   : > { %439 = vst [vmem:[#allocation2 + $0xb8] sm:$0xf0] %v13782_v7  ;;  %440 = vst [vmem:[#allocation2 + $0xc8] sm:$0xf0] %v13782_v7  ;;  %v14186_v35 = vld [vmem:[%s14050_s19 + $0xa0] sm:$0xff]  ;;  %v14189_v36 = vld [vmem:[%s14050_s19 + $0xa8] sm:$0xff]  ;;  %13032 = vrot.lane.b32.xlu0 %v13031_v28, %s13783_s15  ;;  %11667 = vmatprep.subr.bf16.mxu1 %v13088_v34 }
  0xad   : > { %441 = vst [vmem:[#allocation2 + $0xd8] sm:$0xf0] %v13782_v7  ;;  %442 = vst [vmem:[#allocation2 + $0xe8] sm:$0xf0] %v13782_v7  ;;  %v13089_v37 = vld [vmem:[#allocation7 + $0xf4] ss:$12 sps:$4 sm:$0xff]   ;;  %13037 = vrot.lane.b32.xlu1 %v13036_v30, %s13783_s15  ;;  %v13051_v47 = vpack.i.bf16 %v14189_v36, %v14186_v35 }
  0xae   : > { %443 = vst [vmem:[#allocation2 + $0xf8] sm:$0xf0] %v13782_v7  ;;  %444 = vst [vmem:[#allocation2 + $0x108] sm:$0xf0] %v13782_v7  ;;  %v14195_v39 = vld [vmem:[%s14050_s19 + $0xb0] sm:$0xff]  ;;  %v14201_v43 = vld [vmem:[%s14050_s19 + $0xb8] sm:$0xff]  ;;  %1018 = vmatprep.subr.bf16.mxu0 %v13089_v37  ;;  %11668 = vmatpush3.bf16.msra.mxu1 %v13088_v34 }
  0xaf   : > { %446 = vst [vmem:[#allocation2] sm:$0xff] %v13782_v7  ;;  %v13091_v40 = vld [vmem:[#allocation7 + $0xf0] ss:$12 sps:$4 sm:$0xff]   ;;  %v13092_v42 = vld [vmem:[#allocation7 + $0xf8] ss:$12 sps:$4 sm:$0xff]   ;;  %v14207_v46 = vld [vmem:[%s14050_s19 + $0xc8] sm:$0xff]  ;;  %v13056_v50 = vpack.i.bf16 %v14201_v43, %v14195_v39 }
  0xb0   : > { %v13093_v44 = vld [vmem:[#allocation7 + $0x10c] ss:$12 sps:$4 sm:$0xff]   ;;  %v14204_v45 = vld [vmem:[%s14050_s19 + $0xc0] sm:$0xff]  ;;  %13042 = vrot.lane.b32.xlu0 %v13041_v38, %s13783_s15  ;;  %v14213_v48 = vld [vmem:[%s14050_s19 + $0xd0] sm:$0xff]  ;;  %11669 = vmatprep.subr.bf16.mxu1 %v13092_v42  ;;  %vm3246_vm2 = vcmask 1040384   ;;  %vm13785_vm3 = vmmov 0  }
  0xb1   : > { %v13096_v49 = vld [vmem:[#allocation7 + $0x110] ss:$12 sps:$4 sm:$0xff]   ;;  %13047 = vrot.lane.b32.xlu1 %v13046_v41, %s13783_s15  ;;  %1019 = vmatpush1.bf16.msra.mxu0 %v13091_v40  ;;  %v13095_v52 = vld [vmem:[#allocation7 + $0x108] ss:$12 sps:$4 sm:$0xff]   ;;  %v14222_v54 = vld [vmem:[%s14050_s19 + $0xe0] sm:$0xff]  ;;  %v13061_v56 = vpack.i.bf16 %v14207_v46, %v14204_v45  ;;  %s10185_s25 = sld [smem:[#allocation12]] }
  0xb2   : > { %v14219_v51 = vld [vmem:[%s14050_s19 + $0xd8] sm:$0xff]  ;;  %1020 = vmatprep.subr.bf16.mxu0 %v13093_v44  ;;  %v13097_v53 = vld [vmem:[#allocation7 + $0x124] ss:$12 sps:$4 sm:$0xff]   ;;  %11670 = vmatpush3.bf16.msra.mxu1 %v13092_v42  ;;  %v14225_v55 = vld [vmem:[%s14050_s19 + $0xe8] sm:$0xff]  ;;  %s17715_s26 = sld [smem:[#allocation12 + $0x1]]  ;;  %s10849_s16 = sshll.u32 %s14046_s21, 7 }
  0xb3   : > { %11671 = vmatprep.subr.bf16.mxu1 %v13096_v49  ;;  %v13100_v57 = vld [vmem:[#allocation7 + $0x128] ss:$12 sps:$4 sm:$0xff]   ;;  %v13066_v58 = vpack.i.bf16 %v14219_v51, %v14213_v48  ;;  %v13099_v59 = vld [vmem:[#allocation7 + $0x120] ss:$12 sps:$4 sm:$0xff]   ;;  %v14237_v62 = vld [vmem:[%s14050_s19 + $0xf8] sm:$0xff]  ;;  %v13071_v63 = vpack.i.bf16 %v14225_v55, %v14222_v54  ;;  %s17778_s29 = scalar_lea.vmem [#allocation13], %s10849_s16 }
  0xb4   : > { %13052 = vrot.lane.b32.xlu0 %v13051_v47, %s13783_s15  ;;  %v13101_v60 = vld [vmem:[#allocation7 + $0x13c] ss:$12 sps:$4 sm:$0xff]   ;;  %v14234_v61 = vld [vmem:[%s14050_s19 + $0xf0] sm:$0xff]  ;;  %v13104_v3 = vld [vmem:[#allocation7 + $0x140] ss:$12 sps:$4 sm:$0xff]   ;;  %s11175_s9 = sshll.u32 %s13861_s13, 11 }
  0xb5   : > { %13057 = vrot.lane.b32.xlu1 %v13056_v50, %s13783_s15  ;;  %1021 = vmatpush1.bf16.msra.mxu0 %v13095_v52  ;;  %v13103_v8 = vld [vmem:[#allocation7 + $0x138] ss:$12 sps:$4 sm:$0xff]   ;;  %v13076_v11 = vpack.i.bf16 %v14237_v62, %v14234_v61  ;;  %v13105_v12 = vld [vmem:[#allocation7 + $0x154] ss:$12 sps:$4 sm:$0xff]   ;;  %v13107_v17 = vld [vmem:[#allocation7 + $0x150] ss:$12 sps:$4 sm:$0xff]  }
  0xb6   : > { %1022 = vmatprep.subr.bf16.mxu0 %v13097_v53  ;;  %11672 = vmatpush3.bf16.msra.mxu1 %v13096_v49  ;;  %v13108_v20 = vld [vmem:[#allocation7 + $0x158] ss:$12 sps:$4 sm:$0xff]   ;;  %v13112_v24 = vld [vmem:[#allocation7 + $0x170] ss:$12 sps:$4 sm:$0xff]   ;;  %v13111_v27 = vld [vmem:[#allocation7 + $0x168] ss:$12 sps:$4 sm:$0xff]  }
  0xb7   : > { %11673 = vmatprep.subr.bf16.mxu1 %v13100_v57  ;;  %v13109_v23 = vld [vmem:[#allocation7 + $0x16c] ss:$12 sps:$4 sm:$0xff]   ;;  %v13115_v28 = vld [vmem:[#allocation7 + $0x4] ss:$12 sps:$4 sm:$0xff]   ;;  %s10719_s28 = sshll.u32 %s17778_s29, 4  ;;  %s18697_s27 = sld [smem:[#allocation80_spill]]  ;;  %s18179_s28 = int_to_ptr.vmem [resolvable:$true] %s10719_s28 }
  0xb8   : > { %13062 = vrot.lane.b32.xlu0 %v13061_v56, %s13783_s15  ;;  %s10706_s13 = scalar_lea.sflag [#allocation5], %s14046_s21  ;;  %s13693_s17 = scalar_lea.vmem %s18179_s28, 2048 }
  0xb9   : > { %13067 = vrot.lane.b32.xlu1 %v13066_v58, %s13783_s15  ;;  %1023 = vmatpush1.bf16.msra.mxu0 %v13099_v59  ;;  %p13694_p10 = scmp.ne.s32.totalorder %s18179_s28, %s13693_s17 }
  0xba   : > { %1024 = vmatprep.subr.bf16.mxu0 %v13101_v60  ;;  %11674 = vmatpush3.bf16.msra.mxu1 %v13100_v57 }
  0xbb   : > { %11675 = vmatprep.subr.bf16.mxu1 %v13104_v3  ;;  %p13695_p4 = pnand %p13694_p10, %p13994_p1 }
  0xbc   : > { %13072 = vrot.lane.b32.xlu0 %v13071_v63, %s13783_s15 }
  0xbd   : > { %1025 = vmatpush1.bf16.msra.mxu0 %v13103_v8  ;;  %13077 = vrot.lane.b32.xlu1 %v13076_v11, %s13783_s15  ;;  %s18177_s19 = scalar_lea.hbm %s18697_s27, %s11175_s9  ;;  %p13696_p5 = pneg %p13695_p4 }
  0xbe   : > { %1026 = vmatprep.subr.bf16.mxu0 %v13105_v12  ;;  %11676 = vmatpush3.bf16.msra.mxu1 %v13104_v3 }
  0xbf   : > { %11677 = vmatprep.subr.bf16.mxu1 %v13108_v20 }
  0xc1   : > { %1027 = vmatpush1.bf16.msra.mxu0 %v13107_v17 }
  0xc2   : > { %1028 = vmatprep.subr.bf16.mxu0 %v13109_v23  ;;  %11678 = vmatpush3.bf16.msra.mxu1 %v13108_v20 }
  0xc3   : > { %11679 = vmatprep.subr.bf16.mxu1 %v13112_v24 }
  0xc5   : > { %1029 = vmatpush1.bf16.msra.mxu0 %v13111_v27 }
  0xc6   : > { %1720 = vmatprep.subr.bf16.mxu0 %v13115_v28  ;;  %11680 = vmatpush3.bf16.msra.mxu1 %v13112_v24 }
  0xc7   : > { %12503 = vmatprep.subr.bf16.mxu1 %v13115_v28 }
 0x112   : > { %v13003_v29 = vpop.permute.xlu0 %13002 }
 0x113   : > { %v13005_v30 = vunpack.i.h.bf16 %v13003_v29  ;;  %v13004_v31 = vunpack.i.l.bf16 %v13003_v29  ;;  %v13013_v34 = vpop.permute.xlu1 %13012 }
 0x114   : > { %v13015_v37 = vunpack.i.h.bf16 %v13013_v34  ;;  %v13014_v38 = vunpack.i.l.bf16 %v13013_v34 }
 0x115   : > { %v613_v40 = vsel %vm611_vm0, %v14072_v1, %v13005_v30  ;;  %v612_v41 = vsel %vm611_vm0, %v14069_v0, %v13004_v31 }
 0x116   : > { %v644_v42 = vpack.c.bf16 %v613_v40, %v612_v41  ;;  %v13008_v44 = vpop.permute.xlu0 %13007  ;;  %v617_v47 = vsel %vm611_vm0, %v14086_v6, %v13015_v37  ;;  %v616_v49 = vsel %vm611_vm0, %v14083_v5, %v13014_v38  ;;  %v13113_v41 = vld [vmem:[#allocation7] ss:$12 sps:$4 sm:$0xff]  }
 0x117   : > { %v13010_v50 = vunpack.i.h.bf16 %v13008_v44  ;;  %v13009_v52 = vunpack.i.l.bf16 %v13008_v44  ;;  %v646_v53 = vpack.c.bf16 %v617_v47, %v616_v49  ;;  %v13018_v56 = vpop.permute.xlu1 %13017  ;;  %v13118_v47 = vld [vmem:[#allocation7 + $0x1c] ss:$12 sps:$4 sm:$0xff]  }
 0x118   : > { %v676_v57 = vrot.slane %v644_v42, 4  ;;  %v13020_v58 = vunpack.i.h.bf16 %v13018_v56  ;;  %v13019_v59 = vunpack.i.l.bf16 %v13018_v56 }
 0x119   : > { %v615_v1 = vsel %vm611_vm0, %v14080_v4, %v13010_v50  ;;  %v614_v0 = vsel %vm611_vm0, %v14075_v2, %v13009_v52  ;;  %v678_v60 = vrot.slane %v646_v53, 4 }
 0x11a   : > { %709 = vst [vmem:[#allocation2 + $0x18] ss:$-4 sps:$4 sm:$0xff] %v676_v57   ;;  %v645_v63 = vpack.c.bf16 %v615_v1, %v614_v0  ;;  %v619_v6 = vsel %vm611_vm0, %v14128_v10, %v13020_v58  ;;  %v618_v5 = vsel %vm611_vm0, %v14125_v9, %v13019_v59  ;;  %v13023_v3 = vpop.permute.xlu0 %13022 }
 0x11b   : > { %713 = vst [vmem:[#allocation2 + $0x38] ss:$-4 sps:$4 sm:$0xff] %v678_v60   ;;  %v647_v8 = vpack.c.bf16 %v619_v6, %v618_v5  ;;  %v13025_v11 = vunpack.i.h.bf16 %v13023_v3  ;;  %v13024_v12 = vunpack.i.l.bf16 %v13023_v3  ;;  %v13028_v17 = vpop.permute.xlu1 %13027  ;;  %v13121_v3 = vld [vmem:[#allocation7 + $0x34] ss:$12 sps:$4 sm:$0xff]  }
 0x11c   : > { %v677_v20 = vrot.slane %v645_v63, 4  ;;  %v13030_v4 = vunpack.i.h.bf16 %v13028_v17  ;;  %v13029_v23 = vunpack.i.l.bf16 %v13028_v17 }
 0x11d   : > { %v679_v24 = vrot.slane %v647_v8, 4  ;;  %v621_v2 = vsel %vm611_vm0, %v14141_v14, %v13025_v11  ;;  %v620_v27 = vsel %vm611_vm0, %v14138_v13, %v13024_v12 }
 0x11e   : > { %711 = vst [vmem:[#allocation2 + $0x28] ss:$-4 sps:$4 sm:$0xff] %v677_v20   ;;  %v648_v10 = vpack.c.bf16 %v621_v2, %v620_v27  ;;  %v623_v9 = vsel %vm611_vm0, %v14147_v16, %v13030_v4  ;;  %v622_v28 = vsel %vm611_vm0, %v14144_v15, %v13029_v23  ;;  %v13033_v29 = vpop.permute.xlu0 %13032  ;;  %v13119_v2 = vld [vmem:[#allocation7 + $0x30] ss:$12 sps:$4 sm:$0xff]  }
 0x11f   : > { %715 = vst [vmem:[#allocation2 + $0x48] ss:$-4 sps:$4 sm:$0xff] %v679_v24   ;;  %v649_v30 = vpack.c.bf16 %v623_v9, %v622_v28  ;;  %v13035_v31 = vunpack.i.h.bf16 %v13033_v29  ;;  %v13034_v34 = vunpack.i.l.bf16 %v13033_v29  ;;  %v13038_v37 = vpop.permute.xlu1 %13037 }
 0x120   : > { %v680_v38 = vrot.slane %v648_v10, 4  ;;  %v13040_v40 = vunpack.i.h.bf16 %v13038_v37  ;;  %v13039_v14 = vunpack.i.l.bf16 %v13038_v37 }
 0x121   : > { %v14271_v42 = vld [vmem:[#allocation2 + $0x10] sm:$0xff]  ;;  %v14273_v13 = vld [vmem:[#allocation2 + $0x18] sm:$0xff]  ;;  %v681_v44 = vrot.slane %v649_v30, 4  ;;  %v625_v16 = vsel %vm611_vm0, %v14156_v19, %v13035_v31  ;;  %v624_v15 = vsel %vm611_vm0, %v14153_v18, %v13034_v34 }
 0x122   : > { %1047 = vmatmul.mubr.bf16.vlgmr.msra.gmra.mrb[0].mxu0 %v14271_v42  ;;  %11681 = vmatprep.mubr.bf16.mxu1 %v14271_v42  ;;  %717 = vst [vmem:[#allocation2 + $0x58] ss:$-4 sps:$4 sm:$0xff] %v680_v38   ;;  %v650_v49 = vpack.c.bf16 %v625_v16, %v624_v15  ;;  %v627_v50 = vsel %vm611_vm0, %v14165_v22, %v13040_v40  ;;  %v13043_v53 = vpop.permute.xlu0 %13042  ;;  %v13116_v22 = vld [vmem:[#allocation7 + $0x18] ss:$12 sps:$4 sm:$0xff]   ;;  %v14300_v24 = vld [vmem:[#allocation2 + $0x30] sm:$0xff] }
 0x123   : > { %v626_v52 = vsel %vm611_vm0, %v14162_v21, %v13039_v14  ;;  %1721 = vmatpush1.bf16.msra.mxu0 %v13113_v41  ;;  %11682 = vmatmul.mubr.bf16.vlgmr.msra.gmra.mrb[0].mxu1 %v14273_v13  ;;  %719 = vst [vmem:[#allocation2 + $0x68] ss:$-4 sps:$4 sm:$0xff] %v681_v44   ;;  %v13045_v18 = vunpack.i.h.bf16 %v13043_v53  ;;  %v13044_v56 = vunpack.i.l.bf16 %v13043_v53  ;;  %v13048_v57 = vpop.permute.xlu1 %13047  ;;  %v13124_v30 = vld [vmem:[#allocation7 + $0x4c] ss:$12 sps:$4 sm:$0xff]   ;;  %v13122_v44 = vld [vmem:[#allocation7 + $0x48] ss:$12 sps:$4 sm:$0xff]  }
 0x124   : > { %v651_v19 = vpack.c.bf16 %v627_v50, %v626_v52  ;;  %1055 = vmatprep.mubr.bf16.mxu0 %v13782_v7  ;;  %1722 = vmatprep.subr.bf16.mxu0 %v13118_v47  ;;  %v682_v58 = vrot.slane %v650_v49, 4  ;;  %v13050_v59 = vunpack.i.h.bf16 %v13048_v57  ;;  %v13049_v1 = vunpack.i.l.bf16 %v13048_v57  ;;  %v13127_v50 = vld [vmem:[#allocation7 + $0x64] ss:$12 sps:$4 sm:$0xff]  }
 0x125   : > { %v14287_v0 = vld [vmem:[#allocation2 + $0x20] sm:$0xff]  ;;  %v629_v21 = vsel %vm611_vm0, %v14171_v26, %v13045_v18  ;;  %v628_v63 = vsel %vm611_vm0, %v14168_v25, %v13044_v56  ;;  %12511 = vmatpush1.bf16.msra.mxu1 %v13113_v41  ;;  %v14298_v17 = vld [vmem:[#allocation2 + $0x28] sm:$0xff] }
 0x126   : > { %v683_v60 = vrot.slane %v651_v19, 4  ;;  %11685 = vmatprep.mubr.bf16.mxu1 %v14287_v0  ;;  %721 = vst [vmem:[#allocation2 + $0x78] ss:$-4 sps:$4 sm:$0xff] %v682_v58   ;;  %v652_v6 = vpack.c.bf16 %v629_v21, %v628_v63  ;;  %v631_v7 = vsel %vm611_vm0, %v14183_v33, %v13050_v59  ;;  %v630_v5 = vsel %vm611_vm0, %v14180_v32, %v13049_v1  ;;  %v13053_v8 = vpop.permute.xlu0 %13052  ;;  %v14326_v58 = vld [vmem:[#allocation2 + $0x40] sm:$0xff]  ;;  %v13130_v63 = vld [vmem:[#allocation7 + $0x7c] ss:$12 sps:$4 sm:$0xff]  }
 0x127   : > { %12504 = vmatprep.subr.bf16.mxu1 %v13118_v47  ;;  %1723 = vmatpush1.bf16.msra.mxu0 %v13116_v22  ;;  %v653_v26 = vpack.c.bf16 %v631_v7, %v630_v5  ;;  %v13055_v11 = vunpack.i.h.bf16 %v13053_v8  ;;  %v13054_v12 = vunpack.i.l.bf16 %v13053_v8  ;;  %v13058_v25 = vpop.permute.xlu1 %13057  ;;  %v13125_v1 = vld [vmem:[#allocation7 + $0x60] ss:$12 sps:$4 sm:$0xff]   ;;  %v13128_v7 = vld [vmem:[#allocation7 + $0x78] ss:$12 sps:$4 sm:$0xff]  }
 0x128   : > { %723 = vst [vmem:[#allocation2 + $0x88] ss:$-4 sps:$4 sm:$0xff] %v683_v60   ;;  %v684_v20 = vrot.slane %v652_v6, 4  ;;  %1724 = vmatprep.subr.bf16.mxu0 %v13121_v3  ;;  %v13060_v4 = vunpack.i.h.bf16 %v13058_v25  ;;  %v13059_v23 = vunpack.i.l.bf16 %v13058_v25  ;;  %v13136_v8 = vld [vmem:[#allocation7 + $0xac] ss:$12 sps:$4 sm:$0xff]  }
 0x129   : > { %v685_v33 = vrot.slane %v653_v26, 4  ;;  %v633_v32 = vsel %vm611_vm0, %v14189_v36, %v13055_v11  ;;  %v632_v27 = vsel %vm611_vm0, %v14186_v35, %v13054_v12  ;;  %12512 = vmatpush1.bf16.msra.mxu1 %v13116_v22  ;;  %v14312_v36 = vld [vmem:[#allocation2] sm:$0xff]  ;;  %v14342_v5 = vld [vmem:[#allocation2 + $0x50] sm:$0xff]  ;;  %v14348_v11 = vld [vmem:[#allocation2 + $0x58] sm:$0xff] }
 0x12a   : > { %1056 = vmatmul.mubr.bf16.gmra.mrb[4].mxu0 %v14273_v13  ;;  %725 = vst [vmem:[#allocation2 + $0x98] ss:$-4 sps:$4 sm:$0xff] %v684_v20   ;;  %v654_v10 = vpack.c.bf16 %v633_v32, %v632_v27  ;;  %v635_v9 = vsel %vm611_vm0, %v14201_v43, %v13060_v4  ;;  %v634_v28 = vsel %vm611_vm0, %v14195_v39, %v13059_v23  ;;  %v13063_v29 = vpop.permute.xlu0 %13062  ;;  %v13134_v26 = vld [vmem:[#allocation7 + $0xa8] ss:$12 sps:$4 sm:$0xff]   ;;  %v14350_v12 = vld [vmem:[#allocation2 + $0x60] sm:$0xff] }
 0x12b   : > { %12505 = vmatprep.subr.bf16.mxu1 %v13121_v3  ;;  %11686 = vmatmul.mubr.bf16.gmra.mrb[4].mxu1 %v14298_v17  ;;  %727 = vst [vmem:[#allocation2 + $0xa8] ss:$-4 sps:$4 sm:$0xff] %v685_v33   ;;  %v655_v35 = vpack.c.bf16 %v635_v9, %v634_v28  ;;  %v13065_v31 = vunpack.i.h.bf16 %v13063_v29  ;;  %v13064_v34 = vunpack.i.l.bf16 %v13063_v29  ;;  %v13068_v37 = vpop.permute.xlu1 %13067  ;;  %v13131_v3 = vld [vmem:[#allocation7 + $0x90] ss:$12 sps:$4 sm:$0xff]   ;;  %v14356_v25 = vld [vmem:[#allocation2 + $0x68] sm:$0xff] }
 0x12c   : > { %1063 = vmatprep.mubr.bf16.mxu0 %v14312_v36  ;;  %11689 = vmatprep.mubr.bf16.mxu1 %v14300_v24  ;;  %v686_v43 = vrot.slane %v654_v10, 4  ;;  %v13070_v38 = vunpack.i.h.bf16 %v13068_v37  ;;  %v13069_v39 = vunpack.i.l.bf16 %v13068_v37  ;;  %v13137_v10 = vld [vmem:[#allocation7 + $0x8] ss:$12 sps:$4 sm:$0xff]  }
 0x12d   : > { %1725 = vmatpush1.bf16.msra.mxu0 %v13119_v2  ;;  %v687_v40 = vrot.slane %v655_v35, 4  ;;  %v637_v14 = vsel %vm611_vm0, %v14207_v46, %v13065_v31  ;;  %v636_v41 = vsel %vm611_vm0, %v14204_v45, %v13064_v34  ;;  %12513 = vmatpush1.bf16.msra.mxu1 %v13119_v2  ;;  %v14324_v45 = vld [vmem:[#allocation2 + $0x38] sm:$0xff]  ;;  %v14358_v20 = vld [vmem:[#allocation2 + $0x70] sm:$0xff] }
 0x12e   : > { %1726 = vmatprep.subr.bf16.mxu0 %v13124_v30  ;;  %729 = vst [vmem:[#allocation2 + $0xb8] ss:$-4 sps:$4 sm:$0xff] %v686_v43   ;;  %v656_v16 = vpack.c.bf16 %v637_v14, %v636_v41  ;;  %v639_v15 = vsel %vm611_vm0, %v14219_v51, %v13070_v38  ;;  %v638_v47 = vsel %vm611_vm0, %v14213_v48, %v13069_v39  ;;  %v13073_v49 = vpop.permute.xlu0 %13072  ;;  %v14364_v4 = vld [vmem:[#allocation2 + $0x78] sm:$0xff]  ;;  %v13147_v41 = vld [vmem:[#allocation7 + $0x184] ss:$12 sps:$4 sm:$0xff]  }
 0x12f   : > { %12506 = vmatprep.subr.bf16.mxu1 %v13124_v30  ;;  %731 = vst [vmem:[#allocation2 + $0xc8] ss:$-4 sps:$4 sm:$0xff] %v687_v40   ;;  %v657_v52 = vpack.c.bf16 %v639_v15, %v638_v47  ;;  %v13075_v46 = vunpack.i.h.bf16 %v13073_v49  ;;  %v13074_v53 = vunpack.i.l.bf16 %v13073_v49  ;;  %v13078_v19 = vpop.permute.xlu1 %13077  ;;  %v14366_v23 = vld [vmem:[#allocation2 + $0x80] sm:$0xff]  ;;  %v14372_v33 = vld [vmem:[#allocation2 + $0x88] sm:$0xff]  ;;  %v13140_v15 = vld [vmem:[#allocation7 + $0x50] ss:$12 sps:$4 sm:$0xff]  }
 0x130   : > { %v688_v18 = vrot.slane %v656_v16, 4  ;;  %v13080_v56 = vunpack.i.h.bf16 %v13078_v19  ;;  %v13079_v57 = vunpack.i.l.bf16 %v13078_v19  ;;  %v13139_v16 = vld [vmem:[#allocation7 + $0x38] ss:$12 sps:$4 sm:$0xff]   ;;  %v13141_v47 = vld [vmem:[#allocation7 + $0x68] ss:$12 sps:$4 sm:$0xff]  }
 0x131   : > { %1727 = vmatpush1.bf16.msra.mxu0 %v13122_v44  ;;  %v689_v51 = vrot.slane %v657_v52, 4  ;;  %v641_v48 = vsel %vm611_vm0, %v14225_v55, %v13075_v46  ;;  %v640_v59 = vsel %vm611_vm0, %v14222_v54, %v13074_v53  ;;  %12514 = vmatpush1.bf16.msra.mxu1 %v13122_v44  ;;  %v14374_v2 = vld [vmem:[#allocation2 + $0x90] sm:$0xff]  ;;  %v14380_v32 = vld [vmem:[#allocation2 + $0x98] sm:$0xff]  ;;  %v13138_v44 = vld [vmem:[#allocation7 + $0x20] ss:$12 sps:$4 sm:$0xff]  }
 0x132   : > { %1728 = vmatprep.subr.bf16.mxu0 %v13127_v50  ;;  %1064 = vmatmul.mubr.bf16.gmra.mrb[8].mxu0 %v14287_v0  ;;  %733 = vst [vmem:[#allocation2 + $0xd8] ss:$-4 sps:$4 sm:$0xff] %v688_v18   ;;  %v658_v22 = vpack.c.bf16 %v641_v48, %v640_v59  ;;  %v643_v60 = vsel %vm611_vm0, %v14237_v62, %v13080_v56  ;;  %v13133_v62 = vld [vmem:[#allocation7 + $0x94] ss:$12 sps:$4 sm:$0xff]   ;;  %v14388_v9 = vld [vmem:[#allocation2 + $0xa8] sm:$0xff] }
 0x133   : > { %v642_v21 = vsel %vm611_vm0, %v14234_v61, %v13079_v57  ;;  %12507 = vmatprep.subr.bf16.mxu1 %v13127_v50  ;;  %11690 = vmatmul.mubr.bf16.gmra.mrb[8].mxu1 %v14324_v45  ;;  %735 = vst [vmem:[#allocation2 + $0xe8] ss:$-4 sps:$4 sm:$0xff] %v689_v51   ;;  %v14340_v61 = vld [vmem:[#allocation2 + $0x48] sm:$0xff]  ;;  %v14382_v27 = vld [vmem:[#allocation2 + $0xa0] sm:$0xff]  ;;  %v13144_v52 = vld [vmem:[#allocation7 + $0xb0] ss:$12 sps:$4 sm:$0xff]  }
 0x134   : > { %1072 = vmatprep.mubr.bf16.mxu0 %v14312_v36  ;;  %v659_v54 = vpack.c.bf16 %v643_v60, %v642_v21  ;;  %11693 = vmatprep.mubr.bf16.mxu1 %v14326_v58  ;;  %v690_v55 = vrot.slane %v658_v22, 4  ;;  %v13142_v49 = vld [vmem:[#allocation7 + $0x80] ss:$12 sps:$4 sm:$0xff]   ;;  %v13143_v50 = vld [vmem:[#allocation7 + $0x98] ss:$12 sps:$4 sm:$0xff]  }
 0x135   : > { %1729 = vmatpush1.bf16.msra.mxu0 %v13125_v1  ;;  %12515 = vmatpush1.bf16.msra.mxu1 %v13125_v1  ;;  %v14390_v28 = vld [vmem:[#allocation2 + $0xb0] sm:$0xff]  ;;  %v14396_v29 = vld [vmem:[#allocation2 + $0xb8] sm:$0xff]  ;;  %v13158_v1 = vld [vmem:[#allocation7 + $0x1a0] ss:$12 sps:$4 sm:$0xff]  }
 0x136   : > { %v691_v6 = vrot.slane %v659_v54, 4  ;;  %1730 = vmatprep.subr.bf16.mxu0 %v13130_v63  ;;  %737 = vst [vmem:[#allocation2 + $0xf8] ss:$-4 sps:$4 sm:$0xff] %v690_v55   ;;  %12508 = vmatprep.subr.bf16.mxu1 %v13130_v63  ;;  %v14398_v30 = vld [vmem:[#allocation2 + $0xc0] sm:$0xff]  ;;  %v14404_v35 = vld [vmem:[#allocation2 + $0xc8] sm:$0xff] }
 0x137   : > { %v13157_v46 = vld [vmem:[#allocation7 + $0x188] ss:$12 sps:$4 sm:$0xff]   ;;  %v13159_v60 = vld [vmem:[#allocation7 + $0x1b8] ss:$12 sps:$4 sm:$0xff]   ;;  %v13160_v55 = vld [vmem:[#allocation7 + $0x1d0] ss:$12 sps:$4 sm:$0xff]  }
 0x138   : > { %739 = vst [vmem:[#allocation2 + $0x108] ss:$-4 sps:$4 sm:$0xff] %v691_v6  }
 0x139   : > { %1731 = vmatpush1.bf16.msra.mxu0 %v13128_v7  ;;  %12516 = vmatpush1.bf16.msra.mxu1 %v13128_v7  ;;  %v14406_v31 = vld [vmem:[#allocation2 + $0xd0] sm:$0xff]  ;;  %v14412_v34 = vld [vmem:[#allocation2 + $0xd8] sm:$0xff] }
 0x13a   : > { %1732 = vmatprep.subr.bf16.mxu0 %v13133_v62  ;;  %1073 = vmatmul.mubr.bf16.gmra.mrb[12].mxu0 %v14298_v17  ;;  %v14414_v37 = vld [vmem:[#allocation2 + $0xe0] sm:$0xff]  ;;  %v14420_v43 = vld [vmem:[#allocation2 + $0xe8] sm:$0xff] }
 0x13b   : > { %12509 = vmatprep.subr.bf16.mxu1 %v13133_v62  ;;  %11694 = vmatmul.mubr.bf16.gmra.mrb[12].mxu1 %v14340_v61  ;;  %v13164_v7 = vld [vmem:[#allocation7 + $0x1e8] ss:$12 sps:$4 sm:$0xff]  }
 0x13c   : > { %1080 = vmatprep.mubr.bf16.mxu0 %v14312_v36  ;;  %11697 = vmatprep.mubr.bf16.mxu1 %v14342_v5 }
 0x13d   : > { %1733 = vmatpush1.bf16.msra.mxu0 %v13131_v3  ;;  %12517 = vmatpush1.bf16.msra.mxu1 %v13131_v3  ;;  %v14422_v38 = vld [vmem:[#allocation2 + $0xf0] sm:$0xff]  ;;  %v14428_v39 = vld [vmem:[#allocation2 + $0xf8] sm:$0xff] }
 0x13e   : > { %1734 = vmatprep.subr.bf16.mxu0 %v13136_v8  ;;  %12510 = vmatprep.subr.bf16.mxu1 %v13136_v8 }
 0x13f   : > { %v14430_v40 = vld [vmem:[#allocation2 + $0x100] sm:$0xff]  ;;  %v14436_v14 = vld [vmem:[#allocation2 + $0x108] sm:$0xff] }
 0x141   : > { %1735 = vmatpush1.bf16.msra.mxu0 %v13134_v26  ;;  %12518 = vmatpush1.bf16.msra.mxu1 %v13134_v26  ;;  %v13165_v26 = vld [vmem:[#allocation7 + $0x200] ss:$12 sps:$4 sm:$0xff]  }
 0x142   : > { %1081 = vmatmul.mubr.bf16.gmra.mrb[16].mxu0 %v14300_v24  ;;  %11745 = vmatprep.subr.bf16.mxu1 %v13137_v10 }
 0x143   : > { %11698 = vmatmul.mubr.bf16.gmra.mrb[16].mxu1 %v14348_v11  ;;  %1089 = vmatprep.mubr.bf16.mxu0 %v14312_v36 }
 0x144   : > { %11701 = vmatprep.mubr.bf16.mxu1 %v14350_v12  ;;  %2492 = vmatprep.subr.bf16.mxu0 %v13147_v41  ;;  %v13166_v41 = vld [vmem:[#allocation7 + $0x218] ss:$12 sps:$4 sm:$0xff]  }
 0x14a   : > { %1090 = vmatmul.mubr.bf16.gmra.mrb[20].mxu0 %v14324_v45 }
 0x14b   : > { %11702 = vmatmul.mubr.bf16.gmra.mrb[20].mxu1 %v14356_v25  ;;  %1097 = vmatprep.mubr.bf16.mxu0 %v14312_v36 }
 0x14c   : > { %11705 = vmatprep.mubr.bf16.mxu1 %v14358_v20 }
 0x152   : > { %1098 = vmatmul.mubr.bf16.gmra.mrb[24].mxu0 %v14326_v58 }
 0x153   : > { %11706 = vmatmul.mubr.bf16.gmra.mrb[24].mxu1 %v14364_v4  ;;  %1106 = vmatprep.mubr.bf16.mxu0 %v14312_v36 }
 0x154   : > { %11709 = vmatprep.mubr.bf16.mxu1 %v14366_v23 }
 0x15a   : > { %1107 = vmatmul.mubr.bf16.gmra.mrb[28].mxu0 %v14340_v61 }
 0x15b   : > { %11710 = vmatmul.mubr.bf16.gmra.mrb[28].mxu1 %v14372_v33  ;;  %1114 = vmatprep.mubr.bf16.mxu0 %v14312_v36 }
 0x15c   : > { %11713 = vmatprep.mubr.bf16.mxu1 %v14374_v2 }
 0x162   : > { %1115 = vmatmul.mubr.bf16.gmra.mrb[32].mxu0 %v14342_v5 }
 0x163   : > { %11714 = vmatmul.mubr.bf16.gmra.mrb[32].mxu1 %v14380_v32  ;;  %1123 = vmatprep.mubr.bf16.mxu0 %v14312_v36 }
 0x164   : > { %11717 = vmatprep.mubr.bf16.mxu1 %v14382_v27 }
 0x16a   : > { %1124 = vmatmul.mubr.bf16.gmra.mrb[36].mxu0 %v14348_v11 }
 0x16b   : > { %11718 = vmatmul.mubr.bf16.gmra.mrb[36].mxu1 %v14388_v9  ;;  %1131 = vmatprep.mubr.bf16.mxu0 %v14312_v36 }
 0x16c   : > { %11721 = vmatprep.mubr.bf16.mxu1 %v14390_v28 }
 0x172   : > { %1132 = vmatmul.mubr.bf16.gmra.mrb[40].mxu0 %v14350_v12 }
 0x173   : > { %11722 = vmatmul.mubr.bf16.gmra.mrb[40].mxu1 %v14396_v29  ;;  %1140 = vmatprep.mubr.bf16.mxu0 %v14312_v36 }
 0x174   : > { %11725 = vmatprep.mubr.bf16.mxu1 %v14398_v30 }
 0x17a   : > { %1141 = vmatmul.mubr.bf16.gmra.mrb[44].mxu0 %v14356_v25 }
 0x17b   : > { %11726 = vmatmul.mubr.bf16.gmra.mrb[44].mxu1 %v14404_v35  ;;  %1148 = vmatprep.mubr.bf16.mxu0 %v14312_v36 }
 0x17c   : > { %11729 = vmatprep.mubr.bf16.mxu1 %v14406_v31 }
 0x182   : > { %1149 = vmatmul.mubr.bf16.gmra.mrb[48].mxu0 %v14358_v20 }
 0x183   : > { %11730 = vmatmul.mubr.bf16.gmra.mrb[48].mxu1 %v14412_v34  ;;  %1157 = vmatprep.mubr.bf16.mxu0 %v14312_v36 }
 0x184   : > { %11733 = vmatprep.mubr.bf16.mxu1 %v14414_v37 }
 0x18a   : > { %1158 = vmatmul.mubr.bf16.gmra.mrb[52].mxu0 %v14364_v4 }
 0x18b   : > { %11734 = vmatmul.mubr.bf16.gmra.mrb[52].mxu1 %v14420_v43  ;;  %1165 = vmatprep.mubr.bf16.mxu0 %v14312_v36 }
 0x18c   : > { %11737 = vmatprep.mubr.bf16.mxu1 %v14422_v38 }
 0x192   : > { %1166 = vmatmul.mubr.bf16.gmra.mrb[56].mxu0 %v14366_v23 }
 0x193   : > { %11738 = vmatmul.mubr.bf16.gmra.mrb[56].mxu1 %v14428_v39  ;;  %1174 = vmatprep.mubr.bf16.mxu0 %v14312_v36 }
 0x194   : > { %11741 = vmatprep.mubr.bf16.mxu1 %v14430_v40 }
 0x19a   : > { %1175 = vmatmul.mubr.bf16.gmra.mrb[60].mxu0 %v14372_v33 }
 0x19b   : > { %11742 = vmatmul.mubr.bf16.gmra.mrb[60].mxu1 %v14436_v14  ;;  %1182 = vmatprep.mubr.bf16.mxu0 %v14312_v36 }
 0x19c   : > { %1922 = vmatprep.mubr.bf16.mxu1 %v14312_v36 }
 0x1a2   : > { %1183 = vmatmul.mubr.bf16.gmra.mrb[64].mxu0 %v14374_v2 }
 0x1a3   : > { %1923 = vmatmul.mubr.bf16.vlgmr.msra.gmra.mrb[64].mxu1 %v14382_v27  ;;  %1191 = vmatprep.mubr.bf16.mxu0 %v14312_v36 }
 0x1a4   : > { %1931 = vmatprep.mubr.bf16.mxu1 %v14312_v36  ;;  %11746 = vmatpush3.bf16.msra.mxu1 %v13137_v10 }
 0x1a5   : > { %11747 = vmatprep.subr.bf16.mxu1 %v13138_v44 }
 0x1a8   : > { %11748 = vmatpush3.bf16.msra.mxu1 %v13138_v44 }
 0x1a9   : > { %11749 = vmatprep.subr.bf16.mxu1 %v13139_v16 }
 0x1aa   : > { %1192 = vmatmul.mubr.bf16.gmra.mrb[68].mxu0 %v14380_v32 }
 0x1ab   : > { %1932 = vmatmul.mubr.bf16.gmra.mrb[68].mxu1 %v14388_v9  ;;  %1199 = vmatprep.mubr.bf16.mxu0 %v14312_v36 }
 0x1ac   : > { %1939 = vmatprep.mubr.bf16.mxu1 %v14312_v36  ;;  %11750 = vmatpush3.bf16.msra.mxu1 %v13139_v16 }
 0x1ad   : > { %11751 = vmatprep.subr.bf16.mxu1 %v13140_v15 }
 0x1b0   : > { %11752 = vmatpush3.bf16.msra.mxu1 %v13140_v15 }
 0x1b1   : > { %11753 = vmatprep.subr.bf16.mxu1 %v13141_v47 }
 0x1b2   : > { %1200 = vmatmul.mubr.bf16.gmra.mrb[72].mxu0 %v14382_v27 }
 0x1b3   : > { %1940 = vmatmul.mubr.bf16.gmra.mrb[72].mxu1 %v14390_v28  ;;  %1208 = vmatprep.mubr.bf16.mxu0 %v14312_v36 }
 0x1b4   : > { %1948 = vmatprep.mubr.bf16.mxu1 %v14312_v36  ;;  %11754 = vmatpush3.bf16.msra.mxu1 %v13141_v47  ;;  %v13167_v47 = vld [vmem:[#allocation7 + $0x230] ss:$12 sps:$4 sm:$0xff]  }
 0x1b5   : > { %11755 = vmatprep.subr.bf16.mxu1 %v13142_v49 }
 0x1b8   : > { %11756 = vmatpush3.bf16.msra.mxu1 %v13142_v49 }
 0x1b9   : > { %11757 = vmatprep.subr.bf16.mxu1 %v13143_v50 }
 0x1ba   : > { %1209 = vmatmul.mubr.bf16.gmra.mrb[76].mxu0 %v14388_v9 }
 0x1bb   : > { %1949 = vmatmul.mubr.bf16.gmra.mrb[76].mxu1 %v14396_v29  ;;  %1216 = vmatprep.mubr.bf16.mxu0 %v14312_v36 }
 0x1bc   : > { %1956 = vmatprep.mubr.bf16.mxu1 %v14312_v36  ;;  %11758 = vmatpush3.bf16.msra.mxu1 %v13143_v50 }
 0x1bd   : > { %11759 = vmatprep.subr.bf16.mxu1 %v13144_v52 }
 0x1c0   : > { %11760 = vmatpush3.bf16.msra.mxu1 %v13144_v52  ;;  %v13145_v52 = vld [vmem:[#allocation7 + $0x180] ss:$12 sps:$4 sm:$0xff]  }
 0x1c1   : > { %11825 = vmatprep.subr.bf16.mxu1 %v13157_v46 }
 0x1c2   : > { %1217 = vmatmul.mubr.bf16.gmra.mrb[80].mxu0 %v14390_v28 }
 0x1c3   : > { %1957 = vmatmul.mubr.bf16.gmra.mrb[80].mxu1 %v14398_v30  ;;  %1225 = vmatprep.mubr.bf16.mxu0 %v14312_v36 }
 0x1c4   : > { %1965 = vmatprep.mubr.bf16.mxu1 %v14312_v36 }
 0x1ca   : > { %1226 = vmatmul.mubr.bf16.gmra.mrb[84].mxu0 %v14396_v29 }
 0x1cb   : > { %1966 = vmatmul.mubr.bf16.gmra.mrb[84].mxu1 %v14404_v35  ;;  %1233 = vmatprep.mubr.bf16.mxu0 %v14312_v36 }
 0x1cc   : > { %1973 = vmatprep.mubr.bf16.mxu1 %v14312_v36 }
 0x1d2   : > { %1234 = vmatmul.mubr.bf16.gmra.mrb[88].mxu0 %v14398_v30 }
 0x1d3   : > { %1974 = vmatmul.mubr.bf16.gmra.mrb[88].mxu1 %v14406_v31  ;;  %1242 = vmatprep.mubr.bf16.mxu0 %v14312_v36 }
 0x1d4   : > { %1982 = vmatprep.mubr.bf16.mxu1 %v14312_v36 }
 0x1da   : > { %1243 = vmatmul.mubr.bf16.gmra.mrb[92].mxu0 %v14404_v35 }
 0x1db   : > { %1983 = vmatmul.mubr.bf16.gmra.mrb[92].mxu1 %v14412_v34  ;;  %1250 = vmatprep.mubr.bf16.mxu0 %v14312_v36 }
 0x1dc   : > { %1990 = vmatprep.mubr.bf16.mxu1 %v14312_v36 }
 0x1e2   : > { %1251 = vmatmul.mubr.bf16.gmra.mrb[96].mxu0 %v14406_v31 }
 0x1e3   : > { %1991 = vmatmul.mubr.bf16.gmra.mrb[96].mxu1 %v14414_v37  ;;  %1259 = vmatprep.mubr.bf16.mxu0 %v14312_v36 }
 0x1e4   : > { %1999 = vmatprep.mubr.bf16.mxu1 %v14312_v36 }
 0x1ea   : > { %1260 = vmatmul.mubr.bf16.gmra.mrb[100].mxu0 %v14412_v34 }
 0x1eb   : > { %2000 = vmatmul.mubr.bf16.gmra.mrb[100].mxu1 %v14420_v43  ;;  %1267 = vmatprep.mubr.bf16.mxu0 %v14312_v36 }
 0x1ec   : > { %2007 = vmatprep.mubr.bf16.mxu1 %v14312_v36 }
 0x1f2   : > { %1268 = vmatmul.mubr.bf16.gmra.mrb[104].mxu0 %v14414_v37 }
 0x1f3   : > { %2008 = vmatmul.mubr.bf16.gmra.mrb[104].mxu1 %v14422_v38  ;;  %1276 = vmatprep.mubr.bf16.mxu0 %v14312_v36 }
 0x1f4   : > { %2016 = vmatprep.mubr.bf16.mxu1 %v14312_v36 }
 0x1f5   : > { %v14486_v53 = vpop.f32.mrb[0].mxu0 }
 0x1f6   : > { %v1050_v19 = vpop.f32.mrb[1].mxu0 }
 0x1f7   : > { %v14488_v18 = vpop.f32.mrb[2].mxu0  ;;  %v13150_v19 = vld [vmem:[#allocation7 + $0x19c] ss:$12 sps:$4 sm:$0xff]  }
 0x1f8   : > { %v14490_v56 = vpop.f32.mrb[3].mxu0 }
 0x1fa   : > { %1277 = vmatmul.mubr.bf16.gmra.mrb[108].mxu0 %v14420_v43 }
 0x1fb   : > { %2017 = vmatmul.mubr.bf16.gmra.mrb[108].mxu1 %v14428_v39  ;;  %1284 = vmatprep.mubr.bf16.mxu0 %v14312_v36 }
 0x1fc   : > { %11761 = vmatprep.mubr.bf16.mxu1 %v14312_v36 }
 0x1fd   : > { %v14496_v57 = vpop.f32.mrb[4].mxu0 }
 0x1fe   : > { %v14498_v51 = vpop.f32.mrb[5].mxu0 }
 0x1ff   : > { %v1061_v48 = vpop.f32.mrb[6].mxu0 }
 0x200   : > { %v1062_v59 = vpop.f32.mrb[7].mxu0  ;;  %v13153_v48 = vld [vmem:[#allocation7 + $0x1b4] ss:$12 sps:$4 sm:$0xff]  }
 0x202   : > { %1285 = vmatmul.mubr.bf16.gmra.mrb[112].mxu0 %v14422_v38 }
 0x203   : > { %11762 = vmatmul.mubr.bf16.vlgmr.msra.gmra.mrb[0].mxu1 %v14312_v36  ;;  %1293 = vmatprep.mubr.bf16.mxu0 %v14312_v36 }
 0x204   : > { %11765 = vmatprep.mubr.bf16.mxu1 %v14271_v42  ;;  %11826 = vmatpush3.bf16.msra.mxu1 %v13157_v46 }
 0x205   : > { %v14504_v22 = vpop.f32.mrb[8].mxu0  ;;  %11827 = vmatprep.subr.bf16.mxu1 %v13158_v1 }
 0x206   : > { %v1067_v21 = vpop.f32.mrb[9].mxu0 }
 0x207   : > { %v14506_v63 = vpop.f32.mrb[10].mxu0 }
 0x208   : > { %v14508_v54 = vpop.f32.mrb[11].mxu0  ;;  %11828 = vmatpush3.bf16.msra.mxu1 %v13158_v1 }
 0x209   : > { %11829 = vmatprep.subr.bf16.mxu1 %v13159_v60 }
 0x20a   : > { %1294 = vmatmul.mubr.bf16.gmra.mrb[116].mxu0 %v14428_v39 }
 0x20b   : > { %11766 = vmatmul.mubr.bf16.gmra.mrb[4].mxu1 %v14273_v13  ;;  %1301 = vmatprep.mubr.bf16.mxu0 %v14312_v36 }
 0x20c   : > { %11769 = vmatprep.mubr.bf16.mxu1 %v14287_v0  ;;  %11830 = vmatpush3.bf16.msra.mxu1 %v13159_v60 }
 0x20d   : > { %v14514_v6 = vpop.f32.mrb[12].mxu0  ;;  %11831 = vmatprep.subr.bf16.mxu1 %v13160_v55 }
 0x20e   : > { %v14516_v62 = vpop.f32.mrb[13].mxu0 }
 0x20f   : > { %v1078_v3 = vpop.f32.mrb[14].mxu0 }
 0x210   : > { %v1079_v8 = vpop.f32.mrb[15].mxu0  ;;  %11832 = vmatpush3.bf16.msra.mxu1 %v13160_v55  ;;  %v13151_v55 = vld [vmem:[#allocation7 + $0x1b0] ss:$12 sps:$4 sm:$0xff]   ;;  %v13154_v3 = vld [vmem:[#allocation7 + $0x1c8] ss:$12 sps:$4 sm:$0xff]  }
 0x211   : > { %11833 = vmatprep.subr.bf16.mxu1 %v13164_v7 }
 0x212   : > { %1302 = vmatmul.mubr.bf16.gmra.mrb[120].mxu0 %v14430_v40 }
 0x213   : > { %11770 = vmatmul.mubr.bf16.gmra.mrb[8].mxu1 %v14298_v17  ;;  %1310 = vmatprep.mubr.bf16.mxu0 %v14312_v36 }
 0x214   : > { %11773 = vmatprep.mubr.bf16.mxu1 %v14300_v24  ;;  %11834 = vmatpush3.bf16.msra.mxu1 %v13164_v7  ;;  %v13156_v7 = vld [vmem:[#allocation7 + $0x1cc] ss:$12 sps:$4 sm:$0xff]  }
 0x215   : > { %v14522_v10 = vpop.f32.mrb[16].mxu0  ;;  %11835 = vmatprep.subr.bf16.mxu1 %v13165_v26 }
 0x216   : > { %v1084_v44 = vpop.f32.mrb[17].mxu0 }
 0x217   : > { %v14524_v16 = vpop.f32.mrb[18].mxu0 }
 0x218   : > { %v14526_v15 = vpop.f32.mrb[19].mxu0  ;;  %11836 = vmatpush3.bf16.msra.mxu1 %v13165_v26  ;;  %v13163_v26 = vld [vmem:[#allocation7 + $0x1e4] ss:$12 sps:$4 sm:$0xff]  }
 0x219   : > { %11837 = vmatprep.subr.bf16.mxu1 %v13166_v41 }
 0x21a   : > { %1311 = vmatmul.mubr.bf16.gmra.mrb[124].mxu0 %v14436_v14  ;;  %v13148_v14 = vld [vmem:[#allocation7 + $0x198] ss:$12 sps:$4 sm:$0xff]  }
 0x21b   : > { %11774 = vmatmul.mubr.bf16.gmra.mrb[12].mxu1 %v14324_v45  ;;  %1752 = vmatprep.mubr.bf16.mxu0 %v14312_v36 }
 0x21c   : > { %11777 = vmatprep.mubr.bf16.mxu1 %v14326_v58  ;;  %11838 = vmatpush3.bf16.msra.mxu1 %v13166_v41 }
 0x21d   : > { %v14532_v40 = vpop.f32.mrb[20].mxu0  ;;  %11839 = vmatprep.subr.bf16.mxu1 %v13167_v47 }
 0x21e   : > { %v14534_v49 = vpop.f32.mrb[21].mxu0 }
 0x21f   : > { %v1095_v50 = vpop.f32.mrb[22].mxu0 }
 0x220   : > { %v1096_v46 = vpop.f32.mrb[23].mxu0  ;;  %11840 = vmatpush3.bf16.msra.mxu1 %v13167_v47  ;;  %v13161_v50 = vld [vmem:[#allocation7 + $0x1e0] ss:$12 sps:$4 sm:$0xff]  }
 0x221   : > { %v13168_v46 = vld [vmem:[#allocation7 + $0x1f8] ss:$12 sps:$4 sm:$0xff]  }
 0x222   : > { %1753 = vmatmul.mubr.bf16.vlgmr.msra.gmra.mrb[128].mxu0 %v14312_v36 }
 0x223   : > { %2493 = vmatpush1.bf16.msra.mxu0 %v13145_v52  ;;  %11778 = vmatmul.mubr.bf16.gmra.mrb[16].mxu1 %v14340_v61  ;;  %v13170_v52 = vld [vmem:[#allocation7 + $0x1fc] ss:$12 sps:$4 sm:$0xff]  }
 0x224   : > { %11781 = vmatprep.mubr.bf16.mxu1 %v14342_v5  ;;  %1761 = vmatprep.mubr.bf16.mxu0 %v14312_v36 }
 0x225   : > { %v14540_v59 = vpop.f32.mrb[24].mxu0  ;;  %2494 = vmatprep.subr.bf16.mxu0 %v13150_v19 }
 0x226   : > { %v1101_v1 = vpop.f32.mrb[25].mxu0 }
 0x227   : > { %v14542_v60 = vpop.f32.mrb[26].mxu0  ;;  %2495 = vmatpush1.bf16.msra.mxu0 %v13148_v14  ;;  %v13173_v14 = vld [vmem:[#allocation7 + $0x214] ss:$12 sps:$4 sm:$0xff]  }
 0x228   : > { %v14544_v21 = vpop.f32.mrb[27].mxu0  ;;  %2496 = vmatprep.subr.bf16.mxu0 %v13153_v48 }
 0x22a   : > { %1762 = vmatmul.mubr.bf16.gmra.mrb[132].mxu0 %v14312_v36 }
 0x22b   : > { %11782 = vmatmul.mubr.bf16.gmra.mrb[20].mxu1 %v14348_v11  ;;  %1769 = vmatprep.mubr.bf16.mxu0 %v14312_v36 }
 0x22c   : > { %11785 = vmatprep.mubr.bf16.mxu1 %v14350_v12  ;;  %2497 = vmatpush1.bf16.msra.mxu0 %v13151_v55 }
 0x22d   : > { %v14550_v8 = vpop.f32.mrb[28].mxu0  ;;  %2498 = vmatprep.subr.bf16.mxu0 %v13156_v7  ;;  %v13171_v7 = vld [vmem:[#allocation7 + $0x210] ss:$12 sps:$4 sm:$0xff]  }
 0x22e   : > { %v14552_v41 = vpop.f32.mrb[29].mxu0 }
 0x22f   : > { %v1112_v44 = vpop.f32.mrb[30].mxu0 }
 0x230   : > { %v1113_v47 = vpop.f32.mrb[31].mxu0  ;;  %2499 = vmatpush1.bf16.msra.mxu0 %v13154_v3  ;;  %v13174_v3 = vld [vmem:[#allocation7 + $0x228] ss:$12 sps:$4 sm:$0xff]  }
 0x231   : > { %2500 = vmatprep.subr.bf16.mxu0 %v13163_v26 }
 0x232   : > { %1770 = vmatmul.mubr.bf16.gmra.mrb[136].mxu0 %v14271_v42  ;;  %v13176_v42 = vld [vmem:[#allocation7 + $0x22c] ss:$12 sps:$4 sm:$0xff]  }
 0x233   : > { %11786 = vmatmul.mubr.bf16.gmra.mrb[24].mxu1 %v14356_v25  ;;  %1778 = vmatprep.mubr.bf16.mxu0 %v14312_v36 }
 0x234   : > { %11789 = vmatprep.mubr.bf16.mxu1 %v14358_v20  ;;  %2501 = vmatpush1.bf16.msra.mxu0 %v13161_v50 }
 0x235   : > { %v14558_v19 = vpop.f32.mrb[32].mxu0  ;;  %2502 = vmatprep.subr.bf16.mxu0 %v13170_v52 }
 0x236   : > { %v1118_v48 = vpop.f32.mrb[33].mxu0 }
 0x237   : > { %v14560_v1 = vpop.f32.mrb[34].mxu0 }
 0x238   : > { %v14562_v55 = vpop.f32.mrb[35].mxu0  ;;  %2503 = vmatpush1.bf16.msra.mxu0 %v13168_v46 }
 0x239   : > { %2504 = vmatprep.subr.bf16.mxu0 %v13173_v14 }
 0x23a   : > { %1779 = vmatmul.mubr.bf16.gmra.mrb[140].mxu0 %v14273_v13 }
 0x23b   : > { %11790 = vmatmul.mubr.bf16.gmra.mrb[28].mxu1 %v14364_v4  ;;  %1786 = vmatprep.mubr.bf16.mxu0 %v14312_v36 }
 0x23c   : > { %11793 = vmatprep.mubr.bf16.mxu1 %v14366_v23  ;;  %2505 = vmatpush1.bf16.msra.mxu0 %v13171_v7 }
 0x23d   : > { %v14568_v26 = vpop.f32.mrb[36].mxu0  ;;  %2506 = vmatprep.subr.bf16.mxu0 %v13176_v42 }
 0x23e   : > { %v14570_v44 = vpop.f32.mrb[37].mxu0 }
 0x23f   : > { %v1129_v47 = vpop.f32.mrb[38].mxu0 }
 0x240   : > { %v1130_v50 = vpop.f32.mrb[39].mxu0  ;;  %2507 = vmatpush1.bf16.msra.mxu0 %v13174_v3 }
 0x242   : > { %1787 = vmatmul.mubr.bf16.gmra.mrb[144].mxu0 %v14287_v0 }
 0x243   : > { %11794 = vmatmul.mubr.bf16.gmra.mrb[32].mxu1 %v14372_v33  ;;  %1795 = vmatprep.mubr.bf16.mxu0 %v14312_v36 }
 0x244   : > { %11797 = vmatprep.mubr.bf16.mxu1 %v14374_v2 }
 0x245   : > { %v14576_v13 = vpop.f32.mrb[40].mxu0 }
 0x246   : > { %18288 = vst [vmem:[#allocation21_spill] sm:$0xff] %v14576_v13  ;;  %v1135_v52 = vpop.f32.mrb[41].mxu0  ;;  %v14775_v13 = vld [vmem:[#allocation2 + $0x98] sm:$0xff] }
 0x247   : > { %v14578_v46 = vpop.f32.mrb[42].mxu0 }
 0x248   : > { %18289 = vst [vmem:[#allocation22_spill] sm:$0xff] %v14578_v46  ;;  %v14580_v14 = vpop.f32.mrb[43].mxu0 }
 0x249   : > { %18290 = vst [vmem:[#allocation23_spill] sm:$0xff] %v14580_v14  ;;  %v14736_v14 = vld [vmem:[#allocation2 + $0x78] sm:$0xff] }
 0x24a   : > { %1796 = vmatmul.mubr.bf16.gmra.mrb[148].mxu0 %v14298_v17 }
 0x24b   : > { %11798 = vmatmul.mubr.bf16.gmra.mrb[36].mxu1 %v14380_v32  ;;  %1803 = vmatprep.mubr.bf16.mxu0 %v14312_v36 }
 0x24c   : > { %11801 = vmatprep.mubr.bf16.mxu1 %v14382_v27 }
 0x24d   : > { %v14586_v0 = vpop.f32.mrb[44].mxu0 }
 0x24e   : > { %18291 = vst [vmem:[#allocation24_spill] sm:$0xff] %v14586_v0  ;;  %v14588_v48 = vpop.f32.mrb[45].mxu0  ;;  %v14718_v0 = vld [vmem:[#allocation2 + $0x70] sm:$0xff] }
 0x24f   : > { %18292 = vst [vmem:[#allocation25_spill] sm:$0xff] %v14588_v48  ;;  %v1146_v7 = vpop.f32.mrb[46].mxu0  ;;  %v14699_v48 = vld [vmem:[#allocation2 + $0x58] sm:$0xff] }
 0x250   : > { %v1147_v42 = vpop.f32.mrb[47].mxu0 }
 0x252   : > { %1804 = vmatmul.mubr.bf16.gmra.mrb[152].mxu0 %v14300_v24 }
 0x253   : > { %11802 = vmatmul.mubr.bf16.gmra.mrb[40].mxu1 %v14388_v9  ;;  %1812 = vmatprep.mubr.bf16.mxu0 %v14312_v36 }
 0x254   : > { %11805 = vmatprep.mubr.bf16.mxu1 %v14390_v28 }
 0x255   : > { %v14594_v17 = vpop.f32.mrb[48].mxu0 }
 0x256   : > { %18293 = vst [vmem:[#allocation26_spill] sm:$0xff] %v14594_v17  ;;  %v1152_v3 = vpop.f32.mrb[49].mxu0 }
 0x257   : > { %v14596_v47 = vpop.f32.mrb[50].mxu0 }
 0x258   : > { %18294 = vst [vmem:[#allocation27_spill] sm:$0xff] %v14596_v47  ;;  %v14598_v27 = vpop.f32.mrb[51].mxu0 }
 0x259   : > { %18295 = vst [vmem:[#allocation28_spill] sm:$0xff] %v14598_v27 }
 0x25a   : > { %1813 = vmatmul.mubr.bf16.gmra.mrb[156].mxu0 %v14324_v45 }
 0x25b   : > { %11806 = vmatmul.mubr.bf16.gmra.mrb[44].mxu1 %v14396_v29  ;;  %1820 = vmatprep.mubr.bf16.mxu0 %v14312_v36 }
 0x25c   : > { %11809 = vmatprep.mubr.bf16.mxu1 %v14398_v30 }
 0x25d   : > { %v14604_v24 = vpop.f32.mrb[52].mxu0 }
 0x25e   : > { %18296 = vst [vmem:[#allocation29_spill] sm:$0xff] %v14604_v24  ;;  %v14606_v9 = vpop.f32.mrb[53].mxu0 }
 0x25f   : > { %18297 = vst [vmem:[#allocation30_spill] sm:$0xff] %v14606_v9  ;;  %v1163_v28 = vpop.f32.mrb[54].mxu0  ;;  %v14682_v9 = vld [vmem:[#allocation2 + $0x50] sm:$0xff] }
 0x260   : > { %v1164_v50 = vpop.f32.mrb[55].mxu0 }
 0x262   : > { %1821 = vmatmul.mubr.bf16.gmra.mrb[160].mxu0 %v14326_v58 }
 0x263   : > { %11810 = vmatmul.mubr.bf16.gmra.mrb[48].mxu1 %v14404_v35  ;;  %1829 = vmatprep.mubr.bf16.mxu0 %v14312_v36 }
 0x264   : > { %11813 = vmatprep.mubr.bf16.mxu1 %v14406_v31 }
 0x265   : > { %v14612_v45 = vpop.f32.mrb[56].mxu0 }
 0x266   : > { %18298 = vst [vmem:[#allocation31_spill] sm:$0xff] %v14612_v45  ;;  %v1169_v29 = vpop.f32.mrb[57].mxu0  ;;  %v14679_v45 = vld [vmem:[#allocation2 + $0x48] sm:$0xff] }
 0x267   : > { %v14614_v52 = vpop.f32.mrb[58].mxu0 }
 0x268   : > { %18299 = vst [vmem:[#allocation32_spill] sm:$0xff] %v14614_v52  ;;  %v14616_v30 = vpop.f32.mrb[59].mxu0 }
 0x269   : > { %18300 = vst [vmem:[#allocation33_spill] sm:$0xff] %v14616_v30 }
 0x26a   : > { %1830 = vmatmul.mubr.bf16.gmra.mrb[164].mxu0 %v14340_v61 }
 0x26b   : > { %11814 = vmatmul.mubr.bf16.gmra.mrb[52].mxu1 %v14412_v34  ;;  %1837 = vmatprep.mubr.bf16.mxu0 %v14312_v36 }
 0x26c   : > { %11817 = vmatprep.mubr.bf16.mxu1 %v14414_v37 }
 0x26d   : > { %v14622_v58 = vpop.f32.mrb[60].mxu0 }
 0x26e   : > { %18301 = vst [vmem:[#allocation34_spill] sm:$0xff] %v14622_v58  ;;  %v14624_v35 = vpop.f32.mrb[61].mxu0  ;;  %v14666_v58 = vld [vmem:[#allocation2 + $0x40] sm:$0xff] }
 0x26f   : > { %18302 = vst [vmem:[#allocation35_spill] sm:$0xff] %v14624_v35  ;;  %v1180_v31 = vpop.f32.mrb[62].mxu0  ;;  %v14663_v35 = vld [vmem:[#allocation2 + $0x38] sm:$0xff] }
 0x270   : > { %v1181_v7 = vpop.f32.mrb[63].mxu0 }
 0x272   : > { %1838 = vmatmul.mubr.bf16.gmra.mrb[168].mxu0 %v14342_v5  ;;  %v14638_v5 = vld [vmem:[#allocation2 + $0x20] sm:$0xff] }
 0x273   : > { %11818 = vmatmul.mubr.bf16.gmra.mrb[56].mxu1 %v14420_v43  ;;  %1846 = vmatprep.mubr.bf16.mxu0 %v14312_v36 }
 0x274   : > { %11821 = vmatprep.mubr.bf16.mxu1 %v14422_v38 }
 0x275   : > { %v14630_v61 = vpop.f32.mrb[64].mxu0 }
 0x276   : > { %18303 = vst [vmem:[#allocation36_spill] sm:$0xff] %v14630_v61  ;;  %v1186_v34 = vpop.f32.mrb[65].mxu0  ;;  %v1924_v42 = vpop.f32.mrb[64].mxu1 }
 0x277   : > { %v14632_v3 = vpop.f32.mrb[66].mxu0  ;;  %v1926_v37 = vpop.f32.mrb[65].mxu1 }
 0x278   : > { %18304 = vst [vmem:[#allocation37_spill] sm:$0xff] %v14632_v3  ;;  %v14634_v28 = vpop.f32.mrb[67].mxu0  ;;  %v1927_v50 = vpop.f32.mrb[66].mxu1 }
 0x279   : > { %18305 = vst [vmem:[#allocation38_spill] sm:$0xff] %v14634_v28  ;;  %v1929_v29 = vpop.f32.mrb[67].mxu1 }
 0x27a   : > { %1847 = vmatmul.mubr.bf16.gmra.mrb[172].mxu0 %v14348_v11  ;;  %v14647_v11 = vld [vmem:[#allocation2 + $0x28] sm:$0xff] }
 0x27b   : > { %11822 = vmatmul.mubr.bf16.gmra.mrb[60].mxu1 %v14428_v39  ;;  %1854 = vmatprep.mubr.bf16.mxu0 %v14312_v36  ;;  %v14650_v39 = vld [vmem:[#allocation2 + $0x30] sm:$0xff] }
 0x27c   : > { %11841 = vmatprep.mubr.bf16.mxu1 %v14638_v5 }
 0x27d   : > { %v14642_v43 = vpop.f32.mrb[68].mxu0 }
 0x27e   : > { %18306 = vst [vmem:[#allocation39_spill] sm:$0xff] %v14642_v43  ;;  %v14644_v38 = vpop.f32.mrb[69].mxu0  ;;  %v1933_v31 = vpop.f32.mrb[68].mxu1 }
 0x27f   : > { %18307 = vst [vmem:[#allocation40_spill] sm:$0xff] %v14644_v38  ;;  %v1197_v7 = vpop.f32.mrb[70].mxu0  ;;  %v1935_v34 = vpop.f32.mrb[69].mxu1 }
 0x280   : > { %v1198_v37 = vpop.f32.mrb[71].mxu0  ;;  %v1937_v28 = vpop.f32.mrb[70].mxu1 }
 0x281   : > { %v1938_v3 = vpop.f32.mrb[71].mxu1 }
 0x282   : > { %1855 = vmatmul.mubr.bf16.gmra.mrb[176].mxu0 %v14350_v12 }
 0x283   : > { %11842 = vmatmul.mubr.bf16.vlgmr.msra.gmra.mrb[0].mxu1 %v14647_v11  ;;  %1863 = vmatprep.mubr.bf16.mxu0 %v14312_v36 }
 0x284   : > { %11845 = vmatprep.mubr.bf16.mxu1 %v14650_v39 }
 0x285   : > { %v14654_v43 = vpop.f32.mrb[72].mxu0 }
 0x286   : > { %18308 = vst [vmem:[#allocation41_spill] sm:$0xff] %v14654_v43  ;;  %v1203_v38 = vpop.f32.mrb[73].mxu0  ;;  %v1941_v7 = vpop.f32.mrb[72].mxu1 }
 0x287   : > { %v14656_v61 = vpop.f32.mrb[74].mxu0  ;;  %v1943_v28 = vpop.f32.mrb[73].mxu1 }
 0x288   : > { %18309 = vst [vmem:[#allocation42_spill] sm:$0xff] %v14656_v61  ;;  %v14658_v3 = vpop.f32.mrb[75].mxu0  ;;  %v1944_v12 = vpop.f32.mrb[74].mxu1 }
 0x289   : > { %18310 = vst [vmem:[#allocation43_spill] sm:$0xff] %v14658_v3  ;;  %v14660_v37 = vpop.f32.mrb[75].mxu1 }
 0x28a   : > { %1864 = vmatmul.mubr.bf16.gmra.mrb[180].mxu0 %v14356_v25 }
 0x28b   : > { %11846 = vmatmul.mubr.bf16.gmra.mrb[4].mxu1 %v14663_v35  ;;  %1871 = vmatprep.mubr.bf16.mxu0 %v14312_v36 }
 0x28c   : > { %11849 = vmatprep.mubr.bf16.mxu1 %v14666_v58 }
 0x28d   : > { %v14670_v38 = vpop.f32.mrb[76].mxu0 }
 0x28e   : > { %18311 = vst [vmem:[#allocation44_spill] sm:$0xff] %v14670_v38  ;;  %v14672_v28 = vpop.f32.mrb[77].mxu0  ;;  %v14674_v3 = vpop.f32.mrb[76].mxu1 }
 0x28f   : > { %18312 = vst [vmem:[#allocation45_spill] sm:$0xff] %v14672_v28  ;;  %v1214_v61 = vpop.f32.mrb[78].mxu0  ;;  %v14676_v43 = vpop.f32.mrb[77].mxu1 }
 0x290   : > { %v1215_v25 = vpop.f32.mrb[79].mxu0  ;;  %v1954_v30 = vpop.f32.mrb[78].mxu1 }
 0x291   : > { %v1955_v52 = vpop.f32.mrb[79].mxu1 }
 0x292   : > { %1872 = vmatmul.mubr.bf16.gmra.mrb[184].mxu0 %v14358_v20 }
 0x293   : > { %11850 = vmatmul.mubr.bf16.gmra.mrb[8].mxu1 %v14679_v45  ;;  %1880 = vmatprep.mubr.bf16.mxu0 %v14312_v36 }
 0x294   : > { %11853 = vmatprep.mubr.bf16.mxu1 %v14682_v9 }
 0x295   : > { %v1218_v28 = vpop.f32.mrb[80].mxu0 }
 0x296   : > { %v14686_v38 = vadd.f32 %v1924_v42, %v1218_v28  ;;  %v1220_v61 = vpop.f32.mrb[81].mxu0  ;;  %v14688_v24 = vpop.f32.mrb[80].mxu1  ;;  %v14702_v42 = vld [vmem:[#allocation2 + $0x60] sm:$0xff] }
 0x297   : > { %v1221_v30 = vpop.f32.mrb[82].mxu0  ;;  %v1960_v52 = vpop.f32.mrb[81].mxu1 }
 0x298   : > { %18313 = vst [vmem:[#allocation46_spill] sm:$0xff] %v14686_v38  ;;  %v14690_v25 = vadd.f32 %v1927_v50, %v1221_v30  ;;  %v1223_v20 = vpop.f32.mrb[83].mxu0  ;;  %v14692_v27 = vpop.f32.mrb[82].mxu1  ;;  %v14715_v38 = vld [vmem:[#allocation2 + $0x68] sm:$0xff] }
 0x299   : > { %v14694_v47 = vadd.f32 %v1929_v29, %v1223_v20  ;;  %v14696_v17 = vpop.f32.mrb[83].mxu1 }
 0x29a   : > { %18314 = vst [vmem:[#allocation47_spill] sm:$0xff] %v14690_v25  ;;  %1881 = vmatmul.mubr.bf16.gmra.mrb[188].mxu0 %v14364_v4 }
 0x29b   : > { %18315 = vst [vmem:[#allocation48_spill] sm:$0xff] %v14694_v47  ;;  %11854 = vmatmul.mubr.bf16.gmra.mrb[12].mxu1 %v14699_v48  ;;  %1888 = vmatprep.mubr.bf16.mxu0 %v14312_v36 }
 0x29c   : > { %11857 = vmatprep.mubr.bf16.mxu1 %v14702_v42 }
 0x29d   : > { %v1227_v50 = vpop.f32.mrb[84].mxu0 }
 0x29e   : > { %v14706_v28 = vadd.f32 %v1933_v31, %v1227_v50  ;;  %v1229_v61 = vpop.f32.mrb[85].mxu0  ;;  %v14708_v29 = vpop.f32.mrb[84].mxu1 }
 0x29f   : > { %v14710_v30 = vadd.f32 %v1935_v34, %v1229_v61  ;;  %v1231_v52 = vpop.f32.mrb[86].mxu0  ;;  %v14712_v4 = vpop.f32.mrb[85].mxu1 }
 0x2a0   : > { %18316 = vst [vmem:[#allocation49_spill] sm:$0xff] %v14706_v28  ;;  %v1232_v20 = vpop.f32.mrb[87].mxu0  ;;  %v1971_v47 = vpop.f32.mrb[86].mxu1 }
 0x2a1   : > { %18317 = vst [vmem:[#allocation50_spill] sm:$0xff] %v14710_v30  ;;  %v1972_v25 = vpop.f32.mrb[87].mxu1 }
 0x2a2   : > { %1889 = vmatmul.mubr.bf16.gmra.mrb[192].mxu0 %v14366_v23 }
 0x2a3   : > { %11858 = vmatmul.mubr.bf16.gmra.mrb[16].mxu1 %v14715_v38  ;;  %1897 = vmatprep.mubr.bf16.mxu0 %v14312_v36 }
 0x2a4   : > { %11861 = vmatprep.mubr.bf16.mxu1 %v14718_v0 }
 0x2a5   : > { %v1235_v31 = vpop.f32.mrb[88].mxu0 }
 0x2a6   : > { %v14722_v34 = vadd.f32 %v1941_v7, %v1235_v31  ;;  %v1237_v50 = vpop.f32.mrb[89].mxu0  ;;  %v14724_v61 = vpop.f32.mrb[88].mxu1  ;;  %v14739_v7 = vld [vmem:[#allocation2 + $0x80] sm:$0xff] }
 0x2a7   : > { %v1238_v47 = vpop.f32.mrb[90].mxu0  ;;  %v1977_v25 = vpop.f32.mrb[89].mxu1 }
 0x2a8   : > { %18318 = vst [vmem:[#allocation51_spill] sm:$0xff] %v14722_v34  ;;  %v14726_v52 = vadd.f32 %v1944_v12, %v1238_v47  ;;  %v1240_v23 = vpop.f32.mrb[91].mxu0  ;;  %v14728_v20 = vpop.f32.mrb[90].mxu1 }
 0x2a9   : > { %v14731_v30 = vadd.f32 %v14660_v37, %v1240_v23  ;;  %v14733_v28 = vpop.f32.mrb[91].mxu1 }
 0x2aa   : > { %18319 = vst [vmem:[#allocation52_spill] sm:$0xff] %v14726_v52  ;;  %1898 = vmatmul.mubr.bf16.gmra.mrb[196].mxu0 %v14372_v33 }
 0x2ab   : > { %18320 = vst [vmem:[#allocation53_spill] sm:$0xff] %v14731_v30  ;;  %11862 = vmatmul.mubr.bf16.gmra.mrb[20].mxu1 %v14736_v14  ;;  %1905 = vmatprep.mubr.bf16.mxu0 %v14312_v36  ;;  %v14754_v36 = vld [vmem:[#allocation2 + $0x88] sm:$0xff] }
 0x2ac   : > { %11865 = vmatprep.mubr.bf16.mxu1 %v14739_v7 }
 0x2ad   : > { %v1244_v12 = vpop.f32.mrb[92].mxu0 }
 0x2ae   : > { %v14744_v31 = vadd.f32 %v14674_v3, %v1244_v12  ;;  %v1246_v37 = vpop.f32.mrb[93].mxu0  ;;  %v14746_v50 = vpop.f32.mrb[92].mxu1  ;;  %v14757_v3 = vld [vmem:[#allocation2 + $0x90] sm:$0xff]  ;;  %v14759_v12 = vld [vmem:[#allocation2] sm:$0xff] }
 0x2af   : > { %v14749_v47 = vadd.f32 %v14676_v43, %v1246_v37  ;;  %v1248_v33 = vpop.f32.mrb[94].mxu0  ;;  %v14751_v25 = vpop.f32.mrb[93].mxu1 }
 0x2b0   : > { %18321 = vst [vmem:[#allocation54_spill] sm:$0xff] %v14744_v31  ;;  %v1249_v23 = vpop.f32.mrb[95].mxu0  ;;  %v1988_v30 = vpop.f32.mrb[94].mxu1 }
 0x2b1   : > { %18322 = vst [vmem:[#allocation55_spill] sm:$0xff] %v14749_v47  ;;  %v1989_v52 = vpop.f32.mrb[95].mxu1 }
 0x2b2   : > { %1906 = vmatmul.mubr.bf16.gmra.mrb[200].mxu0 %v14374_v2 }
 0x2b3   : > { %11866 = vmatmul.mubr.bf16.gmra.mrb[24].mxu1 %v14754_v36  ;;  %1914 = vmatprep.mubr.bf16.mxu0 %v14759_v12 }
 0x2b4   : > { %11869 = vmatprep.mubr.bf16.mxu1 %v14757_v3 }
 0x2b5   : > { %v1252_v43 = vpop.f32.mrb[96].mxu0 }
 0x2b6   : > { %v14764_v37 = vadd.f32 %v14688_v24, %v1252_v43  ;;  %v1254_v30 = vpop.f32.mrb[97].mxu0  ;;  %v14766_v52 = vpop.f32.mrb[96].mxu1  ;;  %v14778_v24 = vld [vmem:[#allocation2 + $0xa0] sm:$0xff] }
 0x2b7   : > { %v1255_v2 = vpop.f32.mrb[98].mxu0  ;;  %v1994_v33 = vpop.f32.mrb[97].mxu1  ;;  %18326 = vst [vmem:[#allocation59_spill] sm:$0xff] %v14778_v24 }
 0x2b8   : > { %18323 = vst [vmem:[#allocation56_spill] sm:$0xff] %v14764_v37  ;;  %v14769_v23 = vadd.f32 %v14692_v27, %v1255_v2  ;;  %v1257_v47 = vpop.f32.mrb[99].mxu0  ;;  %v1995_v31 = vpop.f32.mrb[98].mxu1  ;;  %v14789_v37 = vld [vmem:[#allocation2 + $0xa8] sm:$0xff] }
 0x2b9   : > { %v14772_v34 = vadd.f32 %v14696_v17, %v1257_v47  ;;  %v1997_v46 = vpop.f32.mrb[99].mxu1 }
 0x2ba   : > { %18324 = vst [vmem:[#allocation57_spill] sm:$0xff] %v14769_v23  ;;  %1915 = vmatmul.mubr.bf16.gmra.mrb[204].mxu0 %v14380_v32 }
 0x2bb   : > { %18325 = vst [vmem:[#allocation58_spill] sm:$0xff] %v14772_v34  ;;  %11870 = vmatmul.mubr.bf16.gmra.mrb[28].mxu1 %v14775_v13  ;;  %2524 = vmatprep.mubr.bf16.mxu0 %v14759_v12 }
 0x2bc   : > { %11873 = vmatprep.mubr.bf16.mxu1 %v14778_v24  ;;  %v14792_v24 = vld [vmem:[#allocation2 + $0xb0] sm:$0xff] }
 0x2bd   : > { %v1261_v27 = vpop.f32.mrb[100].mxu0  ;;  %18329 = vst [vmem:[#allocation62_spill] sm:$0xff] %v14792_v24 }
 0x2be   : > { %v14783_v43 = vadd.f32 %v14708_v29, %v1261_v27  ;;  %v1263_v30 = vpop.f32.mrb[101].mxu0  ;;  %v2001_v17 = vpop.f32.mrb[100].mxu1 }
 0x2bf   : > { %v14786_v47 = vadd.f32 %v14712_v4, %v1263_v30  ;;  %v1265_v32 = vpop.f32.mrb[102].mxu0  ;;  %v2003_v2 = vpop.f32.mrb[101].mxu1 }
 0x2c0   : > { %18327 = vst [vmem:[#allocation60_spill] sm:$0xff] %v14783_v43  ;;  %v1266_v33 = vpop.f32.mrb[103].mxu0  ;;  %v2005_v34 = vpop.f32.mrb[102].mxu1 }
 0x2c1   : > { %18328 = vst [vmem:[#allocation61_spill] sm:$0xff] %v14786_v47  ;;  %v2006_v23 = vpop.f32.mrb[103].mxu1 }
 0x2c2   : > { %2525 = vmatmul.mubr.bf16.vlgmr.msra.gmra.mrb[208].mxu0 %v14638_v5 }
 0x2c3   : > { %11874 = vmatmul.mubr.bf16.gmra.mrb[32].mxu1 %v14789_v37  ;;  %2533 = vmatprep.mubr.bf16.mxu0 %v14759_v12 }
 0x2c4   : > { %11877 = vmatprep.mubr.bf16.mxu1 %v14792_v24  ;;  %v14806_v24 = vld [vmem:[#allocation2 + $0xb8] sm:$0xff] }
 0x2c5   : > { %v1269_v29 = vpop.f32.mrb[104].mxu0 }
 0x2c6   : > { %v14797_v4 = vadd.f32 %v14724_v61, %v1269_v29  ;;  %v1271_v27 = vpop.f32.mrb[105].mxu0  ;;  %v2009_v30 = vpop.f32.mrb[104].mxu1  ;;  %v14809_v61 = vld [vmem:[#allocation2 + $0xc0] sm:$0xff] }
 0x2c7   : > { %v1272_v34 = vpop.f32.mrb[106].mxu0  ;;  %v2011_v23 = vpop.f32.mrb[105].mxu1  ;;  %18333 = vst [vmem:[#allocation66_spill] sm:$0xff] %v14809_v61 }
 0x2c8   : > { %18330 = vst [vmem:[#allocation63_spill] sm:$0xff] %v14797_v4  ;;  %v14800_v5 = vadd.f32 %v14728_v20, %v1272_v34  ;;  %v1274_v32 = vpop.f32.mrb[107].mxu0  ;;  %v2012_v33 = vpop.f32.mrb[106].mxu1  ;;  %v14820_v4 = vld [vmem:[#allocation2 + $0xc8] sm:$0xff] }
 0x2c9   : > { %v14803_v47 = vadd.f32 %v14733_v28, %v1274_v32  ;;  %v2014_v43 = vpop.f32.mrb[107].mxu1 }
 0x2ca   : > { %18331 = vst [vmem:[#allocation64_spill] sm:$0xff] %v14800_v5  ;;  %2534 = vmatmul.mubr.bf16.gmra.mrb[212].mxu0 %v14647_v11 }
 0x2cb   : > { %18332 = vst [vmem:[#allocation65_spill] sm:$0xff] %v14803_v47  ;;  %11878 = vmatmul.mubr.bf16.gmra.mrb[36].mxu1 %v14806_v24  ;;  %2541 = vmatprep.mubr.bf16.mxu0 %v14759_v12 }
 0x2cc   : > { %11881 = vmatprep.mubr.bf16.mxu1 %v14809_v61  ;;  %v14823_v61 = vld [vmem:[#allocation2 + $0xd0] sm:$0xff] }
 0x2cd   : > { %v1278_v20 = vpop.f32.mrb[108].mxu0 }
 0x2ce   : > { %v14814_v29 = vadd.f32 %v14746_v50, %v1278_v20  ;;  %v1280_v27 = vpop.f32.mrb[109].mxu0  ;;  %v2018_v28 = vpop.f32.mrb[108].mxu1 }
 0x2cf   : > { %v14817_v34 = vadd.f32 %v14751_v25, %v1280_v27  ;;  %v1282_v11 = vpop.f32.mrb[110].mxu0  ;;  %v2020_v23 = vpop.f32.mrb[109].mxu1 }
 0x2d0   : > { %18334 = vst [vmem:[#allocation67_spill] sm:$0xff] %v14814_v29  ;;  %v1283_v32 = vpop.f32.mrb[111].mxu0  ;;  %v2022_v47 = vpop.f32.mrb[110].mxu1  ;;  %v14835_v11 = vld [vmem:[#allocation2 + $0xd8] sm:$0xff]  ;;  %v18367_v29 = vld [vmem:[#allocation66_spill] sm:$0xff] }
 0x2d1   : > { %18335 = vst [vmem:[#allocation68_spill] sm:$0xff] %v14817_v34  ;;  %v2023_v5 = vpop.f32.mrb[111].mxu1  ;;  %v14838_v32 = vld [vmem:[#allocation2 + $0xe0] sm:$0xff] }
 0x2d2   : > { %2542 = vmatmul.mubr.bf16.gmra.mrb[216].mxu0 %v14650_v39 }
 0x2d3   : > { %11882 = vmatmul.mubr.bf16.gmra.mrb[40].mxu1 %v14820_v4  ;;  %2550 = vmatprep.mubr.bf16.mxu0 %v14759_v12 }
 0x2d4   : > { %11885 = vmatprep.mubr.bf16.mxu1 %v14823_v61 }
 0x2d5   : > { %v1286_v50 = vpop.f32.mrb[112].mxu0 }
 0x2d6   : > { %v14828_v25 = vadd.f32 %v14766_v52, %v1286_v50  ;;  %v1288_v20 = vpop.f32.mrb[113].mxu0 }
 0x2d7   : > { %v1289_v27 = vpop.f32.mrb[114].mxu0 }
 0x2d8   : > { %18336 = vst [vmem:[#allocation69_spill] sm:$0xff] %v14828_v25  ;;  %v14830_v47 = vadd.f32 %v1995_v31, %v1289_v27  ;;  %v1291_v5 = vpop.f32.mrb[115].mxu0 }
 0x2d9   : > { %v14832_v39 = vadd.f32 %v1997_v46, %v1291_v5  ;;  %v14850_v5 = vld [vmem:[#allocation2 + $0xf0] sm:$0xff] }
 0x2da   : > { %18337 = vst [vmem:[#allocation70_spill] sm:$0xff] %v14830_v47  ;;  %2551 = vmatmul.mubr.bf16.gmra.mrb[220].mxu0 %v14663_v35  ;;  %v14847_v35 = vld [vmem:[#allocation2 + $0xe8] sm:$0xff] }
 0x2db   : > { %18338 = vst [vmem:[#allocation71_spill] sm:$0xff] %v14832_v39  ;;  %11886 = vmatmul.mubr.bf16.gmra.mrb[44].mxu1 %v14835_v11  ;;  %2558 = vmatprep.mubr.bf16.mxu0 %v14759_v12 }
 0x2dc   : > { %11889 = vmatprep.mubr.bf16.mxu1 %v14838_v32 }
 0x2dd   : > { %v1295_v52 = vpop.f32.mrb[116].mxu0 }
 0x2de   : > { %v14842_v50 = vadd.f32 %v2001_v17, %v1295_v52  ;;  %v1297_v31 = vpop.f32.mrb[117].mxu0 }
 0x2df   : > { %v14844_v20 = vadd.f32 %v2003_v2, %v1297_v31  ;;  %v1299_v46 = vpop.f32.mrb[118].mxu0 }
 0x2e0   : > { %18339 = vst [vmem:[#allocation72_spill] sm:$0xff] %v14842_v50  ;;  %v1300_v27 = vpop.f32.mrb[119].mxu0 }
 0x2e1   : > { %18340 = vst [vmem:[#allocation73_spill] sm:$0xff] %v14844_v20  ;;  %v14864_v20 = vld [vmem:[#allocation2 + $0x100] sm:$0xff] }
 0x2e2   : > { %2559 = vmatmul.mubr.bf16.gmra.mrb[224].mxu0 %v14666_v58  ;;  %v14861_v58 = vld [vmem:[#allocation2 + $0xf8] sm:$0xff] }
 0x2e3   : > { %11890 = vmatmul.mubr.bf16.gmra.mrb[48].mxu1 %v14847_v35  ;;  %2567 = vmatprep.mubr.bf16.mxu0 %v14759_v12 }
 0x2e4   : > { %11893 = vmatprep.mubr.bf16.mxu1 %v14850_v5 }
 0x2e5   : > { %v1303_v39 = vpop.f32.mrb[120].mxu0 }
 0x2e6   : > { %v14854_v17 = vadd.f32 %v2009_v30, %v1303_v39  ;;  %v1305_v52 = vpop.f32.mrb[121].mxu0 }
 0x2e7   : > { %v1306_v2 = vpop.f32.mrb[122].mxu0 }
 0x2e8   : > { %18341 = vst [vmem:[#allocation74_spill] sm:$0xff] %v14854_v17  ;;  %v14856_v31 = vadd.f32 %v2012_v33, %v1306_v2  ;;  %v1308_v46 = vpop.f32.mrb[123].mxu0 }
 0x2e9   : > { %v14858_v27 = vadd.f32 %v2014_v43, %v1308_v46 }
 0x2ea   : > { %18342 = vst [vmem:[#allocation75_spill] sm:$0xff] %v14856_v31  ;;  %2568 = vmatmul.mubr.bf16.gmra.mrb[228].mxu0 %v14679_v45  ;;  %v14873_v45 = vld [vmem:[#allocation2 + $0x108] sm:$0xff] }
 0x2eb   : > { %18343 = vst [vmem:[#allocation76_spill] sm:$0xff] %v14858_v27  ;;  %11894 = vmatmul.mubr.bf16.gmra.mrb[52].mxu1 %v14861_v58  ;;  %2575 = vmatprep.mubr.bf16.mxu0 %v14759_v12 }
 0x2ec   : > { %11897 = vmatprep.mubr.bf16.mxu1 %v14864_v20 }
 0x2ed   : > { %v1312_v30 = vpop.f32.mrb[124].mxu0 }
 0x2ee   : > { %v14868_v39 = vadd.f32 %v2018_v28, %v1312_v30  ;;  %v1314_v33 = vpop.f32.mrb[125].mxu0 }
 0x2ef   : > { %v14870_v52 = vadd.f32 %v2020_v23, %v1314_v33  ;;  %v1316_v43 = vpop.f32.mrb[126].mxu0 }
 0x2f0   : > { %18344 = vst [vmem:[#allocation77_spill] sm:$0xff] %v14868_v39  ;;  %v1317_v2 = vpop.f32.mrb[127].mxu0  ;;  %v18360_v39 = vld [vmem:[#allocation28_spill] sm:$0xff] }
 0x2f1   : > { %18345 = vst [vmem:[#allocation78_spill] sm:$0xff] %v14870_v52 }
 0x2f2   : > { %2576 = vmatmul.mubr.bf16.gmra.mrb[232].mxu0 %v14682_v9 }
 0x2f3   : > { %11898 = vmatmul.mubr.bf16.gmra.mrb[56].mxu1 %v14873_v45  ;;  %2584 = vmatprep.mubr.bf16.mxu0 %v14759_v12 }
 0x2f4   : > { %11901 = vmatprep.mubr.bf16.mxu1 %v14759_v12 }
 0x2f5   : > { %v1754_v46 = vpop.f32.mrb[128].mxu0 }
 0x2f6   : > { %v14879_v27 = vadd.f32 %v1754_v46, %v14486_v53  ;;  %v1756_v28 = vpop.f32.mrb[129].mxu0 }
 0x2f7   : > { %v1757_v30 = vpop.f32.mrb[130].mxu0 }
 0x2f8   : > { %v14882_v23 = vadd.f32 %v1757_v30, %v14488_v18  ;;  %v1759_v33 = vpop.f32.mrb[131].mxu0 }
 0x2f9   : > { %v14885_v9 = vadd.f32 %v1759_v33, %v14490_v56 }
 0x2fa   : > { %2585 = vmatmul.mubr.bf16.gmra.mrb[236].mxu0 %v14699_v48 }
 0x2fb   : > { %11902 = vmatmul.mubr.bf16.gmra.mrb[60].mxu1 %v14759_v12  ;;  %2592 = vmatprep.mubr.bf16.mxu0 %v14759_v12 }
 0x2fd   : > { %v1763_v43 = vpop.f32.mrb[132].mxu0 }
 0x2fe   : > { %v14891_v2 = vadd.f32 %v1763_v43, %v14496_v57  ;;  %v1765_v53 = vpop.f32.mrb[133].mxu0 }
 0x2ff   : > { %v14894_v46 = vadd.f32 %v1765_v53, %v14498_v51  ;;  %v1767_v18 = vpop.f32.mrb[134].mxu0 }
 0x300   : > { %v1768_v28 = vpop.f32.mrb[135].mxu0 }
 0x302   : > { %2593 = vmatmul.mubr.bf16.gmra.mrb[240].mxu0 %v14702_v42 }
 0x303   : > { %2601 = vmatprep.mubr.bf16.mxu0 %v14759_v12 }
 0x305   : > { %v1771_v56 = vpop.f32.mrb[136].mxu0 }
 0x306   : > { %v14899_v48 = vadd.f32 %v1771_v56, %v14504_v22  ;;  %v1773_v30 = vpop.f32.mrb[137].mxu0 }
 0x307   : > { %v1774_v33 = vpop.f32.mrb[138].mxu0 }
 0x308   : > { %v14902_v52 = vadd.f32 %v1774_v33, %v14506_v63  ;;  %v1776_v57 = vpop.f32.mrb[139].mxu0 }
 0x309   : > { %v14905_v43 = vadd.f32 %v1776_v57, %v14508_v54 }
 0x30a   : > { %2602 = vmatmul.mubr.bf16.gmra.mrb[244].mxu0 %v14715_v38 }
 0x30b   : > { %2609 = vmatprep.mubr.bf16.mxu0 %v14759_v12 }
 0x30d   : > { %v1780_v51 = vpop.f32.mrb[140].mxu0 }
 0x30e   : > { %v14910_v42 = vadd.f32 %v1780_v51, %v14514_v6  ;;  %v1782_v53 = vpop.f32.mrb[141].mxu0 }
 0x30f   : > { %v14913_v22 = vadd.f32 %v1782_v53, %v14516_v62  ;;  %v1784_v18 = vpop.f32.mrb[142].mxu0 }
 0x310   : > { %v1785_v28 = vpop.f32.mrb[143].mxu0 }
 0x312   : > { %2610 = vmatmul.mubr.bf16.gmra.mrb[248].mxu0 %v14718_v0 }
 0x313   : > { %2618 = vmatprep.mubr.bf16.mxu0 %v14759_v12 }
 0x315   : > { %v1788_v63 = vpop.f32.mrb[144].mxu0 }
 0x316   : > { %v14918_v54 = vadd.f32 %v1788_v63, %v14522_v10  ;;  %v1790_v38 = vpop.f32.mrb[145].mxu0 }
 0x317   : > { %v1791_v56 = vpop.f32.mrb[146].mxu0 }
 0x318   : > { %v14921_v30 = vadd.f32 %v1791_v56, %v14524_v16  ;;  %v1793_v6 = vpop.f32.mrb[147].mxu0 }
 0x319   : > { %v14924_v33 = vadd.f32 %v1793_v6, %v14526_v15 }
 0x31a   : > { %2619 = vmatmul.mubr.bf16.gmra.mrb[252].mxu0 %v14736_v14 }
 0x31b   : > { %2626 = vmatprep.mubr.bf16.mxu0 %v14759_v12 }
 0x31d   : > { %v1797_v62 = vpop.f32.mrb[148].mxu0 }
 0x31e   : > { %v14929_v0 = vadd.f32 %v1797_v62, %v14532_v40  ;;  %v1799_v57 = vpop.f32.mrb[149].mxu0  ;;  %v742_v62 = vld [vmem:[#allocation10 + $0x8] sm:$0xff] }
 0x31f   : > { %v14932_v10 = vadd.f32 %v1799_v57, %v14534_v49  ;;  %v1801_v51 = vpop.f32.mrb[150].mxu0 }
 0x320   : > { %v1802_v53 = vpop.f32.mrb[151].mxu0  ;;  %v18245_v51 = vmov 0.0|0.0  }
 0x321   : > { %12455 = vmatprep.subr.bf16.mxu0 %v18245_v51 }
 0x322   : > { %2627 = vmatmul.mubr.bf16.gmra.mrb[0].mxu0 %v14739_v7 }
 0x323   : > { %2635 = vmatprep.mubr.bf16.mxu0 %v14759_v12 }
 0x325   : > { %v1805_v16 = vpop.f32.mrb[152].mxu0 }
 0x326   : > { %v14937_v15 = vadd.f32 %v1805_v16, %v14540_v59  ;;  %v1807_v14 = vpop.f32.mrb[153].mxu0 }
 0x327   : > { %v1808_v18 = vpop.f32.mrb[154].mxu0 }
 0x328   : > { %v14940_v28 = vadd.f32 %v1808_v18, %v14542_v60  ;;  %v1810_v40 = vpop.f32.mrb[155].mxu0 }
 0x329   : > { %v14943_v63 = vadd.f32 %v1810_v40, %v14544_v21  ;;  %v741_v21 = vld [vmem:[#allocation10] sm:$0xff] }
 0x32a   : > { %2636 = vmatmul.mubr.bf16.gmra.mrb[4].mxu0 %v14754_v36 }
 0x32b   : > { %2643 = vmatprep.mubr.bf16.mxu0 %v14759_v12 }
 0x32d   : > { %v1814_v49 = vpop.f32.mrb[156].mxu0 }
 0x32e   : > { %v14948_v7 = vadd.f32 %v1814_v49, %v14550_v8  ;;  %v1816_v38 = vpop.f32.mrb[157].mxu0  ;;  %v14959_v8 = vpack.c.bf16 %v742_v62, %v741_v21  ;;  %v18349_v21 = vld [vmem:[#allocation22_spill] sm:$0xff] }
 0x32f   : > { %v14951_v59 = vadd.f32 %v1816_v38, %v14552_v41  ;;  %v1818_v56 = vpop.f32.mrb[158].mxu0  ;;  %v18347_v38 = vld [vmem:[#allocation59_spill] sm:$0xff] }
 0x330   : > { %v1819_v6 = vpop.f32.mrb[159].mxu0  ;;  %18346 = vst [vmem:[#allocation79_spill] sm:$0xff] %v14959_v8  ;;  %12457 = vmatpush3.bf16.msra.mxu0 %v14959_v8  ;;  %v18348_v56 = vld [vmem:[#allocation21_spill] sm:$0xff] }
 0x331   : > { %12458 = vmatprep.subr.bf16.mxu0 %v18245_v51 }
 0x332   : > { %2644 = vmatmul.mubr.bf16.gmra.mrb[8].mxu0 %v14757_v3 }
 0x333   : > { %2652 = vmatprep.mubr.bf16.mxu0 %v14759_v12 }
 0x335   : > { %v1822_v60 = vpop.f32.mrb[160].mxu0 }
 0x336   : > { %v14956_v36 = vadd.f32 %v1822_v60, %v14558_v19  ;;  %v1824_v57 = vpop.f32.mrb[161].mxu0 }
 0x337   : > { %v1825_v41 = vpop.f32.mrb[162].mxu0  ;;  %v18350_v57 = vld [vmem:[#allocation23_spill] sm:$0xff] }
 0x338   : > { %v14962_v53 = vadd.f32 %v1825_v41, %v14560_v1  ;;  %v1827_v16 = vpop.f32.mrb[163].mxu0 }
 0x339   : > { %v14966_v3 = vadd.f32 %v1827_v16, %v14562_v55  ;;  %v18351_v16 = vld [vmem:[#allocation24_spill] sm:$0xff] }
 0x33a   : > { %2653 = vmatmul.mubr.bf16.gmra.mrb[12].mxu0 %v14775_v13 }
 0x33b   : > { %2660 = vmatprep.mubr.bf16.mxu0 %v14759_v12 }
 0x33d   : > { %v1831_v19 = vpop.f32.mrb[164].mxu0 }
 0x33e   : > { %v14972_v14 = vadd.f32 %v1831_v19, %v14568_v26  ;;  %v1833_v18 = vpop.f32.mrb[165].mxu0 }
 0x33f   : > { %v14975_v1 = vadd.f32 %v1833_v18, %v14570_v44  ;;  %v1835_v40 = vpop.f32.mrb[166].mxu0 }
 0x340   : > { %v1836_v49 = vpop.f32.mrb[167].mxu0  ;;  %v18352_v40 = vld [vmem:[#allocation25_spill] sm:$0xff] }
 0x342   : > { %2661 = vmatmul.mubr.bf16.gmra.mrb[16].mxu0 %v18347_v38 }
 0x343   : > { %2669 = vmatprep.mubr.bf16.mxu0 %v14759_v12 }
 0x345   : > { %v1839_v55 = vpop.f32.mrb[168].mxu0 }
 0x346   : > { %v14980_v6 = vadd.f32 %v1839_v55, %v18348_v56  ;;  %v1841_v13 = vpop.f32.mrb[169].mxu0  ;;  %v18354_v56 = vld [vmem:[#allocation62_spill] sm:$0xff] }
 0x347   : > { %v1842_v60 = vpop.f32.mrb[170].mxu0 }
 0x348   : > { %v14983_v62 = vadd.f32 %v1842_v60, %v18349_v21  ;;  %v1844_v26 = vpop.f32.mrb[171].mxu0  ;;  %v743_v60 = vld [vmem:[#allocation10 + $0x10] sm:$0xff]  ;;  %v744_v21 = vld [vmem:[#allocation10 + $0x18] sm:$0xff] }
 0x349   : > { %v14986_v41 = vadd.f32 %v1844_v26, %v18350_v57 }
 0x34a   : > { %2670 = vmatmul.mubr.bf16.gmra.mrb[20].mxu0 %v14789_v37  ;;  %v18355_v37 = vld [vmem:[#allocation26_spill] sm:$0xff] }
 0x34b   : > { %2677 = vmatprep.mubr.bf16.mxu0 %v14759_v12 }
 0x34d   : > { %v1848_v44 = vpop.f32.mrb[172].mxu0 }
 0x34e   : > { %v14991_v19 = vadd.f32 %v1848_v44, %v18351_v16  ;;  %v1850_v18 = vpop.f32.mrb[173].mxu0  ;;  %v15001_v44 = vpack.c.bf16 %v744_v21, %v743_v60 }
 0x34f   : > { %v14994_v49 = vadd.f32 %v1850_v18, %v18352_v40  ;;  %v1852_v38 = vpop.f32.mrb[174].mxu0  ;;  %v18358_v18 = vld [vmem:[#allocation27_spill] sm:$0xff] }
 0x350   : > { %v1853_v55 = vpop.f32.mrb[175].mxu0  ;;  %18357 = vst [vmem:[#allocation22_spill] sm:$0xff] %v15001_v44  ;;  %12460 = vmatpush3.bf16.msra.mxu0 %v15001_v44 }
 0x351   : > { %18353 = vst [vmem:[#allocation59_spill] sm:$0xff] %v14994_v49 }
 0x352   : > { %2678 = vmatmul.mubr.bf16.gmra.mrb[24].mxu0 %v18354_v56 }
 0x353   : > { %2686 = vmatprep.mubr.bf16.mxu0 %v14759_v12 }
 0x355   : > { %v1856_v13 = vpop.f32.mrb[176].mxu0 }
 0x356   : > { %v14999_v26 = vadd.f32 %v1856_v13, %v18355_v37  ;;  %v1858_v57 = vpop.f32.mrb[177].mxu0  ;;  %v11843_v51 = vpop.f32.mrb[0].mxu1 }
 0x357   : > { %v1859_v16 = vpop.f32.mrb[178].mxu0  ;;  %v2831_v8 = vpop.f32.mrb[1].mxu1  ;;  %v3441_v56 = vrot.slane %v11843_v51, 1  ;;  %v18362_v57 = vmov 0.0|0.0   ;;  %v18363_v51 = vld [vmem:[#allocation29_spill] sm:$0xff] }
 0x358   : > { %18356 = vst [vmem:[#allocation21_spill] sm:$0xff] %v14999_v26  ;;  %v15004_v40 = vadd.f32 %v1859_v16, %v18358_v18  ;;  %v1861_v38 = vpop.f32.mrb[179].mxu0  ;;  %v11844_v55 = vpop.f32.mrb[2].mxu1  ;;  %12461 = vmatprep.subr.bf16.mxu0 %v18362_v57 }
 0x359   : > { %v15008_v31 = vadd.f32 %v1861_v38, %v18360_v39  ;;  %v3443_v13 = vrot.slane %v11844_v55, 1  ;;  %v2833_v37 = vpop.f32.mrb[3].mxu1  ;;  %v18365_v55 = vld [vmem:[#allocation30_spill] sm:$0xff] }
 0x35a   : > { %18359 = vst [vmem:[#allocation23_spill] sm:$0xff] %v15004_v40  ;;  %v3440_v60 = vrot.slane %v2833_v37, 1  ;;  %2687 = vmatmul.mubr.bf16.gmra.mrb[28].mxu0 %v14806_v24 }
 0x35b   : > { %18361 = vst [vmem:[#allocation24_spill] sm:$0xff] %v15008_v31  ;;  %2694 = vmatprep.mubr.bf16.mxu0 %v14759_v12  ;;  %v15014_v8 = vsel %vm3439_vm1, %v3441_v56, %v3443_v13 }
 0x35c   : > { %v15017_v21 = vsel %vm3439_vm1, %v3440_v60, %v3441_v56 }
 0x35d   : > { %v1865_v16 = vpop.f32.mrb[180].mxu0 }
 0x35e   : > { %v15020_v18 = vadd.f32 %v1865_v16, %v18363_v51  ;;  %v1867_v39 = vpop.f32.mrb[181].mxu0  ;;  %v11847_v38 = vpop.f32.mrb[4].mxu1  ;;  %v18368_v51 = vld [vmem:[#allocation31_spill] sm:$0xff] }
 0x35f   : > { %v15023_v44 = vadd.f32 %v1867_v39, %v18365_v55  ;;  %v1869_v37 = vpop.f32.mrb[182].mxu0  ;;  %v2846_v17 = vpop.f32.mrb[5].mxu1  ;;  %v3446_v47 = vrot.slane %v11847_v38, 1 }
 0x360   : > { %18364 = vst [vmem:[#allocation25_spill] sm:$0xff] %v15020_v18  ;;  %v1870_v24 = vpop.f32.mrb[183].mxu0  ;;  %v11848_v50 = vpop.f32.mrb[6].mxu1  ;;  %v18370_v37 = vld [vmem:[#allocation32_spill] sm:$0xff]  ;;  %v18372_v18 = vld [vmem:[#allocation33_spill] sm:$0xff] }
 0x361   : > { %18366 = vst [vmem:[#allocation62_spill] sm:$0xff] %v15023_v44  ;;  %v3448_v25 = vrot.slane %v11848_v50, 1  ;;  %v2848_v13 = vpop.f32.mrb[7].mxu1 }
 0x362   : > { %v3445_v34 = vrot.slane %v2848_v13, 1  ;;  %2695 = vmatmul.mubr.bf16.gmra.mrb[32].mxu0 %v18367_v29 }
 0x363   : > { %2703 = vmatprep.mubr.bf16.mxu0 %v14759_v12  ;;  %v15028_v56 = vsel %vm3439_vm1, %v3446_v47, %v3448_v25 }
 0x364   : > { %v15031_v60 = vsel %vm3439_vm1, %v3445_v34, %v3446_v47 }
 0x365   : > { %v1873_v16 = vpop.f32.mrb[184].mxu0 }
 0x366   : > { %v15034_v39 = vadd.f32 %v1873_v16, %v18368_v51  ;;  %v1875_v17 = vpop.f32.mrb[185].mxu0  ;;  %v11851_v55 = vpop.f32.mrb[8].mxu1 }
 0x367   : > { %v1876_v38 = vpop.f32.mrb[186].mxu0  ;;  %v2861_v50 = vpop.f32.mrb[9].mxu1  ;;  %v3451_v44 = vrot.slane %v11851_v55, 1 }
 0x368   : > { %18369 = vst [vmem:[#allocation26_spill] sm:$0xff] %v15034_v39  ;;  %v15037_v24 = vadd.f32 %v1876_v38, %v18370_v37  ;;  %v1878_v29 = vpop.f32.mrb[187].mxu0  ;;  %v11852_v13 = vpop.f32.mrb[10].mxu1  ;;  %v18374_v38 = vld [vmem:[#allocation34_spill] sm:$0xff]  ;;  %v18376_v37 = vld [vmem:[#allocation35_spill] sm:$0xff] }
 0x369   : > { %v15040_v25 = vadd.f32 %v1878_v29, %v18372_v18  ;;  %v3453_v31 = vrot.slane %v11852_v13, 1  ;;  %v2863_v34 = vpop.f32.mrb[11].mxu1 }
 0x36a   : > { %18371 = vst [vmem:[#allocation27_spill] sm:$0xff] %v15037_v24  ;;  %v3450_v47 = vrot.slane %v2863_v34, 1  ;;  %2704 = vmatmul.mubr.bf16.gmra.mrb[36].mxu0 %v14820_v4 }
 0x36b   : > { %18373 = vst [vmem:[#allocation28_spill] sm:$0xff] %v15040_v25  ;;  %2711 = vmatprep.mubr.bf16.mxu0 %v14759_v12  ;;  %v15045_v16 = vsel %vm3439_vm1, %v3451_v44, %v3453_v31 }
 0x36c   : > { %v15048_v51 = vsel %vm3439_vm1, %v3450_v47, %v3451_v44 }
 0x36d   : > { %v1882_v17 = vpop.f32.mrb[188].mxu0 }
 0x36e   : > { %v15051_v50 = vadd.f32 %v1882_v17, %v18374_v38  ;;  %v1884_v55 = vpop.f32.mrb[189].mxu0  ;;  %v11855_v18 = vpop.f32.mrb[12].mxu1  ;;  %v745_v38 = vld [vmem:[#allocation10 + $0x20] sm:$0xff] }
 0x36f   : > { %v15054_v29 = vadd.f32 %v1884_v55, %v18376_v37  ;;  %v1886_v13 = vpop.f32.mrb[190].mxu0  ;;  %v2876_v34 = vpop.f32.mrb[13].mxu1  ;;  %v3456_v24 = vrot.slane %v11855_v18, 1  ;;  %v746_v55 = vld [vmem:[#allocation10 + $0x28] sm:$0xff]  ;;  %v18378_v37 = vld [vmem:[#allocation36_spill] sm:$0xff] }
 0x370   : > { %18375 = vst [vmem:[#allocation29_spill] sm:$0xff] %v15051_v50  ;;  %v1887_v4 = vpop.f32.mrb[191].mxu0  ;;  %v11856_v25 = vpop.f32.mrb[14].mxu1  ;;  %v15067_v34 = vpack.c.bf16 %v746_v55, %v745_v38 }
 0x371   : > { %18377 = vst [vmem:[#allocation30_spill] sm:$0xff] %v15054_v29  ;;  %v3458_v39 = vrot.slane %v11856_v25, 1  ;;  %v2878_v31 = vpop.f32.mrb[15].mxu1 }
 0x372   : > { %v3455_v40 = vrot.slane %v2878_v31, 1  ;;  %2712 = vmatmul.mubr.bf16.gmra.mrb[40].mxu0 %v14823_v61  ;;  %18380 = vst [vmem:[#allocation31_spill] sm:$0xff] %v15067_v34  ;;  %v18381_v31 = vld [vmem:[#allocation37_spill] sm:$0xff] }
 0x373   : > { %2720 = vmatprep.mubr.bf16.mxu0 %v14759_v12  ;;  %v15059_v44 = vsel %vm3439_vm1, %v3456_v24, %v3458_v39  ;;  %12463 = vmatpush3.bf16.msra.mxu0 %v15067_v34 }
 0x374   : > { %v15062_v47 = vsel %vm3439_vm1, %v3455_v40, %v3456_v24  ;;  %v18383_v24 = vld [vmem:[#allocation38_spill] sm:$0xff]  ;;  %12464 = vmatprep.subr.bf16.mxu0 %v18362_v57 }
 0x375   : > { %v1890_v17 = vpop.f32.mrb[192].mxu0 }
 0x376   : > { %v15065_v13 = vadd.f32 %v1890_v17, %v18378_v37  ;;  %v1892_v18 = vpop.f32.mrb[193].mxu0  ;;  %v11859_v25 = vpop.f32.mrb[16].mxu1 }
 0x377   : > { %v1893_v4 = vpop.f32.mrb[194].mxu0  ;;  %v2891_v61 = vpop.f32.mrb[17].mxu1  ;;  %v3461_v40 = vrot.slane %v11859_v25, 1  ;;  %v18385_v25 = vld [vmem:[#allocation39_spill] sm:$0xff] }
 0x378   : > { %18379 = vst [vmem:[#allocation66_spill] sm:$0xff] %v15065_v13  ;;  %v15070_v29 = vadd.f32 %v1893_v4, %v18381_v31  ;;  %v1895_v39 = vpop.f32.mrb[195].mxu0  ;;  %v11860_v50 = vpop.f32.mrb[18].mxu1  ;;  %v18387_v31 = vld [vmem:[#allocation40_spill] sm:$0xff] }
 0x379   : > { %v15074_v26 = vadd.f32 %v1895_v39, %v18383_v24  ;;  %v3463_v49 = vrot.slane %v11860_v50, 1  ;;  %v2893_v17 = vpop.f32.mrb[19].mxu1 }
 0x37a   : > { %18382 = vst [vmem:[#allocation32_spill] sm:$0xff] %v15070_v29  ;;  %v3460_v37 = vrot.slane %v2893_v17, 1  ;;  %2721 = vmatmul.mubr.bf16.gmra.mrb[44].mxu0 %v14835_v11 }
 0x37b   : > { %18384 = vst [vmem:[#allocation33_spill] sm:$0xff] %v15074_v26  ;;  %2728 = vmatprep.mubr.bf16.mxu0 %v14759_v12  ;;  %v15080_v38 = vsel %vm3439_vm1, %v3461_v40, %v3463_v49 }
 0x37c   : > { %v15083_v55 = vsel %vm3439_vm1, %v3460_v37, %v3461_v40 }
 0x37d   : > { %v1899_v18 = vpop.f32.mrb[196].mxu0 }
 0x37e   : > { %v15086_v4 = vadd.f32 %v1899_v18, %v18385_v25  ;;  %v1901_v61 = vpop.f32.mrb[197].mxu0  ;;  %v11863_v50 = vpop.f32.mrb[20].mxu1  ;;  %v18390_v25 = vld [vmem:[#allocation41_spill] sm:$0xff] }
 0x37f   : > { %v15089_v39 = vadd.f32 %v1901_v61, %v18387_v31  ;;  %v1903_v24 = vpop.f32.mrb[198].mxu0  ;;  %v2906_v17 = vpop.f32.mrb[21].mxu1  ;;  %v3466_v26 = vrot.slane %v11863_v50, 1 }
 0x380   : > { %18386 = vst [vmem:[#allocation34_spill] sm:$0xff] %v15086_v4  ;;  %v1904_v11 = vpop.f32.mrb[199].mxu0  ;;  %v11864_v34 = vpop.f32.mrb[22].mxu1  ;;  %v18392_v17 = vld [vmem:[#allocation42_spill] sm:$0xff]  ;;  %v18394_v4 = vld [vmem:[#allocation43_spill] sm:$0xff] }
 0x381   : > { %18388 = vst [vmem:[#allocation35_spill] sm:$0xff] %v15089_v39  ;;  %v3468_v29 = vrot.slane %v11864_v34, 1  ;;  %v2908_v49 = vpop.f32.mrb[23].mxu1 }
 0x382   : > { %v3465_v13 = vrot.slane %v2908_v49, 1  ;;  %2729 = vmatmul.mubr.bf16.gmra.mrb[48].mxu0 %v14838_v32 }
 0x383   : > { %2737 = vmatprep.mubr.bf16.mxu0 %v14759_v12  ;;  %v15094_v40 = vsel %vm3439_vm1, %v3466_v26, %v3468_v29 }
 0x384   : > { %18389 = vst [vmem:[#allocation36_spill] sm:$0xff] %v15094_v40  ;;  %v15097_v37 = vsel %vm3439_vm1, %v3465_v13, %v3466_v26 }
 0x385   : > { %v1907_v18 = vpop.f32.mrb[200].mxu0 }
 0x386   : > { %v15100_v61 = vadd.f32 %v1907_v18, %v18390_v25  ;;  %v1909_v31 = vpop.f32.mrb[201].mxu0  ;;  %v11867_v24 = vpop.f32.mrb[24].mxu1 }
 0x387   : > { %v1910_v50 = vpop.f32.mrb[202].mxu0  ;;  %v2921_v34 = vpop.f32.mrb[25].mxu1  ;;  %v3471_v39 = vrot.slane %v11867_v24, 1 }
 0x388   : > { %18391 = vst [vmem:[#allocation37_spill] sm:$0xff] %v15100_v61  ;;  %v15103_v11 = vadd.f32 %v1910_v50, %v18392_v17  ;;  %v1912_v32 = vpop.f32.mrb[203].mxu0  ;;  %v11868_v49 = vpop.f32.mrb[26].mxu1  ;;  %v18397_v50 = vld [vmem:[#allocation44_spill] sm:$0xff]  ;;  %v18399_v17 = vld [vmem:[#allocation45_spill] sm:$0xff] }
 0x389   : > { %v15106_v29 = vadd.f32 %v1912_v32, %v18394_v4  ;;  %v3473_v40 = vrot.slane %v11868_v49, 1  ;;  %v2923_v26 = vpop.f32.mrb[27].mxu1 }
 0x38a   : > { %18393 = vst [vmem:[#allocation38_spill] sm:$0xff] %v15103_v11  ;;  %v3470_v13 = vrot.slane %v2923_v26, 1  ;;  %2738 = vmatmul.mubr.bf16.gmra.mrb[52].mxu0 %v14847_v35 }
 0x38b   : > { %18395 = vst [vmem:[#allocation39_spill] sm:$0xff] %v15106_v29  ;;  %2745 = vmatprep.mubr.bf16.mxu0 %v14759_v12  ;;  %v15111_v18 = vsel %vm3439_vm1, %v3471_v39, %v3473_v40 }
 0x38c   : > { %18396 = vst [vmem:[#allocation40_spill] sm:$0xff] %v15111_v18  ;;  %v15114_v25 = vsel %vm3439_vm1, %v3470_v13, %v3471_v39 }
 0x38d   : > { %v1916_v31 = vpop.f32.mrb[204].mxu0 }
 0x38e   : > { %v15117_v34 = vadd.f32 %v1916_v31, %v18397_v50  ;;  %v1918_v24 = vpop.f32.mrb[205].mxu0  ;;  %v11871_v4 = vpop.f32.mrb[28].mxu1  ;;  %v747_v50 = vld [vmem:[#allocation10 + $0x30] sm:$0xff] }
 0x38f   : > { %v15120_v32 = vadd.f32 %v1918_v24, %v18399_v17  ;;  %v1920_v49 = vpop.f32.mrb[206].mxu0  ;;  %v2936_v26 = vpop.f32.mrb[29].mxu1  ;;  %v3476_v11 = vrot.slane %v11871_v4, 1  ;;  %v748_v24 = vld [vmem:[#allocation10 + $0x38] sm:$0xff] }
 0x390   : > { %18398 = vst [vmem:[#allocation41_spill] sm:$0xff] %v15117_v34  ;;  %v1921_v35 = vpop.f32.mrb[207].mxu0  ;;  %v11872_v29 = vpop.f32.mrb[30].mxu1 }
 0x391   : > { %18400 = vst [vmem:[#allocation42_spill] sm:$0xff] %v15120_v32  ;;  %v3478_v61 = vrot.slane %v11872_v29, 1  ;;  %v2938_v40 = vpop.f32.mrb[31].mxu1  ;;  %v15131_v29 = vpack.c.bf16 %v748_v24, %v747_v50 }
 0x392   : > { %v3475_v18 = vrot.slane %v2938_v40, 1  ;;  %2746 = vmatmul.mubr.bf16.gmra.mrb[56].mxu0 %v14850_v5 }
 0x393   : > { %2754 = vmatprep.mubr.bf16.mxu0 %v14759_v12  ;;  %v15125_v39 = vsel %vm3439_vm1, %v3476_v11, %v3478_v61  ;;  %18401 = vst [vmem:[#allocation43_spill] sm:$0xff] %v15131_v29  ;;  %12466 = vmatpush3.bf16.msra.mxu0 %v15131_v29 }
 0x394   : > { %v15128_v13 = vsel %vm3439_vm1, %v3475_v18, %v3476_v11  ;;  %12467 = vmatprep.subr.bf16.mxu0 %v18362_v57 }
 0x395   : > { %v2526_v31 = vpop.f32.mrb[208].mxu0 }
 0x396   : > { %v3070_v17 = vadd.f32 %v2526_v31, %v14879_v27  ;;  %v2528_v49 = vpop.f32.mrb[209].mxu0  ;;  %v11875_v4 = vpop.f32.mrb[32].mxu1 }
 0x397   : > { %v2529_v26 = vpop.f32.mrb[210].mxu0  ;;  %v2951_v35 = vpop.f32.mrb[33].mxu1  ;;  %v3481_v61 = vrot.slane %v11875_v4, 1 }
 0x398   : > { %v3071_v5 = vadd.f32 %v2529_v26, %v14882_v23  ;;  %v2531_v40 = vpop.f32.mrb[211].mxu0  ;;  %v11876_v32 = vpop.f32.mrb[34].mxu1  ;;  %v3247_v27 = vrot.slane %v3070_v17, 7 }
 0x399   : > { %v3072_v11 = vadd.f32 %v2531_v40, %v14885_v9  ;;  %v3483_v18 = vrot.slane %v11876_v32, 1  ;;  %v2953_v34 = vpop.f32.mrb[35].mxu1 }
 0x39a   : > { %v3248_v31 = vrot.slane %v3071_v5, 7  ;;  %v3480_v50 = vrot.slane %v2953_v34, 1  ;;  %2755 = vmatmul.mubr.bf16.gmra.mrb[60].mxu0 %v14861_v58 }
 0x39b   : > { %2762 = vmatprep.mubr.bf16.mxu0 %v14759_v12  ;;  %v15140_v23 = vsel %vm3439_vm1, %v3481_v61, %v3483_v18 }
 0x39c   : > { %18402 = vst [vmem:[#allocation44_spill] sm:$0xff] %v15140_v23  ;;  %v3249_v24 = vsel %vm3246_vm2, %v3247_v27, %v3248_v31  ;;  %v15144_v49 = vsel %vm3439_vm1, %v3480_v50, %v3481_v61 }
 0x39d   : > { %v3359_v9 = vadd.f32 %v3249_v24, %v3072_v11  ;;  %v2535_v32 = vpop.f32.mrb[212].mxu0 }
 0x39e   : > { %v3074_v4 = vadd.f32 %v2535_v32, %v14891_v2  ;;  %v2537_v26 = vpop.f32.mrb[213].mxu0  ;;  %v11879_v17 = vpop.f32.mrb[36].mxu1 }
 0x39f   : > { %v15148_v34 = vadd.f32 %v15017_v21, %v3359_v9  ;;  %v3075_v58 = vadd.f32 %v2537_v26, %v14894_v46  ;;  %v2539_v35 = vpop.f32.mrb[214].mxu0  ;;  %v2966_v5 = vpop.f32.mrb[37].mxu1  ;;  %v3486_v27 = vrot.slane %v11879_v17, 1 }
 0x3a0   : > { %v3250_v40 = vrot.slane %v3074_v4, 7  ;;  %v2540_v18 = vpop.f32.mrb[215].mxu0  ;;  %v11880_v29 = vpop.f32.mrb[38].mxu1 }
 0x3a1   : > { %v3488_v23 = vrot.slane %v11880_v29, 1  ;;  %v2968_v61 = vpop.f32.mrb[39].mxu1 }
 0x3a2   : > { %v3251_v11 = vsel %vm3246_vm2, %v3248_v31, %v3250_v40  ;;  %v3485_v50 = vrot.slane %v2968_v61, 1  ;;  %2763 = vmatmul.mubr.bf16.gmra.mrb[64].mxu0 %v14864_v20 }
 0x3a3   : > { %v3360_v2 = vadd.f32 %v3251_v11, %v3075_v58  ;;  %2771 = vmatprep.mubr.bf16.mxu0 %v14759_v12  ;;  %v15155_v21 = vsel %vm3439_vm1, %v3486_v27, %v3488_v23 }
 0x3a4   : > { %v15158_v46 = vsel %vm3439_vm1, %v3485_v50, %v3486_v27 }
 0x3a5   : > { %v15161_v24 = vadd.f32 %v15014_v8, %v3360_v2  ;;  %v2543_v9 = vpop.f32.mrb[216].mxu0 }
 0x3a6   : > { %v3078_v29 = vadd.f32 %v2543_v9, %v14899_v48  ;;  %v2545_v32 = vpop.f32.mrb[217].mxu0  ;;  %v11883_v31 = vpop.f32.mrb[40].mxu1 }
 0x3a7   : > { %v2546_v4 = vpop.f32.mrb[218].mxu0  ;;  %v2981_v26 = vpop.f32.mrb[41].mxu1  ;;  %v3491_v35 = vrot.slane %v11883_v31, 1 }
 0x3a8   : > { %v3079_v20 = vadd.f32 %v2546_v4, %v14902_v52  ;;  %v2548_v17 = vpop.f32.mrb[219].mxu0  ;;  %v11884_v58 = vpop.f32.mrb[42].mxu1  ;;  %v3252_v18 = vrot.slane %v3078_v29, 7 }
 0x3a9   : > { %v3080_v23 = vadd.f32 %v2548_v17, %v14905_v43  ;;  %v3493_v5 = vrot.slane %v11884_v58, 1  ;;  %v2983_v40 = vpop.f32.mrb[43].mxu1 }
 0x3aa   : > { %v3253_v27 = vrot.slane %v3079_v20, 7  ;;  %v3490_v8 = vrot.slane %v2983_v40, 1  ;;  %2772 = vmatmul.mubr.bf16.gmra.mrb[68].mxu0 %v14873_v45 }
 0x3ab   : > { %2779 = vmatprep.mubr.bf16.mxu0 %v14759_v12  ;;  %v15169_v48 = vsel %vm3439_vm1, %v3491_v35, %v3493_v5 }
 0x3ac   : > { %v3254_v61 = vsel %vm3246_vm2, %v3252_v18, %v3253_v27  ;;  %v15173_v52 = vsel %vm3439_vm1, %v3490_v8, %v3491_v35  ;;  %v749_v8 = vld [vmem:[#allocation10 + $0x40] sm:$0xff] }
 0x3ad   : > { %v3361_v11 = vadd.f32 %v3254_v61, %v3080_v23  ;;  %v2552_v50 = vpop.f32.mrb[220].mxu0  ;;  %v750_v61 = vld [vmem:[#allocation10 + $0x48] sm:$0xff] }
 0x3ae   : > { %v3082_v43 = vadd.f32 %v2552_v50, %v14910_v42  ;;  %v2554_v2 = vpop.f32.mrb[221].mxu0  ;;  %v11887_v9 = vpop.f32.mrb[44].mxu1 }
 0x3af   : > { %v15177_v29 = vadd.f32 %v15031_v60, %v3361_v11  ;;  %v3083_v45 = vadd.f32 %v2554_v2, %v14913_v22  ;;  %v2556_v32 = vpop.f32.mrb[222].mxu0  ;;  %v2996_v31 = vpop.f32.mrb[45].mxu1  ;;  %v3496_v17 = vrot.slane %v11887_v9, 1 }
 0x3b0   : > { %v3255_v4 = vrot.slane %v3082_v43, 7  ;;  %v2557_v26 = vpop.f32.mrb[223].mxu0  ;;  %v11888_v20 = vpop.f32.mrb[46].mxu1  ;;  %v15193_v43 = vpack.c.bf16 %v750_v61, %v749_v8 }
 0x3b1   : > { %v3498_v58 = vrot.slane %v11888_v20, 1  ;;  %v2998_v35 = vpop.f32.mrb[47].mxu1 }
 0x3b2   : > { %v3256_v23 = vsel %vm3246_vm2, %v3253_v27, %v3255_v4  ;;  %v3495_v5 = vrot.slane %v2998_v35, 1  ;;  %2780 = vmatmul.mubr.bf16.gmra.mrb[72].mxu0 %v14759_v12 }
 0x3b3   : > { %v3362_v42 = vadd.f32 %v3256_v23, %v3083_v45  ;;  %2788 = vmatprep.mubr.bf16.mxu0 %v14759_v12  ;;  %v15184_v60 = vsel %vm3439_vm1, %v3496_v17, %v3498_v58  ;;  %12469 = vmatpush3.bf16.msra.mxu0 %v15193_v43 }
 0x3b4   : > { %v15187_v22 = vsel %vm3439_vm1, %v3495_v5, %v3496_v17  ;;  %12470 = vmatprep.subr.bf16.mxu0 %v18362_v57 }
 0x3b5   : > { %v15190_v40 = vadd.f32 %v15028_v56, %v3362_v42  ;;  %v2560_v18 = vpop.f32.mrb[224].mxu0 }
 0x3b6   : > { %v3086_v27 = vadd.f32 %v2560_v18, %v14918_v54  ;;  %v2562_v11 = vpop.f32.mrb[225].mxu0  ;;  %v11891_v50 = vpop.f32.mrb[48].mxu1 }
 0x3b7   : > { %v2563_v2 = vpop.f32.mrb[226].mxu0  ;;  %v3011_v9 = vpop.f32.mrb[49].mxu1  ;;  %v3501_v4 = vrot.slane %v11891_v50, 1 }
 0x3b8   : > { %v3087_v45 = vadd.f32 %v2563_v2, %v14921_v30  ;;  %v2565_v32 = vpop.f32.mrb[227].mxu0  ;;  %v11892_v31 = vpop.f32.mrb[50].mxu1  ;;  %v3257_v54 = vrot.slane %v3086_v27, 7 }
 0x3b9   : > { %v3088_v56 = vadd.f32 %v2565_v32, %v14924_v33  ;;  %v3503_v26 = vrot.slane %v11892_v31, 1  ;;  %v3013_v20 = vpop.f32.mrb[51].mxu1 }
 0x3ba   : > { %v3258_v17 = vrot.slane %v3087_v45, 7  ;;  %v3500_v58 = vrot.slane %v3013_v20, 1  ;;  %2789 = vmatmul.mubr.bf16.gmra.mrb[76].mxu0 %v14759_v12 }
 0x3bb   : > { %v15201_v35 = vsel %vm3439_vm1, %v3501_v4, %v3503_v26 }
 0x3bc   : > { %v3259_v30 = vsel %vm3246_vm2, %v3257_v54, %v3258_v17  ;;  %v15205_v23 = vsel %vm3439_vm1, %v3500_v58, %v3501_v4 }
 0x3bd   : > { %v3363_v5 = vadd.f32 %v3259_v30, %v3088_v56  ;;  %v2569_v42 = vpop.f32.mrb[228].mxu0 }
 0x3be   : > { %v3090_v33 = vadd.f32 %v2569_v42, %v14929_v0  ;;  %v2571_v18 = vpop.f32.mrb[229].mxu0  ;;  %v11895_v8 = vpop.f32.mrb[52].mxu1 }
 0x3bf   : > { %v15209_v61 = vadd.f32 %v15048_v51, %v3363_v5  ;;  %v3091_v27 = vadd.f32 %v2571_v18, %v14932_v10  ;;  %v2573_v12 = vpop.f32.mrb[230].mxu0  ;;  %v3026_v11 = vpop.f32.mrb[53].mxu1  ;;  %v3506_v45 = vrot.slane %v11895_v8, 1 }
 0x3c0   : > { %v3260_v50 = vrot.slane %v3090_v33, 7  ;;  %v2574_v2 = vpop.f32.mrb[231].mxu0  ;;  %v11896_v9 = vpop.f32.mrb[54].mxu1 }
 0x3c1   : > { %v3508_v32 = vrot.slane %v11896_v9, 1  ;;  %v3028_v31 = vpop.f32.mrb[55].mxu1 }
 0x3c2   : > { %v3261_v4 = vsel %vm3246_vm2, %v3258_v17, %v3260_v50  ;;  %v3505_v56 = vrot.slane %v3028_v31, 1 }
 0x3c3   : > { %v3364_v26 = vadd.f32 %v3261_v4, %v3091_v27  ;;  %v15214_v0 = vsel %vm3439_vm1, %v3506_v45, %v3508_v32 }
 0x3c4   : > { %v15217_v51 = vsel %vm3439_vm1, %v3505_v56, %v3506_v45 }
 0x3c5   : > { %v15220_v10 = vadd.f32 %v15045_v16, %v3364_v26  ;;  %v2577_v20 = vpop.f32.mrb[232].mxu0 }
 0x3c6   : > { %v3094_v54 = vadd.f32 %v2577_v20, %v14937_v15  ;;  %v2579_v58 = vpop.f32.mrb[233].mxu0  ;;  %v11899_v30 = vpop.f32.mrb[56].mxu1 }
 0x3c7   : > { %v2580_v5 = vpop.f32.mrb[234].mxu0  ;;  %v3041_v42 = vpop.f32.mrb[57].mxu1  ;;  %v3511_v8 = vrot.slane %v11899_v30, 1 }
 0x3c8   : > { %v3095_v17 = vadd.f32 %v2580_v5, %v14940_v28  ;;  %v2582_v33 = vpop.f32.mrb[235].mxu0  ;;  %v11900_v18 = vpop.f32.mrb[58].mxu1  ;;  %v3262_v50 = vrot.slane %v3094_v54, 7 }
 0x3c9   : > { %v3096_v27 = vadd.f32 %v2582_v33, %v14943_v63  ;;  %v3513_v12 = vrot.slane %v11900_v18, 1  ;;  %v3043_v11 = vpop.f32.mrb[59].mxu1 }
 0x3ca   : > { %v3263_v2 = vrot.slane %v3095_v17, 7  ;;  %v3510_v16 = vrot.slane %v3043_v11, 1  ;;  %v751_v11 = vld [vmem:[#allocation10 + $0x50] sm:$0xff] }
 0x3cb   : > { %v15226_v9 = vsel %vm3439_vm1, %v3511_v8, %v3513_v12 }
 0x3cc   : > { %v3264_v15 = vsel %vm3246_vm2, %v3262_v50, %v3263_v2  ;;  %v15230_v45 = vsel %vm3439_vm1, %v3510_v16, %v3511_v8  ;;  %v752_v50 = vld [vmem:[#allocation10 + $0x58] sm:$0xff] }
 0x3cd   : > { %v3365_v32 = vadd.f32 %v3264_v15, %v3096_v27  ;;  %v2586_v28 = vpop.f32.mrb[236].mxu0 }
 0x3ce   : > { %v3098_v31 = vadd.f32 %v2586_v28, %v14948_v7  ;;  %v2588_v4 = vpop.f32.mrb[237].mxu0  ;;  %v11903_v56 = vpop.f32.mrb[60].mxu1 }
 0x3cf   : > { %v15234_v63 = vadd.f32 %v15062_v47, %v3365_v32  ;;  %v3099_v26 = vadd.f32 %v2588_v4, %v14951_v59  ;;  %v2590_v20 = vpop.f32.mrb[238].mxu0  ;;  %v3056_v54 = vpop.f32.mrb[61].mxu1  ;;  %v3516_v42 = vrot.slane %v11903_v56, 1  ;;  %v15248_v32 = vpack.c.bf16 %v752_v50, %v751_v11 }
 0x3d0   : > { %v3265_v58 = vrot.slane %v3098_v31, 7  ;;  %v2591_v30 = vpop.f32.mrb[239].mxu0  ;;  %v11904_v5 = vpop.f32.mrb[62].mxu1 }
 0x3d1   : > { %v3518_v17 = vrot.slane %v11904_v5, 1  ;;  %v3058_v33 = vpop.f32.mrb[63].mxu1  ;;  %12472 = vmatpush3.bf16.msra.mxu0 %v15248_v32 }
 0x3d2   : > { %v3266_v18 = vsel %vm3246_vm2, %v3263_v2, %v3265_v58  ;;  %v3515_v8 = vrot.slane %v3058_v33, 1  ;;  %12473 = vmatprep.subr.bf16.mxu0 %v18362_v57 }
 0x3d3   : > { %v3366_v27 = vadd.f32 %v3266_v18, %v3099_v26  ;;  %v15239_v7 = vsel %vm3439_vm1, %v3516_v42, %v3518_v17 }
 0x3d4   : > { %v15242_v47 = vsel %vm3439_vm1, %v3515_v8, %v3516_v42 }
 0x3d5   : > { %v15245_v59 = vadd.f32 %v15059_v44, %v3366_v27  ;;  %v2594_v12 = vpop.f32.mrb[240].mxu0 }
 0x3d6   : > { %v3102_v16 = vadd.f32 %v2594_v12, %v14956_v36  ;;  %v2596_v15 = vpop.f32.mrb[241].mxu0 }
 0x3d7   : > { %v2597_v2 = vpop.f32.mrb[242].mxu0 }
 0x3d8   : > { %v3103_v28 = vadd.f32 %v2597_v2, %v14962_v53  ;;  %v2599_v31 = vpop.f32.mrb[243].mxu0  ;;  %v3267_v44 = vrot.slane %v3102_v16, 7 }
 0x3d9   : > { %v3104_v4 = vadd.f32 %v2599_v31, %v14966_v3 }
 0x3da   : > { %v3268_v56 = vrot.slane %v3103_v28, 7 }
 0x3dc   : > { %v3269_v26 = vsel %vm3246_vm2, %v3267_v44, %v3268_v56 }
 0x3dd   : > { %v3367_v20 = vadd.f32 %v3269_v26, %v3104_v4  ;;  %v2603_v54 = vpop.f32.mrb[244].mxu0 }
 0x3de   : > { %v3106_v36 = vadd.f32 %v2603_v54, %v14972_v14  ;;  %v2605_v58 = vpop.f32.mrb[245].mxu0  ;;  %v18404_v54 = vld [vmem:[#allocation36_spill] sm:$0xff] }
 0x3df   : > { %v15257_v30 = vadd.f32 %v15083_v55, %v3367_v20  ;;  %v3107_v53 = vadd.f32 %v2605_v58, %v14975_v1  ;;  %v2607_v5 = vpop.f32.mrb[246].mxu0 }
 0x3e0   : > { %v3270_v42 = vrot.slane %v3106_v36, 7  ;;  %v2608_v17 = vpop.f32.mrb[247].mxu0  ;;  %v754_v5 = vld [vmem:[#allocation10 + $0x68] sm:$0xff] }
 0x3e2   : > { %v3271_v3 = vsel %vm3246_vm2, %v3268_v56, %v3270_v42  ;;  %v18405_v42 = vld [vmem:[#allocation21_spill] sm:$0xff] }
 0x3e3   : > { %v3368_v33 = vadd.f32 %v3271_v3, %v3107_v53  ;;  %v753_v53 = vld [vmem:[#allocation10 + $0x60] sm:$0xff] }
 0x3e4   : > { %v15278_v3 = vpack.c.bf16 %v754_v5, %v753_v53  ;;  %v18411_v53 = vld [vmem:[#allocation26_spill] sm:$0xff] }
 0x3e5   : > { %v15262_v18 = vadd.f32 %v15080_v38, %v3368_v33  ;;  %v2611_v8 = vpop.f32.mrb[248].mxu0  ;;  %v18406_v33 = vld [vmem:[#allocation23_spill] sm:$0xff] }
 0x3e6   : > { %v3110_v27 = vadd.f32 %v2611_v8, %v14980_v6  ;;  %v2613_v12 = vpop.f32.mrb[249].mxu0  ;;  %v18403_v6 = vld [vmem:[#allocation59_spill] sm:$0xff]  ;;  %12475 = vmatpush3.bf16.msra.mxu0 %v15278_v3 }
 0x3e7   : > { %v2614_v14 = vpop.f32.mrb[250].mxu0  ;;  %v18407_v12 = vld [vmem:[#allocation24_spill] sm:$0xff]  ;;  %12476 = vmatprep.subr.bf16.mxu0 %v18362_v57 }
 0x3e8   : > { %v3111_v11 = vadd.f32 %v2614_v14, %v14983_v62  ;;  %v2616_v55 = vpop.f32.mrb[251].mxu0  ;;  %v3272_v1 = vrot.slane %v3110_v27, 7 }
 0x3e9   : > { %v3112_v50 = vadd.f32 %v2616_v55, %v14986_v41 }
 0x3ea   : > { %v3273_v16 = vrot.slane %v3111_v11, 7 }
 0x3ec   : > { %v3274_v15 = vsel %vm3246_vm2, %v3272_v1, %v3273_v16 }
 0x3ed   : > { %v3369_v2 = vadd.f32 %v3274_v15, %v3112_v50  ;;  %v2620_v28 = vpop.f32.mrb[252].mxu0  ;;  %v18408_v15 = vld [vmem:[#allocation25_spill] sm:$0xff] }
 0x3ee   : > { %v3114_v31 = vadd.f32 %v2620_v28, %v14991_v19  ;;  %v2622_v38 = vpop.f32.mrb[253].mxu0 }
 0x3ef   : > { %v15270_v4 = vadd.f32 %v15097_v37, %v3369_v2  ;;  %v3115_v44 = vadd.f32 %v2622_v38, %v18403_v6  ;;  %v2624_v56 = vpop.f32.mrb[254].mxu0  ;;  %v18409_v38 = vld [vmem:[#allocation62_spill] sm:$0xff] }
 0x3f0   : > { %v3275_v26 = vrot.slane %v3114_v31, 7  ;;  %v2625_v62 = vpop.f32.mrb[255].mxu0 }
 0x3f2   : > { %v3276_v20 = vsel %vm3246_vm2, %v3273_v16, %v3275_v26 }
 0x3f3   : > { %v3370_v41 = vadd.f32 %v3276_v20, %v3115_v44 }
 0x3f5   : > { %v15275_v36 = vadd.f32 %v18404_v54, %v3370_v41  ;;  %v2628_v58 = vpop.f32.mrb[0].mxu0  ;;  %v18410_v41 = vld [vmem:[#allocation40_spill] sm:$0xff] }
 0x3f6   : > { %v3118_v19 = vadd.f32 %v2628_v58, %v18405_v42  ;;  %v2630_v17 = vpop.f32.mrb[1].mxu0 }
 0x3f7   : > { %v2631_v37 = vpop.f32.mrb[2].mxu0  ;;  %v18412_v17 = vld [vmem:[#allocation27_spill] sm:$0xff] }
 0x3f8   : > { %v3119_v8 = vadd.f32 %v2631_v37, %v18406_v33  ;;  %v2633_v27 = vpop.f32.mrb[3].mxu0  ;;  %v3277_v11 = vrot.slane %v3118_v19, 7  ;;  %v18413_v33 = vld [vmem:[#allocation28_spill] sm:$0xff] }
 0x3f9   : > { %v3120_v14 = vadd.f32 %v2633_v27, %v18407_v12 }
 0x3fa   : > { %v3278_v55 = vrot.slane %v3119_v8, 7 }
 0x3fc   : > { %v3279_v50 = vsel %vm3246_vm2, %v3277_v11, %v3278_v55 }
 0x3fd   : > { %v3371_v1 = vadd.f32 %v3279_v50, %v3120_v14  ;;  %v2637_v16 = vpop.f32.mrb[4].mxu0  ;;  %v18414_v50 = vld [vmem:[#allocation29_spill] sm:$0xff] }
 0x3fe   : > { %v3122_v2 = vadd.f32 %v2637_v16, %v18408_v15  ;;  %v2639_v28 = vpop.f32.mrb[5].mxu0 }
 0x3ff   : > { %v15287_v31 = vadd.f32 %v15114_v25, %v3371_v1  ;;  %v3123_v6 = vadd.f32 %v2639_v28, %v18409_v38  ;;  %v2641_v44 = vpop.f32.mrb[6].mxu0 }
 0x400   : > { %v3280_v56 = vrot.slane %v3122_v2, 7  ;;  %v2642_v26 = vpop.f32.mrb[7].mxu0  ;;  %v18415_v2 = vld [vmem:[#allocation30_spill] sm:$0xff] }
 0x402   : > { %v3281_v62 = vsel %vm3246_vm2, %v3278_v55, %v3280_v56 }
 0x403   : > { %v3372_v20 = vadd.f32 %v3281_v62, %v3123_v6 }
 0x405   : > { %v15292_v54 = vadd.f32 %v18410_v41, %v3372_v20  ;;  %v2645_v58 = vpop.f32.mrb[8].mxu0  ;;  %v755_v41 = vld [vmem:[#allocation10 + $0x70] sm:$0xff] }
 0x406   : > { %v3126_v5 = vadd.f32 %v2645_v58, %v18411_v53  ;;  %v2647_v42 = vpop.f32.mrb[9].mxu0  ;;  %v756_v58 = vld [vmem:[#allocation10 + $0x78] sm:$0xff]  ;;  %v18416_v53 = vld [vmem:[#allocation66_spill] sm:$0xff] }
 0x407   : > { %v2648_v19 = vpop.f32.mrb[10].mxu0 }
 0x408   : > { %v3127_v37 = vadd.f32 %v2648_v19, %v18412_v17  ;;  %v2650_v25 = vpop.f32.mrb[11].mxu0  ;;  %v3282_v27 = vrot.slane %v3126_v5, 7  ;;  %v15308_v19 = vpack.c.bf16 %v756_v58, %v755_v41  ;;  %v18417_v17 = vld [vmem:[#allocation32_spill] sm:$0xff] }
 0x409   : > { %v3128_v8 = vadd.f32 %v2650_v25, %v18413_v33  ;;  %v18418_v33 = vld [vmem:[#allocation33_spill] sm:$0xff]  ;;  %v18421_v41 = vld [vmem:[#allocation44_spill] sm:$0xff] }
 0x40a   : > { %v3283_v12 = vrot.slane %v3127_v37, 7  ;;  %12478 = vmatpush3.bf16.msra.mxu0 %v15308_v19 }
 0x40c   : > { %v3284_v14 = vsel %vm3246_vm2, %v3282_v27, %v3283_v12 }
 0x40d   : > { %v3373_v11 = vadd.f32 %v3284_v14, %v3128_v8  ;;  %v2654_v55 = vpop.f32.mrb[12].mxu0 }
 0x40e   : > { %v3130_v1 = vadd.f32 %v2654_v55, %v18414_v50  ;;  %v2656_v16 = vpop.f32.mrb[13].mxu0  ;;  %v18419_v55 = vld [vmem:[#allocation34_spill] sm:$0xff] }
 0x40f   : > { %v15300_v15 = vadd.f32 %v15128_v13, %v3373_v11  ;;  %v3131_v28 = vadd.f32 %v2656_v16, %v18415_v2  ;;  %v2658_v38 = vpop.f32.mrb[14].mxu0  ;;  %v18420_v2 = vld [vmem:[#allocation35_spill] sm:$0xff] }
 0x410   : > { %v3285_v6 = vrot.slane %v3130_v1, 7  ;;  %v2659_v44 = vpop.f32.mrb[15].mxu0 }
 0x412   : > { %v3286_v56 = vsel %vm3246_vm2, %v3283_v12, %v3285_v6 }
 0x413   : > { %v3374_v26 = vadd.f32 %v3286_v56, %v3131_v28 }
 0x415   : > { %v15305_v62 = vadd.f32 %v15125_v39, %v3374_v26  ;;  %v2662_v20 = vpop.f32.mrb[16].mxu0  ;;  %v18252_v26 = vmov 0.0  }
 0x416   : > { %v3134_v5 = vadd.f32 %v2662_v20, %v18416_v53  ;;  %v2664_v42 = vpop.f32.mrb[17].mxu0  ;;  %11937 = vmatprep.mubr.msk.f32.mxu0 %vm13785_vm3, %v18252_v26  ;;  %v15958_v26 = vld [vmem:[#allocation2] sm:$0xff] }
 0x417   : > { %v2665_v13 = vpop.f32.mrb[18].mxu0 }
 0x418   : > { %v3135_v37 = vadd.f32 %v2665_v13, %v18417_v17  ;;  %v2667_v25 = vpop.f32.mrb[19].mxu0  ;;  %v3287_v27 = vrot.slane %v3134_v5, 7  ;;  %v18422_v5 = vld [vmem:[#allocation37_spill] sm:$0xff]  ;;  %v18423_v17 = vld [vmem:[#allocation38_spill] sm:$0xff] }
 0x419   : > { %v3136_v8 = vadd.f32 %v2667_v25, %v18418_v33  ;;  %v18424_v33 = vld [vmem:[#allocation39_spill] sm:$0xff] }
 0x41a   : > { %v3288_v12 = vrot.slane %v3135_v37, 7 }
 0x41c   : > { %v3289_v39 = vsel %vm3246_vm2, %v3287_v27, %v3288_v12 }
 0x41d   : > { %v3375_v14 = vadd.f32 %v3289_v39, %v3136_v8  ;;  %v2671_v11 = vpop.f32.mrb[20].mxu0  ;;  %v13177_v39 = vld [vmem:[#allocation7 + $0x308] ss:$12 sps:$4 sm:$0xff]  }
 0x41e   : > { %v3138_v50 = vadd.f32 %v2671_v11, %v18419_v55  ;;  %v2673_v1 = vpop.f32.mrb[21].mxu0  ;;  %11940 = vmatprep.subr.bf16.mxu1 %v13177_v39 }
 0x41f   : > { %v15316_v16 = vadd.f32 %v15144_v49, %v3375_v14  ;;  %v3139_v28 = vadd.f32 %v2673_v1, %v18420_v2  ;;  %v2675_v38 = vpop.f32.mrb[22].mxu0  ;;  %v13178_v14 = vld [vmem:[#allocation7 + $0x320] ss:$12 sps:$4 sm:$0xff]   ;;  %11941 = vmatpush3.bf16.msra.mxu1 %v13177_v39 }
 0x420   : > { %v3290_v6 = vrot.slane %v3138_v50, 7  ;;  %v2676_v44 = vpop.f32.mrb[23].mxu0  ;;  %v18425_v1 = vld [vmem:[#allocation41_spill] sm:$0xff]  ;;  %11942 = vmatprep.subr.bf16.mxu1 %v13178_v14 }
 0x421   : > { %v13179_v38 = vld [vmem:[#allocation7 + $0x338] ss:$12 sps:$4 sm:$0xff]   ;;  %v18426_v44 = vld [vmem:[#allocation42_spill] sm:$0xff] }
 0x422   : > { %v3291_v56 = vsel %vm3246_vm2, %v3288_v12, %v3290_v6 }
 0x423   : > { %v3376_v20 = vadd.f32 %v3291_v56, %v3139_v28  ;;  %11943 = vmatpush3.bf16.msra.mxu1 %v13178_v14  ;;  %v18429_v14 = vld [vmem:[#allocation48_spill] sm:$0xff] }
 0x424   : > { %11944 = vmatprep.subr.bf16.mxu1 %v13179_v38 }
 0x425   : > { %v15323_v58 = vadd.f32 %v18421_v41, %v3376_v20  ;;  %v2679_v53 = vpop.f32.mrb[24].mxu0 }
 0x426   : > { %v3142_v49 = vadd.f32 %v2679_v53, %v18422_v5  ;;  %v2681_v42 = vpop.f32.mrb[25].mxu0 }
 0x427   : > { %v2682_v13 = vpop.f32.mrb[26].mxu0  ;;  %11945 = vmatpush3.bf16.msra.mxu1 %v13179_v38 }
 0x428   : > { %v3143_v37 = vadd.f32 %v2682_v13, %v18423_v17  ;;  %v2684_v25 = vpop.f32.mrb[27].mxu0  ;;  %v3292_v27 = vrot.slane %v3142_v49, 7  ;;  %v13180_v49 = vld [vmem:[#allocation7 + $0x350] ss:$12 sps:$4 sm:$0xff]  }
 0x429   : > { %v3144_v8 = vadd.f32 %v2684_v25, %v18424_v33  ;;  %11946 = vmatprep.subr.bf16.mxu1 %v13180_v49  ;;  %v13181_v33 = vld [vmem:[#allocation7 + $0x368] ss:$12 sps:$4 sm:$0xff]  }
 0x42a   : > { %v3293_v12 = vrot.slane %v3143_v37, 7  ;;  %v18427_v37 = vld [vmem:[#allocation46_spill] sm:$0xff] }
 0x42b   : > { %11947 = vmatpush3.bf16.msra.mxu1 %v13180_v49 }
 0x42c   : > { %v3294_v11 = vsel %vm3246_vm2, %v3292_v27, %v3293_v12  ;;  %v18428_v27 = vld [vmem:[#allocation47_spill] sm:$0xff]  ;;  %11948 = vmatprep.subr.bf16.mxu1 %v13181_v33 }
 0x42d   : > { %v3377_v55 = vadd.f32 %v3294_v11, %v3144_v8  ;;  %v2688_v50 = vpop.f32.mrb[28].mxu0 }
 0x42e   : > { %v3146_v2 = vadd.f32 %v2688_v50, %v18425_v1  ;;  %v2690_v28 = vpop.f32.mrb[29].mxu0 }
 0x42f   : > { %v15331_v6 = vadd.f32 %v15158_v46, %v3377_v55  ;;  %v3147_v56 = vadd.f32 %v2690_v28, %v18426_v44  ;;  %v2692_v20 = vpop.f32.mrb[30].mxu0  ;;  %11949 = vmatpush3.bf16.msra.mxu1 %v13181_v33  ;;  %v18430_v28 = vld [vmem:[#allocation49_spill] sm:$0xff] }
 0x430   : > { %v3295_v41 = vrot.slane %v3146_v2, 7  ;;  %v2693_v53 = vpop.f32.mrb[31].mxu0  ;;  %v18431_v20 = vld [vmem:[#allocation50_spill] sm:$0xff] }
 0x432   : > { %v3296_v5 = vsel %vm3246_vm2, %v3293_v12, %v3295_v41 }
 0x433   : > { %v3378_v42 = vadd.f32 %v3296_v5, %v3147_v56 }
 0x435   : > { %v15336_v13 = vadd.f32 %v15155_v21, %v3378_v42  ;;  %v2696_v17 = vpop.f32.mrb[32].mxu0 }
 0x436   : > { %v3150_v25 = vadd.f32 %v2696_v17, %v18427_v37  ;;  %v2698_v46 = vpop.f32.mrb[33].mxu0 }
 0x437   : > { %v2699_v8 = vpop.f32.mrb[34].mxu0  ;;  %v18432_v46 = vld [vmem:[#allocation51_spill] sm:$0xff] }
 0x438   : > { %v3151_v39 = vadd.f32 %v2699_v8, %v18428_v27  ;;  %v2701_v11 = vpop.f32.mrb[35].mxu0  ;;  %v3297_v12 = vrot.slane %v3150_v25, 7 }
 0x439   : > { %v3152_v55 = vadd.f32 %v2701_v11, %v18429_v14  ;;  %v18434_v14 = vld [vmem:[#allocation53_spill] sm:$0xff] }
 0x43a   : > { %v3298_v50 = vrot.slane %v3151_v39, 7  ;;  %v18433_v39 = vld [vmem:[#allocation52_spill] sm:$0xff] }
 0x43c   : > { %v3299_v21 = vsel %vm3246_vm2, %v3297_v12, %v3298_v50 }
 0x43d   : > { %v3379_v1 = vadd.f32 %v3299_v21, %v3152_v55  ;;  %v2705_v2 = vpop.f32.mrb[36].mxu0 }
 0x43e   : > { %v3154_v38 = vadd.f32 %v2705_v2, %v18430_v28  ;;  %v2707_v44 = vpop.f32.mrb[37].mxu0  ;;  %v18435_v28 = vld [vmem:[#allocation54_spill] sm:$0xff] }
 0x43f   : > { %v15344_v56 = vadd.f32 %v15173_v52, %v3379_v1  ;;  %v3155_v41 = vadd.f32 %v2707_v44, %v18431_v20  ;;  %v2709_v53 = vpop.f32.mrb[38].mxu0  ;;  %v18436_v20 = vld [vmem:[#allocation55_spill] sm:$0xff] }
 0x440   : > { %v3300_v5 = vrot.slane %v3154_v38, 7  ;;  %v2710_v42 = vpop.f32.mrb[39].mxu0 }
 0x442   : > { %v3301_v49 = vsel %vm3246_vm2, %v3298_v50, %v3300_v5 }
 0x443   : > { %v3380_v17 = vadd.f32 %v3301_v49, %v3155_v41  ;;  %v15363_v49 = vld [vmem:[%s18228_s2] ss:$0 sm:$0xff] }
 0x445   : > { %v15349_v37 = vadd.f32 %v15169_v48, %v3380_v17  ;;  %v2713_v25 = vpop.f32.mrb[40].mxu0  ;;  %v15367_v17 = vadd.f32 %v15363_v49, %v15161_v24  ;;  %v15385_v24 = vadd.f32 %v15363_v49, %v15190_v40  ;;  %v15397_v40 = vadd.f32 %v15363_v49, %v15209_v61 }
 0x446   : > { %v3158_v33 = vadd.f32 %v2713_v25, %v18432_v46  ;;  %v2715_v8 = vpop.f32.mrb[41].mxu0 }
 0x447   : > { %v2716_v27 = vpop.f32.mrb[42].mxu0  ;;  %v3664_v61 = vmul.f32 %v15397_v40, %v15397_v40 }
 0x448   : > { %v3159_v11 = vadd.f32 %v2716_v27, %v18433_v39  ;;  %v2718_v52 = vpop.f32.mrb[43].mxu0  ;;  %v3302_v12 = vrot.slane %v3158_v33, 7  ;;  %v15376_v33 = vadd.f32 %v15363_v49, %v15177_v29  ;;  %v3661_v39 = vmul.f32 %v15367_v17, %v15367_v17 }
 0x449   : > { %v3160_v55 = vadd.f32 %v2718_v52, %v18434_v14 }
 0x44a   : > { %v3303_v21 = vrot.slane %v3159_v11, 7  ;;  %v18437_v11 = vld [vmem:[#allocation56_spill] sm:$0xff]  ;;  %v3662_v29 = vmul.f32 %v15376_v33, %v15376_v33 }
 0x44c   : > { %v3304_v1 = vsel %vm3246_vm2, %v3302_v12, %v3303_v21 }
 0x44d   : > { %v3381_v2 = vadd.f32 %v3304_v1, %v3160_v55  ;;  %v2722_v50 = vpop.f32.mrb[44].mxu0 }
 0x44e   : > { %v3162_v38 = vadd.f32 %v2722_v50, %v18435_v28  ;;  %v2724_v48 = vpop.f32.mrb[45].mxu0 }
 0x44f   : > { %v15357_v44 = vadd.f32 %v15187_v22, %v3381_v2  ;;  %v3163_v41 = vadd.f32 %v2724_v48, %v18436_v20  ;;  %v2726_v53 = vpop.f32.mrb[46].mxu0  ;;  %v15372_v22 = vadd.f32 %v15363_v49, %v15148_v34  ;;  %v18439_v2 = vld [vmem:[#allocation58_spill] sm:$0xff] }
 0x450   : > { %v3305_v5 = vrot.slane %v3162_v38, 7  ;;  %v2727_v42 = vpop.f32.mrb[47].mxu0  ;;  %v3663_v38 = vmul.f32 %v15385_v24, %v15385_v24 }
 0x451   : > { %v3660_v55 = vmul.f32 %v15372_v22, %v15372_v22  ;;  %v3623_v1 = vadd.f32 %v15367_v17, %v15372_v22 }
 0x452   : > { %v3306_v25 = vsel %vm3246_vm2, %v3303_v21, %v3305_v5 }
 0x453   : > { %v3382_v46 = vadd.f32 %v3306_v25, %v3163_v41  ;;  %v3692_v28 = vadd.f32 %v3661_v39, %v3660_v55  ;;  %v15404_v41 = vadd.f32 %v15363_v49, %v15220_v10  ;;  %v3624_v53 = vadd.f32 %v3623_v1, %v15376_v33 }
 0x454   : > { %v15412_v25 = vadd.f32 %v15363_v49, %v15234_v63  ;;  %v15420_v55 = vadd.f32 %v15363_v49, %v15245_v59  ;;  %v18441_v63 = vld [vmem:[#allocation61_spill] sm:$0xff] }
 0x455   : > { %v15379_v8 = vadd.f32 %v15184_v60, %v3382_v46  ;;  %v2730_v27 = vpop.f32.mrb[48].mxu0  ;;  %v18438_v60 = vld [vmem:[#allocation57_spill] sm:$0xff]  ;;  %v3693_v5 = vadd.f32 %v3692_v28, %v3662_v29  ;;  %v3625_v39 = vadd.f32 %v3624_v53, %v15385_v24 }
 0x456   : > { %v3166_v52 = vadd.f32 %v2730_v27, %v18437_v11  ;;  %v2732_v14 = vpop.f32.mrb[49].mxu0  ;;  %v3666_v28 = vmul.f32 %v15412_v25, %v15412_v25  ;;  %v3667_v53 = vmul.f32 %v15420_v55, %v15420_v55 }
 0x457   : > { %v2733_v34 = vpop.f32.mrb[50].mxu0  ;;  %v3694_v11 = vadd.f32 %v3693_v5, %v3663_v38  ;;  %v15431_v38 = vadd.f32 %v15363_v49, %v15257_v30 }
 0x458   : > { %v3167_v12 = vadd.f32 %v2733_v34, %v18438_v60  ;;  %v2735_v21 = vpop.f32.mrb[51].mxu0  ;;  %v3307_v48 = vrot.slane %v3166_v52, 7  ;;  %v18440_v52 = vld [vmem:[#allocation60_spill] sm:$0xff]  ;;  %v3665_v34 = vmul.f32 %v15404_v41, %v15404_v41 }
 0x459   : > { %v3168_v50 = vadd.f32 %v2735_v21, %v18439_v2  ;;  %v3626_v2 = vadd.f32 %v3625_v39, %v15397_v40  ;;  %v3668_v30 = vmul.f32 %v15431_v38, %v15431_v38  ;;  %v15449_v39 = vadd.f32 %v15363_v49, %v15270_v4 }
 0x45a   : > { %v3308_v20 = vrot.slane %v3167_v12, 7 }
 0x45c   : > { %v3309_v42 = vsel %vm3246_vm2, %v3307_v48, %v3308_v20 }
 0x45d   : > { %v3383_v46 = vadd.f32 %v3309_v42, %v3168_v50  ;;  %v2739_v27 = vpop.f32.mrb[52].mxu0  ;;  %v3695_v50 = vadd.f32 %v3694_v11, %v3664_v61  ;;  %v15439_v42 = vadd.f32 %v15363_v49, %v15262_v18  ;;  %v18442_v11 = vld [vmem:[#allocation63_spill] sm:$0xff] }
 0x45e   : > { %v3170_v10 = vadd.f32 %v2739_v27, %v18440_v52  ;;  %v2741_v14 = vpop.f32.mrb[53].mxu0 }
 0x45f   : > { %v15423_v29 = vadd.f32 %v15205_v23, %v3383_v46  ;;  %v3171_v60 = vadd.f32 %v2741_v14, %v18441_v63  ;;  %v2743_v12 = vpop.f32.mrb[54].mxu0  ;;  %v3627_v23 = vadd.f32 %v3626_v2, %v15404_v41  ;;  %v3696_v48 = vadd.f32 %v3695_v50, %v3665_v34  ;;  %v18444_v2 = vld [vmem:[#allocation65_spill] sm:$0xff] }
 0x460   : > { %v3310_v21 = vrot.slane %v3170_v10, 7  ;;  %v2744_v1 = vpop.f32.mrb[55].mxu0  ;;  %v3669_v63 = vmul.f32 %v15439_v42, %v15439_v42 }
 0x461   : > { %v3628_v61 = vadd.f32 %v3627_v23, %v15412_v25  ;;  %v3697_v46 = vadd.f32 %v3696_v48, %v3666_v28  ;;  %v3670_v28 = vmul.f32 %v15449_v39, %v15449_v39 }
 0x462   : > { %v3311_v59 = vsel %vm3246_vm2, %v3308_v20, %v3310_v21 }
 0x463   : > { %v3384_v5 = vadd.f32 %v3311_v59, %v3171_v60  ;;  %v3629_v18 = vadd.f32 %v3628_v61, %v15420_v55  ;;  %v3698_v14 = vadd.f32 %v3697_v46, %v3667_v53  ;;  %v15457_v60 = vadd.f32 %v15363_v49, %v15275_v36 }
 0x464   : > { %v15466_v59 = vadd.f32 %v15363_v49, %v15287_v31  ;;  %v15473_v61 = vadd.f32 %v15363_v49, %v15292_v54 }
 0x465   : > { %v15445_v27 = vadd.f32 %v15201_v35, %v3384_v5  ;;  %v2747_v20 = vpop.f32.mrb[56].mxu0  ;;  %v18443_v35 = vld [vmem:[#allocation64_spill] sm:$0xff]  ;;  %v3630_v4 = vadd.f32 %v3629_v18, %v15431_v38  ;;  %v3699_v1 = vadd.f32 %v3698_v14, %v3668_v30  ;;  %v3671_v5 = vmul.f32 %v15457_v60, %v15457_v60  ;;  %v18445_v18 = vld [vmem:[#allocation67_spill] sm:$0xff] }
 0x466   : > { %v3174_v52 = vadd.f32 %v2747_v20, %v18442_v11  ;;  %v2749_v10 = vpop.f32.mrb[57].mxu0 }
 0x467   : > { %v2750_v34 = vpop.f32.mrb[58].mxu0  ;;  %v3631_v36 = vadd.f32 %v3630_v4, %v15439_v42  ;;  %v3700_v53 = vadd.f32 %v3699_v1, %v3669_v63  ;;  %v15481_v10 = vadd.f32 %v15363_v49, %v15300_v15  ;;  %v3673_v1 = vmul.f32 %v15473_v61, %v15473_v61 }
 0x468   : > { %v3175_v12 = vadd.f32 %v2750_v34, %v18443_v35  ;;  %v2752_v21 = vpop.f32.mrb[59].mxu0  ;;  %v3312_v23 = vrot.slane %v3174_v52, 7  ;;  %v3672_v52 = vmul.f32 %v15466_v59, %v15466_v59  ;;  %v18446_v35 = vld [vmem:[#allocation68_spill] sm:$0xff] }
 0x469   : > { %v3176_v50 = vadd.f32 %v2752_v21, %v18444_v2  ;;  %v3632_v30 = vadd.f32 %v3631_v36, %v15449_v39  ;;  %v3701_v31 = vadd.f32 %v3700_v53, %v3670_v28  ;;  %v15493_v2 = vadd.f32 %v15363_v49, %v15305_v62 }
 0x46a   : > { %v3313_v48 = vrot.slane %v3175_v12, 7  ;;  %v15500_v36 = vadd.f32 %v15363_v49, %v15316_v16 }
 0x46b   : > { %v3633_v54 = vadd.f32 %v3632_v30, %v15457_v60  ;;  %v3702_v4 = vadd.f32 %v3701_v31, %v3671_v5  ;;  %v3675_v62 = vmul.f32 %v15493_v2, %v15493_v2 }
 0x46c   : > { %v3314_v46 = vsel %vm3246_vm2, %v3312_v23, %v3313_v48 }
 0x46d   : > { %v3385_v20 = vadd.f32 %v3314_v46, %v3176_v50  ;;  %v2756_v11 = vpop.f32.mrb[60].mxu0  ;;  %v3634_v28 = vadd.f32 %v3633_v54, %v15466_v59  ;;  %v3703_v23 = vadd.f32 %v3702_v4, %v3672_v52 }
 0x46e   : > { %v3178_v14 = vadd.f32 %v2756_v11, %v18445_v18  ;;  %v2758_v34 = vpop.f32.mrb[61].mxu0  ;;  %v15518_v18 = vadd.f32 %v15363_v49, %v15331_v6  ;;  %v18449_v6 = vld [vmem:[#allocation71_spill] sm:$0xff] }
 0x46f   : > { %v15486_v63 = vadd.f32 %v15217_v51, %v3385_v20  ;;  %v3179_v12 = vadd.f32 %v2758_v34, %v18446_v35  ;;  %v2760_v21 = vpop.f32.mrb[62].mxu0  ;;  %v3674_v51 = vmul.f32 %v15481_v10, %v15481_v10  ;;  %v3635_v5 = vadd.f32 %v3634_v28, %v15473_v61 }
 0x470   : > { %v3315_v15 = vrot.slane %v3178_v14, 7  ;;  %v2761_v50 = vpop.f32.mrb[63].mxu0  ;;  %v3704_v30 = vadd.f32 %v3703_v23, %v3673_v1  ;;  %v15508_v20 = vadd.f32 %v15363_v49, %v15323_v58  ;;  %v18447_v14 = vld [vmem:[#allocation69_spill] sm:$0xff]  ;;  %v18448_v21 = vld [vmem:[#allocation70_spill] sm:$0xff] }
 0x471   : > { %v3636_v11 = vadd.f32 %v3635_v5, %v15481_v10  ;;  %v15528_v50 = vadd.f32 %v15363_v49, %v15336_v13 }
 0x472   : > { %v3316_v53 = vsel %vm3246_vm2, %v3313_v48, %v3315_v15  ;;  %v3705_v52 = vadd.f32 %v3704_v30, %v3674_v51  ;;  %v3676_v48 = vmul.f32 %v15500_v36, %v15500_v36  ;;  %v3678_v51 = vmul.f32 %v15518_v18, %v15518_v18 }
 0x473   : > { %v3386_v46 = vadd.f32 %v3316_v53, %v3179_v12  ;;  %v3637_v58 = vadd.f32 %v3636_v11, %v15493_v2  ;;  %v3679_v13 = vmul.f32 %v15528_v50, %v15528_v50 }
 0x474   : > { %v3706_v12 = vadd.f32 %v3705_v52, %v3675_v62 }
 0x475   : > { %v15512_v31 = vadd.f32 %v15214_v0, %v3386_v46  ;;  %v2764_v16 = vpop.f32.mrb[64].mxu0  ;;  %v3677_v0 = vmul.f32 %v15508_v20, %v15508_v20  ;;  %v3638_v15 = vadd.f32 %v3637_v58, %v15500_v36  ;;  %v15535_v46 = vadd.f32 %v15363_v49, %v15344_v56 }
 0x476   : > { %v3182_v34 = vadd.f32 %v2764_v16, %v18447_v14  ;;  %v2766_v54 = vpop.f32.mrb[65].mxu0  ;;  %v3707_v23 = vadd.f32 %v3706_v12, %v3676_v48  ;;  %v15543_v16 = vadd.f32 %v15363_v49, %v15349_v37  ;;  %v15551_v12 = vadd.f32 %v15363_v49, %v15357_v44 }
 0x477   : > { %v2767_v35 = vpop.f32.mrb[66].mxu0  ;;  %v3639_v30 = vadd.f32 %v3638_v15, %v15508_v20  ;;  %v18450_v54 = vld [vmem:[#allocation72_spill] sm:$0xff] }
 0x478   : > { %v3183_v4 = vadd.f32 %v2767_v35, %v18448_v21  ;;  %v2769_v1 = vpop.f32.mrb[67].mxu0  ;;  %v3317_v53 = vrot.slane %v3182_v34, 7  ;;  %v3708_v62 = vadd.f32 %v3707_v23, %v3677_v0  ;;  %v3680_v35 = vmul.f32 %v15535_v46, %v15535_v46  ;;  %v18451_v21 = vld [vmem:[#allocation73_spill] sm:$0xff] }
 0x479   : > { %v3184_v28 = vadd.f32 %v2769_v1, %v18449_v6  ;;  %v3640_v14 = vadd.f32 %v3639_v30, %v15518_v18  ;;  %v3681_v23 = vmul.f32 %v15543_v16, %v15543_v16  ;;  %v3682_v30 = vmul.f32 %v15551_v12, %v15551_v12 }
 0x47a   : > { %v3318_v5 = vrot.slane %v3183_v4, 7  ;;  %v3709_v34 = vadd.f32 %v3708_v62, %v3678_v51  ;;  %v15560_v51 = vadd.f32 %v15363_v49, %v15379_v8 }
 0x47b   : > { %v3641_v1 = vadd.f32 %v3640_v14, %v15528_v50 }
 0x47c   : > { %v3319_v11 = vsel %vm3246_vm2, %v3317_v53, %v3318_v5  ;;  %v3683_v8 = vmul.f32 %v15560_v51, %v15560_v51 }
 0x47d   : > { %v3387_v52 = vadd.f32 %v3319_v11, %v3184_v28  ;;  %v2773_v48 = vpop.f32.mrb[68].mxu0  ;;  %v3710_v28 = vadd.f32 %v3709_v34, %v3679_v13  ;;  %v3642_v44 = vadd.f32 %v3641_v1, %v15535_v46  ;;  %v15569_v13 = vadd.f32 %v15363_v49, %v15423_v29 }
 0x47e   : > { %v3186_v56 = vadd.f32 %v2773_v48, %v18450_v54  ;;  %v2775_v58 = vpop.f32.mrb[69].mxu0  ;;  %v15577_v34 = vadd.f32 %v15363_v49, %v15445_v27  ;;  %v18452_v54 = vld [vmem:[#allocation74_spill] sm:$0xff]  ;;  %v18454_v27 = vld [vmem:[#allocation76_spill] sm:$0xff] }
 0x47f   : > { %v3580_v0 = vadd.f32 %v15230_v45, %v3387_v52  ;;  %v3187_v37 = vadd.f32 %v2775_v58, %v18451_v21  ;;  %v2777_v4 = vpop.f32.mrb[70].mxu0  ;;  %v3711_v45 = vadd.f32 %v3710_v28, %v3680_v35  ;;  %v3643_v11 = vadd.f32 %v3642_v44, %v15543_v16 }
 0x480   : > { %v3320_v15 = vrot.slane %v3186_v56, 7  ;;  %v2778_v6 = vpop.f32.mrb[71].mxu0  ;;  %v18453_v4 = vld [vmem:[#allocation75_spill] sm:$0xff]  ;;  %v3685_v44 = vmul.f32 %v15577_v34, %v15577_v34 }
 0x481   : > { %v3712_v52 = vadd.f32 %v3711_v45, %v3681_v23  ;;  %v15586_v6 = vadd.f32 %v15363_v49, %v15486_v63 }
 0x482   : > { %v3321_v53 = vsel %vm3246_vm2, %v3318_v5, %v3320_v15  ;;  %v3644_v5 = vadd.f32 %v3643_v11, %v15551_v12 }
 0x483   : > { %v3388_v62 = vadd.f32 %v3321_v53, %v3187_v37  ;;  %v3713_v35 = vadd.f32 %v3712_v52, %v3682_v30  ;;  %v3684_v37 = vmul.f32 %v15569_v13, %v15569_v13  ;;  %v15594_v30 = vadd.f32 %v15363_v49, %v15512_v31 }
 0x484   : > { %v3645_v29 = vadd.f32 %v3644_v5, %v15560_v51  ;;  %v3686_v63 = vmul.f32 %v15586_v6, %v15586_v6 }
 0x485   : > { %v3581_v48 = vadd.f32 %v15226_v9, %v3388_v62  ;;  %v2781_v14 = vpop.f32.mrb[72].mxu0  ;;  %v3714_v15 = vadd.f32 %v3713_v35, %v3683_v8  ;;  %v15601_v8 = vadd.f32 %v15363_v49, %v3580_v0 }
 0x486   : > { %v3190_v56 = vadd.f32 %v2781_v14, %v18452_v54  ;;  %v2783_v58 = vpop.f32.mrb[73].mxu0  ;;  %v3646_v23 = vadd.f32 %v3645_v29, %v15569_v13 }
 0x487   : > { %v2784_v21 = vpop.f32.mrb[74].mxu0  ;;  %v3715_v62 = vadd.f32 %v3714_v15, %v3684_v37  ;;  %v18455_v58 = vld [vmem:[#allocation77_spill] sm:$0xff]  ;;  %v15608_v29 = vadd.f32 %v15363_v49, %v3581_v48 }
 0x488   : > { %v3191_v1 = vadd.f32 %v2784_v21, %v18453_v4  ;;  %v2786_v9 = vpop.f32.mrb[75].mxu0  ;;  %v3322_v53 = vrot.slane %v3190_v56, 7  ;;  %v3647_v11 = vadd.f32 %v3646_v23, %v15577_v34  ;;  %v3687_v21 = vmul.f32 %v15594_v30, %v15594_v30  ;;  %v18456_v4 = vld [vmem:[#allocation78_spill] sm:$0xff] }
 0x489   : > { %v3192_v28 = vadd.f32 %v2786_v9, %v18454_v27  ;;  %v3716_v54 = vadd.f32 %v3715_v62, %v3685_v44  ;;  %v3688_v23 = vmul.f32 %v15601_v8, %v15601_v8 }
 0x48a   : > { %v3323_v45 = vrot.slane %v3191_v1, 7  ;;  %v3648_v56 = vadd.f32 %v3647_v11, %v15586_v6 }
 0x48b   : > { %v3717_v27 = vadd.f32 %v3716_v54, %v3686_v63 }
 0x48c   : > { %v3324_v52 = vsel %vm3246_vm2, %v3322_v53, %v3323_v45 }
 0x48d   : > { %v3389_v14 = vadd.f32 %v3324_v52, %v3192_v28  ;;  %v2790_v5 = vpop.f32.mrb[76].mxu0  ;;  %v3649_v28 = vadd.f32 %v3648_v56, %v15594_v30  ;;  %v3718_v48 = vadd.f32 %v3717_v27, %v3687_v21 }
 0x48e   : > { %v3194_v35 = vadd.f32 %v2790_v5, %v18455_v58  ;;  %v2792_v31 = vpop.f32.mrb[77].mxu0 }
 0x48f   : > { %v3582_v37 = vadd.f32 %v15242_v47, %v3389_v14  ;;  %v3195_v1 = vadd.f32 %v2792_v31, %v18456_v4  ;;  %v2794_v0 = vpop.f32.mrb[78].mxu0  ;;  %v3650_v62 = vadd.f32 %v3649_v28, %v15601_v8  ;;  %v3689_v47 = vmul.f32 %v15608_v29, %v15608_v29 }
 0x490   : > { %v3325_v9 = vrot.slane %v3194_v35, 7  ;;  %v2795_v15 = vpop.f32.mrb[79].mxu0  ;;  %v3719_v52 = vadd.f32 %v3718_v48, %v3688_v23 }
 0x491   : > { %v15616_v44 = vadd.f32 %v15363_v49, %v3582_v37  ;;  %v3651_v63 = vadd.f32 %v3650_v62, %v15608_v29  ;;  %v15634_v62 = vld [vmem:[#allocation2] sm:$0xff] }
 0x492   : > { %v3326_v53 = vsel %vm3246_vm2, %v3323_v45, %v3325_v9  ;;  %v3720_v54 = vadd.f32 %v3719_v52, %v3689_v47  ;;  %v13185_v47 = vld [vmem:[#allocation7 + $0x304] ss:$12 sps:$4 sm:$0xff]   ;;  %v13189_v52 = vld [vmem:[#allocation7 + $0x31c] ss:$12 sps:$4 sm:$0xff]  }
 0x493   : > { %v3390_v11 = vadd.f32 %v3326_v53, %v3195_v1  ;;  %v3690_v14 = vmul.f32 %v15616_v44, %v15616_v44  ;;  %v3652_v56 = vadd.f32 %v3651_v63, %v15616_v44  ;;  %4293 = vmatprep.subr.bf16.mxu0 %v13185_v47  ;;  %v13187_v63 = vld [vmem:[#allocation7 + $0x318] ss:$12 sps:$4 sm:$0xff]  }
 0x495   : > { %v3583_v5 = vadd.f32 %v15239_v7, %v3390_v11  ;;  %v3721_v58 = vadd.f32 %v3720_v54, %v3690_v14  ;;  %v13183_v11 = vld [vmem:[#allocation7 + $0x300] ss:$12 sps:$4 sm:$0xff]   ;;  %v13190_v54 = vld [vmem:[#allocation7 + $0x330] ss:$12 sps:$4 sm:$0xff]  }
 0x496   : > { %v13182_v14 = vld [vmem:[#allocation7 + $0x380] ss:$12 sps:$4 sm:$0xff]  }
 0x497   : > { %v15628_v45 = vadd.f32 %v15363_v49, %v3583_v5  ;;  %v13192_v5 = vld [vmem:[#allocation7 + $0x334] ss:$12 sps:$4 sm:$0xff]   ;;  %11950 = vmatprep.subr.bf16.mxu1 %v13182_v14 }
 0x498   : > { %11951 = vmatpush3.bf16.msra.mxu1 %v13182_v14 }
 0x499   : > { %v3653_v35 = vadd.f32 %v3652_v56, %v15628_v45  ;;  %v3691_v31 = vmul.f32 %v15628_v45, %v15628_v45  ;;  %v13195_v56 = vld [vmem:[#allocation7 + $0x34c] ss:$12 sps:$4 sm:$0xff]  }
 0x49b   : > { %v3654_v21 = vrot.slane %v3653_v35, 4  ;;  %v3722_v37 = vadd.f32 %v3721_v58, %v3691_v31  ;;  %v13193_v58 = vld [vmem:[#allocation7 + $0x348] ss:$12 sps:$4 sm:$0xff]   ;;  %v13196_v31 = vld [vmem:[#allocation7 + $0x360] ss:$12 sps:$4 sm:$0xff]  }
 0x49d   : > { %v3655_v4 = vadd.f32 %v3654_v21, %v3653_v35  ;;  %v3723_v1 = vrot.slane %v3722_v37, 4  ;;  %v13198_v35 = vld [vmem:[#allocation7 + $0x364] ss:$12 sps:$4 sm:$0xff]   ;;  %v13202_v21 = vld [vmem:[#allocation7 + $0x37c] ss:$12 sps:$4 sm:$0xff]  }
 0x49f   : > { %v3656_v0 = vrot.slane %v3655_v4, 2  ;;  %v3724_v9 = vadd.f32 %v3723_v1, %v3722_v37  ;;  %v13200_v37 = vld [vmem:[#allocation7 + $0x378] ss:$12 sps:$4 sm:$0xff]  }
 0x4a0   : > { %v13186_v1 = vld [vmem:[#allocation7 + $0x398] ss:$12 sps:$4 sm:$0xff]  }
 0x4a1   : > { %v3657_v15 = vadd.f32 %v3656_v0, %v3655_v4  ;;  %v3725_v7 = vrot.slane %v3724_v9, 2  ;;  %v13205_v4 = vld [vmem:[#allocation7 + $0x394] ss:$12 sps:$4 sm:$0xff]   ;;  %v13203_v0 = vld [vmem:[#allocation7 + $0x390] ss:$12 sps:$4 sm:$0xff]   ;;  %11952 = vmatprep.subr.bf16.mxu1 %v13186_v1 }
 0x4a2   : > { %11953 = vmatpush3.bf16.msra.mxu1 %v13186_v1 }
 0x4a3   : > { %v3658_v27 = vrot.slane %v3657_v15, 1  ;;  %v3726_v28 = vadd.f32 %v3725_v7, %v3724_v9  ;;  %v13199_v9 = vld [vmem:[#allocation7 + $0x3b0] ss:$12 sps:$4 sm:$0xff]   ;;  %v13206_v7 = vld [vmem:[#allocation7 + $0x3a8] ss:$12 sps:$4 sm:$0xff]  }
 0x4a4   : > { %11954 = vmatprep.subr.bf16.mxu1 %v13199_v9 }
 0x4a5   : > { %v3727_v23 = vrot.slane %v3726_v28, 1  ;;  %v3659_v53 = vadd.f32 %v3658_v27, %v3657_v15  ;;  %v13208_v15 = vld [vmem:[#allocation7 + $0x3ac] ss:$12 sps:$4 sm:$0xff]   ;;  %v13211_v27 = vld [vmem:[#allocation7 + $0x244] ss:$12 sps:$4 sm:$0xff]  }
 0x4a6   : > { %11955 = vmatpush3.bf16.msra.mxu1 %v13199_v9  ;;  %v3828_v9 = vld [vmem:[%s18230_s4] sm:$0x1] }
 0x4a7   : > { %v3728_v49 = vadd.f32 %v3727_v23, %v3726_v28  ;;  %4999 = vmatprep.subr.bf16.mxu1 %v13211_v27 }
 0x4a9   : > { %v3729_v48 = vsel %vm3246_vm2, %v3659_v53, %v3728_v49 }
 0x4aa   : > { %11938 = vmatmul.mubr.f32.vlgmr.msra.gmra.mrb[80].mxu0 %v3729_v48 }
 0x4ab   : > { %4325 = vmatprep.mubr.bf16.mxu0 %v15634_v62  ;;  %4294 = vmatpush1.bf16.msra.mxu0 %v13183_v11 }
 0x4ac   : > { %4295 = vmatprep.subr.bf16.mxu0 %v13189_v52 }
 0x4af   : > { %4296 = vmatpush1.bf16.msra.mxu0 %v13187_v63  ;;  %v13787_v63 = vmov 1966171168  }
 0x4b0   : > { %4297 = vmatprep.subr.bf16.mxu0 %v13192_v5  ;;  %v3812_v14 = vunpack.c.l.s4 %v13787_v63  ;;  %v18251_v5 = vlaneseq }
 0x4b3   : > { %4298 = vmatpush1.bf16.msra.mxu0 %v13190_v54  ;;  %v3813_v54 = vunpack.c.0.s8 %v3812_v14 }
 0x4b4   : > { %4299 = vmatprep.subr.bf16.mxu0 %v13195_v56  ;;  %v3815_v56 = vshrl.u32 %v18251_v5, 7  ;;  %v18463_v5 = vld [vmem:[#allocation43_spill] sm:$0xff] }
 0x4b6   : > { %v15645_v1 = vsub.s32 0, %v3815_v56 }
 0x4b7   : > { %4300 = vmatpush1.bf16.msra.mxu0 %v13193_v58  ;;  %v15638_v58 = vsub.s32 %v3813_v54, %v3815_v56 }
 0x4b8   : > { %4301 = vmatprep.subr.bf16.mxu0 %v13198_v35  ;;  %18458 = vst [vmem:[#allocation59_spill] sm:$0xff] %v15645_v1 }
 0x4b9   : > { %18457 = vst [vmem:[#allocation45_spill] sm:$0xff] %v15638_v58 }
 0x4bb   : > { %4302 = vmatpush1.bf16.msra.mxu0 %v13196_v31 }
 0x4bc   : > { %4303 = vmatprep.subr.bf16.mxu0 %v13202_v21 }
 0x4bf   : > { %4304 = vmatpush1.bf16.msra.mxu0 %v13200_v37  ;;  %v3809_v37 = vld [vmem:[%s18229_s3] sm:$0x1] }
 0x4c0   : > { %4305 = vmatprep.subr.bf16.mxu0 %v13205_v4 }
 0x4c3   : > { %4306 = vmatpush1.bf16.msra.mxu0 %v13203_v0 }
 0x4c4   : > { %4307 = vmatprep.subr.bf16.mxu0 %v13208_v15 }
 0x4c7   : > { %4308 = vmatpush1.bf16.msra.mxu0 %v13206_v7 }
 0x57d   : > { %v3796_v28 = vpop.f32.mrb[80].mxu0 }
 0x57e   : > { %v3800_v23 = vmul.f32 0.001953125, %v3796_v28  ;;  %v11939_v53 = vpop.f32.mrb[81].mxu0 }
 0x580   : > { %v3801_v49 = vmul.f32 %v3800_v23, %v3800_v23 }
 0x582   : > { %v3803_v48 = vrot.slane %v3801_v49, 7 }
 0x584   : > { %v3805_v47 = vsub.f32 %v3800_v23, %v3803_v48 }
 0x586   : > { %v3806_v11 = vmax.f32 %v3805_v47, 0.0 }
 0x588   : > { %v3807_v52 = vadd.f32 1e-05, %v3806_v11 }
 0x58a   : > { %13369 = vrsqrt.f32 %v3807_v52 }
 0x594   : > { %v13370_v35 = vpop.eup %13369 }
 0x595   : > { %v3817_v31 = vrot.slane %v13370_v35, %v15638_v58 }
 0x597   : > { %v3818_v21 = vcombine.high %v3817_v31, %v3817_v31 }
 0x599   : > { %v3825_v4 = vrot.slane %v3818_v21, %v15638_v58 }
 0x59b   : > { %v3827_v0 = vmul.f32 %v3825_v4, %v3809_v37 }
 0x59d   : > { %v3829_v15 = vmul.f32 %v3827_v0, %v3800_v23  ;;  %v3835_v7 = vrot.slane %v3827_v0, %v15645_v1 }
 0x59f   : > { %v3830_v27 = vsub.f32 %v3828_v9, %v3829_v15  ;;  %v3837_v28 = vmul.f32 %v3835_v7, %v15372_v22  ;;  %v3838_v53 = vmul.f32 %v3835_v7, %v15367_v17  ;;  %v3839_v49 = vmul.f32 %v3835_v7, %v15376_v33 }
 0x5a0   : > { %v3840_v48 = vmul.f32 %v3835_v7, %v15385_v24  ;;  %v3841_v47 = vmul.f32 %v3835_v7, %v15397_v40  ;;  %v3842_v11 = vmul.f32 %v3835_v7, %v15404_v41  ;;  %v3843_v52 = vmul.f32 %v3835_v7, %v15412_v25 }
 0x5a1   : > { %v3873_v63 = vrot.slane %v3830_v27, %v15645_v1  ;;  %v3844_v23 = vmul.f32 %v3835_v7, %v15420_v55  ;;  %v3845_v14 = vmul.f32 %v3835_v7, %v15431_v38  ;;  %v3846_v22 = vmul.f32 %v3835_v7, %v15439_v42 }
 0x5a2   : > { %v3847_v17 = vmul.f32 %v3835_v7, %v15449_v39  ;;  %v3848_v33 = vmul.f32 %v3835_v7, %v15457_v60  ;;  %v3849_v24 = vmul.f32 %v3835_v7, %v15466_v59  ;;  %v3850_v40 = vmul.f32 %v3835_v7, %v15473_v61 }
 0x5a3   : > { %v3851_v41 = vmul.f32 %v3835_v7, %v15481_v10  ;;  %v3852_v25 = vmul.f32 %v3835_v7, %v15493_v2  ;;  %v3853_v54 = vmul.f32 %v3835_v7, %v15500_v36  ;;  %v3854_v55 = vmul.f32 %v3835_v7, %v15508_v20 }
 0x5a4   : > { %v3855_v38 = vmul.f32 %v3835_v7, %v15518_v18  ;;  %v3856_v42 = vmul.f32 %v3835_v7, %v15528_v50  ;;  %v3857_v39 = vmul.f32 %v3835_v7, %v15535_v46  ;;  %v3858_v60 = vmul.f32 %v3835_v7, %v15543_v16 }
 0x5a5   : > { %v3859_v59 = vmul.f32 %v3835_v7, %v15551_v12  ;;  %v3860_v61 = vmul.f32 %v3835_v7, %v15560_v51  ;;  %v3861_v10 = vmul.f32 %v3835_v7, %v15569_v13  ;;  %v3862_v2 = vmul.f32 %v3835_v7, %v15577_v34 }
 0x5a6   : > { %v3863_v36 = vmul.f32 %v3835_v7, %v15586_v6  ;;  %v3864_v20 = vmul.f32 %v3835_v7, %v15594_v30  ;;  %v3865_v18 = vmul.f32 %v3835_v7, %v15601_v8  ;;  %v3866_v50 = vmul.f32 %v3835_v7, %v15608_v29 }
 0x5a7   : > { %v3867_v46 = vmul.f32 %v3835_v7, %v15616_v44  ;;  %v3868_v16 = vmul.f32 %v3835_v7, %v15628_v45  ;;  %v15684_v56 = vadd.f32 %v3873_v63, %v3837_v28  ;;  %v15686_v12 = vadd.f32 %v3873_v63, %v3838_v53 }
 0x5a8   : > { %v15688_v51 = vadd.f32 %v3873_v63, %v3839_v49  ;;  %v15690_v13 = vadd.f32 %v3873_v63, %v3840_v48  ;;  %v15692_v34 = vadd.f32 %v3873_v63, %v3841_v47  ;;  %v3880_v6 = vadd.f32 %v3873_v63, %v3842_v11 }
 0x5a9   : > { %v3881_v30 = vadd.f32 %v3873_v63, %v3843_v52  ;;  %v3882_v35 = vadd.f32 %v3873_v63, %v3844_v23  ;;  %v3883_v8 = vadd.f32 %v3873_v63, %v3845_v14  ;;  %v3884_v31 = vadd.f32 %v3873_v63, %v3846_v22 }
 0x5aa   : > { %v3885_v29 = vadd.f32 %v3873_v63, %v3847_v17  ;;  %v3886_v21 = vadd.f32 %v3873_v63, %v3848_v33  ;;  %v3887_v44 = vadd.f32 %v3873_v63, %v3849_v24  ;;  %v3888_v37 = vadd.f32 %v3873_v63, %v3850_v40 }
 0x5ab   : > { %v3889_v45 = vadd.f32 %v3873_v63, %v3851_v41  ;;  %v3890_v4 = vadd.f32 %v3873_v63, %v3852_v25  ;;  %v3891_v0 = vadd.f32 %v3873_v63, %v3853_v54  ;;  %v3892_v9 = vadd.f32 %v3873_v63, %v3854_v55 }
 0x5ac   : > { %v3893_v15 = vadd.f32 %v3873_v63, %v3855_v38  ;;  %v3894_v7 = vadd.f32 %v3873_v63, %v3856_v42  ;;  %v3895_v27 = vadd.f32 %v3873_v63, %v3857_v39  ;;  %v3896_v28 = vadd.f32 %v3873_v63, %v3858_v60 }
 0x5ad   : > { %v3897_v53 = vadd.f32 %v3873_v63, %v3859_v59  ;;  %v3898_v49 = vadd.f32 %v3873_v63, %v3860_v61  ;;  %v3899_v48 = vadd.f32 %v3873_v63, %v3861_v10  ;;  %v3900_v47 = vadd.f32 %v3873_v63, %v3862_v2 }
 0x5ae   : > { %v3901_v11 = vadd.f32 %v3873_v63, %v3863_v36  ;;  %v3902_v52 = vadd.f32 %v3873_v63, %v3864_v20  ;;  %v3903_v23 = vadd.f32 %v3873_v63, %v3865_v18  ;;  %v3904_v14 = vadd.f32 %v3873_v63, %v3866_v50 }
 0x5af   : > { %v3905_v22 = vadd.f32 %v3873_v63, %v3867_v46  ;;  %v3906_v17 = vadd.f32 %v3873_v63, %v3868_v16  ;;  %v3907_v33 = vmax.f32 %v15684_v56, 0.0  ;;  %v3908_v24 = vmax.f32 %v15686_v12, 0.0 }
 0x5b0   : > { %v3909_v40 = vmax.f32 %v15688_v51, 0.0  ;;  %v3910_v41 = vmax.f32 %v15690_v13, 0.0  ;;  %v3911_v25 = vmax.f32 %v15692_v34, 0.0  ;;  %v3912_v54 = vmax.f32 %v3880_v6, 0.0 }
 0x5b1   : > { %v3913_v55 = vmax.f32 %v3881_v30, 0.0  ;;  %v3914_v38 = vmax.f32 %v3882_v35, 0.0  ;;  %v3915_v42 = vmax.f32 %v3883_v8, 0.0  ;;  %v3916_v39 = vmax.f32 %v3884_v31, 0.0 }
 0x5b2   : > { %v3917_v60 = vmax.f32 %v3885_v29, 0.0  ;;  %v3918_v59 = vmax.f32 %v3886_v21, 0.0  ;;  %v3919_v61 = vmax.f32 %v3887_v44, 0.0  ;;  %v3920_v10 = vmax.f32 %v3888_v37, 0.0 }
 0x5b3   : > { %v3921_v63 = vmax.f32 %v3889_v45, 0.0  ;;  %v3922_v2 = vmax.f32 %v3890_v4, 0.0  ;;  %v3923_v36 = vmax.f32 %v3891_v0, 0.0  ;;  %v3924_v20 = vmax.f32 %v3892_v9, 0.0 }
 0x5b4   : > { %v3925_v18 = vmax.f32 %v3893_v15, 0.0  ;;  %v3926_v50 = vmax.f32 %v3894_v7, 0.0  ;;  %v3927_v46 = vmax.f32 %v3895_v27, 0.0  ;;  %v3928_v16 = vmax.f32 %v3896_v28, 0.0 }
 0x5b5   : > { %v3929_v56 = vmax.f32 %v3897_v53, 0.0  ;;  %v3930_v12 = vmax.f32 %v3898_v49, 0.0  ;;  %v3931_v51 = vmax.f32 %v3899_v48, 0.0  ;;  %v3932_v13 = vmax.f32 %v3900_v47, 0.0 }
 0x5b6   : > { %v3933_v34 = vmax.f32 %v3901_v11, 0.0  ;;  %v3934_v6 = vmax.f32 %v3902_v52, 0.0  ;;  %v3935_v30 = vmax.f32 %v3903_v23, 0.0  ;;  %v3936_v35 = vmax.f32 %v3904_v14, 0.0 }
 0x5b7   : > { %v3937_v8 = vmax.f32 %v3905_v22, 0.0  ;;  %v3938_v31 = vmax.f32 %v3906_v17, 0.0  ;;  %v3939_v29 = vpack.c.bf16 %v3908_v24, %v3907_v33  ;;  %v3940_v21 = vpack.c.bf16 %v3910_v41, %v3909_v40 }
 0x5b8   : > { %v3941_v44 = vpack.c.bf16 %v3912_v54, %v3911_v25  ;;  %v3942_v37 = vpack.c.bf16 %v3914_v38, %v3913_v55  ;;  %v3943_v45 = vpack.c.bf16 %v3916_v39, %v3915_v42  ;;  %v3944_v4 = vpack.c.bf16 %v3918_v59, %v3917_v60  ;;  %v13209_v60 = vld [vmem:[#allocation7 + $0x240] ss:$12 sps:$4 sm:$0xff]  }
 0x5b9   : > { %v3945_v0 = vpack.c.bf16 %v3920_v10, %v3919_v61  ;;  %v3946_v9 = vpack.c.bf16 %v3922_v2, %v3921_v63  ;;  %v3947_v15 = vpack.c.bf16 %v3924_v20, %v3923_v36  ;;  %v3948_v7 = vpack.c.bf16 %v3926_v50, %v3925_v18  ;;  %v13214_v10 = vld [vmem:[#allocation7 + $0x25c] ss:$12 sps:$4 sm:$0xff]   ;;  %v13212_v2 = vld [vmem:[#allocation7 + $0x258] ss:$12 sps:$4 sm:$0xff]   ;;  %v13217_v36 = vld [vmem:[#allocation7 + $0x274] ss:$12 sps:$4 sm:$0xff]  }
 0x5ba   : > { %v3949_v27 = vpack.c.bf16 %v3928_v16, %v3927_v46  ;;  %v3950_v28 = vpack.c.bf16 %v3930_v12, %v3929_v56  ;;  %v3951_v53 = vpack.c.bf16 %v3932_v13, %v3931_v51  ;;  %v3952_v49 = vpack.c.bf16 %v3934_v6, %v3933_v34  ;;  %v13215_v20 = vld [vmem:[#allocation7 + $0x270] ss:$12 sps:$4 sm:$0xff]   ;;  %v13220_v18 = vld [vmem:[#allocation7 + $0x28c] ss:$12 sps:$4 sm:$0xff]   ;;  %v13218_v16 = vld [vmem:[#allocation7 + $0x288] ss:$12 sps:$4 sm:$0xff]  }
 0x5bb   : > { %v3953_v48 = vpack.c.bf16 %v3936_v35, %v3935_v30  ;;  %v3954_v47 = vpack.c.bf16 %v3938_v31, %v3937_v8  ;;  %v3971_v11 = vrot.slane %v3939_v29, 4  ;;  %v3972_v52 = vrot.slane %v3940_v21, 4  ;;  %v13234_v56 = vld [vmem:[#allocation7 + $0x3c0] ss:$12 sps:$4 sm:$0xff]   ;;  %v13236_v12 = vld [vmem:[#allocation7 + $0x3c4] ss:$12 sps:$4 sm:$0xff]  }
 0x5bc   : > { %v3973_v23 = vrot.slane %v3941_v44, 4  ;;  %v3974_v14 = vrot.slane %v3942_v37, 4  ;;  %v3975_v22 = vrot.slane %v3943_v45, 4  ;;  %v3976_v17 = vrot.slane %v3944_v4, 4  ;;  %v13223_v51 = vld [vmem:[#allocation7 + $0x2a4] ss:$12 sps:$4 sm:$0xff]   ;;  %5770 = vmatprep.subr.bf16.mxu0 %v13236_v12 }
 0x5bd   : > { %v3977_v33 = vrot.slane %v3945_v0, 4  ;;  %v3978_v24 = vrot.slane %v3946_v9, 4  ;;  %v3979_v40 = vrot.slane %v3947_v15, 4  ;;  %v3980_v41 = vrot.slane %v3948_v7, 4  ;;  %4003 = vst [vmem:[#allocation2 + $0x18] ss:$-4 sps:$4 sm:$0xff] %v3971_v11  }
 0x5be   : > { %4005 = vst [vmem:[#allocation2 + $0x28] ss:$-4 sps:$4 sm:$0xff] %v3972_v52   ;;  %v3981_v25 = vrot.slane %v3949_v27, 4  ;;  %v3982_v54 = vrot.slane %v3950_v28, 4  ;;  %v3983_v55 = vrot.slane %v3951_v53, 4  ;;  %v3984_v38 = vrot.slane %v3952_v49, 4 }
 0x5bf   : > { %4007 = vst [vmem:[#allocation2 + $0x38] ss:$-4 sps:$4 sm:$0xff] %v3973_v23   ;;  %4009 = vst [vmem:[#allocation2 + $0x48] ss:$-4 sps:$4 sm:$0xff] %v3974_v14   ;;  %v3985_v42 = vrot.slane %v3953_v48, 4  ;;  %v3986_v39 = vrot.slane %v3954_v47, 4 }
 0x5c0   : > { %4011 = vst [vmem:[#allocation2 + $0x58] ss:$-4 sps:$4 sm:$0xff] %v3975_v22   ;;  %4013 = vst [vmem:[#allocation2 + $0x68] ss:$-4 sps:$4 sm:$0xff] %v3976_v17   ;;  %v13221_v13 = vld [vmem:[#allocation7 + $0x2a0] ss:$12 sps:$4 sm:$0xff]  }
 0x5c1   : > { %4015 = vst [vmem:[#allocation2 + $0x78] ss:$-4 sps:$4 sm:$0xff] %v3977_v33   ;;  %4017 = vst [vmem:[#allocation2 + $0x88] ss:$-4 sps:$4 sm:$0xff] %v3978_v24   ;;  %v13226_v34 = vld [vmem:[#allocation7 + $0x2bc] ss:$12 sps:$4 sm:$0xff]  }
 0x5c2   : > { %4019 = vst [vmem:[#allocation2 + $0x98] ss:$-4 sps:$4 sm:$0xff] %v3979_v40   ;;  %4021 = vst [vmem:[#allocation2 + $0xa8] ss:$-4 sps:$4 sm:$0xff] %v3980_v41   ;;  %v13224_v35 = vld [vmem:[#allocation7 + $0x2b8] ss:$12 sps:$4 sm:$0xff]  }
 0x5c3   : > { %4023 = vst [vmem:[#allocation2 + $0xb8] ss:$-4 sps:$4 sm:$0xff] %v3981_v25   ;;  %4025 = vst [vmem:[#allocation2 + $0xc8] ss:$-4 sps:$4 sm:$0xff] %v3982_v54   ;;  %v13229_v8 = vld [vmem:[#allocation7 + $0x2d4] ss:$12 sps:$4 sm:$0xff]  }
 0x5c4   : > { %4027 = vst [vmem:[#allocation2 + $0xd8] ss:$-4 sps:$4 sm:$0xff] %v3983_v55   ;;  %4029 = vst [vmem:[#allocation2 + $0xe8] ss:$-4 sps:$4 sm:$0xff] %v3984_v38   ;;  %v15699_v59 = vld [vmem:[#allocation2 + $0x10] sm:$0xff]  ;;  %v15701_v61 = vld [vmem:[#allocation2 + $0x18] sm:$0xff] }
 0x5c5   : > { %4031 = vst [vmem:[#allocation2 + $0xf8] ss:$-4 sps:$4 sm:$0xff] %v3985_v42   ;;  %4033 = vst [vmem:[#allocation2 + $0x108] ss:$-4 sps:$4 sm:$0xff] %v3986_v39   ;;  %4326 = vmatmul.mubr.bf16.vlgmr.msra.gmra.mrb[84].mxu0 %v15699_v59  ;;  %11956 = vmatprep.mubr.bf16.mxu1 %v15699_v59  ;;  %v15706_v63 = vld [vmem:[#allocation2 + $0x20] sm:$0xff]  ;;  %v15711_v50 = vld [vmem:[#allocation2 + $0x28] sm:$0xff] }
 0x5c6   : > { %11957 = vmatmul.mubr.bf16.vlgmr.msra.gmra.mrb[112].mxu1 %v15701_v61  ;;  %4334 = vmatprep.mubr.bf16.mxu0 %v15634_v62  ;;  %v15714_v46 = vld [vmem:[#allocation2 + $0x30] sm:$0xff]  ;;  %v15719_v6 = vld [vmem:[#allocation2 + $0x38] sm:$0xff]  ;;  %v15722_v30 = vld [vmem:[#allocation2 + $0x40] sm:$0xff] }
 0x5c7   : > { %5000 = vmatpush1.bf16.msra.mxu1 %v13209_v60  ;;  %11960 = vmatprep.mubr.bf16.mxu1 %v15706_v63  ;;  %v13227_v31 = vld [vmem:[#allocation7 + $0x2d0] ss:$12 sps:$4 sm:$0xff]   ;;  %v13232_v29 = vld [vmem:[#allocation7 + $0x2ec] ss:$12 sps:$4 sm:$0xff]   ;;  %v13230_v37 = vld [vmem:[#allocation7 + $0x2e8] ss:$12 sps:$4 sm:$0xff]  }
 0x5c8   : > { %5001 = vmatprep.subr.bf16.mxu1 %v13214_v10  ;;  %5771 = vmatpush1.bf16.msra.mxu0 %v13234_v56  ;;  %v15727_v21 = vld [vmem:[#allocation2 + $0x48] sm:$0xff]  ;;  %v15730_v44 = vld [vmem:[#allocation2 + $0x50] sm:$0xff]  ;;  %v15738_v4 = vld [vmem:[#allocation2 + $0x58] sm:$0xff] }
 0x5c9   : > { %v15734_v45 = vld [vmem:[#allocation7 + $0x248] ss:$12 sps:$4 sm:$0xff]   ;;  %v15741_v0 = vld [vmem:[#allocation2 + $0x60] sm:$0xff]  ;;  %v15754_v28 = vld [vmem:[#allocation2 + $0x78] sm:$0xff] }
 0x5ca   : > { %v13238_v9 = vld [vmem:[#allocation7 + $0x3d8] ss:$12 sps:$4 sm:$0xff]   ;;  %v13240_v15 = vld [vmem:[#allocation7 + $0x3dc] ss:$12 sps:$4 sm:$0xff]   ;;  %v15749_v27 = vld [vmem:[#allocation2 + $0x70] sm:$0xff] }
 0x5cb   : > { %5002 = vmatpush1.bf16.msra.mxu1 %v13212_v2  ;;  %5772 = vmatprep.subr.bf16.mxu0 %v13240_v15  ;;  %v15746_v7 = vld [vmem:[#allocation2 + $0x68] sm:$0xff]  ;;  %18459 = vst [vmem:[#allocation36_spill] sm:$0xff] %v15749_v27  ;;  %v15757_v53 = vld [vmem:[#allocation2 + $0x80] sm:$0xff]  ;;  %v15765_v48 = vld [vmem:[#allocation2 + $0x90] sm:$0xff] }
 0x5cc   : > { %5003 = vmatprep.subr.bf16.mxu1 %v13217_v36  ;;  %5773 = vmatpush1.bf16.msra.mxu0 %v13238_v9  ;;  %v15762_v49 = vld [vmem:[#allocation2 + $0x88] sm:$0xff]  ;;  %v15770_v47 = vld [vmem:[#allocation2 + $0x98] sm:$0xff]  ;;  %v15773_v11 = vld [vmem:[#allocation2 + $0xa0] sm:$0xff] }
 0x5cd   : > { %4335 = vmatmul.mubr.bf16.gmra.mrb[88].mxu0 %v15701_v61  ;;  %v13242_v52 = vld [vmem:[#allocation7 + $0x3f0] ss:$12 sps:$4 sm:$0xff]   ;;  %v13244_v23 = vld [vmem:[#allocation7 + $0x3f4] ss:$12 sps:$4 sm:$0xff]   ;;  %v15778_v14 = vld [vmem:[#allocation2 + $0xa8] sm:$0xff] }
 0x5ce   : > { %11961 = vmatmul.mubr.bf16.gmra.mrb[116].mxu1 %v15711_v50  ;;  %4342 = vmatprep.mubr.bf16.mxu0 %v15634_v62  ;;  %v15781_v22 = vld [vmem:[#allocation2 + $0xb0] sm:$0xff]  ;;  %v15786_v17 = vld [vmem:[#allocation2 + $0xb8] sm:$0xff]  ;;  %v15789_v33 = vld [vmem:[#allocation2 + $0xc0] sm:$0xff] }
 0x5cf   : > { %11964 = vmatprep.mubr.bf16.mxu1 %v15714_v46  ;;  %5004 = vmatpush1.bf16.msra.mxu1 %v13215_v20  ;;  %v15794_v24 = vld [vmem:[#allocation2 + $0xc8] sm:$0xff]  ;;  %v15797_v40 = vld [vmem:[#allocation2 + $0xd0] sm:$0xff]  ;;  %v15802_v41 = vld [vmem:[#allocation2 + $0xd8] sm:$0xff] }
 0x5d0   : > { %5005 = vmatprep.subr.bf16.mxu1 %v13220_v18  ;;  %5774 = vmatprep.subr.bf16.mxu0 %v13244_v23  ;;  %v15805_v25 = vld [vmem:[#allocation2 + $0xe0] sm:$0xff]  ;;  %v13246_v54 = vld [vmem:[#allocation7 + $0x408] ss:$12 sps:$4 sm:$0xff]   ;;  %v13248_v55 = vld [vmem:[#allocation7 + $0x40c] ss:$12 sps:$4 sm:$0xff]  }
 0x5d1   : > { %5775 = vmatpush1.bf16.msra.mxu0 %v13242_v52  ;;  %v15810_v38 = vld [vmem:[#allocation2 + $0xe8] sm:$0xff]  ;;  %v15813_v42 = vld [vmem:[#allocation2 + $0xf0] sm:$0xff]  ;;  %v15818_v39 = vld [vmem:[#allocation2 + $0xf8] sm:$0xff] }
 0x5d2   : > { %5776 = vmatprep.subr.bf16.mxu0 %v13248_v55  ;;  %v13249_v60 = vld [vmem:[#allocation7 + $0x420] ss:$12 sps:$4 sm:$0xff]   ;;  %v13251_v10 = vld [vmem:[#allocation7 + $0x424] ss:$12 sps:$4 sm:$0xff]   ;;  %v13254_v20 = vld [vmem:[#allocation7 + $0x43c] ss:$12 sps:$4 sm:$0xff]  }
 0x5d3   : > { %5006 = vmatpush1.bf16.msra.mxu1 %v13218_v16  ;;  %v15821_v2 = vld [vmem:[#allocation2 + $0x100] sm:$0xff]  ;;  %v15826_v18 = vld [vmem:[#allocation2 + $0x108] sm:$0xff]  ;;  %v13255_v16 = vld [vmem:[#allocation7 + $0x450] ss:$12 sps:$4 sm:$0xff]  }
 0x5d4   : > { %5007 = vmatprep.subr.bf16.mxu1 %v13223_v51  ;;  %v13252_v36 = vld [vmem:[#allocation7 + $0x438] ss:$12 sps:$4 sm:$0xff]   ;;  %v13257_v56 = vld [vmem:[#allocation7 + $0x454] ss:$12 sps:$4 sm:$0xff]  }
 0x5d5   : > { %4343 = vmatmul.mubr.bf16.gmra.mrb[92].mxu0 %v15706_v63  ;;  %v13258_v12 = vld [vmem:[#allocation7 + $0x468] ss:$12 sps:$4 sm:$0xff]   ;;  %v13260_v51 = vld [vmem:[#allocation7 + $0x46c] ss:$12 sps:$4 sm:$0xff]  }
 0x5d6   : > { %11965 = vmatmul.mubr.bf16.gmra.mrb[120].mxu1 %v15719_v6  ;;  %4351 = vmatprep.mubr.bf16.mxu0 %v15634_v62 }
 0x5d7   : > { %11968 = vmatprep.mubr.bf16.mxu1 %v15722_v30  ;;  %5008 = vmatpush1.bf16.msra.mxu1 %v13221_v13  ;;  %v13237_v13 = vld [vmem:[#allocation7 + $0x260] ss:$12 sps:$4 sm:$0xff]  }
 0x5d8   : > { %5009 = vmatprep.subr.bf16.mxu1 %v13226_v34  ;;  %5777 = vmatpush1.bf16.msra.mxu0 %v13246_v54  ;;  %v13241_v34 = vld [vmem:[#allocation7 + $0x278] ss:$12 sps:$4 sm:$0xff]  }
 0x5d9   : > { %5778 = vmatprep.subr.bf16.mxu0 %v13251_v10 }
 0x5db   : > { %5010 = vmatpush1.bf16.msra.mxu1 %v13224_v35  ;;  %v13245_v35 = vld [vmem:[#allocation7 + $0x290] ss:$12 sps:$4 sm:$0xff]  }
 0x5dc   : > { %5011 = vmatprep.subr.bf16.mxu1 %v13229_v8  ;;  %5779 = vmatpush1.bf16.msra.mxu0 %v13249_v60  ;;  %v13261_v8 = vld [vmem:[#allocation7 + $0x2a8] ss:$12 sps:$4 sm:$0xff]   ;;  %v13264_v60 = vld [vmem:[#allocation7 + $0x2f0] ss:$12 sps:$4 sm:$0xff]  }
 0x5dd   : > { %4352 = vmatmul.mubr.bf16.gmra.mrb[96].mxu0 %v15711_v50  ;;  %5780 = vmatprep.subr.bf16.mxu0 %v13254_v20 }
 0x5de   : > { %11969 = vmatmul.mubr.bf16.gmra.mrb[124].mxu1 %v15727_v21  ;;  %4359 = vmatprep.mubr.bf16.mxu0 %v15634_v62 }
 0x5df   : > { %11972 = vmatprep.mubr.bf16.mxu1 %v15730_v44  ;;  %5012 = vmatpush1.bf16.msra.mxu1 %v13227_v31  ;;  %v13262_v31 = vld [vmem:[#allocation7 + $0x2c0] ss:$12 sps:$4 sm:$0xff]  }
 0x5e0   : > { %5013 = vmatprep.subr.bf16.mxu1 %v13232_v29  ;;  %5781 = vmatpush1.bf16.msra.mxu0 %v13252_v36  ;;  %v13263_v29 = vld [vmem:[#allocation7 + $0x2d8] ss:$12 sps:$4 sm:$0xff]  }
 0x5e1   : > { %5782 = vmatprep.subr.bf16.mxu0 %v13257_v56 }
 0x5e3   : > { %5014 = vmatpush1.bf16.msra.mxu1 %v13230_v37 }
 0x5e4   : > { %12020 = vmatprep.subr.bf16.mxu1 %v15734_v45  ;;  %5783 = vmatpush1.bf16.msra.mxu0 %v13255_v16 }
 0x5e5   : > { %4360 = vmatmul.mubr.bf16.gmra.mrb[100].mxu0 %v15714_v46  ;;  %5784 = vmatprep.subr.bf16.mxu0 %v13260_v51 }
 0x5e6   : > { %11973 = vmatmul.mubr.bf16.gmra.mrb[128].mxu1 %v15738_v4  ;;  %4368 = vmatprep.mubr.bf16.mxu0 %v15634_v62 }
 0x5e7   : > { %11976 = vmatprep.mubr.bf16.mxu1 %v15741_v0 }
 0x5e8   : > { %5785 = vmatpush1.bf16.msra.mxu0 %v13258_v12 }
 0x5e9   : > { %12479 = vmatprep.subr.bf16.mxu0 %v18362_v57 }
 0x5ed   : > { %4369 = vmatmul.mubr.bf16.gmra.mrb[104].mxu0 %v15719_v6 }
 0x5ee   : > { %11977 = vmatmul.mubr.bf16.gmra.mrb[132].mxu1 %v15746_v7  ;;  %4376 = vmatprep.mubr.bf16.mxu0 %v15634_v62 }
 0x5ef   : > { %11980 = vmatprep.mubr.bf16.mxu1 %v15749_v27 }
 0x5f5   : > { %4377 = vmatmul.mubr.bf16.gmra.mrb[108].mxu0 %v15722_v30 }
 0x5f6   : > { %11981 = vmatmul.mubr.bf16.gmra.mrb[136].mxu1 %v15754_v28  ;;  %4385 = vmatprep.mubr.bf16.mxu0 %v15634_v62 }
 0x5f7   : > { %11984 = vmatprep.mubr.bf16.mxu1 %v15757_v53 }
 0x5fd   : > { %4386 = vmatmul.mubr.bf16.gmra.mrb[112].mxu0 %v15727_v21 }
 0x5fe   : > { %11985 = vmatmul.mubr.bf16.gmra.mrb[140].mxu1 %v15762_v49  ;;  %4393 = vmatprep.mubr.bf16.mxu0 %v15634_v62 }
 0x5ff   : > { %11988 = vmatprep.mubr.bf16.mxu1 %v15765_v48 }
 0x605   : > { %4394 = vmatmul.mubr.bf16.gmra.mrb[116].mxu0 %v15730_v44 }
 0x606   : > { %11989 = vmatmul.mubr.bf16.gmra.mrb[144].mxu1 %v15770_v47  ;;  %4402 = vmatprep.mubr.bf16.mxu0 %v15634_v62 }
 0x607   : > { %11992 = vmatprep.mubr.bf16.mxu1 %v15773_v11 }
 0x60d   : > { %4403 = vmatmul.mubr.bf16.gmra.mrb[120].mxu0 %v15738_v4 }
 0x60e   : > { %11993 = vmatmul.mubr.bf16.gmra.mrb[148].mxu1 %v15778_v14  ;;  %4410 = vmatprep.mubr.bf16.mxu0 %v15634_v62 }
 0x60f   : > { %11996 = vmatprep.mubr.bf16.mxu1 %v15781_v22 }
 0x615   : > { %4411 = vmatmul.mubr.bf16.gmra.mrb[124].mxu0 %v15741_v0 }
 0x616   : > { %11997 = vmatmul.mubr.bf16.gmra.mrb[152].mxu1 %v15786_v17  ;;  %4419 = vmatprep.mubr.bf16.mxu0 %v15634_v62 }
 0x617   : > { %12000 = vmatprep.mubr.bf16.mxu1 %v15789_v33 }
 0x61d   : > { %4420 = vmatmul.mubr.bf16.gmra.mrb[128].mxu0 %v15746_v7 }
 0x61e   : > { %12001 = vmatmul.mubr.bf16.gmra.mrb[156].mxu1 %v15794_v24  ;;  %4427 = vmatprep.mubr.bf16.mxu0 %v15634_v62 }
 0x61f   : > { %12004 = vmatprep.mubr.bf16.mxu1 %v15797_v40 }
 0x625   : > { %4428 = vmatmul.mubr.bf16.gmra.mrb[132].mxu0 %v15749_v27 }
 0x626   : > { %12005 = vmatmul.mubr.bf16.gmra.mrb[160].mxu1 %v15802_v41  ;;  %4436 = vmatprep.mubr.bf16.mxu0 %v15634_v62 }
 0x627   : > { %12008 = vmatprep.mubr.bf16.mxu1 %v15805_v25 }
 0x62d   : > { %4437 = vmatmul.mubr.bf16.gmra.mrb[136].mxu0 %v15754_v28 }
 0x62e   : > { %12009 = vmatmul.mubr.bf16.gmra.mrb[164].mxu1 %v15810_v38  ;;  %4444 = vmatprep.mubr.bf16.mxu0 %v15634_v62 }
 0x62f   : > { %12012 = vmatprep.mubr.bf16.mxu1 %v15813_v42 }
 0x635   : > { %4445 = vmatmul.mubr.bf16.gmra.mrb[140].mxu0 %v15757_v53 }
 0x636   : > { %12013 = vmatmul.mubr.bf16.gmra.mrb[168].mxu1 %v15818_v39  ;;  %4453 = vmatprep.mubr.bf16.mxu0 %v15634_v62 }
 0x637   : > { %12016 = vmatprep.mubr.bf16.mxu1 %v15821_v2 }
 0x63d   : > { %4454 = vmatmul.mubr.bf16.gmra.mrb[144].mxu0 %v15762_v49 }
 0x63e   : > { %12017 = vmatmul.mubr.bf16.gmra.mrb[172].mxu1 %v15826_v18  ;;  %4461 = vmatprep.mubr.bf16.mxu0 %v15634_v62 }
 0x63f   : > { %5031 = vmatprep.mubr.bf16.mxu1 %v15634_v62 }
 0x645   : > { %4462 = vmatmul.mubr.bf16.gmra.mrb[148].mxu0 %v15765_v48 }
 0x646   : > { %5032 = vmatmul.mubr.bf16.vlgmr.msra.gmra.mrb[176].mxu1 %v15634_v62  ;;  %4470 = vmatprep.mubr.bf16.mxu0 %v15634_v62 }
 0x647   : > { %12021 = vmatpush3.bf16.msra.mxu1 %v15734_v45  ;;  %5040 = vmatprep.mubr.bf16.mxu1 %v15634_v62 }
 0x648   : > { %12022 = vmatprep.subr.bf16.mxu1 %v13237_v13 }
 0x64b   : > { %12023 = vmatpush3.bf16.msra.mxu1 %v13237_v13 }
 0x64c   : > { %12024 = vmatprep.subr.bf16.mxu1 %v13241_v34 }
 0x64d   : > { %4471 = vmatmul.mubr.bf16.gmra.mrb[152].mxu0 %v15770_v47 }
 0x64e   : > { %5041 = vmatmul.mubr.bf16.gmra.mrb[180].mxu1 %v15634_v62  ;;  %4478 = vmatprep.mubr.bf16.mxu0 %v15634_v62 }
 0x64f   : > { %5048 = vmatprep.mubr.bf16.mxu1 %v15634_v62  ;;  %12025 = vmatpush3.bf16.msra.mxu1 %v13241_v34 }
 0x650   : > { %12026 = vmatprep.subr.bf16.mxu1 %v13245_v35 }
 0x653   : > { %12027 = vmatpush3.bf16.msra.mxu1 %v13245_v35 }
 0x654   : > { %12028 = vmatprep.subr.bf16.mxu1 %v13261_v8 }
 0x655   : > { %4479 = vmatmul.mubr.bf16.gmra.mrb[156].mxu0 %v15773_v11 }
 0x656   : > { %5049 = vmatmul.mubr.bf16.gmra.mrb[184].mxu1 %v15699_v59  ;;  %4487 = vmatprep.mubr.bf16.mxu0 %v15634_v62 }
 0x657   : > { %5057 = vmatprep.mubr.bf16.mxu1 %v15634_v62  ;;  %12029 = vmatpush3.bf16.msra.mxu1 %v13261_v8 }
 0x658   : > { %12030 = vmatprep.subr.bf16.mxu1 %v13262_v31 }
 0x65b   : > { %12031 = vmatpush3.bf16.msra.mxu1 %v13262_v31 }
 0x65c   : > { %12032 = vmatprep.subr.bf16.mxu1 %v13263_v29 }
 0x65d   : > { %4488 = vmatmul.mubr.bf16.gmra.mrb[160].mxu0 %v15778_v14 }
 0x65e   : > { %5058 = vmatmul.mubr.bf16.gmra.mrb[188].mxu1 %v15701_v61  ;;  %4495 = vmatprep.mubr.bf16.mxu0 %v15634_v62 }
 0x65f   : > { %5065 = vmatprep.mubr.bf16.mxu1 %v15634_v62  ;;  %12033 = vmatpush3.bf16.msra.mxu1 %v13263_v29 }
 0x660   : > { %12034 = vmatprep.subr.bf16.mxu1 %v13264_v60 }
 0x663   : > { %12035 = vmatpush3.bf16.msra.mxu1 %v13264_v60  ;;  %v18460_v60 = vld [vmem:[#allocation79_spill] sm:$0xff] }
 0x665   : > { %4496 = vmatmul.mubr.bf16.gmra.mrb[164].mxu0 %v15781_v22 }
 0x666   : > { %5066 = vmatmul.mubr.bf16.gmra.mrb[192].mxu1 %v15706_v63  ;;  %4504 = vmatprep.mubr.bf16.mxu0 %v15634_v62 }
 0x667   : > { %5074 = vmatprep.mubr.bf16.mxu1 %v15634_v62 }
 0x66d   : > { %4505 = vmatmul.mubr.bf16.gmra.mrb[168].mxu0 %v15786_v17 }
 0x66e   : > { %5075 = vmatmul.mubr.bf16.gmra.mrb[196].mxu1 %v15711_v50  ;;  %4512 = vmatprep.mubr.bf16.mxu0 %v15634_v62 }
 0x66f   : > { %5082 = vmatprep.mubr.bf16.mxu1 %v15634_v62 }
 0x675   : > { %4513 = vmatmul.mubr.bf16.gmra.mrb[172].mxu0 %v15789_v33 }
 0x676   : > { %5083 = vmatmul.mubr.bf16.gmra.mrb[200].mxu1 %v15714_v46  ;;  %4521 = vmatprep.mubr.bf16.mxu0 %v15634_v62 }
 0x677   : > { %5091 = vmatprep.mubr.bf16.mxu1 %v15634_v62 }
 0x67d   : > { %4522 = vmatmul.mubr.bf16.gmra.mrb[176].mxu0 %v15794_v24 }
 0x67e   : > { %5092 = vmatmul.mubr.bf16.gmra.mrb[204].mxu1 %v15719_v6  ;;  %4529 = vmatprep.mubr.bf16.mxu0 %v15634_v62 }
 0x67f   : > { %5099 = vmatprep.mubr.bf16.mxu1 %v15634_v62 }
 0x685   : > { %4530 = vmatmul.mubr.bf16.gmra.mrb[180].mxu0 %v15797_v40 }
 0x686   : > { %5100 = vmatmul.mubr.bf16.gmra.mrb[208].mxu1 %v15722_v30  ;;  %4538 = vmatprep.mubr.bf16.mxu0 %v15634_v62 }
 0x687   : > { %5108 = vmatprep.mubr.bf16.mxu1 %v15634_v62 }
 0x68d   : > { %4539 = vmatmul.mubr.bf16.gmra.mrb[184].mxu0 %v15802_v41 }
 0x68e   : > { %5109 = vmatmul.mubr.bf16.gmra.mrb[212].mxu1 %v15727_v21  ;;  %4546 = vmatprep.mubr.bf16.mxu0 %v15634_v62 }
 0x68f   : > { %5116 = vmatprep.mubr.bf16.mxu1 %v15634_v62 }
 0x695   : > { %4547 = vmatmul.mubr.bf16.gmra.mrb[188].mxu0 %v15805_v25 }
 0x696   : > { %5117 = vmatmul.mubr.bf16.gmra.mrb[216].mxu1 %v15730_v44  ;;  %4555 = vmatprep.mubr.bf16.mxu0 %v15634_v62 }
 0x697   : > { %5125 = vmatprep.mubr.bf16.mxu1 %v15634_v62 }
 0x698   : > { %v15877_v37 = vpop.f32.mrb[84].mxu0 }
 0x699   : > { %v4329_v45 = vpop.f32.mrb[85].mxu0 }
 0x69a   : > { %v15879_v9 = vpop.f32.mrb[86].mxu0 }
 0x69b   : > { %v15881_v15 = vpop.f32.mrb[87].mxu0 }
 0x69d   : > { %4556 = vmatmul.mubr.bf16.gmra.mrb[192].mxu0 %v15810_v38 }
 0x69e   : > { %5126 = vmatmul.mubr.bf16.gmra.mrb[220].mxu1 %v15738_v4  ;;  %4563 = vmatprep.mubr.bf16.mxu0 %v15634_v62 }
 0x69f   : > { %5133 = vmatprep.mubr.bf16.mxu1 %v15634_v62 }
 0x6a0   : > { %v15887_v52 = vpop.f32.mrb[88].mxu0 }
 0x6a1   : > { %v15889_v23 = vpop.f32.mrb[89].mxu0 }
 0x6a2   : > { %v4340_v54 = vpop.f32.mrb[90].mxu0 }
 0x6a3   : > { %v4341_v55 = vpop.f32.mrb[91].mxu0 }
 0x6a4   : > { %v15928_v55 = vld [vmem:[#allocation7 + $0x3c8] ss:$12 sps:$4 sm:$0xff]  }
 0x6a5   : > { %4564 = vmatmul.mubr.bf16.gmra.mrb[196].mxu0 %v15813_v42  ;;  %12100 = vmatprep.subr.bf16.mxu1 %v15928_v55 }
 0x6a6   : > { %5134 = vmatmul.mubr.bf16.gmra.mrb[224].mxu1 %v15741_v0  ;;  %4572 = vmatprep.mubr.bf16.mxu0 %v15634_v62 }
 0x6a7   : > { %5142 = vmatprep.mubr.bf16.mxu1 %v15634_v62 }
 0x6a8   : > { %v15895_v10 = vpop.f32.mrb[92].mxu0 }
 0x6a9   : > { %v4346_v36 = vpop.f32.mrb[93].mxu0 }
 0x6aa   : > { %v15897_v20 = vpop.f32.mrb[94].mxu0 }
 0x6ab   : > { %v15899_v16 = vpop.f32.mrb[95].mxu0 }
 0x6ad   : > { %4573 = vmatmul.mubr.bf16.gmra.mrb[200].mxu0 %v15818_v39 }
 0x6ae   : > { %5143 = vmatmul.mubr.bf16.gmra.mrb[228].mxu1 %v15746_v7  ;;  %4580 = vmatprep.mubr.bf16.mxu0 %v15634_v62 }
 0x6af   : > { %5150 = vmatprep.mubr.bf16.mxu1 %v15634_v62 }
 0x6b0   : > { %v15905_v56 = vpop.f32.mrb[96].mxu0 }
 0x6b1   : > { %v15907_v12 = vpop.f32.mrb[97].mxu0 }
 0x6b2   : > { %v4357_v51 = vpop.f32.mrb[98].mxu0 }
 0x6b3   : > { %v4358_v13 = vpop.f32.mrb[99].mxu0 }
 0x6b5   : > { %4581 = vmatmul.mubr.bf16.gmra.mrb[204].mxu0 %v15821_v2 }
 0x6b6   : > { %5151 = vmatmul.mubr.bf16.gmra.mrb[232].mxu1 %v15749_v27  ;;  %4589 = vmatprep.mubr.bf16.mxu0 %v15634_v62 }
 0x6b7   : > { %5159 = vmatprep.mubr.bf16.mxu1 %v15634_v62 }
 0x6b8   : > { %v15913_v34 = vpop.f32.mrb[100].mxu0 }
 0x6b9   : > { %v4363_v35 = vpop.f32.mrb[101].mxu0 }
 0x6ba   : > { %v15915_v8 = vpop.f32.mrb[102].mxu0  ;;  %v18461_v35 = vld [vmem:[#allocation22_spill] sm:$0xff] }
 0x6bb   : > { %v15917_v31 = vpop.f32.mrb[103].mxu0 }
 0x6bd   : > { %4590 = vmatmul.mubr.bf16.gmra.mrb[208].mxu0 %v15826_v18 }
 0x6be   : > { %5160 = vmatmul.mubr.bf16.gmra.mrb[236].mxu1 %v15754_v28  ;;  %5802 = vmatprep.mubr.bf16.mxu0 %v15634_v62 }
 0x6bf   : > { %5167 = vmatprep.mubr.bf16.mxu1 %v15634_v62 }
 0x6c0   : > { %v15923_v2 = vpop.f32.mrb[104].mxu0 }
 0x6c1   : > { %v15925_v29 = vpop.f32.mrb[105].mxu0 }
 0x6c2   : > { %v4374_v45 = vpop.f32.mrb[106].mxu0 }
 0x6c3   : > { %v4375_v54 = vpop.f32.mrb[107].mxu0 }
 0x6c4   : > { %v18462_v54 = vld [vmem:[#allocation31_spill] sm:$0xff] }
 0x6c5   : > { %5803 = vmatmul.mubr.bf16.vlgmr.msra.gmra.mrb[212].mxu0 %v15706_v63 }
 0x6c6   : > { %5168 = vmatmul.mubr.bf16.gmra.mrb[240].mxu1 %v15757_v53  ;;  %5811 = vmatprep.mubr.bf16.mxu0 %v15634_v62 }
 0x6c7   : > { %5176 = vmatprep.mubr.bf16.mxu1 %v15634_v62  ;;  %12481 = vmatpush3.bf16.msra.mxu0 %v18460_v60 }
 0x6c8   : > { %v15934_v18 = vpop.f32.mrb[108].mxu0  ;;  %12482 = vmatprep.subr.bf16.mxu0 %v18362_v57 }
 0x6c9   : > { %v4380_v36 = vpop.f32.mrb[109].mxu0 }
 0x6ca   : > { %v15938_v51 = vpop.f32.mrb[110].mxu0 }
 0x6cb   : > { %v15940_v13 = vpop.f32.mrb[111].mxu0  ;;  %12484 = vmatpush3.bf16.msra.mxu0 %v18461_v35 }
 0x6cc   : > { %12485 = vmatprep.subr.bf16.mxu0 %v18362_v57 }
 0x6cd   : > { %5812 = vmatmul.mubr.bf16.gmra.mrb[216].mxu0 %v15711_v50 }
 0x6ce   : > { %5177 = vmatmul.mubr.bf16.gmra.mrb[244].mxu1 %v15762_v49  ;;  %5819 = vmatprep.mubr.bf16.mxu0 %v15634_v62 }
 0x6cf   : > { %5184 = vmatprep.mubr.bf16.mxu1 %v15634_v62  ;;  %12487 = vmatpush3.bf16.msra.mxu0 %v18462_v54 }
 0x6d0   : > { %v15948_v45 = vpop.f32.mrb[112].mxu0  ;;  %12488 = vmatprep.subr.bf16.mxu0 %v18362_v57 }
 0x6d1   : > { %v15951_v60 = vpop.f32.mrb[113].mxu0 }
 0x6d2   : > { %v4391_v36 = vpop.f32.mrb[114].mxu0 }
 0x6d3   : > { %v4392_v35 = vpop.f32.mrb[115].mxu0  ;;  %12490 = vmatpush3.bf16.msra.mxu0 %v18463_v5 }
 0x6d4   : > { %12491 = vmatprep.subr.bf16.mxu0 %v18362_v57 }
 0x6d5   : > { %5820 = vmatmul.mubr.bf16.gmra.mrb[220].mxu0 %v15714_v46 }
 0x6d6   : > { %5185 = vmatmul.mubr.bf16.gmra.mrb[248].mxu1 %v15765_v48  ;;  %5828 = vmatprep.mubr.bf16.mxu0 %v15958_v26 }
 0x6d7   : > { %5193 = vmatprep.mubr.bf16.mxu1 %v15958_v26  ;;  %12493 = vmatpush3.bf16.msra.mxu0 %v15193_v43 }
 0x6d8   : > { %v15962_v62 = vpop.f32.mrb[116].mxu0  ;;  %12494 = vmatprep.subr.bf16.mxu0 %v18362_v57 }
 0x6d9   : > { %v4397_v54 = vpop.f32.mrb[117].mxu0 }
 0x6da   : > { %v15966_v5 = vpop.f32.mrb[118].mxu0 }
 0x6db   : > { %v15968_v36 = vpop.f32.mrb[119].mxu0  ;;  %12496 = vmatpush3.bf16.msra.mxu0 %v15248_v32 }
 0x6dc   : > { %12497 = vmatprep.subr.bf16.mxu0 %v18362_v57 }
 0x6dd   : > { %5829 = vmatmul.mubr.bf16.gmra.mrb[224].mxu0 %v15719_v6 }
 0x6de   : > { %5194 = vmatmul.mubr.bf16.gmra.mrb[252].mxu1 %v15770_v47  ;;  %5836 = vmatprep.mubr.bf16.mxu0 %v15958_v26 }
 0x6df   : > { %5201 = vmatprep.mubr.bf16.mxu1 %v15958_v26  ;;  %12499 = vmatpush3.bf16.msra.mxu0 %v15278_v3 }
 0x6e0   : > { %v15976_v43 = vpop.f32.mrb[120].mxu0  ;;  %12500 = vmatprep.subr.bf16.mxu0 %v18362_v57 }
 0x6e1   : > { %v15979_v35 = vpop.f32.mrb[121].mxu0 }
 0x6e2   : > { %18464 = vst [vmem:[#allocation21_spill] sm:$0xff] %v15979_v35  ;;  %v4408_v54 = vpop.f32.mrb[122].mxu0 }
 0x6e3   : > { %v4409_v32 = vpop.f32.mrb[123].mxu0  ;;  %12502 = vmatpush3.bf16.msra.mxu0 %v15308_v19 }
 0x6e5   : > { %5837 = vmatmul.mubr.bf16.gmra.mrb[228].mxu0 %v15722_v30 }
 0x6e6   : > { %5202 = vmatmul.mubr.bf16.gmra.mrb[64].mxu1 %v15773_v11  ;;  %5845 = vmatprep.mubr.bf16.mxu0 %v15958_v26 }
 0x6e7   : > { %5210 = vmatprep.mubr.bf16.mxu1 %v15958_v26 }
 0x6e8   : > { %v15987_v1 = vpop.f32.mrb[124].mxu0 }
 0x6e9   : > { %18465 = vst [vmem:[#allocation23_spill] sm:$0xff] %v15987_v1  ;;  %v4414_v58 = vpop.f32.mrb[125].mxu0 }
 0x6ea   : > { %v15989_v3 = vpop.f32.mrb[126].mxu0 }
 0x6eb   : > { %18466 = vst [vmem:[#allocation24_spill] sm:$0xff] %v15989_v3  ;;  %v15991_v35 = vpop.f32.mrb[127].mxu0 }
 0x6ec   : > { %18467 = vst [vmem:[#allocation25_spill] sm:$0xff] %v15991_v35 }
 0x6ed   : > { %5846 = vmatmul.mubr.bf16.gmra.mrb[232].mxu0 %v15727_v21 }
 0x6ee   : > { %5211 = vmatmul.mubr.bf16.gmra.mrb[68].mxu1 %v15778_v14  ;;  %5853 = vmatprep.mubr.bf16.mxu0 %v15958_v26 }
 0x6ef   : > { %5218 = vmatprep.mubr.bf16.mxu1 %v15958_v26 }
 0x6f0   : > { %v15997_v57 = vpop.f32.mrb[128].mxu0 }
 0x6f1   : > { %18468 = vst [vmem:[#allocation62_spill] sm:$0xff] %v15997_v57  ;;  %v15999_v19 = vpop.f32.mrb[129].mxu0 }
 0x6f2   : > { %18469 = vst [vmem:[#allocation40_spill] sm:$0xff] %v15999_v19  ;;  %v4425_v54 = vpop.f32.mrb[130].mxu0 }
 0x6f3   : > { %v4426_v32 = vpop.f32.mrb[131].mxu0 }
 0x6f5   : > { %5854 = vmatmul.mubr.bf16.gmra.mrb[236].mxu0 %v15730_v44 }
 0x6f6   : > { %5219 = vmatmul.mubr.bf16.gmra.mrb[72].mxu1 %v15781_v22  ;;  %5862 = vmatprep.mubr.bf16.mxu0 %v15958_v26 }
 0x6f7   : > { %5227 = vmatprep.mubr.bf16.mxu1 %v15958_v26 }
 0x6f8   : > { %v16005_v58 = vpop.f32.mrb[132].mxu0 }
 0x6f9   : > { %18470 = vst [vmem:[#allocation26_spill] sm:$0xff] %v16005_v58  ;;  %v4431_v35 = vpop.f32.mrb[133].mxu0 }
 0x6fa   : > { %v16007_v3 = vpop.f32.mrb[134].mxu0 }
 0x6fb   : > { %18471 = vst [vmem:[#allocation27_spill] sm:$0xff] %v16007_v3  ;;  %v16009_v1 = vpop.f32.mrb[135].mxu0 }
 0x6fc   : > { %18472 = vst [vmem:[#allocation28_spill] sm:$0xff] %v16009_v1 }
 0x6fd   : > { %5863 = vmatmul.mubr.bf16.gmra.mrb[240].mxu0 %v15738_v4 }
 0x6fe   : > { %5228 = vmatmul.mubr.bf16.gmra.mrb[76].mxu1 %v15786_v17  ;;  %5870 = vmatprep.mubr.bf16.mxu0 %v15958_v26 }
 0x6ff   : > { %5235 = vmatprep.mubr.bf16.mxu1 %v15958_v26 }
 0x700   : > { %v16015_v54 = vpop.f32.mrb[136].mxu0 }
 0x701   : > { %18473 = vst [vmem:[#allocation29_spill] sm:$0xff] %v16015_v54  ;;  %v16017_v32 = vpop.f32.mrb[137].mxu0 }
 0x702   : > { %18474 = vst [vmem:[#allocation30_spill] sm:$0xff] %v16017_v32  ;;  %v4442_v19 = vpop.f32.mrb[138].mxu0 }
 0x703   : > { %v4443_v57 = vpop.f32.mrb[139].mxu0 }
 0x705   : > { %5871 = vmatmul.mubr.bf16.gmra.mrb[244].mxu0 %v15741_v0 }
 0x706   : > { %5236 = vmatmul.mubr.bf16.gmra.mrb[80].mxu1 %v15789_v33  ;;  %5879 = vmatprep.mubr.bf16.mxu0 %v15958_v26 }
 0x707   : > { %5244 = vmatprep.mubr.bf16.mxu1 %v15958_v26 }
 0x708   : > { %v16023_v35 = vpop.f32.mrb[140].mxu0 }
 0x709   : > { %18475 = vst [vmem:[#allocation66_spill] sm:$0xff] %v16023_v35  ;;  %v4448_v1 = vpop.f32.mrb[141].mxu0 }
 0x70a   : > { %v16025_v3 = vpop.f32.mrb[142].mxu0 }
 0x70b   : > { %18476 = vst [vmem:[#allocation32_spill] sm:$0xff] %v16025_v3  ;;  %v16027_v58 = vpop.f32.mrb[143].mxu0 }
 0x70c   : > { %18477 = vst [vmem:[#allocation33_spill] sm:$0xff] %v16027_v58 }
 0x70d   : > { %5880 = vmatmul.mubr.bf16.gmra.mrb[248].mxu0 %v15746_v7 }
 0x70e   : > { %5245 = vmatmul.mubr.bf16.gmra.mrb[84].mxu1 %v15794_v24  ;;  %5887 = vmatprep.mubr.bf16.mxu0 %v15958_v26 }
 0x70f   : > { %5252 = vmatprep.mubr.bf16.mxu1 %v15958_v26 }
 0x710   : > { %v16033_v57 = vpop.f32.mrb[144].mxu0 }
 0x711   : > { %18478 = vst [vmem:[#allocation34_spill] sm:$0xff] %v16033_v57  ;;  %v16035_v19 = vpop.f32.mrb[145].mxu0 }
 0x712   : > { %18479 = vst [vmem:[#allocation35_spill] sm:$0xff] %v16035_v19  ;;  %v4459_v32 = vpop.f32.mrb[146].mxu0 }
 0x713   : > { %v4460_v54 = vpop.f32.mrb[147].mxu0 }
 0x715   : > { %5888 = vmatmul.mubr.bf16.gmra.mrb[252].mxu0 %v15749_v27 }
 0x716   : > { %5253 = vmatmul.mubr.bf16.gmra.mrb[88].mxu1 %v15797_v40  ;;  %5896 = vmatprep.mubr.bf16.mxu0 %v15958_v26 }
 0x717   : > { %5261 = vmatprep.mubr.bf16.mxu1 %v15958_v26 }
 0x718   : > { %v16041_v1 = vpop.f32.mrb[148].mxu0 }
 0x719   : > { %v4465_v24 = vpop.f32.mrb[149].mxu0  ;;  %v5033_v58 = vpop.f32.mrb[176].mxu1 }
 0x71a   : > { %v16044_v3 = vadd.f32 %v5033_v58, %v15877_v37  ;;  %v16046_v57 = vpop.f32.mrb[150].mxu0  ;;  %v5035_v19 = vpop.f32.mrb[177].mxu1 }
 0x71b   : > { %v16048_v32 = vpop.f32.mrb[151].mxu0  ;;  %v5036_v54 = vpop.f32.mrb[178].mxu1 }
 0x71c   : > { %18480 = vst [vmem:[#allocation44_spill] sm:$0xff] %v16048_v32  ;;  %v16051_v35 = vadd.f32 %v5036_v54, %v15879_v9  ;;  %v5038_v40 = vpop.f32.mrb[179].mxu1 }
 0x71d   : > { %v16054_v27 = vadd.f32 %v5038_v40, %v15881_v15  ;;  %5897 = vmatmul.mubr.bf16.gmra.mrb[0].mxu0 %v15754_v28 }
 0x71e   : > { %5262 = vmatmul.mubr.bf16.gmra.mrb[92].mxu1 %v15802_v41  ;;  %5904 = vmatprep.mubr.bf16.mxu0 %v15958_v26 }
 0x71f   : > { %5269 = vmatprep.mubr.bf16.mxu1 %v15958_v26 }
 0x720   : > { %v16060_v37 = vpop.f32.mrb[152].mxu0 }
 0x721   : > { %v16062_v58 = vpop.f32.mrb[153].mxu0  ;;  %v5042_v19 = vpop.f32.mrb[180].mxu1 }
 0x722   : > { %18481 = vst [vmem:[#allocation37_spill] sm:$0xff] %v16062_v58  ;;  %v16065_v9 = vadd.f32 %v5042_v19, %v15887_v52  ;;  %v4476_v24 = vpop.f32.mrb[154].mxu0  ;;  %v5044_v54 = vpop.f32.mrb[181].mxu1 }
 0x723   : > { %v16068_v15 = vadd.f32 %v5044_v54, %v15889_v23  ;;  %v4477_v40 = vpop.f32.mrb[155].mxu0  ;;  %v5046_v32 = vpop.f32.mrb[182].mxu1 }
 0x724   : > { %v5047_v41 = vpop.f32.mrb[183].mxu1 }
 0x725   : > { %18482 = vst [vmem:[#allocation38_spill] sm:$0xff] %v16068_v15  ;;  %5905 = vmatmul.mubr.bf16.gmra.mrb[4].mxu0 %v15757_v53 }
 0x726   : > { %5270 = vmatmul.mubr.bf16.gmra.mrb[96].mxu1 %v15805_v25  ;;  %5913 = vmatprep.mubr.bf16.mxu0 %v15958_v26 }
 0x727   : > { %5278 = vmatprep.mubr.bf16.mxu1 %v15958_v26 }
 0x728   : > { %v16074_v58 = vpop.f32.mrb[156].mxu0 }
 0x729   : > { %v4482_v52 = vpop.f32.mrb[157].mxu0  ;;  %v5050_v19 = vpop.f32.mrb[184].mxu1 }
 0x72a   : > { %v16077_v24 = vadd.f32 %v5050_v19, %v15895_v10  ;;  %v16079_v23 = vpop.f32.mrb[158].mxu0  ;;  %v5052_v54 = vpop.f32.mrb[185].mxu1 }
 0x72b   : > { %v16081_v32 = vpop.f32.mrb[159].mxu0  ;;  %v5053_v40 = vpop.f32.mrb[186].mxu1 }
 0x72c   : > { %v16084_v41 = vadd.f32 %v5053_v40, %v15897_v20  ;;  %v5055_v25 = vpop.f32.mrb[187].mxu1 }
 0x72d   : > { %v16087_v15 = vadd.f32 %v5055_v25, %v15899_v16  ;;  %5914 = vmatmul.mubr.bf16.gmra.mrb[8].mxu0 %v15762_v49 }
 0x72e   : > { %5279 = vmatmul.mubr.bf16.gmra.mrb[100].mxu1 %v15810_v38  ;;  %5921 = vmatprep.mubr.bf16.mxu0 %v15958_v26 }
 0x72f   : > { %5286 = vmatprep.mubr.bf16.mxu1 %v15958_v26 }
 0x730   : > { %v16093_v10 = vpop.f32.mrb[160].mxu0 }
 0x731   : > { %v16095_v52 = vpop.f32.mrb[161].mxu0  ;;  %v5059_v19 = vpop.f32.mrb[188].mxu1 }
 0x732   : > { %18483 = vst [vmem:[#allocation39_spill] sm:$0xff] %v16095_v52  ;;  %v16098_v20 = vadd.f32 %v5059_v19, %v15905_v56  ;;  %v4493_v54 = vpop.f32.mrb[162].mxu0  ;;  %v5061_v40 = vpop.f32.mrb[189].mxu1 }
 0x733   : > { %v16101_v16 = vadd.f32 %v5061_v40, %v15907_v12  ;;  %v4494_v49 = vpop.f32.mrb[163].mxu0  ;;  %v5063_v25 = vpop.f32.mrb[190].mxu1 }
 0x734   : > { %v5064_v38 = vpop.f32.mrb[191].mxu1 }
 0x735   : > { %5922 = vmatmul.mubr.bf16.gmra.mrb[12].mxu0 %v15765_v48 }
 0x736   : > { %5287 = vmatmul.mubr.bf16.gmra.mrb[104].mxu1 %v15813_v42  ;;  %5930 = vmatprep.mubr.bf16.mxu0 %v15958_v26 }
 0x737   : > { %5295 = vmatprep.mubr.bf16.mxu1 %v15958_v26 }
 0x738   : > { %v16107_v52 = vpop.f32.mrb[164].mxu0 }
 0x739   : > { %v4499_v56 = vpop.f32.mrb[165].mxu0  ;;  %v5067_v19 = vpop.f32.mrb[192].mxu1 }
 0x73a   : > { %v16110_v54 = vadd.f32 %v5067_v19, %v15913_v34  ;;  %v16112_v12 = vpop.f32.mrb[166].mxu0  ;;  %v5069_v40 = vpop.f32.mrb[193].mxu1 }
 0x73b   : > { %v16114_v49 = vpop.f32.mrb[167].mxu0  ;;  %v5070_v25 = vpop.f32.mrb[194].mxu1 }
 0x73c   : > { %18484 = vst [vmem:[#allocation41_spill] sm:$0xff] %v16114_v49  ;;  %v16117_v48 = vadd.f32 %v5070_v25, %v15915_v8  ;;  %v5072_v42 = vpop.f32.mrb[195].mxu1  ;;  %v13266_v49 = vld [vmem:[#allocation7 + $0x3e0] ss:$12 sps:$4 sm:$0xff]  }
 0x73d   : > { %v16120_v38 = vadd.f32 %v5072_v42, %v15917_v31  ;;  %5931 = vmatmul.mubr.bf16.gmra.mrb[16].mxu0 %v15770_v47 }
 0x73e   : > { %5296 = vmatmul.mubr.bf16.gmra.mrb[108].mxu1 %v15818_v39  ;;  %5938 = vmatprep.mubr.bf16.mxu0 %v15958_v26 }
 0x73f   : > { %12036 = vmatprep.mubr.bf16.mxu1 %v15958_v26 }
 0x740   : > { %v16126_v34 = vpop.f32.mrb[168].mxu0 }
 0x741   : > { %v16128_v56 = vpop.f32.mrb[169].mxu0  ;;  %v5076_v19 = vpop.f32.mrb[196].mxu1 }
 0x742   : > { %18485 = vst [vmem:[#allocation42_spill] sm:$0xff] %v16128_v56  ;;  %v16131_v8 = vadd.f32 %v5076_v19, %v15923_v2  ;;  %v4510_v40 = vpop.f32.mrb[170].mxu0  ;;  %v5078_v25 = vpop.f32.mrb[197].mxu1  ;;  %v13267_v19 = vld [vmem:[#allocation7 + $0x3f8] ss:$12 sps:$4 sm:$0xff]  }
 0x743   : > { %v16134_v31 = vadd.f32 %v5078_v25, %v15925_v29  ;;  %v4511_v47 = vpop.f32.mrb[171].mxu0  ;;  %v5080_v42 = vpop.f32.mrb[198].mxu1 }
 0x744   : > { %v5081_v39 = vpop.f32.mrb[199].mxu1 }
 0x745   : > { %5939 = vmatmul.mubr.bf16.gmra.mrb[20].mxu0 %v15773_v11 }
 0x746   : > { %12037 = vmatmul.mubr.bf16.vlgmr.msra.gmra.mrb[112].mxu1 %v15958_v26  ;;  %5947 = vmatprep.mubr.bf16.mxu0 %v15958_v26 }
 0x747   : > { %12101 = vmatpush3.bf16.msra.mxu1 %v15928_v55  ;;  %12040 = vmatprep.mubr.bf16.mxu1 %v15699_v59 }
 0x748   : > { %v16141_v2 = vpop.f32.mrb[172].mxu0  ;;  %12102 = vmatprep.subr.bf16.mxu1 %v13266_v49 }
 0x749   : > { %18486 = vst [vmem:[#allocation46_spill] sm:$0xff] %v16141_v2  ;;  %v4516_v29 = vpop.f32.mrb[173].mxu0  ;;  %v5084_v40 = vpop.f32.mrb[200].mxu1  ;;  %v13268_v2 = vld [vmem:[#allocation7 + $0x410] ss:$12 sps:$4 sm:$0xff]  }
 0x74a   : > { %v16144_v25 = vadd.f32 %v5084_v40, %v15934_v18  ;;  %v16146_v47 = vpop.f32.mrb[174].mxu0  ;;  %v5086_v11 = vpop.f32.mrb[201].mxu1 }
 0x74b   : > { %v16148_v42 = vpop.f32.mrb[175].mxu0  ;;  %v5087_v39 = vpop.f32.mrb[202].mxu1  ;;  %12103 = vmatpush3.bf16.msra.mxu1 %v13266_v49 }
 0x74c   : > { %v16151_v55 = vadd.f32 %v5087_v39, %v15938_v51  ;;  %v5089_v59 = vpop.f32.mrb[203].mxu1  ;;  %12104 = vmatprep.subr.bf16.mxu1 %v13267_v19  ;;  %v13269_v51 = vld [vmem:[#allocation7 + $0x428] ss:$12 sps:$4 sm:$0xff]  }
 0x74d   : > { %v16154_v56 = vadd.f32 %v5089_v59, %v15940_v13  ;;  %5948 = vmatmul.mubr.bf16.gmra.mrb[24].mxu0 %v15778_v14 }
 0x74e   : > { %12041 = vmatmul.mubr.bf16.gmra.mrb[116].mxu1 %v15701_v61  ;;  %5955 = vmatprep.mubr.bf16.mxu0 %v15958_v26 }
 0x74f   : > { %12044 = vmatprep.mubr.bf16.mxu1 %v15706_v63  ;;  %12105 = vmatpush3.bf16.msra.mxu1 %v13267_v19  ;;  %v13270_v19 = vld [vmem:[#allocation7 + $0x440] ss:$12 sps:$4 sm:$0xff]  }
 0x750   : > { %v16160_v18 = vpop.f32.mrb[176].mxu0  ;;  %12106 = vmatprep.subr.bf16.mxu1 %v13268_v2 }
 0x751   : > { %v16162_v49 = vpop.f32.mrb[177].mxu0  ;;  %v5093_v29 = vpop.f32.mrb[204].mxu1 }
 0x752   : > { %v16165_v40 = vadd.f32 %v5093_v29, %v15948_v45  ;;  %v4527_v13 = vpop.f32.mrb[178].mxu0  ;;  %v5095_v11 = vpop.f32.mrb[205].mxu1 }
 0x753   : > { %v16168_v14 = vadd.f32 %v5095_v11, %v15951_v60  ;;  %v4528_v61 = vpop.f32.mrb[179].mxu0  ;;  %v5097_v39 = vpop.f32.mrb[206].mxu1  ;;  %12107 = vmatpush3.bf16.msra.mxu1 %v13268_v2  ;;  %v13271_v60 = vld [vmem:[#allocation7 + $0x458] ss:$12 sps:$4 sm:$0xff]  }
 0x754   : > { %v5098_v63 = vpop.f32.mrb[207].mxu1  ;;  %12108 = vmatprep.subr.bf16.mxu1 %v13269_v51 }
 0x755   : > { %5956 = vmatmul.mubr.bf16.gmra.mrb[28].mxu0 %v15781_v22 }
 0x756   : > { %12045 = vmatmul.mubr.bf16.gmra.mrb[120].mxu1 %v15711_v50  ;;  %5964 = vmatprep.mubr.bf16.mxu0 %v15958_v26 }
 0x757   : > { %12048 = vmatprep.mubr.bf16.mxu1 %v15714_v46  ;;  %12109 = vmatpush3.bf16.msra.mxu1 %v13269_v51  ;;  %v13272_v51 = vld [vmem:[#allocation7 + $0x470] ss:$12 sps:$4 sm:$0xff]  }
 0x758   : > { %v16174_v45 = vpop.f32.mrb[180].mxu0  ;;  %12110 = vmatprep.subr.bf16.mxu1 %v13270_v19 }
 0x759   : > { %v4533_v59 = vpop.f32.mrb[181].mxu0  ;;  %v5101_v29 = vpop.f32.mrb[208].mxu1 }
 0x75a   : > { %v16177_v2 = vadd.f32 %v5101_v29, %v15962_v62  ;;  %v16179_v13 = vpop.f32.mrb[182].mxu0  ;;  %v5103_v11 = vpop.f32.mrb[209].mxu1  ;;  %v18487_v29 = vld [vmem:[#allocation21_spill] sm:$0xff] }
 0x75b   : > { %v16181_v22 = vpop.f32.mrb[183].mxu0  ;;  %v5104_v50 = vpop.f32.mrb[210].mxu1  ;;  %12111 = vmatpush3.bf16.msra.mxu1 %v13270_v19 }
 0x75c   : > { %v16184_v61 = vadd.f32 %v5104_v50, %v15966_v5  ;;  %v5106_v46 = vpop.f32.mrb[211].mxu1  ;;  %12112 = vmatprep.subr.bf16.mxu1 %v13271_v60 }
 0x75d   : > { %v16187_v39 = vadd.f32 %v5106_v46, %v15968_v36  ;;  %5965 = vmatmul.mubr.bf16.gmra.mrb[32].mxu0 %v15786_v17  ;;  %v18488_v46 = vld [vmem:[#allocation23_spill] sm:$0xff] }
 0x75e   : > { %12049 = vmatmul.mubr.bf16.gmra.mrb[124].mxu1 %v15719_v6  ;;  %5972 = vmatprep.mubr.bf16.mxu0 %v15958_v26 }
 0x75f   : > { %12052 = vmatprep.mubr.bf16.mxu1 %v15722_v30  ;;  %12113 = vmatpush3.bf16.msra.mxu1 %v13271_v60 }
 0x760   : > { %v16193_v62 = vpop.f32.mrb[184].mxu0  ;;  %12114 = vmatprep.subr.bf16.mxu1 %v13272_v51 }
 0x761   : > { %v16195_v5 = vpop.f32.mrb[185].mxu0  ;;  %v5110_v63 = vpop.f32.mrb[212].mxu1 }
 0x762   : > { %v16198_v19 = vadd.f32 %v5110_v63, %v15976_v43  ;;  %v4544_v36 = vpop.f32.mrb[186].mxu0  ;;  %v5112_v59 = vpop.f32.mrb[213].mxu1 }
 0x763   : > { %v16201_v17 = vadd.f32 %v5112_v59, %v18487_v29  ;;  %v4545_v6 = vpop.f32.mrb[187].mxu0  ;;  %v5114_v11 = vpop.f32.mrb[214].mxu1  ;;  %12115 = vmatpush3.bf16.msra.mxu1 %v13272_v51 }
 0x764   : > { %v5115_v50 = vpop.f32.mrb[215].mxu1  ;;  %v16219_v11 = vld [vmem:[#allocation2 + $0xc8] sm:$0xff] }
 0x765   : > { %5973 = vmatmul.mubr.bf16.gmra.mrb[36].mxu0 %v15789_v33  ;;  %v18491_v33 = vld [vmem:[#allocation24_spill] sm:$0xff]  ;;  %18492 = vst [vmem:[#allocation49_spill] sm:$0xff] %v16219_v11 }
 0x766   : > { %12053 = vmatmul.mubr.bf16.gmra.mrb[128].mxu1 %v15727_v21  ;;  %5981 = vmatprep.mubr.bf16.mxu0 %v15958_v26 }
 0x767   : > { %12056 = vmatprep.mubr.bf16.mxu1 %v15730_v44  ;;  %v18493_v44 = vld [vmem:[#allocation25_spill] sm:$0xff] }
 0x768   : > { %v16207_v30 = vpop.f32.mrb[188].mxu0 }
 0x769   : > { %v4550_v43 = vpop.f32.mrb[189].mxu0  ;;  %v5118_v60 = vpop.f32.mrb[216].mxu1 }
 0x76a   : > { %v16210_v63 = vadd.f32 %v5118_v60, %v18488_v46  ;;  %v16212_v36 = vpop.f32.mrb[190].mxu0  ;;  %v5120_v59 = vpop.f32.mrb[217].mxu1 }
 0x76b   : > { %18489 = vst [vmem:[#allocation47_spill] sm:$0xff] %v16212_v36  ;;  %v16214_v51 = vpop.f32.mrb[191].mxu0  ;;  %v5121_v29 = vpop.f32.mrb[218].mxu1  ;;  %v18497_v59 = vld [vmem:[#allocation62_spill] sm:$0xff]  ;;  %v16238_v36 = vld [vmem:[#allocation2 + $0xd0] sm:$0xff] }
 0x76c   : > { %18490 = vst [vmem:[#allocation48_spill] sm:$0xff] %v16214_v51  ;;  %v16217_v6 = vadd.f32 %v5121_v29, %v18491_v33  ;;  %v5123_v21 = vpop.f32.mrb[219].mxu1  ;;  %18501 = vst [vmem:[#allocation55_spill] sm:$0xff] %v16238_v36 }
 0x76d   : > { %v16222_v50 = vadd.f32 %v5123_v21, %v18493_v44  ;;  %5982 = vmatmul.mubr.bf16.gmra.mrb[40].mxu0 %v16219_v11  ;;  %v18499_v21 = vld [vmem:[#allocation40_spill] sm:$0xff] }
 0x76e   : > { %12057 = vmatmul.mubr.bf16.gmra.mrb[132].mxu1 %v15738_v4  ;;  %5989 = vmatprep.mubr.bf16.mxu0 %v15958_v26 }
 0x76f   : > { %18494 = vst [vmem:[#allocation50_spill] sm:$0xff] %v16222_v50  ;;  %12060 = vmatprep.mubr.bf16.mxu1 %v15741_v0  ;;  %v18502_v0 = vld [vmem:[#allocation36_spill] sm:$0xff] }
 0x770   : > { %v16228_v43 = vpop.f32.mrb[192].mxu0 }
 0x771   : > { %18495 = vst [vmem:[#allocation51_spill] sm:$0xff] %v16228_v43  ;;  %v16230_v60 = vpop.f32.mrb[193].mxu0  ;;  %v5127_v46 = vpop.f32.mrb[220].mxu1  ;;  %v16256_v43 = vld [vmem:[#allocation2 + $0xd8] sm:$0xff] }
 0x772   : > { %18496 = vst [vmem:[#allocation52_spill] sm:$0xff] %v16230_v60  ;;  %v16233_v29 = vadd.f32 %v5127_v46, %v18497_v59  ;;  %v4561_v33 = vpop.f32.mrb[194].mxu0  ;;  %v5129_v51 = vpop.f32.mrb[221].mxu1  ;;  %v18504_v60 = vld [vmem:[#allocation26_spill] sm:$0xff]  ;;  %18510 = vst [vmem:[#allocation63_spill] sm:$0xff] %v16256_v43 }
 0x773   : > { %v16236_v44 = vadd.f32 %v5129_v51, %v18499_v21  ;;  %v4562_v11 = vpop.f32.mrb[195].mxu0  ;;  %v5131_v50 = vpop.f32.mrb[222].mxu1 }
 0x774   : > { %18498 = vst [vmem:[#allocation53_spill] sm:$0xff] %v16233_v29  ;;  %v5132_v4 = vpop.f32.mrb[223].mxu1 }
 0x775   : > { %18500 = vst [vmem:[#allocation54_spill] sm:$0xff] %v16236_v44  ;;  %5990 = vmatmul.mubr.bf16.gmra.mrb[44].mxu0 %v16238_v36  ;;  %v18508_v36 = vld [vmem:[#allocation27_spill] sm:$0xff] }
 0x776   : > { %12061 = vmatmul.mubr.bf16.gmra.mrb[136].mxu1 %v15746_v7  ;;  %5998 = vmatprep.mubr.bf16.mxu0 %v15958_v26 }
 0x777   : > { %12064 = vmatprep.mubr.bf16.mxu1 %v18502_v0  ;;  %v18511_v0 = vld [vmem:[#allocation28_spill] sm:$0xff] }
 0x778   : > { %v16244_v46 = vpop.f32.mrb[196].mxu0 }
 0x779   : > { %18503 = vst [vmem:[#allocation56_spill] sm:$0xff] %v16244_v46  ;;  %v4567_v59 = vpop.f32.mrb[197].mxu0  ;;  %v5135_v33 = vpop.f32.mrb[224].mxu1  ;;  %v18528_v46 = vld [vmem:[#allocation33_spill] sm:$0xff] }
 0x77a   : > { %v16247_v51 = vadd.f32 %v5135_v33, %v18504_v60  ;;  %v16249_v11 = vpop.f32.mrb[198].mxu0  ;;  %v5137_v50 = vpop.f32.mrb[225].mxu1  ;;  %v18515_v33 = vld [vmem:[#allocation29_spill] sm:$0xff] }
 0x77b   : > { %18506 = vst [vmem:[#allocation58_spill] sm:$0xff] %v16249_v11  ;;  %v16251_v21 = vpop.f32.mrb[199].mxu0  ;;  %v5138_v4 = vpop.f32.mrb[226].mxu1  ;;  %v16275_v11 = vld [vmem:[#allocation2 + $0xe0] sm:$0xff] }
 0x77c   : > { %18505 = vst [vmem:[#allocation57_spill] sm:$0xff] %v16247_v51  ;;  %18507 = vst [vmem:[#allocation60_spill] sm:$0xff] %v16251_v21  ;;  %v16254_v44 = vadd.f32 %v5138_v4, %v18508_v36  ;;  %v5140_v7 = vpop.f32.mrb[227].mxu1 }
 0x77d   : > { %v16259_v29 = vadd.f32 %v5140_v7, %v18511_v0  ;;  %5999 = vmatmul.mubr.bf16.gmra.mrb[48].mxu0 %v16256_v43  ;;  %v18517_v7 = vld [vmem:[#allocation30_spill] sm:$0xff]  ;;  %18519 = vst [vmem:[#allocation70_spill] sm:$0xff] %v16275_v11 }
 0x77e   : > { %18509 = vst [vmem:[#allocation61_spill] sm:$0xff] %v16254_v44  ;;  %12065 = vmatmul.mubr.bf16.gmra.mrb[140].mxu1 %v15754_v28  ;;  %6006 = vmatprep.mubr.bf16.mxu0 %v15958_v26  ;;  %v16297_v44 = vld [vmem:[#allocation2 + $0xe8] sm:$0xff] }
 0x77f   : > { %18512 = vst [vmem:[#allocation64_spill] sm:$0xff] %v16259_v29  ;;  %12068 = vmatprep.mubr.bf16.mxu1 %v15757_v53  ;;  %v16278_v53 = vld [vmem:[#allocation2 + $0x88] sm:$0xff]  ;;  %18527 = vst [vmem:[#allocation76_spill] sm:$0xff] %v16297_v44 }
 0x780   : > { %v16265_v60 = vpop.f32.mrb[200].mxu0 }
 0x781   : > { %18513 = vst [vmem:[#allocation65_spill] sm:$0xff] %v16265_v60  ;;  %v16267_v59 = vpop.f32.mrb[201].mxu0  ;;  %v5144_v36 = vpop.f32.mrb[228].mxu1 }
 0x782   : > { %18514 = vst [vmem:[#allocation67_spill] sm:$0xff] %v16267_v59  ;;  %v16270_v50 = vadd.f32 %v5144_v36, %v18515_v33  ;;  %v4578_v4 = vpop.f32.mrb[202].mxu0  ;;  %v5146_v21 = vpop.f32.mrb[229].mxu1  ;;  %v16282_v36 = vld [vmem:[#allocation2 + $0x90] sm:$0xff] }
 0x783   : > { %v16273_v0 = vadd.f32 %v5146_v21, %v18517_v7  ;;  %v4579_v43 = vpop.f32.mrb[203].mxu0  ;;  %v5148_v29 = vpop.f32.mrb[230].mxu1 }
 0x784   : > { %18516 = vst [vmem:[#allocation68_spill] sm:$0xff] %v16270_v50  ;;  %v5149_v28 = vpop.f32.mrb[231].mxu1  ;;  %v18521_v29 = vld [vmem:[#allocation66_spill] sm:$0xff] }
 0x785   : > { %18518 = vst [vmem:[#allocation69_spill] sm:$0xff] %v16273_v0  ;;  %6007 = vmatmul.mubr.bf16.gmra.mrb[52].mxu0 %v16275_v11  ;;  %v18525_v0 = vld [vmem:[#allocation32_spill] sm:$0xff] }
 0x786   : > { %12069 = vmatmul.mubr.bf16.gmra.mrb[144].mxu1 %v16278_v53  ;;  %6015 = vmatprep.mubr.bf16.mxu0 %v15958_v26 }
 0x787   : > { %12072 = vmatprep.mubr.bf16.mxu1 %v16282_v36 }
 0x788   : > { %v16285_v33 = vpop.f32.mrb[204].mxu0 }
 0x789   : > { %18520 = vst [vmem:[#allocation71_spill] sm:$0xff] %v16285_v33  ;;  %v4584_v21 = vpop.f32.mrb[205].mxu0  ;;  %v5152_v43 = vpop.f32.mrb[232].mxu1 }
 0x78a   : > { %v16288_v4 = vadd.f32 %v5152_v43, %v18521_v29  ;;  %v16290_v7 = vpop.f32.mrb[206].mxu0  ;;  %v5154_v28 = vpop.f32.mrb[233].mxu1  ;;  %v16303_v21 = vld [vmem:[#allocation2 + $0x98] sm:$0xff]  ;;  %v16307_v43 = vld [vmem:[#allocation2 + $0xa0] sm:$0xff] }
 0x78b   : > { %18523 = vst [vmem:[#allocation73_spill] sm:$0xff] %v16290_v7  ;;  %v16292_v11 = vpop.f32.mrb[207].mxu0  ;;  %v5155_v59 = vpop.f32.mrb[234].mxu1  ;;  %18530 = vst [vmem:[#allocation78_spill] sm:$0xff] %v16303_v21  ;;  %v18534_v28 = vld [vmem:[#allocation34_spill] sm:$0xff] }
 0x78c   : > { %18522 = vst [vmem:[#allocation72_spill] sm:$0xff] %v16288_v4  ;;  %18524 = vst [vmem:[#allocation74_spill] sm:$0xff] %v16292_v11  ;;  %v16295_v60 = vadd.f32 %v5155_v59, %v18525_v0  ;;  %v5157_v50 = vpop.f32.mrb[235].mxu1  ;;  %v18536_v11 = vld [vmem:[#allocation35_spill] sm:$0xff] }
 0x78d   : > { %v16300_v51 = vadd.f32 %v5157_v50, %v18528_v46  ;;  %6016 = vmatmul.mubr.bf16.gmra.mrb[56].mxu0 %v16297_v44  ;;  %18531 = vst [vmem:[#allocation79_spill] sm:$0xff] %v16307_v43  ;;  %v16320_v4 = vld [vmem:[#allocation2 + $0xf0] sm:$0xff] }
 0x78e   : > { %18526 = vst [vmem:[#allocation75_spill] sm:$0xff] %v16295_v60  ;;  %12073 = vmatmul.mubr.bf16.gmra.mrb[148].mxu1 %v16303_v21  ;;  %6023 = vmatprep.mubr.bf16.mxu0 %v15958_v26  ;;  %18538 = vst [vmem:[#allocation23_spill] sm:$0xff] %v16320_v4 }
 0x78f   : > { %18529 = vst [vmem:[#allocation77_spill] sm:$0xff] %v16300_v51  ;;  %12076 = vmatprep.mubr.bf16.mxu1 %v16307_v43  ;;  %v16323_v43 = vld [vmem:[#allocation2 + $0xa8] sm:$0xff] }
 0x790   : > { %v16310_v59 = vpop.f32.mrb[208].mxu0  ;;  %18539 = vst [vmem:[#allocation24_spill] sm:$0xff] %v16323_v43 }
 0x791   : > { %18532 = vst [vmem:[#allocation22_spill] sm:$0xff] %v16310_v59  ;;  %v16312_v0 = vpop.f32.mrb[209].mxu0  ;;  %v5161_v29 = vpop.f32.mrb[236].mxu1 }
 0x792   : > { %18533 = vst [vmem:[#allocation31_spill] sm:$0xff] %v16312_v0  ;;  %v16315_v46 = vadd.f32 %v5161_v29, %v18534_v28  ;;  %v4595_v50 = vpop.f32.mrb[210].mxu0  ;;  %v5163_v44 = vpop.f32.mrb[237].mxu1  ;;  %v16327_v29 = vld [vmem:[#allocation2 + $0xb0] sm:$0xff] }
 0x793   : > { %v16318_v51 = vadd.f32 %v5163_v44, %v18536_v11  ;;  %v4596_v7 = vpop.f32.mrb[211].mxu0  ;;  %v5165_v60 = vpop.f32.mrb[238].mxu1  ;;  %18540 = vst [vmem:[#allocation25_spill] sm:$0xff] %v16327_v29 }
 0x794   : > { %18535 = vst [vmem:[#allocation43_spill] sm:$0xff] %v16315_v46  ;;  %v5166_v33 = vpop.f32.mrb[239].mxu1 }
 0x795   : > { %18537 = vst [vmem:[#allocation21_spill] sm:$0xff] %v16318_v51  ;;  %6024 = vmatmul.mubr.bf16.gmra.mrb[60].mxu0 %v16320_v4 }
 0x796   : > { %12077 = vmatmul.mubr.bf16.gmra.mrb[152].mxu1 %v16323_v43  ;;  %6032 = vmatprep.mubr.bf16.mxu0 %v15958_v26  ;;  %v16339_v43 = vld [vmem:[#allocation2 + $0xf8] sm:$0xff] }
 0x797   : > { %12080 = vmatprep.mubr.bf16.mxu1 %v16327_v29  ;;  %18543 = vst [vmem:[#allocation36_spill] sm:$0xff] %v16339_v43 }
 0x798   : > { %v5804_v28 = vpop.f32.mrb[212].mxu0 }
 0x799   : > { %v6348_v44 = vadd.f32 %v5804_v28, %v16044_v3  ;;  %v5169_v11 = vpop.f32.mrb[240].mxu1  ;;  %v5806_v60 = vpop.f32.mrb[213].mxu0 }
 0x79a   : > { %v16332_v33 = vadd.f32 %v5169_v11, %v16041_v1  ;;  %v5171_v7 = vpop.f32.mrb[241].mxu1  ;;  %v5807_v50 = vpop.f32.mrb[214].mxu0  ;;  %v18544_v60 = vld [vmem:[#allocation44_spill] sm:$0xff]  ;;  %v18546_v11 = vld [vmem:[#allocation38_spill] sm:$0xff] }
 0x79b   : > { %v6349_v4 = vadd.f32 %v5807_v50, %v16051_v35  ;;  %v5172_v0 = vpop.f32.mrb[242].mxu1  ;;  %v5809_v51 = vpop.f32.mrb[215].mxu0  ;;  %v6524_v3 = vrot.slane %v6348_v44, 7  ;;  %v16345_v1 = vld [vmem:[#allocation2 + $0xb8] sm:$0xff] }
 0x79c   : > { %18541 = vst [vmem:[#allocation62_spill] sm:$0xff] %v16332_v33  ;;  %v16336_v59 = vadd.f32 %v5172_v0, %v16046_v57  ;;  %v6350_v46 = vadd.f32 %v5809_v51, %v16054_v27  ;;  %v5174_v29 = vpop.f32.mrb[243].mxu1  ;;  %v16350_v57 = vld [vmem:[#allocation2 + $0xc0] sm:$0xff] }
 0x79d   : > { %v6525_v28 = vrot.slane %v6349_v4, 7  ;;  %v16342_v21 = vadd.f32 %v5174_v29, %v18544_v60  ;;  %6033 = vmatmul.mubr.bf16.gmra.mrb[64].mxu0 %v16339_v43 }
 0x79e   : > { %18542 = vst [vmem:[#allocation40_spill] sm:$0xff] %v16336_v59  ;;  %12081 = vmatmul.mubr.bf16.gmra.mrb[156].mxu1 %v16345_v1  ;;  %6040 = vmatprep.mubr.bf16.mxu0 %v15958_v26 }
 0x79f   : > { %18545 = vst [vmem:[#allocation26_spill] sm:$0xff] %v16342_v21  ;;  %v6526_v35 = vsel %vm3246_vm2, %v6524_v3, %v6525_v28  ;;  %12084 = vmatprep.mubr.bf16.mxu1 %v16350_v57  ;;  %v18547_v3 = vld [vmem:[#allocation37_spill] sm:$0xff] }
 0x7a0   : > { %v16353_v27 = vadd.f32 %v6526_v35, %v6350_v46  ;;  %v5813_v51 = vpop.f32.mrb[216].mxu0  ;;  %v16363_v35 = vld [vmem:[#allocation2 + $0x100] sm:$0xff] }
 0x7a1   : > { %v6352_v4 = vadd.f32 %v5813_v51, %v16065_v9  ;;  %v5178_v0 = vpop.f32.mrb[244].mxu1  ;;  %v5815_v29 = vpop.f32.mrb[217].mxu0 }
 0x7a2   : > { %v16357_v44 = vadd.f32 %v5178_v0, %v16060_v37  ;;  %v6353_v7 = vadd.f32 %v5815_v29, %v18546_v11  ;;  %v5180_v50 = vpop.f32.mrb[245].mxu1  ;;  %v5817_v60 = vpop.f32.mrb[218].mxu0  ;;  %v13513_v37 = vld [vmem:[#allocation2 + $0xc8] sm:$0xff]  ;;  %v13514_v0 = vld [vmem:[#allocation2 + $0xd0] sm:$0xff] }
 0x7a3   : > { %v6527_v43 = vrot.slane %v6352_v4, 7  ;;  %v16361_v21 = vadd.f32 %v5180_v50, %v18547_v3  ;;  %v5182_v59 = vpop.f32.mrb[246].mxu1  ;;  %v5818_v33 = vpop.f32.mrb[219].mxu0 }
 0x7a4   : > { %v5183_v46 = vpop.f32.mrb[247].mxu1 }
 0x7a5   : > { %v6528_v9 = vsel %vm3246_vm2, %v6525_v28, %v6527_v43  ;;  %6041 = vmatmul.mubr.bf16.gmra.mrb[68].mxu0 %v16363_v35 }
 0x7a6   : > { %v16367_v51 = vadd.f32 %v6528_v9, %v6353_v7  ;;  %12085 = vmatmul.mubr.bf16.gmra.mrb[160].mxu1 %v13513_v37  ;;  %6049 = vmatprep.mubr.bf16.mxu0 %v15958_v26  ;;  %v16379_v37 = vld [vmem:[#allocation2 + $0x108] sm:$0xff] }
 0x7a7   : > { %12088 = vmatprep.mubr.bf16.mxu1 %v13514_v0 }
 0x7a8   : > { %v5821_v4 = vpop.f32.mrb[220].mxu0 }
 0x7a9   : > { %v6356_v29 = vadd.f32 %v5821_v4, %v16077_v24  ;;  %v5186_v59 = vpop.f32.mrb[248].mxu1  ;;  %v5823_v33 = vpop.f32.mrb[221].mxu0 }
 0x7aa   : > { %v16372_v11 = vadd.f32 %v5186_v59, %v16074_v58  ;;  %v5188_v50 = vpop.f32.mrb[249].mxu1  ;;  %v5824_v43 = vpop.f32.mrb[222].mxu0  ;;  %v13515_v58 = vld [vmem:[#allocation2 + $0xd8] sm:$0xff] }
 0x7ab   : > { %v6357_v28 = vadd.f32 %v5824_v43, %v16084_v41  ;;  %v5189_v7 = vpop.f32.mrb[250].mxu1  ;;  %v5826_v60 = vpop.f32.mrb[223].mxu0  ;;  %v6529_v24 = vrot.slane %v6356_v29, 7 }
 0x7ac   : > { %v16376_v3 = vadd.f32 %v5189_v7, %v16079_v23  ;;  %v6358_v46 = vadd.f32 %v5826_v60, %v16087_v15  ;;  %v5191_v9 = vpop.f32.mrb[251].mxu1  ;;  %v13516_v23 = vld [vmem:[#allocation2 + $0xe0] sm:$0xff] }
 0x7ad   : > { %v6530_v0 = vrot.slane %v6357_v28, 7  ;;  %v16382_v4 = vadd.f32 %v5191_v9, %v16081_v32  ;;  %6050 = vmatmul.mubr.bf16.gmra.mrb[72].mxu0 %v16379_v37  ;;  %v18548_v9 = vld [vmem:[#allocation39_spill] sm:$0xff] }
 0x7ae   : > { %12089 = vmatmul.mubr.bf16.gmra.mrb[164].mxu1 %v13515_v58  ;;  %6057 = vmatprep.mubr.bf16.mxu0 %v15958_v26 }
 0x7af   : > { %v6531_v41 = vsel %vm3246_vm2, %v6529_v24, %v6530_v0  ;;  %12092 = vmatprep.mubr.bf16.mxu1 %v13516_v23 }
 0x7b0   : > { %v16387_v59 = vadd.f32 %v6531_v41, %v6358_v46  ;;  %v5830_v15 = vpop.f32.mrb[224].mxu0 }
 0x7b1   : > { %v6360_v33 = vadd.f32 %v5830_v15, %v16098_v20  ;;  %v5195_v29 = vpop.f32.mrb[252].mxu1  ;;  %v5832_v50 = vpop.f32.mrb[225].mxu0  ;;  %v13517_v15 = vld [vmem:[#allocation2 + $0xe8] sm:$0xff] }
 0x7b2   : > { %v16391_v32 = vadd.f32 %v5195_v29, %v16093_v10  ;;  %v6361_v43 = vadd.f32 %v5832_v50, %v16101_v16  ;;  %v5197_v28 = vpop.f32.mrb[253].mxu1  ;;  %v5834_v7 = vpop.f32.mrb[226].mxu0  ;;  %v13518_v10 = vld [vmem:[#allocation2 + $0xf0] sm:$0xff] }
 0x7b3   : > { %v6532_v60 = vrot.slane %v6360_v33, 7  ;;  %v16395_v58 = vadd.f32 %v5197_v28, %v18548_v9  ;;  %v5199_v24 = vpop.f32.mrb[254].mxu1  ;;  %v5835_v23 = vpop.f32.mrb[227].mxu0 }
 0x7b4   : > { %v5200_v46 = vpop.f32.mrb[255].mxu1 }
 0x7b5   : > { %v6533_v41 = vsel %vm3246_vm2, %v6530_v0, %v6532_v60  ;;  %6058 = vmatmul.mubr.bf16.gmra.mrb[76].mxu0 %v15958_v26 }
 0x7b6   : > { %v16399_v20 = vadd.f32 %v6533_v41, %v6361_v43  ;;  %12093 = vmatmul.mubr.bf16.gmra.mrb[168].mxu1 %v13517_v15  ;;  %6066 = vmatprep.mubr.bf16.mxu0 %v15958_v26 }
 0x7b7   : > { %12096 = vmatprep.mubr.bf16.mxu1 %v13518_v10 }
 0x7b8   : > { %v5838_v16 = vpop.f32.mrb[228].mxu0 }
 0x7b9   : > { %v6364_v33 = vadd.f32 %v5838_v16, %v16110_v54  ;;  %v5203_v29 = vpop.f32.mrb[64].mxu1  ;;  %v5840_v50 = vpop.f32.mrb[229].mxu0  ;;  %v18549_v54 = vld [vmem:[#allocation41_spill] sm:$0xff]  ;;  %v18550_v16 = vmov 0.0  }
 0x7ba   : > { %v16404_v28 = vadd.f32 %v5203_v29, %v16107_v52  ;;  %v5205_v7 = vpop.f32.mrb[65].mxu1  ;;  %v5841_v0 = vpop.f32.mrb[230].mxu0  ;;  %v13519_v52 = vld [vmem:[#allocation2 + $0xf8] sm:$0xff]  ;;  %v13520_v29 = vld [vmem:[#allocation2 + $0x20] sm:$0xff] }
 0x7bb   : > { %v6365_v60 = vadd.f32 %v5841_v0, %v16117_v48  ;;  %v5206_v43 = vpop.f32.mrb[66].mxu1  ;;  %v5843_v9 = vpop.f32.mrb[231].mxu0  ;;  %v6534_v41 = vrot.slane %v6364_v33, 7 }
 0x7bc   : > { %v16408_v24 = vadd.f32 %v5206_v43, %v16112_v12  ;;  %v6366_v23 = vadd.f32 %v5843_v9, %v16120_v38  ;;  %v5208_v46 = vpop.f32.mrb[67].mxu1 }
 0x7bd   : > { %v6535_v15 = vrot.slane %v6365_v60, 7  ;;  %v16412_v10 = vadd.f32 %v5208_v46, %v18549_v54  ;;  %6067 = vmatmul.mubr.bf16.gmra.mrb[80].mxu0 %v15958_v26  ;;  %v18552_v46 = vld [vmem:[#allocation42_spill] sm:$0xff] }
 0x7be   : > { %12097 = vmatmul.mubr.bf16.gmra.mrb[172].mxu1 %v13519_v52  ;;  %12212 = vmatprep.mubr.msk.f32.mxu0 %vm13785_vm3, %v18550_v16 }
 0x7bf   : > { %v6536_v48 = vsel %vm3246_vm2, %v6534_v41, %v6535_v15  ;;  %12116 = vmatprep.mubr.bf16.mxu1 %v13520_v29  ;;  %v13522_v29 = vld [vmem:[#allocation2 + $0x30] sm:$0xff] }
 0x7c0   : > { %v16418_v12 = vadd.f32 %v6536_v48, %v6366_v23  ;;  %v5847_v38 = vpop.f32.mrb[232].mxu0 }
 0x7c1   : > { %v6368_v33 = vadd.f32 %v5847_v38, %v16131_v8  ;;  %v5212_v50 = vpop.f32.mrb[68].mxu1  ;;  %v5849_v7 = vpop.f32.mrb[233].mxu0  ;;  %v13521_v8 = vld [vmem:[#allocation2 + $0x28] sm:$0xff] }
 0x7c2   : > { %18551 = vst [vmem:[#allocation27_spill] sm:$0xff] %v16418_v12  ;;  %v16422_v0 = vadd.f32 %v5212_v50, %v16126_v34  ;;  %v6369_v26 = vadd.f32 %v5849_v7, %v16134_v31  ;;  %v5214_v60 = vpop.f32.mrb[69].mxu1  ;;  %v5851_v43 = vpop.f32.mrb[234].mxu0  ;;  %v18599_v12 = vld [vmem:[#allocation63_spill] sm:$0xff] }
 0x7c3   : > { %v6537_v9 = vrot.slane %v6368_v33, 7  ;;  %v16426_v54 = vadd.f32 %v5214_v60, %v18552_v46  ;;  %v5216_v41 = vpop.f32.mrb[70].mxu1  ;;  %v5852_v52 = vpop.f32.mrb[235].mxu0  ;;  %v18553_v33 = vld [vmem:[#allocation46_spill] sm:$0xff] }
 0x7c4   : > { %v5217_v23 = vpop.f32.mrb[71].mxu1 }
 0x7c5   : > { %v6538_v16 = vsel %vm3246_vm2, %v6535_v15, %v6537_v9 }
 0x7c6   : > { %v16429_v48 = vadd.f32 %v6538_v16, %v6369_v26  ;;  %12117 = vmatmul.mubr.bf16.vlgmr.msra.gmra.mrb[112].mxu1 %v13521_v8  ;;  %v13523_v8 = vld [vmem:[#allocation2 + $0x38] sm:$0xff] }
 0x7c7   : > { %12120 = vmatprep.mubr.bf16.mxu1 %v13522_v29 }
 0x7c8   : > { %v5855_v34 = vpop.f32.mrb[236].mxu0 }
 0x7c9   : > { %v6372_v31 = vadd.f32 %v5855_v34, %v16144_v25  ;;  %v5220_v38 = vpop.f32.mrb[72].mxu1  ;;  %v5857_v50 = vpop.f32.mrb[237].mxu0  ;;  %v13524_v34 = vld [vmem:[#allocation2 + $0x40] sm:$0xff] }
 0x7ca   : > { %v16433_v7 = vadd.f32 %v5220_v38, %v18553_v33  ;;  %v5222_v60 = vpop.f32.mrb[73].mxu1  ;;  %v5858_v43 = vpop.f32.mrb[238].mxu0 }
 0x7cb   : > { %v6373_v46 = vadd.f32 %v5858_v43, %v16151_v55  ;;  %v5223_v41 = vpop.f32.mrb[74].mxu1  ;;  %v5860_v15 = vpop.f32.mrb[239].mxu0  ;;  %v6539_v23 = vrot.slane %v6372_v31, 7 }
 0x7cc   : > { %v16437_v26 = vadd.f32 %v5223_v41, %v16146_v47  ;;  %v6374_v9 = vadd.f32 %v5860_v15, %v16154_v56  ;;  %v5225_v52 = vpop.f32.mrb[75].mxu1 }
 0x7cd   : > { %v6540_v16 = vrot.slane %v6373_v46, 7  ;;  %v16441_v25 = vadd.f32 %v5225_v52, %v16148_v42 }
 0x7ce   : > { %12121 = vmatmul.mubr.bf16.gmra.mrb[116].mxu1 %v13523_v8  ;;  %v13526_v8 = vld [vmem:[#allocation2 + $0x50] sm:$0xff] }
 0x7cf   : > { %v6541_v29 = vsel %vm3246_vm2, %v6539_v23, %v6540_v16  ;;  %12124 = vmatprep.mubr.bf16.mxu1 %v13524_v34 }
 0x7d0   : > { %v16444_v55 = vadd.f32 %v6541_v29, %v6374_v9  ;;  %v5864_v38 = vpop.f32.mrb[240].mxu0 }
 0x7d1   : > { %v6376_v47 = vadd.f32 %v5864_v38, %v16165_v40  ;;  %v5229_v50 = vpop.f32.mrb[76].mxu1  ;;  %v5866_v33 = vpop.f32.mrb[241].mxu0  ;;  %v13525_v40 = vld [vmem:[#allocation2 + $0x48] sm:$0xff] }
 0x7d2   : > { %18554 = vst [vmem:[#allocation28_spill] sm:$0xff] %v16444_v55  ;;  %v16448_v56 = vadd.f32 %v5229_v50, %v16160_v18  ;;  %v6377_v31 = vadd.f32 %v5866_v33, %v16168_v14  ;;  %v5231_v42 = vpop.f32.mrb[77].mxu1  ;;  %v5868_v60 = vpop.f32.mrb[242].mxu0 }
 0x7d3   : > { %v6542_v43 = vrot.slane %v6376_v47, 7  ;;  %v16452_v46 = vadd.f32 %v5231_v42, %v16162_v49  ;;  %v5233_v41 = vpop.f32.mrb[78].mxu1  ;;  %v5869_v15 = vpop.f32.mrb[243].mxu0 }
 0x7d4   : > { %v5234_v9 = vpop.f32.mrb[79].mxu1  ;;  %v13527_v15 = vld [vmem:[#allocation2 + $0x58] sm:$0xff] }
 0x7d5   : > { %v6543_v52 = vsel %vm3246_vm2, %v6540_v16, %v6542_v43  ;;  %v13528_v9 = vld [vmem:[#allocation2 + $0x60] sm:$0xff] }
 0x7d6   : > { %v16455_v23 = vadd.f32 %v6543_v52, %v6377_v31  ;;  %12125 = vmatmul.mubr.bf16.gmra.mrb[120].mxu1 %v13525_v40 }
 0x7d7   : > { %12128 = vmatprep.mubr.bf16.mxu1 %v13526_v8 }
 0x7d8   : > { %18555 = vst [vmem:[#allocation29_spill] sm:$0xff] %v16455_v23  ;;  %v5872_v18 = vpop.f32.mrb[244].mxu0 }
 0x7d9   : > { %v6380_v14 = vadd.f32 %v5872_v18, %v16177_v2  ;;  %v5237_v29 = vpop.f32.mrb[80].mxu1  ;;  %v5874_v34 = vpop.f32.mrb[245].mxu0 }
 0x7da   : > { %v16459_v38 = vadd.f32 %v5237_v29, %v16174_v45  ;;  %v5239_v49 = vpop.f32.mrb[81].mxu1  ;;  %v5875_v47 = vpop.f32.mrb[246].mxu0 }
 0x7db   : > { %v6381_v50 = vadd.f32 %v5875_v47, %v16184_v61  ;;  %v5240_v33 = vpop.f32.mrb[82].mxu1  ;;  %v5877_v16 = vpop.f32.mrb[247].mxu0  ;;  %v6544_v43 = vrot.slane %v6380_v14, 7 }
 0x7dc   : > { %v16463_v31 = vadd.f32 %v5240_v33, %v16179_v13  ;;  %v6382_v42 = vadd.f32 %v5877_v16, %v16187_v39  ;;  %v5242_v60 = vpop.f32.mrb[83].mxu1 }
 0x7dd   : > { %v6545_v41 = vrot.slane %v6381_v50, 7  ;;  %v16467_v2 = vadd.f32 %v5242_v60, %v16181_v22 }
 0x7de   : > { %12129 = vmatmul.mubr.bf16.gmra.mrb[124].mxu1 %v13527_v15 }
 0x7df   : > { %v6546_v45 = vsel %vm3246_vm2, %v6544_v43, %v6545_v41  ;;  %12132 = vmatprep.mubr.bf16.mxu1 %v13528_v9 }
 0x7e0   : > { %v16470_v61 = vadd.f32 %v6546_v45, %v6382_v42  ;;  %v5881_v52 = vpop.f32.mrb[248].mxu0  ;;  %v13530_v42 = vld [vmem:[#allocation2 + $0x70] sm:$0xff] }
 0x7e1   : > { %v6384_v13 = vadd.f32 %v5881_v52, %v16198_v19  ;;  %v5246_v40 = vpop.f32.mrb[84].mxu1  ;;  %v5883_v8 = vpop.f32.mrb[249].mxu0  ;;  %v13529_v19 = vld [vmem:[#allocation2 + $0x68] sm:$0xff] }
 0x7e2   : > { %18556 = vst [vmem:[#allocation30_spill] sm:$0xff] %v16470_v61  ;;  %v16474_v39 = vadd.f32 %v5246_v40, %v16193_v62  ;;  %v6385_v18 = vadd.f32 %v5883_v8, %v16201_v17  ;;  %v5248_v22 = vpop.f32.mrb[85].mxu1  ;;  %v5885_v14 = vpop.f32.mrb[250].mxu0  ;;  %v18559_v8 = vld [vmem:[#allocation50_spill] sm:$0xff] }
 0x7e3   : > { %v6547_v29 = vrot.slane %v6384_v13, 7  ;;  %v16478_v34 = vadd.f32 %v5248_v22, %v16195_v5  ;;  %v5250_v49 = vpop.f32.mrb[86].mxu1  ;;  %v5886_v47 = vpop.f32.mrb[251].mxu0  ;;  %v18558_v13 = vld [vmem:[#allocation47_spill] sm:$0xff] }
 0x7e4   : > { %v5251_v50 = vpop.f32.mrb[87].mxu1  ;;  %v13531_v47 = vld [vmem:[#allocation2 + $0x78] sm:$0xff] }
 0x7e5   : > { %v6548_v33 = vsel %vm3246_vm2, %v6545_v41, %v6547_v29  ;;  %v13532_v50 = vld [vmem:[#allocation2 + $0x80] sm:$0xff] }
 0x7e6   : > { %v16481_v16 = vadd.f32 %v6548_v33, %v6385_v18  ;;  %12133 = vmatmul.mubr.bf16.gmra.mrb[128].mxu1 %v13529_v19  ;;  %v18562_v19 = vld [vmem:[#allocation53_spill] sm:$0xff] }
 0x7e7   : > { %12136 = vmatprep.mubr.bf16.mxu1 %v13530_v42 }
 0x7e8   : > { %18557 = vst [vmem:[#allocation66_spill] sm:$0xff] %v16481_v16  ;;  %v5889_v62 = vpop.f32.mrb[252].mxu0 }
 0x7e9   : > { %v6388_v17 = vadd.f32 %v5889_v62, %v16210_v63  ;;  %v5254_v60 = vpop.f32.mrb[88].mxu1  ;;  %v5891_v43 = vpop.f32.mrb[253].mxu0  ;;  %v18560_v63 = vld [vmem:[#allocation48_spill] sm:$0xff] }
 0x7ea   : > { %v16485_v15 = vadd.f32 %v5254_v60, %v16207_v30  ;;  %v5256_v5 = vpop.f32.mrb[89].mxu1  ;;  %v5892_v45 = vpop.f32.mrb[254].mxu0  ;;  %v18563_v43 = vld [vmem:[#allocation51_spill] sm:$0xff] }
 0x7eb   : > { %v6389_v9 = vadd.f32 %v5892_v45, %v16217_v6  ;;  %v5257_v52 = vpop.f32.mrb[90].mxu1  ;;  %v5894_v41 = vpop.f32.mrb[255].mxu0  ;;  %v6549_v14 = vrot.slane %v6388_v17, 7  ;;  %v18564_v17 = vld [vmem:[#allocation54_spill] sm:$0xff] }
 0x7ec   : > { %v16489_v40 = vadd.f32 %v5257_v52, %v18558_v13  ;;  %v6390_v18 = vadd.f32 %v5894_v41, %v18559_v8  ;;  %v5259_v22 = vpop.f32.mrb[91].mxu1  ;;  %v18565_v13 = vld [vmem:[#allocation52_spill] sm:$0xff] }
 0x7ed   : > { %v6550_v29 = vrot.slane %v6389_v9, 7  ;;  %v16493_v49 = vadd.f32 %v5259_v22, %v18560_v63 }
 0x7ee   : > { %12137 = vmatmul.mubr.bf16.gmra.mrb[132].mxu1 %v13531_v47 }
 0x7ef   : > { %v6551_v30 = vsel %vm3246_vm2, %v6549_v14, %v6550_v29  ;;  %12140 = vmatprep.mubr.bf16.mxu1 %v13532_v50  ;;  %v18567_v50 = vld [vmem:[#allocation57_spill] sm:$0xff] }
 0x7f0   : > { %v16496_v6 = vadd.f32 %v6551_v30, %v6390_v18  ;;  %v5898_v33 = vpop.f32.mrb[0].mxu0 }
 0x7f1   : > { %v6392_v42 = vadd.f32 %v5898_v33, %v18562_v19  ;;  %v5263_v62 = vpop.f32.mrb[92].mxu1  ;;  %v5900_v60 = vpop.f32.mrb[1].mxu0 }
 0x7f2   : > { %18561 = vst [vmem:[#allocation32_spill] sm:$0xff] %v16496_v6  ;;  %v16500_v5 = vadd.f32 %v5263_v62, %v18563_v43  ;;  %v6393_v45 = vadd.f32 %v5900_v60, %v18564_v17  ;;  %v5265_v9 = vpop.f32.mrb[93].mxu1  ;;  %v5902_v52 = vpop.f32.mrb[2].mxu0 }
 0x7f3   : > { %v6552_v41 = vrot.slane %v6392_v42, 7  ;;  %v16504_v8 = vadd.f32 %v5265_v9, %v18565_v13  ;;  %v5267_v22 = vpop.f32.mrb[94].mxu1  ;;  %v5903_v14 = vpop.f32.mrb[3].mxu0  ;;  %v18568_v42 = vld [vmem:[#allocation56_spill] sm:$0xff]  ;;  %v18569_v9 = vld [vmem:[#allocation61_spill] sm:$0xff] }
 0x7f4   : > { %v5268_v18 = vpop.f32.mrb[95].mxu1 }
 0x7f5   : > { %v6553_v63 = vsel %vm3246_vm2, %v6550_v29, %v6552_v41 }
 0x7f6   : > { %v16507_v47 = vadd.f32 %v6553_v63, %v6393_v45  ;;  %12141 = vmatmul.mubr.bf16.gmra.mrb[136].mxu1 %v16278_v53  ;;  %v18570_v45 = vld [vmem:[#allocation58_spill] sm:$0xff]  ;;  %v18571_v53 = vld [vmem:[#allocation64_spill] sm:$0xff] }
 0x7f7   : > { %12144 = vmatprep.mubr.bf16.mxu1 %v16282_v36  ;;  %v18572_v63 = vld [vmem:[#allocation60_spill] sm:$0xff] }
 0x7f8   : > { %18566 = vst [vmem:[#allocation33_spill] sm:$0xff] %v16507_v47  ;;  %v5906_v30 = vpop.f32.mrb[4].mxu0 }
 0x7f9   : > { %v6396_v33 = vadd.f32 %v5906_v30, %v18567_v50  ;;  %v5271_v19 = vpop.f32.mrb[96].mxu1  ;;  %v5908_v62 = vpop.f32.mrb[5].mxu0  ;;  %v18573_v50 = vld [vmem:[#allocation78_spill] sm:$0xff] }
 0x7fa   : > { %v16513_v60 = vadd.f32 %v5271_v19, %v18568_v42  ;;  %v5273_v43 = vpop.f32.mrb[97].mxu1  ;;  %v5909_v17 = vpop.f32.mrb[6].mxu0  ;;  %v18574_v62 = vld [vmem:[#allocation79_spill] sm:$0xff] }
 0x7fb   : > { %v6397_v52 = vadd.f32 %v5909_v17, %v18569_v9  ;;  %v5274_v13 = vpop.f32.mrb[98].mxu1  ;;  %v5911_v29 = vpop.f32.mrb[7].mxu0  ;;  %v6554_v14 = vrot.slane %v6396_v33, 7  ;;  %v18576_v17 = vld [vmem:[#allocation68_spill] sm:$0xff]  ;;  %v18578_v33 = vld [vmem:[#allocation69_spill] sm:$0xff] }
 0x7fc   : > { %v16517_v41 = vadd.f32 %v5274_v13, %v18570_v45  ;;  %v6398_v22 = vadd.f32 %v5911_v29, %v18571_v53  ;;  %v5276_v36 = vpop.f32.mrb[99].mxu1  ;;  %v18577_v29 = vld [vmem:[#allocation65_spill] sm:$0xff] }
 0x7fd   : > { %v6555_v18 = vrot.slane %v6397_v52, 7  ;;  %v16521_v30 = vadd.f32 %v5276_v36, %v18572_v63 }
 0x7fe   : > { %12145 = vmatmul.mubr.bf16.gmra.mrb[140].mxu1 %v18573_v50  ;;  %v18579_v50 = vld [vmem:[#allocation67_spill] sm:$0xff] }
 0x7ff   : > { %v6556_v19 = vsel %vm3246_vm2, %v6554_v14, %v6555_v18  ;;  %12148 = vmatprep.mubr.bf16.mxu1 %v18574_v62 }
 0x800   : > { %v16526_v42 = vadd.f32 %v6556_v19, %v6398_v22  ;;  %v5915_v43 = vpop.f32.mrb[8].mxu0 }
 0x801   : > { %v6400_v9 = vadd.f32 %v5915_v43, %v18576_v17  ;;  %v5280_v13 = vpop.f32.mrb[100].mxu1  ;;  %v5917_v45 = vpop.f32.mrb[9].mxu0  ;;  %v18581_v43 = vld [vmem:[#allocation24_spill] sm:$0xff]  ;;  %v18582_v17 = vld [vmem:[#allocation25_spill] sm:$0xff] }
 0x802   : > { %18575 = vst [vmem:[#allocation34_spill] sm:$0xff] %v16526_v42  ;;  %v16530_v53 = vadd.f32 %v5280_v13, %v18577_v29  ;;  %v6401_v52 = vadd.f32 %v5917_v45, %v18578_v33  ;;  %v5282_v36 = vpop.f32.mrb[101].mxu1  ;;  %v5919_v63 = vpop.f32.mrb[10].mxu0  ;;  %v18583_v29 = vld [vmem:[#allocation72_spill] sm:$0xff] }
 0x803   : > { %v6557_v6 = vrot.slane %v6400_v9, 7  ;;  %v16534_v47 = vadd.f32 %v5282_v36, %v18579_v50  ;;  %v5284_v14 = vpop.f32.mrb[102].mxu1  ;;  %v5920_v62 = vpop.f32.mrb[11].mxu0  ;;  %v18584_v9 = vld [vmem:[#allocation71_spill] sm:$0xff] }
 0x804   : > { %v5285_v22 = vpop.f32.mrb[103].mxu1  ;;  %v18585_v14 = vld [vmem:[#allocation75_spill] sm:$0xff] }
 0x805   : > { %v6558_v19 = vsel %vm3246_vm2, %v6555_v18, %v6557_v6  ;;  %v18586_v18 = vld [vmem:[#allocation73_spill] sm:$0xff] }
 0x806   : > { %v16537_v42 = vadd.f32 %v6558_v19, %v6401_v52  ;;  %12149 = vmatmul.mubr.bf16.gmra.mrb[144].mxu1 %v18581_v43  ;;  %v18587_v19 = vld [vmem:[#allocation77_spill] sm:$0xff] }
 0x807   : > { %12152 = vmatprep.mubr.bf16.mxu1 %v18582_v17 }
 0x808   : > { %18580 = vst [vmem:[#allocation35_spill] sm:$0xff] %v16537_v42  ;;  %v5923_v13 = vpop.f32.mrb[12].mxu0 }
 0x809   : > { %v6404_v45 = vadd.f32 %v5923_v13, %v18583_v29  ;;  %v5288_v33 = vpop.f32.mrb[104].mxu1  ;;  %v5925_v63 = vpop.f32.mrb[13].mxu0  ;;  %v18588_v13 = vld [vmem:[#allocation74_spill] sm:$0xff] }
 0x80a   : > { %v16543_v61 = vadd.f32 %v5288_v33, %v18584_v9  ;;  %v5290_v36 = vpop.f32.mrb[105].mxu1  ;;  %v5926_v50 = vpop.f32.mrb[14].mxu0 }
 0x80b   : > { %v6405_v62 = vadd.f32 %v5926_v50, %v18585_v14  ;;  %v5291_v22 = vpop.f32.mrb[106].mxu1  ;;  %v5928_v6 = vpop.f32.mrb[15].mxu0  ;;  %v6559_v42 = vrot.slane %v6404_v45, 7  ;;  %v18590_v36 = vld [vmem:[#allocation43_spill] sm:$0xff]  ;;  %v18592_v45 = vld [vmem:[#allocation21_spill] sm:$0xff] }
 0x80c   : > { %v16547_v52 = vadd.f32 %v5291_v22, %v18586_v18  ;;  %v6406_v43 = vadd.f32 %v5928_v6, %v18587_v19  ;;  %v5293_v17 = vpop.f32.mrb[107].mxu1  ;;  %v18591_v6 = vld [vmem:[#allocation22_spill] sm:$0xff] }
 0x80d   : > { %v6560_v16 = vrot.slane %v6405_v62, 7  ;;  %v16551_v29 = vadd.f32 %v5293_v17, %v18588_v13 }
 0x80e   : > { %12153 = vmatmul.mubr.bf16.gmra.mrb[148].mxu1 %v16345_v1  ;;  %v18593_v1 = vld [vmem:[#allocation31_spill] sm:$0xff] }
 0x80f   : > { %v6561_v33 = vsel %vm3246_vm2, %v6559_v42, %v6560_v16  ;;  %12156 = vmatprep.mubr.bf16.mxu1 %v16350_v57 }
 0x810   : > { %v16556_v63 = vadd.f32 %v6561_v33, %v6406_v43  ;;  %v5932_v9 = vpop.f32.mrb[16].mxu0 }
 0x811   : > { %v6408_v50 = vadd.f32 %v5932_v9, %v18590_v36  ;;  %v5297_v14 = vpop.f32.mrb[108].mxu1  ;;  %v5934_v22 = vpop.f32.mrb[17].mxu0  ;;  %v18594_v9 = vld [vmem:[#allocation49_spill] sm:$0xff]  ;;  %v18595_v36 = vld [vmem:[#allocation55_spill] sm:$0xff] }
 0x812   : > { %18589 = vst [vmem:[#allocation44_spill] sm:$0xff] %v16556_v63  ;;  %v16560_v18 = vadd.f32 %v5297_v14, %v18591_v6  ;;  %v6409_v62 = vadd.f32 %v5934_v22, %v18592_v45  ;;  %v5299_v19 = vpop.f32.mrb[109].mxu1  ;;  %v5936_v17 = vpop.f32.mrb[18].mxu0  ;;  %v18596_v6 = vld [vmem:[#allocation62_spill] sm:$0xff] }
 0x813   : > { %v6562_v13 = vrot.slane %v6408_v50, 7  ;;  %v16564_v55 = vadd.f32 %v5299_v19, %v18593_v1  ;;  %v5301_v42 = vpop.f32.mrb[110].mxu1  ;;  %v5937_v57 = vpop.f32.mrb[19].mxu0  ;;  %v18597_v50 = vld [vmem:[#allocation40_spill] sm:$0xff]  ;;  %v18598_v1 = vld [vmem:[#allocation26_spill] sm:$0xff] }
 0x814   : > { %v5302_v43 = vpop.f32.mrb[111].mxu1 }
 0x815   : > { %v6563_v33 = vsel %vm3246_vm2, %v6560_v16, %v6562_v13 }
 0x816   : > { %v16567_v63 = vadd.f32 %v6563_v33, %v6409_v62  ;;  %12157 = vmatmul.mubr.bf16.gmra.mrb[152].mxu1 %v18594_v9  ;;  %v18600_v62 = vld [vmem:[#allocation70_spill] sm:$0xff] }
 0x817   : > { %12160 = vmatprep.mubr.bf16.mxu1 %v18595_v36 }
 0x818   : > { %v5940_v14 = vpop.f32.mrb[20].mxu0 }
 0x819   : > { %v6412_v22 = vadd.f32 %v5940_v14, %v18596_v6  ;;  %v5942_v45 = vpop.f32.mrb[21].mxu0 }
 0x81a   : > { %v5943_v17 = vpop.f32.mrb[22].mxu0 }
 0x81b   : > { %v6413_v23 = vadd.f32 %v5943_v17, %v18597_v50  ;;  %v5945_v19 = vpop.f32.mrb[23].mxu0  ;;  %v6564_v57 = vrot.slane %v6412_v22, 7  ;;  %v18602_v50 = vld [vmem:[#allocation23_spill] sm:$0xff] }
 0x81c   : > { %v6414_v42 = vadd.f32 %v5945_v19, %v18598_v1 }
 0x81d   : > { %v6565_v43 = vrot.slane %v6413_v23, 7 }
 0x81e   : > { %12161 = vmatmul.mubr.bf16.gmra.mrb[156].mxu1 %v18599_v12  ;;  %v18601_v12 = vld [vmem:[#allocation76_spill] sm:$0xff] }
 0x81f   : > { %v6566_v16 = vsel %vm3246_vm2, %v6564_v57, %v6565_v43  ;;  %12164 = vmatprep.mubr.bf16.mxu1 %v18600_v62 }
 0x820   : > { %v16577_v13 = vadd.f32 %v6566_v16, %v6414_v42  ;;  %v5949_v33 = vpop.f32.mrb[24].mxu0 }
 0x821   : > { %v6416_v9 = vadd.f32 %v5949_v33, %v16357_v44  ;;  %v5951_v36 = vpop.f32.mrb[25].mxu0 }
 0x822   : > { %v6417_v14 = vadd.f32 %v5951_v36, %v16361_v21  ;;  %v5953_v6 = vpop.f32.mrb[26].mxu0 }
 0x823   : > { %v6567_v45 = vrot.slane %v6416_v9, 7  ;;  %v5954_v17 = vpop.f32.mrb[27].mxu0  ;;  %v18603_v9 = vld [vmem:[#allocation36_spill] sm:$0xff] }
 0x825   : > { %v6568_v22 = vsel %vm3246_vm2, %v6565_v43, %v6567_v45 }
 0x826   : > { %v16582_v23 = vadd.f32 %v6568_v22, %v6417_v14  ;;  %12165 = vmatmul.mubr.bf16.gmra.mrb[160].mxu1 %v18601_v12 }
 0x827   : > { %12168 = vmatprep.mubr.bf16.mxu1 %v18602_v50  ;;  %v16600_v50 = vld [vmem:[#allocation2] sm:$0xff] }
 0x828   : > { %v5957_v19 = vpop.f32.mrb[28].mxu0 }
 0x829   : > { %v6420_v1 = vadd.f32 %v5957_v19, %v16372_v11  ;;  %v5959_v42 = vpop.f32.mrb[29].mxu0 }
 0x82a   : > { %v5960_v57 = vpop.f32.mrb[30].mxu0 }
 0x82b   : > { %v6421_v44 = vadd.f32 %v5960_v57, %v16376_v3  ;;  %v5962_v16 = vpop.f32.mrb[31].mxu0  ;;  %v6569_v62 = vrot.slane %v6420_v1, 7 }
 0x82c   : > { %v6422_v21 = vadd.f32 %v5962_v16, %v16382_v4 }
 0x82d   : > { %v6570_v33 = vrot.slane %v6421_v44, 7 }
 0x82e   : > { %12169 = vmatmul.mubr.bf16.gmra.mrb[164].mxu1 %v18603_v9 }
 0x82f   : > { %v6571_v43 = vsel %vm3246_vm2, %v6569_v62, %v6570_v33  ;;  %12172 = vmatprep.mubr.bf16.mxu1 %v16363_v35 }
 0x830   : > { %v16592_v36 = vadd.f32 %v6571_v43, %v6422_v21  ;;  %v5966_v14 = vpop.f32.mrb[32].mxu0 }
 0x831   : > { %v6424_v11 = vadd.f32 %v5966_v14, %v16391_v32  ;;  %v5968_v6 = vpop.f32.mrb[33].mxu0 }
 0x832   : > { %v6425_v45 = vadd.f32 %v5968_v6, %v16395_v58  ;;  %v5970_v3 = vpop.f32.mrb[34].mxu0 }
 0x833   : > { %v6572_v17 = vrot.slane %v6424_v11, 7  ;;  %v5971_v22 = vpop.f32.mrb[35].mxu0 }
 0x835   : > { %v6573_v4 = vsel %vm3246_vm2, %v6570_v33, %v6572_v17 }
 0x836   : > { %v16597_v12 = vadd.f32 %v6573_v4, %v6425_v45  ;;  %12173 = vmatmul.mubr.bf16.gmra.mrb[168].mxu1 %v16379_v37 }
 0x837   : > { %12176 = vmatprep.mubr.bf16.mxu1 %v16600_v50 }
 0x838   : > { %v5974_v35 = vpop.f32.mrb[36].mxu0 }
 0x839   : > { %v6428_v19 = vadd.f32 %v5974_v35, %v16404_v28  ;;  %v5976_v32 = vpop.f32.mrb[37].mxu0 }
 0x83a   : > { %v5977_v1 = vpop.f32.mrb[38].mxu0 }
 0x83b   : > { %v6429_v58 = vadd.f32 %v5977_v1, %v16408_v24  ;;  %v5979_v42 = vpop.f32.mrb[39].mxu0  ;;  %v6574_v44 = vrot.slane %v6428_v19, 7 }
 0x83c   : > { %v6430_v57 = vadd.f32 %v5979_v42, %v16412_v10 }
 0x83d   : > { %v6575_v16 = vrot.slane %v6429_v58, 7 }
 0x83e   : > { %12177 = vmatmul.mubr.bf16.gmra.mrb[172].mxu1 %v16600_v50 }
 0x83f   : > { %v6576_v37 = vsel %vm3246_vm2, %v6574_v44, %v6575_v16 }
 0x840   : > { %v16608_v21 = vadd.f32 %v6576_v37, %v6430_v57  ;;  %v5983_v62 = vpop.f32.mrb[40].mxu0 }
 0x841   : > { %v6432_v33 = vadd.f32 %v5983_v62, %v16422_v0  ;;  %v5985_v9 = vpop.f32.mrb[41].mxu0 }
 0x842   : > { %v6433_v28 = vadd.f32 %v5985_v9, %v16426_v54  ;;  %v5987_v43 = vpop.f32.mrb[42].mxu0 }
 0x843   : > { %v6577_v14 = vrot.slane %v6432_v33, 7  ;;  %v5988_v24 = vpop.f32.mrb[43].mxu0 }
 0x845   : > { %v6578_v11 = vsel %vm3246_vm2, %v6575_v16, %v6577_v14 }
 0x846   : > { %v16613_v10 = vadd.f32 %v6578_v11, %v6433_v28 }
 0x848   : > { %v5991_v6 = vpop.f32.mrb[44].mxu0 }
 0x849   : > { %v6436_v45 = vadd.f32 %v5991_v6, %v16433_v7  ;;  %v5993_v3 = vpop.f32.mrb[45].mxu0 }
 0x84a   : > { %v5994_v17 = vpop.f32.mrb[46].mxu0 }
 0x84b   : > { %v6437_v22 = vadd.f32 %v5994_v17, %v16437_v26  ;;  %v5996_v4 = vpop.f32.mrb[47].mxu0  ;;  %v6579_v35 = vrot.slane %v6436_v45, 7 }
 0x84c   : > { %v6438_v0 = vadd.f32 %v5996_v4, %v16441_v25 }
 0x84d   : > { %v6580_v19 = vrot.slane %v6437_v22, 7 }
 0x84f   : > { %v6581_v54 = vsel %vm3246_vm2, %v6579_v35, %v6580_v19 }
 0x850   : > { %v16619_v32 = vadd.f32 %v6581_v54, %v6438_v0  ;;  %v6000_v1 = vpop.f32.mrb[48].mxu0 }
 0x851   : > { %v6440_v58 = vadd.f32 %v6000_v1, %v16448_v56  ;;  %v6002_v42 = vpop.f32.mrb[49].mxu0 }
 0x852   : > { %v6441_v57 = vadd.f32 %v6002_v42, %v16452_v46  ;;  %v6004_v7 = vpop.f32.mrb[50].mxu0 }
 0x853   : > { %v6582_v44 = vrot.slane %v6440_v58, 7  ;;  %v6005_v16 = vpop.f32.mrb[51].mxu0 }
 0x855   : > { %v6583_v26 = vsel %vm3246_vm2, %v6580_v19, %v6582_v44 }
 0x856   : > { %v16624_v37 = vadd.f32 %v6583_v26, %v6441_v57 }
 0x858   : > { %v6008_v25 = vpop.f32.mrb[52].mxu0 }
 0x859   : > { %v6444_v62 = vadd.f32 %v6008_v25, %v16459_v38  ;;  %v6010_v33 = vpop.f32.mrb[53].mxu0 }
 0x85a   : > { %v6011_v9 = vpop.f32.mrb[54].mxu0 }
 0x85b   : > { %v6445_v28 = vadd.f32 %v6011_v9, %v16463_v31  ;;  %v6013_v43 = vpop.f32.mrb[55].mxu0  ;;  %v6584_v14 = vrot.slane %v6444_v62, 7 }
 0x85c   : > { %v6446_v56 = vadd.f32 %v6013_v43, %v16467_v2 }
 0x85d   : > { %v6585_v24 = vrot.slane %v6445_v28, 7 }
 0x85f   : > { %v6586_v46 = vsel %vm3246_vm2, %v6584_v14, %v6585_v24 }
 0x860   : > { %v16630_v11 = vadd.f32 %v6586_v46, %v6446_v56  ;;  %v6017_v6 = vpop.f32.mrb[56].mxu0 }
 0x861   : > { %v6448_v45 = vadd.f32 %v6017_v6, %v16474_v39  ;;  %v6019_v3 = vpop.f32.mrb[57].mxu0 }
 0x862   : > { %v6449_v17 = vadd.f32 %v6019_v3, %v16478_v34  ;;  %v6021_v38 = vpop.f32.mrb[58].mxu0 }
 0x863   : > { %v6587_v22 = vrot.slane %v6448_v45, 7  ;;  %v6022_v4 = vpop.f32.mrb[59].mxu0 }
 0x865   : > { %v6588_v31 = vsel %vm3246_vm2, %v6585_v24, %v6587_v22 }
 0x866   : > { %v16635_v0 = vadd.f32 %v6588_v31, %v6449_v17 }
 0x868   : > { %v6025_v2 = vpop.f32.mrb[60].mxu0 }
 0x869   : > { %v6452_v35 = vadd.f32 %v6025_v2, %v16485_v15  ;;  %v6027_v19 = vpop.f32.mrb[61].mxu0 }
 0x86a   : > { %v6028_v54 = vpop.f32.mrb[62].mxu0 }
 0x86b   : > { %v6453_v1 = vadd.f32 %v6028_v54, %v16489_v40  ;;  %v6030_v58 = vpop.f32.mrb[63].mxu0  ;;  %v6589_v42 = vrot.slane %v6452_v35, 7 }
 0x86c   : > { %v6454_v39 = vadd.f32 %v6030_v58, %v16493_v49 }
 0x86d   : > { %v6590_v57 = vrot.slane %v6453_v1, 7 }
 0x86f   : > { %v6591_v34 = vsel %vm3246_vm2, %v6589_v42, %v6590_v57 }
 0x870   : > { %v16641_v7 = vadd.f32 %v6591_v34, %v6454_v39  ;;  %v6034_v44 = vpop.f32.mrb[64].mxu0 }
 0x871   : > { %v6456_v16 = vadd.f32 %v6034_v44, %v16500_v5  ;;  %v6036_v26 = vpop.f32.mrb[65].mxu0 }
 0x872   : > { %v6457_v25 = vadd.f32 %v6036_v26, %v16504_v8  ;;  %v6038_v15 = vpop.f32.mrb[66].mxu0 }
 0x873   : > { %v6592_v62 = vrot.slane %v6456_v16, 7  ;;  %v6039_v33 = vpop.f32.mrb[67].mxu0 }
 0x875   : > { %v6593_v40 = vsel %vm3246_vm2, %v6590_v57, %v6592_v62 }
 0x876   : > { %v16646_v9 = vadd.f32 %v6593_v40, %v6457_v25 }
 0x878   : > { %v6042_v49 = vpop.f32.mrb[68].mxu0 }
 0x879   : > { %v6460_v28 = vadd.f32 %v6042_v49, %v16513_v60  ;;  %v6044_v43 = vpop.f32.mrb[69].mxu0 }
 0x87a   : > { %v6045_v56 = vpop.f32.mrb[70].mxu0 }
 0x87b   : > { %v6461_v14 = vadd.f32 %v6045_v56, %v16517_v41  ;;  %v6047_v24 = vpop.f32.mrb[71].mxu0  ;;  %v6594_v46 = vrot.slane %v6460_v28, 7 }
 0x87c   : > { %v6462_v5 = vadd.f32 %v6047_v24, %v16521_v30 }
 0x87d   : > { %v6595_v6 = vrot.slane %v6461_v14, 7 }
 0x87f   : > { %v6596_v8 = vsel %vm3246_vm2, %v6594_v46, %v6595_v6 }
 0x880   : > { %v16652_v45 = vadd.f32 %v6596_v8, %v6462_v5  ;;  %v6051_v3 = vpop.f32.mrb[72].mxu0 }
 0x881   : > { %v6464_v17 = vadd.f32 %v6051_v3, %v16530_v53  ;;  %v6053_v38 = vpop.f32.mrb[73].mxu0 }
 0x882   : > { %v6465_v22 = vadd.f32 %v6053_v38, %v16534_v47  ;;  %v6055_v60 = vpop.f32.mrb[74].mxu0 }
 0x883   : > { %v6597_v4 = vrot.slane %v6464_v17, 7  ;;  %v6056_v31 = vpop.f32.mrb[75].mxu0 }
 0x885   : > { %v6598_v41 = vsel %vm3246_vm2, %v6595_v6, %v6597_v4 }
 0x886   : > { %v16657_v2 = vadd.f32 %v6598_v41, %v6465_v22 }
 0x888   : > { %v6059_v30 = vpop.f32.mrb[76].mxu0 }
 0x889   : > { %v6468_v35 = vadd.f32 %v6059_v30, %v16543_v61  ;;  %v6061_v19 = vpop.f32.mrb[77].mxu0 }
 0x88a   : > { %v6062_v54 = vpop.f32.mrb[78].mxu0 }
 0x88b   : > { %v6469_v1 = vadd.f32 %v6062_v54, %v16547_v52  ;;  %v6064_v58 = vpop.f32.mrb[79].mxu0  ;;  %v6599_v39 = vrot.slane %v6468_v35, 7 }
 0x88c   : > { %v6470_v53 = vadd.f32 %v6064_v58, %v16551_v29 }
 0x88d   : > { %v6600_v42 = vrot.slane %v6469_v1, 7 }
 0x88f   : > { %v6601_v47 = vsel %vm3246_vm2, %v6599_v39, %v6600_v42  ;;  %v13274_v39 = vld [vmem:[#allocation9 + $0xe0] ss:$12 sps:$4 sm:$0xff]  }
 0x890   : > { %v16663_v57 = vadd.f32 %v6601_v47, %v6470_v53  ;;  %v6068_v34 = vpop.f32.mrb[80].mxu0 }
 0x891   : > { %v6472_v44 = vadd.f32 %v6068_v34, %v16560_v18  ;;  %v6070_v16 = vpop.f32.mrb[81].mxu0 }
 0x892   : > { %v6473_v26 = vadd.f32 %v6070_v16, %v16564_v55  ;;  %v6072_v61 = vpop.f32.mrb[82].mxu0  ;;  %v13275_v16 = vld [vmem:[#allocation9 + $0xf8] ss:$12 sps:$4 sm:$0xff]  }
 0x893   : > { %v6602_v25 = vrot.slane %v6472_v44, 7  ;;  %v6073_v15 = vpop.f32.mrb[83].mxu0 }
 0x895   : > { %v6603_v52 = vsel %vm3246_vm2, %v6600_v42, %v6602_v25  ;;  %v18604_v42 = vld [vmem:[#allocation27_spill] sm:$0xff] }
 0x896   : > { %v16668_v62 = vadd.f32 %v6603_v52, %v6473_v26  ;;  %v18605_v52 = vld [vmem:[#allocation29_spill] sm:$0xff] }
 0x899   : > { %v12118_v29 = vpop.f32.mrb[112].mxu1 }
 0x89a   : > { %v6109_v33 = vpop.f32.mrb[113].mxu1  ;;  %v6717_v49 = vrot.slane %v12118_v29, 1 }
 0x89b   : > { %v12119_v40 = vpop.f32.mrb[114].mxu1 }
 0x89c   : > { %v6719_v28 = vrot.slane %v12119_v40, 1  ;;  %v6111_v43 = vpop.f32.mrb[115].mxu1  ;;  %v13276_v40 = vld [vmem:[#allocation9 + $0x110] ss:$12 sps:$4 sm:$0xff]  }
 0x89d   : > { %v6716_v56 = vrot.slane %v6111_v43, 1 }
 0x89e   : > { %v6720_v14 = vsel %vm3439_vm1, %v6717_v49, %v6719_v28  ;;  %v18606_v28 = vld [vmem:[#allocation28_spill] sm:$0xff] }
 0x89f   : > { %v6829_v18 = vadd.f32 %v6720_v14, %v16367_v51  ;;  %v6718_v55 = vsel %vm3439_vm1, %v6716_v56, %v6717_v49  ;;  %v16694_v49 = vld [vmem:[%s18228_s2 + $0x1] ss:$0 sm:$0xff] }
 0x8a0   : > { %v6828_v24 = vadd.f32 %v6718_v55, %v16353_v27 }
 0x8a1   : > { %v12122_v5 = vpop.f32.mrb[116].mxu1  ;;  %v16698_v55 = vadd.f32 %v16694_v49, %v6829_v18 }
 0x8a2   : > { %v6124_v46 = vpop.f32.mrb[117].mxu1  ;;  %v6722_v8 = vrot.slane %v12122_v5, 1  ;;  %v16701_v5 = vadd.f32 %v16694_v49, %v6828_v24 }
 0x8a3   : > { %v12123_v6 = vpop.f32.mrb[118].mxu1  ;;  %v6938_v18 = vmul.f32 %v16698_v55, %v16698_v55 }
 0x8a4   : > { %v6724_v3 = vrot.slane %v12123_v6, 1  ;;  %v6126_v17 = vpop.f32.mrb[119].mxu1  ;;  %v13277_v6 = vld [vmem:[#allocation9 + $0x128] ss:$12 sps:$4 sm:$0xff]   ;;  %v6937_v24 = vmul.f32 %v16701_v5, %v16701_v5 }
 0x8a5   : > { %v6721_v38 = vrot.slane %v6126_v17, 1 }
 0x8a6   : > { %v6725_v22 = vsel %vm3439_vm1, %v6722_v8, %v6724_v3 }
 0x8a7   : > { %v16676_v60 = vadd.f32 %v6725_v22, %v16399_v20  ;;  %v6723_v4 = vsel %vm3439_vm1, %v6721_v38, %v6722_v8  ;;  %v13273_v20 = vld [vmem:[#allocation9 + $0xc8] ss:$12 sps:$4 sm:$0xff]  }
 0x8a8   : > { %v6830_v51 = vadd.f32 %v6723_v4, %v16387_v59  ;;  %12215 = vmatprep.subr.bf16.mxu1 %v13273_v20 }
 0x8a9   : > { %v12126_v31 = vpop.f32.mrb[120].mxu1  ;;  %12216 = vmatpush3.bf16.msra.mxu1 %v13273_v20 }
 0x8aa   : > { %v6139_v41 = vpop.f32.mrb[121].mxu1  ;;  %v6727_v27 = vrot.slane %v12126_v31, 1  ;;  %12217 = vmatprep.subr.bf16.mxu1 %v13274_v39  ;;  %v16704_v22 = vadd.f32 %v16694_v49, %v6830_v51  ;;  %v18607_v31 = vld [vmem:[#allocation66_spill] sm:$0xff] }
 0x8ab   : > { %v12127_v30 = vpop.f32.mrb[122].mxu1 }
 0x8ac   : > { %v6729_v35 = vrot.slane %v12127_v30, 1  ;;  %v6141_v19 = vpop.f32.mrb[123].mxu1  ;;  %v6939_v51 = vmul.f32 %v16704_v22, %v16704_v22 }
 0x8ad   : > { %v6726_v54 = vrot.slane %v6141_v19, 1  ;;  %12218 = vmatpush3.bf16.msra.mxu1 %v13274_v39  ;;  %v16722_v39 = vadd.f32 %v16694_v49, %v16676_v60 }
 0x8ae   : > { %v6730_v1 = vsel %vm3439_vm1, %v6727_v27, %v6729_v35  ;;  %12219 = vmatprep.subr.bf16.mxu1 %v13275_v16 }
 0x8af   : > { %v16682_v58 = vadd.f32 %v6730_v1, %v16429_v48  ;;  %v6728_v53 = vsel %vm3439_vm1, %v6726_v54, %v6727_v27  ;;  %v18608_v27 = vld [vmem:[#allocation30_spill] sm:$0xff]  ;;  %v6900_v1 = vadd.f32 %v16698_v55, %v16701_v5  ;;  %v6940_v60 = vmul.f32 %v16722_v39, %v16722_v39 }
 0x8b0   : > { %v6832_v47 = vadd.f32 %v6728_v53, %v18604_v42  ;;  %v6969_v53 = vadd.f32 %v6938_v18, %v6937_v24 }
 0x8b1   : > { %v12130_v34 = vpop.f32.mrb[124].mxu1  ;;  %12220 = vmatpush3.bf16.msra.mxu1 %v13275_v16 }
 0x8b2   : > { %v6154_v59 = vpop.f32.mrb[125].mxu1  ;;  %v6732_v26 = vrot.slane %v12130_v34, 1  ;;  %12221 = vmatprep.subr.bf16.mxu1 %v13276_v40  ;;  %v16725_v42 = vadd.f32 %v16694_v49, %v6832_v47 }
 0x8b3   : > { %v12131_v44 = vpop.f32.mrb[126].mxu1 }
 0x8b4   : > { %v6734_v61 = vrot.slane %v12131_v44, 1  ;;  %v6156_v25 = vpop.f32.mrb[127].mxu1  ;;  %v6941_v47 = vmul.f32 %v16725_v42, %v16725_v42 }
 0x8b5   : > { %v6731_v15 = vrot.slane %v6156_v25, 1  ;;  %12222 = vmatpush3.bf16.msra.mxu1 %v13276_v40 }
 0x8b6   : > { %v6735_v48 = vsel %vm3439_vm1, %v6732_v26, %v6734_v61  ;;  %12223 = vmatprep.subr.bf16.mxu1 %v13277_v6  ;;  %v6970_v61 = vadd.f32 %v6969_v53, %v6939_v51 }
 0x8b7   : > { %v16688_v29 = vadd.f32 %v6735_v48, %v18605_v52  ;;  %v6733_v33 = vsel %vm3439_vm1, %v6731_v15, %v6732_v26  ;;  %v6901_v26 = vadd.f32 %v6900_v1, %v16704_v22  ;;  %v18609_v15 = vld [vmem:[#allocation33_spill] sm:$0xff] }
 0x8b8   : > { %v6834_v43 = vadd.f32 %v6733_v33, %v18606_v28  ;;  %v18610_v33 = vld [vmem:[#allocation32_spill] sm:$0xff] }
 0x8b9   : > { %v12134_v56 = vpop.f32.mrb[128].mxu1  ;;  %12224 = vmatpush3.bf16.msra.mxu1 %v13277_v6 }
 0x8ba   : > { %v6169_v14 = vpop.f32.mrb[129].mxu1  ;;  %v6737_v8 = vrot.slane %v12134_v56, 1  ;;  %v16738_v56 = vadd.f32 %v16694_v49, %v16682_v58  ;;  %v16742_v6 = vadd.f32 %v16694_v49, %v6834_v43 }
 0x8bb   : > { %v12135_v46 = vpop.f32.mrb[130].mxu1  ;;  %v6902_v14 = vadd.f32 %v6901_v26, %v16722_v39 }
 0x8bc   : > { %v6739_v3 = vrot.slane %v12135_v46, 1  ;;  %v6171_v17 = vpop.f32.mrb[131].mxu1  ;;  %v6971_v46 = vadd.f32 %v6970_v61, %v6940_v60  ;;  %v6943_v58 = vmul.f32 %v16742_v6, %v16742_v6 }
 0x8bd   : > { %v6736_v38 = vrot.slane %v6171_v17, 1  ;;  %v6903_v17 = vadd.f32 %v6902_v14, %v16725_v42 }
 0x8be   : > { %v6740_v4 = vsel %vm3439_vm1, %v6737_v8, %v6739_v3 }
 0x8bf   : > { %v16712_v41 = vadd.f32 %v6740_v4, %v18607_v31  ;;  %v6738_v30 = vsel %vm3439_vm1, %v6736_v38, %v6737_v8  ;;  %v6972_v38 = vadd.f32 %v6971_v46, %v6941_v47  ;;  %v6904_v1 = vadd.f32 %v6903_v17, %v16738_v56 }
 0x8c0   : > { %v6836_v35 = vadd.f32 %v6738_v30, %v18608_v27  ;;  %v6942_v30 = vmul.f32 %v16738_v56, %v16738_v56 }
 0x8c1   : > { %v12138_v19 = vpop.f32.mrb[132].mxu1  ;;  %v16770_v46 = vadd.f32 %v16694_v49, %v16712_v41 }
 0x8c2   : > { %v6184_v54 = vpop.f32.mrb[133].mxu1  ;;  %v6742_v34 = vrot.slane %v12138_v19, 1  ;;  %v18611_v19 = vld [vmem:[#allocation35_spill] sm:$0xff]  ;;  %v6973_v53 = vadd.f32 %v6972_v38, %v6942_v30  ;;  %v18613_v38 = vld [vmem:[#allocation44_spill] sm:$0xff] }
 0x8c3   : > { %v12139_v20 = vpop.f32.mrb[134].mxu1  ;;  %v16754_v54 = vadd.f32 %v16694_v49, %v16688_v29 }
 0x8c4   : > { %v6744_v59 = vrot.slane %v12139_v20, 1  ;;  %v6186_v44 = vpop.f32.mrb[135].mxu1  ;;  %v18612_v20 = vld [vmem:[#allocation34_spill] sm:$0xff]  ;;  %v6974_v26 = vadd.f32 %v6973_v53, %v6943_v58  ;;  %v6946_v58 = vmul.f32 %v16770_v46, %v16770_v46 }
 0x8c5   : > { %v6741_v16 = vrot.slane %v6186_v44, 1 }
 0x8c6   : > { %v6745_v25 = vsel %vm3439_vm1, %v6742_v34, %v6744_v59  ;;  %v16759_v59 = vadd.f32 %v16694_v49, %v6836_v35 }
 0x8c7   : > { %v6839_v48 = vadd.f32 %v6745_v25, %v18609_v15  ;;  %v6743_v52 = vsel %vm3439_vm1, %v6741_v16, %v6742_v34  ;;  %v6905_v16 = vadd.f32 %v6904_v1, %v16742_v6  ;;  %v6944_v15 = vmul.f32 %v16754_v54, %v16754_v54 }
 0x8c8   : > { %v6838_v40 = vadd.f32 %v6743_v52, %v18610_v33  ;;  %v6945_v47 = vmul.f32 %v16759_v59, %v16759_v59 }
 0x8c9   : > { %v12142_v28 = vpop.f32.mrb[136].mxu1  ;;  %v6975_v35 = vadd.f32 %v6974_v26, %v6944_v15 }
 0x8ca   : > { %v6199_v8 = vpop.f32.mrb[137].mxu1  ;;  %v6747_v4 = vrot.slane %v12142_v28, 1  ;;  %v6906_v28 = vadd.f32 %v6905_v16, %v16754_v54 }
 0x8cb   : > { %v12143_v3 = vpop.f32.mrb[138].mxu1  ;;  %v16773_v8 = vadd.f32 %v16694_v49, %v6838_v40 }
 0x8cc   : > { %v6749_v18 = vrot.slane %v12143_v3, 1  ;;  %v6201_v24 = vpop.f32.mrb[139].mxu1 }
 0x8cd   : > { %v6746_v31 = vrot.slane %v6201_v24, 1  ;;  %v6976_v24 = vadd.f32 %v6975_v35, %v6945_v47  ;;  %v6947_v41 = vmul.f32 %v16773_v8, %v16773_v8 }
 0x8ce   : > { %v6750_v27 = vsel %vm3439_vm1, %v6747_v4, %v6749_v18  ;;  %v6907_v18 = vadd.f32 %v6906_v28, %v16759_v59 }
 0x8cf   : > { %v6841_v43 = vadd.f32 %v6750_v27, %v18611_v19  ;;  %v6748_v51 = vsel %vm3439_vm1, %v6746_v31, %v6747_v4  ;;  %v6977_v53 = vadd.f32 %v6976_v24, %v6946_v58 }
 0x8d0   : > { %v6840_v34 = vadd.f32 %v6748_v51, %v18612_v20  ;;  %v6908_v1 = vadd.f32 %v6907_v18, %v16770_v46 }
 0x8d1   : > { %v12146_v44 = vpop.f32.mrb[140].mxu1  ;;  %v16801_v35 = vadd.f32 %v16694_v49, %v6841_v43 }
 0x8d2   : > { %v6214_v61 = vpop.f32.mrb[141].mxu1  ;;  %v6752_v52 = vrot.slane %v12146_v44, 1  ;;  %v16788_v44 = vadd.f32 %v16694_v49, %v6840_v34  ;;  %v6909_v26 = vadd.f32 %v6908_v1, %v16773_v8 }
 0x8d3   : > { %v12147_v25 = vpop.f32.mrb[142].mxu1  ;;  %v6978_v61 = vadd.f32 %v6977_v53, %v6947_v41  ;;  %v6950_v43 = vmul.f32 %v16801_v35, %v16801_v35 }
 0x8d4   : > { %v6754_v29 = vrot.slane %v12147_v25, 1  ;;  %v6216_v60 = vpop.f32.mrb[143].mxu1 }
 0x8d5   : > { %v6751_v33 = vrot.slane %v6216_v60, 1  ;;  %v6949_v60 = vmul.f32 %v16788_v44, %v16788_v44 }
 0x8d6   : > { %v6755_v14 = vsel %vm3439_vm1, %v6752_v52, %v6754_v29 }
 0x8d7   : > { %v6843_v3 = vadd.f32 %v6755_v14, %v16567_v63  ;;  %v6753_v17 = vsel %vm3439_vm1, %v6751_v33, %v6752_v52  ;;  %v16784_v63 = vadd.f32 %v16694_v49, %v6839_v48 }
 0x8d8   : > { %v6842_v4 = vadd.f32 %v6753_v17, %v18613_v38 }
 0x8d9   : > { %v12150_v31 = vpop.f32.mrb[144].mxu1  ;;  %v6948_v48 = vmul.f32 %v16784_v63, %v16784_v63  ;;  %v6910_v47 = vadd.f32 %v6909_v26, %v16784_v63 }
 0x8da   : > { %v6229_v30 = vpop.f32.mrb[145].mxu1  ;;  %v6757_v40 = vrot.slane %v12150_v31, 1 }
 0x8db   : > { %v12151_v27 = vpop.f32.mrb[146].mxu1  ;;  %v6979_v33 = vadd.f32 %v6978_v61, %v6948_v48  ;;  %v6911_v18 = vadd.f32 %v6910_v47, %v16788_v44 }
 0x8dc   : > { %v6759_v19 = vrot.slane %v12151_v27, 1  ;;  %v6231_v51 = vpop.f32.mrb[147].mxu1 }
 0x8dd   : > { %v6756_v20 = vrot.slane %v6231_v51, 1  ;;  %v6980_v24 = vadd.f32 %v6979_v33, %v6949_v60 }
 0x8de   : > { %v6760_v16 = vsel %vm3439_vm1, %v6757_v40, %v6759_v19  ;;  %v6912_v19 = vadd.f32 %v6911_v18, %v16801_v35 }
 0x8df   : > { %v6845_v25 = vadd.f32 %v6760_v16, %v16582_v23  ;;  %v6758_v15 = vsel %vm3439_vm1, %v6756_v20, %v6757_v40  ;;  %v16804_v23 = vadd.f32 %v16694_v49, %v6842_v4  ;;  %v16816_v40 = vadd.f32 %v16694_v49, %v6843_v3 }
 0x8e0   : > { %v6844_v52 = vadd.f32 %v6758_v15, %v16577_v13  ;;  %v6981_v51 = vadd.f32 %v6980_v24, %v6950_v43 }
 0x8e1   : > { %v12154_v29 = vpop.f32.mrb[148].mxu1  ;;  %v6951_v4 = vmul.f32 %v16804_v23, %v16804_v23  ;;  %v6913_v20 = vadd.f32 %v6912_v19, %v16804_v23 }
 0x8e2   : > { %v6244_v34 = vpop.f32.mrb[149].mxu1  ;;  %v6762_v14 = vrot.slane %v12154_v29, 1  ;;  %v16820_v1 = vadd.f32 %v16694_v49, %v6844_v52 }
 0x8e3   : > { %v12155_v28 = vpop.f32.mrb[150].mxu1  ;;  %v6982_v16 = vadd.f32 %v6981_v51, %v6951_v4  ;;  %v16831_v34 = vadd.f32 %v16694_v49, %v6845_v25  ;;  %v6914_v47 = vadd.f32 %v6913_v20, %v16816_v40 }
 0x8e4   : > { %v6764_v13 = vrot.slane %v12155_v28, 1  ;;  %v6246_v17 = vpop.f32.mrb[151].mxu1  ;;  %v6953_v3 = vmul.f32 %v16820_v1, %v16820_v1 }
 0x8e5   : > { %v6761_v38 = vrot.slane %v6246_v17, 1  ;;  %v6915_v17 = vadd.f32 %v6914_v47, %v16820_v1 }
 0x8e6   : > { %v6765_v31 = vsel %vm3439_vm1, %v6762_v14, %v6764_v13 }
 0x8e7   : > { %v6847_v30 = vadd.f32 %v6765_v31, %v16597_v12  ;;  %v6763_v58 = vsel %vm3439_vm1, %v6761_v38, %v6762_v14 }
 0x8e8   : > { %v6846_v41 = vadd.f32 %v6763_v58, %v16592_v36  ;;  %v6952_v36 = vmul.f32 %v16816_v40, %v16816_v40 }
 0x8e9   : > { %v12158_v27 = vpop.f32.mrb[152].mxu1  ;;  %v16846_v19 = vadd.f32 %v16694_v49, %v6847_v30 }
 0x8ea   : > { %v6259_v12 = vpop.f32.mrb[153].mxu1  ;;  %v6767_v26 = vrot.slane %v12158_v27, 1  ;;  %v6983_v33 = vadd.f32 %v6982_v16, %v6952_v36  ;;  %v16836_v14 = vadd.f32 %v16694_v49, %v6846_v41 }
 0x8eb   : > { %v12159_v53 = vpop.f32.mrb[154].mxu1 }
 0x8ec   : > { %v6769_v61 = vrot.slane %v12159_v53, 1  ;;  %v6261_v15 = vpop.f32.mrb[155].mxu1  ;;  %v6984_v38 = vadd.f32 %v6983_v33, %v6953_v3  ;;  %v6955_v43 = vmul.f32 %v16836_v14, %v16836_v14 }
 0x8ed   : > { %v6766_v48 = vrot.slane %v6261_v15, 1 }
 0x8ee   : > { %v6770_v29 = vsel %vm3439_vm1, %v6767_v26, %v6769_v61 }
 0x8ef   : > { %v6849_v52 = vadd.f32 %v6770_v29, %v16613_v10  ;;  %v6768_v60 = vsel %vm3439_vm1, %v6766_v48, %v6767_v26  ;;  %v6954_v10 = vmul.f32 %v16831_v34, %v16831_v34  ;;  %v6956_v48 = vmul.f32 %v16846_v19, %v16846_v19 }
 0x8f0   : > { %v6848_v28 = vadd.f32 %v6768_v60, %v16608_v21  ;;  %v6916_v21 = vadd.f32 %v6915_v17, %v16831_v34 }
 0x8f1   : > { %v12162_v13 = vpop.f32.mrb[156].mxu1  ;;  %v6985_v41 = vadd.f32 %v6984_v38, %v6954_v10  ;;  %v16861_v47 = vadd.f32 %v16694_v49, %v6849_v52 }
 0x8f2   : > { %v6274_v18 = vpop.f32.mrb[157].mxu1  ;;  %v6772_v31 = vrot.slane %v12162_v13, 1  ;;  %v16849_v51 = vadd.f32 %v16694_v49, %v6848_v28  ;;  %v6917_v20 = vadd.f32 %v6916_v21, %v16836_v14 }
 0x8f3   : > { %v12163_v24 = vpop.f32.mrb[158].mxu1  ;;  %v6986_v26 = vadd.f32 %v6985_v41, %v6955_v43  ;;  %v6958_v52 = vmul.f32 %v16861_v47, %v16861_v47 }
 0x8f4   : > { %v6774_v25 = vrot.slane %v12163_v24, 1  ;;  %v6276_v58 = vpop.f32.mrb[159].mxu1  ;;  %v6957_v30 = vmul.f32 %v16849_v51, %v16849_v51  ;;  %v6918_v3 = vadd.f32 %v6917_v20, %v16846_v19 }
 0x8f5   : > { %v6771_v4 = vrot.slane %v6276_v58, 1  ;;  %v6987_v33 = vadd.f32 %v6986_v26, %v6956_v48 }
 0x8f6   : > { %v6775_v27 = vsel %vm3439_vm1, %v6772_v31, %v6774_v25  ;;  %v6919_v28 = vadd.f32 %v6918_v3, %v16849_v51 }
 0x8f7   : > { %v6851_v12 = vadd.f32 %v6775_v27, %v16624_v37  ;;  %v6773_v53 = vsel %vm3439_vm1, %v6771_v4, %v6772_v31  ;;  %v6988_v38 = vadd.f32 %v6987_v33, %v6957_v30 }
 0x8f8   : > { %v6850_v16 = vadd.f32 %v6773_v53, %v16619_v32  ;;  %v6920_v25 = vadd.f32 %v6919_v28, %v16861_v47 }
 0x8f9   : > { %v12166_v61 = vpop.f32.mrb[160].mxu1  ;;  %v16877_v4 = vadd.f32 %v16694_v49, %v6851_v12  ;;  %v6989_v21 = vadd.f32 %v6988_v38, %v6958_v52 }
 0x8fa   : > { %v6289_v15 = vpop.f32.mrb[161].mxu1  ;;  %v6777_v29 = vrot.slane %v12166_v61, 1  ;;  %v16865_v13 = vadd.f32 %v16694_v49, %v6850_v16 }
 0x8fb   : > { %v12167_v36 = vpop.f32.mrb[162].mxu1  ;;  %v6960_v12 = vmul.f32 %v16877_v4, %v16877_v4 }
 0x8fc   : > { %v6779_v37 = vrot.slane %v12167_v36, 1  ;;  %v6291_v60 = vpop.f32.mrb[163].mxu1  ;;  %v6959_v58 = vmul.f32 %v16865_v13, %v16865_v13 }
 0x8fd   : > { %v6776_v32 = vrot.slane %v6291_v60, 1 }
 0x8fe   : > { %v6780_v17 = vsel %vm3439_vm1, %v6777_v29, %v6779_v37  ;;  %v6990_v26 = vadd.f32 %v6989_v21, %v6959_v58 }
 0x8ff   : > { %v6853_v18 = vadd.f32 %v6780_v17, %v16635_v0  ;;  %v6778_v24 = vsel %vm3439_vm1, %v6776_v32, %v6777_v29  ;;  %v6921_v0 = vadd.f32 %v6920_v25, %v16865_v13 }
 0x900   : > { %v6852_v10 = vadd.f32 %v6778_v24, %v16630_v11  ;;  %v6991_v33 = vadd.f32 %v6990_v26, %v6960_v12 }
 0x901   : > { %v12170_v31 = vpop.f32.mrb[164].mxu1  ;;  %v6922_v30 = vadd.f32 %v6921_v0, %v16877_v4  ;;  %v16893_v37 = vadd.f32 %v16694_v49, %v6853_v18 }
 0x902   : > { %v6304_v43 = vpop.f32.mrb[165].mxu1  ;;  %v16881_v27 = vadd.f32 %v16694_v49, %v6852_v10  ;;  %v6782_v11 = vrot.slane %v12170_v31, 1 }
 0x903   : > { %v12171_v41 = vpop.f32.mrb[166].mxu1 }
 0x904   : > { %v6784_v53 = vrot.slane %v12171_v41, 1  ;;  %v6306_v20 = vpop.f32.mrb[167].mxu1  ;;  %v6961_v36 = vmul.f32 %v16881_v27, %v16881_v27  ;;  %v6923_v60 = vadd.f32 %v6922_v30, %v16881_v27 }
 0x905   : > { %v6781_v16 = vrot.slane %v6306_v20, 1 }
 0x906   : > { %v6785_v61 = vsel %vm3439_vm1, %v6782_v11, %v6784_v53  ;;  %v6992_v17 = vadd.f32 %v6991_v33, %v6961_v36  ;;  %v6924_v31 = vadd.f32 %v6923_v60, %v16893_v37 }
 0x907   : > { %v6855_v15 = vadd.f32 %v6785_v61, %v16646_v9  ;;  %v6783_v48 = vsel %vm3439_vm1, %v6781_v16, %v6782_v11 }
 0x908   : > { %v6854_v3 = vadd.f32 %v6783_v48, %v16641_v7  ;;  %v6962_v7 = vmul.f32 %v16893_v37, %v16893_v37 }
 0x909   : > { %v12174_v29 = vpop.f32.mrb[168].mxu1  ;;  %v16906_v58 = vadd.f32 %v16694_v49, %v6855_v15 }
 0x90a   : > { %v16897_v9 = vadd.f32 %v16694_v49, %v6854_v3  ;;  %v6319_v32 = vpop.f32.mrb[169].mxu1  ;;  %v6787_v38 = vrot.slane %v12174_v29, 1  ;;  %v6993_v0 = vadd.f32 %v6992_v17, %v6962_v7 }
 0x90b   : > { %v12175_v28 = vpop.f32.mrb[170].mxu1  ;;  %v6964_v61 = vmul.f32 %v16906_v58, %v16906_v58 }
 0x90c   : > { %v6789_v24 = vrot.slane %v12175_v28, 1  ;;  %v6321_v10 = vpop.f32.mrb[171].mxu1  ;;  %v6963_v18 = vmul.f32 %v16897_v9, %v16897_v9  ;;  %v6925_v41 = vadd.f32 %v6924_v31, %v16897_v9 }
 0x90d   : > { %v6786_v52 = vrot.slane %v6321_v10, 1 }
 0x90e   : > { %v6790_v25 = vsel %vm3439_vm1, %v6787_v38, %v6789_v24  ;;  %v6994_v20 = vadd.f32 %v6993_v0, %v6963_v18  ;;  %v6926_v48 = vadd.f32 %v6925_v41, %v16906_v58 }
 0x90f   : > { %v6857_v43 = vadd.f32 %v6790_v25, %v16657_v2  ;;  %v6788_v21 = vsel %vm3439_vm1, %v6786_v52, %v6787_v38 }
 0x910   : > { %v6856_v11 = vadd.f32 %v6788_v21, %v16652_v45  ;;  %v6995_v60 = vadd.f32 %v6994_v20, %v6964_v61 }
 0x911   : > { %v12178_v53 = vpop.f32.mrb[172].mxu1  ;;  %v16921_v45 = vadd.f32 %v16694_v49, %v6857_v43 }
 0x912   : > { %v16913_v16 = vadd.f32 %v16694_v49, %v6856_v11  ;;  %v6334_v26 = vpop.f32.mrb[173].mxu1  ;;  %v6792_v12 = vrot.slane %v12178_v53, 1 }
 0x913   : > { %v12179_v15 = vpop.f32.mrb[174].mxu1  ;;  %v6966_v24 = vmul.f32 %v16921_v45, %v16921_v45 }
 0x914   : > { %v6965_v2 = vmul.f32 %v16913_v16, %v16913_v16  ;;  %v6794_v30 = vrot.slane %v12179_v15, 1  ;;  %v6336_v36 = vpop.f32.mrb[175].mxu1  ;;  %v6927_v29 = vadd.f32 %v6926_v48, %v16913_v16 }
 0x915   : > { %v6791_v3 = vrot.slane %v6336_v36, 1  ;;  %v13281_v36 = vld [vmem:[#allocation9 + $0xc4] ss:$12 sps:$4 sm:$0xff]  }
 0x916   : > { %v6795_v33 = vsel %vm3439_vm1, %v6792_v12, %v6794_v30  ;;  %v6996_v17 = vadd.f32 %v6995_v60, %v6965_v2  ;;  %v6928_v7 = vadd.f32 %v6927_v29, %v16921_v45  ;;  %7571 = vmatprep.subr.bf16.mxu0 %v13281_v36  ;;  %v13285_v29 = vld [vmem:[#allocation9 + $0xdc] ss:$12 sps:$4 sm:$0xff]   ;;  %v13283_v60 = vld [vmem:[#allocation9 + $0xd8] ss:$12 sps:$4 sm:$0xff]   ;;  %v10997_v36 = vld [vmem:[%s18229_s3 + $0x1] sm:$0x1] }
 0x917   : > { %v6859_v32 = vadd.f32 %v6795_v33, %v16668_v62  ;;  %v6793_v28 = vsel %vm3439_vm1, %v6791_v3, %v6792_v12  ;;  %v13279_v3 = vld [vmem:[#allocation9 + $0xc0] ss:$12 sps:$4 sm:$0xff]  }
 0x918   : > { %v6858_v38 = vadd.f32 %v6793_v28, %v16663_v57  ;;  %v6997_v18 = vadd.f32 %v6996_v17, %v6966_v24  ;;  %v13278_v33 = vld [vmem:[#allocation9 + $0x140] ss:$12 sps:$4 sm:$0xff]   ;;  %v13286_v28 = vld [vmem:[#allocation9 + $0xf0] ss:$12 sps:$4 sm:$0xff]  }
 0x919   : > { %v16931_v10 = vadd.f32 %v16694_v49, %v6859_v32  ;;  %v13288_v32 = vld [vmem:[#allocation9 + $0xf4] ss:$12 sps:$4 sm:$0xff]   ;;  %12225 = vmatprep.subr.bf16.mxu1 %v13278_v33  ;;  %v13291_v17 = vld [vmem:[#allocation9 + $0x10c] ss:$12 sps:$4 sm:$0xff]  }
 0x91a   : > { %v16934_v52 = vadd.f32 %v16694_v49, %v6858_v38  ;;  %12226 = vmatpush3.bf16.msra.mxu1 %v13278_v33  ;;  %v13289_v38 = vld [vmem:[#allocation9 + $0x108] ss:$12 sps:$4 sm:$0xff]   ;;  %v13292_v24 = vld [vmem:[#allocation9 + $0x120] ss:$12 sps:$4 sm:$0xff]  }
 0x91b   : > { %v6968_v57 = vmul.f32 %v16931_v10, %v16931_v10 }
 0x91c   : > { %v6929_v31 = vadd.f32 %v6928_v7, %v16934_v52  ;;  %v6967_v62 = vmul.f32 %v16934_v52, %v16934_v52  ;;  %v13298_v7 = vld [vmem:[#allocation9 + $0x13c] ss:$12 sps:$4 sm:$0xff]  }
 0x91e   : > { %v6930_v25 = vadd.f32 %v6929_v31, %v16931_v10  ;;  %v6998_v43 = vadd.f32 %v6997_v18, %v6967_v62  ;;  %v13296_v31 = vld [vmem:[#allocation9 + $0x138] ss:$12 sps:$4 sm:$0xff]   ;;  %v13301_v62 = vld [vmem:[#allocation9 + $0x154] ss:$12 sps:$4 sm:$0xff]  }
 0x91f   : > { %v13282_v18 = vld [vmem:[#allocation9 + $0x158] ss:$12 sps:$4 sm:$0xff]  }
 0x920   : > { %v6931_v21 = vrot.slane %v6930_v25, 4  ;;  %v6999_v41 = vadd.f32 %v6998_v43, %v6968_v57  ;;  %v13299_v57 = vld [vmem:[#allocation9 + $0x150] ss:$12 sps:$4 sm:$0xff]   ;;  %v13304_v43 = vld [vmem:[#allocation9 + $0x16c] ss:$12 sps:$4 sm:$0xff]   ;;  %12227 = vmatprep.subr.bf16.mxu1 %v13282_v18 }
 0x921   : > { %12228 = vmatpush3.bf16.msra.mxu1 %v13282_v18 }
 0x922   : > { %v6932_v0 = vadd.f32 %v6931_v21, %v6930_v25  ;;  %v7000_v11 = vrot.slane %v6999_v41, 4  ;;  %v13295_v25 = vld [vmem:[#allocation9 + $0x170] ss:$12 sps:$4 sm:$0xff]   ;;  %v13302_v21 = vld [vmem:[#allocation9 + $0x168] ss:$12 sps:$4 sm:$0xff]  }
 0x923   : > { %12229 = vmatprep.subr.bf16.mxu1 %v13295_v25 }
 0x924   : > { %v6933_v49 = vrot.slane %v6932_v0, 2  ;;  %v7001_v53 = vadd.f32 %v7000_v11, %v6999_v41  ;;  %v16945_v41 = vld [vmem:[#allocation9 + $0x8] ss:$12 sps:$4 sm:$0xff]  }
 0x925   : > { %12230 = vmatpush3.bf16.msra.mxu1 %v13295_v25 }
 0x926   : > { %v6934_v20 = vadd.f32 %v6933_v49, %v6932_v0  ;;  %v7002_v26 = vrot.slane %v7001_v53, 2  ;;  %12295 = vmatprep.subr.bf16.mxu1 %v16945_v41 }
 0x928   : > { %v6935_v61 = vrot.slane %v6934_v20, 1  ;;  %v7003_v15 = vadd.f32 %v7002_v26, %v7001_v53 }
 0x92a   : > { %v7004_v48 = vrot.slane %v7003_v15, 1  ;;  %v6936_v2 = vadd.f32 %v6935_v61, %v6934_v20 }
 0x92c   : > { %v7005_v12 = vadd.f32 %v7004_v48, %v7003_v15 }
 0x92e   : > { %v7006_v30 = vsel %vm3246_vm2, %v6936_v2, %v7005_v12  ;;  %v18614_v2 = vld [vmem:[#allocation45_spill] sm:$0xff] }
 0x92f   : > { %12213 = vmatmul.mubr.f32.vlgmr.msra.gmra.mrb[84].mxu0 %v7006_v30 }
 0x930   : > { %7603 = vmatprep.mubr.bf16.mxu0 %v16600_v50  ;;  %7572 = vmatpush1.bf16.msra.mxu0 %v13279_v3  ;;  %v13294_v50 = vld [vmem:[#allocation9 + $0x124] ss:$12 sps:$4 sm:$0xff]  }
 0x931   : > { %7573 = vmatprep.subr.bf16.mxu0 %v13285_v29 }
 0x934   : > { %7574 = vmatpush1.bf16.msra.mxu0 %v13283_v60  ;;  %v10998_v60 = vld [vmem:[%s18230_s4 + $0x1] sm:$0x1] }
 0x935   : > { %7575 = vmatprep.subr.bf16.mxu0 %v13288_v32  ;;  %v18615_v32 = vld [vmem:[#allocation59_spill] sm:$0xff] }
 0x938   : > { %7576 = vmatpush1.bf16.msra.mxu0 %v13286_v28 }
 0x939   : > { %7577 = vmatprep.subr.bf16.mxu0 %v13291_v17 }
 0x93c   : > { %7578 = vmatpush1.bf16.msra.mxu0 %v13289_v38 }
 0x93d   : > { %7579 = vmatprep.subr.bf16.mxu0 %v13294_v50 }
 0x940   : > { %7580 = vmatpush1.bf16.msra.mxu0 %v13292_v24 }
 0x941   : > { %7581 = vmatprep.subr.bf16.mxu0 %v13298_v7 }
 0x944   : > { %7582 = vmatpush1.bf16.msra.mxu0 %v13296_v31 }
 0x945   : > { %7583 = vmatprep.subr.bf16.mxu0 %v13301_v62 }
 0x948   : > { %7584 = vmatpush1.bf16.msra.mxu0 %v13299_v57 }
 0x949   : > { %7585 = vmatprep.subr.bf16.mxu0 %v13304_v43 }
 0x94c   : > { %7586 = vmatpush1.bf16.msra.mxu0 %v13302_v21 }
 0xa02   : > { %v7073_v0 = vpop.f32.mrb[84].mxu0 }
 0xa03   : > { %v7077_v11 = vmul.f32 0.001953125, %v7073_v0  ;;  %v12214_v49 = vpop.f32.mrb[85].mxu0 }
 0xa05   : > { %v7078_v53 = vmul.f32 %v7077_v11, %v7077_v11 }
 0xa07   : > { %v7080_v20 = vrot.slane %v7078_v53, 7 }
 0xa09   : > { %v7082_v26 = vsub.f32 %v7077_v11, %v7080_v20 }
 0xa0b   : > { %v7083_v61 = vmax.f32 %v7082_v26, 0.0 }
 0xa0d   : > { %v7084_v15 = vadd.f32 1e-05, %v7083_v61 }
 0xa0f   : > { %13371 = vrsqrt.f32 %v7084_v15 }
 0xa19   : > { %v13372_v48 = vpop.eup %13371 }
 0xa1a   : > { %v7095_v12 = vrot.slane %v13372_v48, %v18614_v2 }
 0xa1c   : > { %v7096_v30 = vcombine.high %v7095_v12, %v7095_v12 }
 0xa1e   : > { %v7103_v3 = vrot.slane %v7096_v30, %v18614_v2 }
 0xa20   : > { %v7105_v29 = vmul.f32 %v10997_v36, %v7103_v3 }
 0xa22   : > { %v7108_v33 = vmul.f32 %v7105_v29, %v7077_v11  ;;  %v7114_v28 = vrot.slane %v7105_v29, %v18615_v32 }
 0xa24   : > { %v7109_v17 = vsub.f32 %v10998_v60, %v7108_v33  ;;  %v7116_v38 = vmul.f32 %v7114_v28, %v16701_v5  ;;  %v7117_v50 = vmul.f32 %v7114_v28, %v16698_v55  ;;  %v7118_v24 = vmul.f32 %v7114_v28, %v16704_v22 }
 0xa25   : > { %v7119_v7 = vmul.f32 %v7114_v28, %v16722_v39  ;;  %v7120_v31 = vmul.f32 %v7114_v28, %v16725_v42  ;;  %v7121_v62 = vmul.f32 %v7114_v28, %v16738_v56  ;;  %v7122_v18 = vmul.f32 %v7114_v28, %v16742_v6 }
 0xa26   : > { %v7152_v57 = vrot.slane %v7109_v17, %v18615_v32  ;;  %v7123_v25 = vmul.f32 %v7114_v28, %v16754_v54  ;;  %v7124_v43 = vmul.f32 %v7114_v28, %v16759_v59  ;;  %v7125_v5 = vmul.f32 %v7114_v28, %v16770_v46 }
 0xa27   : > { %v7126_v55 = vmul.f32 %v7114_v28, %v16773_v8  ;;  %v7127_v22 = vmul.f32 %v7114_v28, %v16784_v63  ;;  %v7128_v39 = vmul.f32 %v7114_v28, %v16788_v44  ;;  %v7129_v42 = vmul.f32 %v7114_v28, %v16801_v35 }
 0xa28   : > { %v7130_v56 = vmul.f32 %v7114_v28, %v16804_v23  ;;  %v7131_v6 = vmul.f32 %v7114_v28, %v16816_v40  ;;  %v7132_v21 = vmul.f32 %v7114_v28, %v16820_v1  ;;  %v7133_v54 = vmul.f32 %v7114_v28, %v16831_v34 }
 0xa29   : > { %v7134_v59 = vmul.f32 %v7114_v28, %v16836_v14  ;;  %v7135_v46 = vmul.f32 %v7114_v28, %v16846_v19  ;;  %v7136_v8 = vmul.f32 %v7114_v28, %v16849_v51  ;;  %v7137_v63 = vmul.f32 %v7114_v28, %v16861_v47 }
 0xa2a   : > { %v7138_v44 = vmul.f32 %v7114_v28, %v16865_v13  ;;  %v7139_v35 = vmul.f32 %v7114_v28, %v16877_v4  ;;  %v7140_v23 = vmul.f32 %v7114_v28, %v16881_v27  ;;  %v7141_v40 = vmul.f32 %v7114_v28, %v16893_v37 }
 0xa2b   : > { %v7142_v1 = vmul.f32 %v7114_v28, %v16897_v9  ;;  %v7143_v34 = vmul.f32 %v7114_v28, %v16906_v58  ;;  %v7144_v14 = vmul.f32 %v7114_v28, %v16913_v16  ;;  %v7145_v19 = vmul.f32 %v7114_v28, %v16921_v45 }
 0xa2c   : > { %v7146_v51 = vmul.f32 %v7114_v28, %v16934_v52  ;;  %v7147_v47 = vmul.f32 %v7114_v28, %v16931_v10  ;;  %v16990_v0 = vadd.f32 %v7152_v57, %v7116_v38  ;;  %v16992_v13 = vadd.f32 %v7152_v57, %v7117_v50 }
 0xa2d   : > { %v16994_v4 = vadd.f32 %v7152_v57, %v7118_v24  ;;  %v16996_v27 = vadd.f32 %v7152_v57, %v7119_v7  ;;  %v16998_v37 = vadd.f32 %v7152_v57, %v7120_v31  ;;  %v7159_v9 = vadd.f32 %v7152_v57, %v7121_v62 }
 0xa2e   : > { %v7160_v58 = vadd.f32 %v7152_v57, %v7122_v18  ;;  %v7161_v11 = vadd.f32 %v7152_v57, %v7123_v25  ;;  %v7162_v16 = vadd.f32 %v7152_v57, %v7124_v43  ;;  %v7163_v49 = vadd.f32 %v7152_v57, %v7125_v5 }
 0xa2f   : > { %v7164_v45 = vadd.f32 %v7152_v57, %v7126_v55  ;;  %v7165_v53 = vadd.f32 %v7152_v57, %v7127_v22  ;;  %v7166_v52 = vadd.f32 %v7152_v57, %v7128_v39  ;;  %v7167_v20 = vadd.f32 %v7152_v57, %v7129_v42 }
 0xa30   : > { %v7168_v10 = vadd.f32 %v7152_v57, %v7130_v56  ;;  %v7169_v26 = vadd.f32 %v7152_v57, %v7131_v6  ;;  %v7170_v61 = vadd.f32 %v7152_v57, %v7132_v21  ;;  %v7171_v15 = vadd.f32 %v7152_v57, %v7133_v54 }
 0xa31   : > { %v7172_v48 = vadd.f32 %v7152_v57, %v7134_v59  ;;  %v7173_v2 = vadd.f32 %v7152_v57, %v7135_v46  ;;  %v7174_v12 = vadd.f32 %v7152_v57, %v7136_v8  ;;  %v7175_v30 = vadd.f32 %v7152_v57, %v7137_v63 }
 0xa32   : > { %v7176_v36 = vadd.f32 %v7152_v57, %v7138_v44  ;;  %v7177_v3 = vadd.f32 %v7152_v57, %v7139_v35  ;;  %v7178_v29 = vadd.f32 %v7152_v57, %v7140_v23  ;;  %v7179_v60 = vadd.f32 %v7152_v57, %v7141_v40 }
 0xa33   : > { %v7180_v33 = vadd.f32 %v7152_v57, %v7142_v1  ;;  %v7181_v32 = vadd.f32 %v7152_v57, %v7143_v34  ;;  %v7182_v28 = vadd.f32 %v7152_v57, %v7144_v14  ;;  %v7183_v17 = vadd.f32 %v7152_v57, %v7145_v19 }
 0xa34   : > { %v7184_v38 = vadd.f32 %v7152_v57, %v7146_v51  ;;  %v7185_v50 = vadd.f32 %v7152_v57, %v7147_v47  ;;  %v7186_v24 = vmax.f32 %v16990_v0, 0.0  ;;  %v7187_v7 = vmax.f32 %v16992_v13, 0.0 }
 0xa35   : > { %v7188_v31 = vmax.f32 %v16994_v4, 0.0  ;;  %v7189_v62 = vmax.f32 %v16996_v27, 0.0  ;;  %v7190_v18 = vmax.f32 %v16998_v37, 0.0  ;;  %v7191_v25 = vmax.f32 %v7159_v9, 0.0 }
 0xa36   : > { %v7192_v43 = vmax.f32 %v7160_v58, 0.0  ;;  %v7193_v5 = vmax.f32 %v7161_v11, 0.0  ;;  %v7194_v55 = vmax.f32 %v7162_v16, 0.0  ;;  %v7195_v22 = vmax.f32 %v7163_v49, 0.0 }
 0xa37   : > { %v7196_v39 = vmax.f32 %v7164_v45, 0.0  ;;  %v7197_v42 = vmax.f32 %v7165_v53, 0.0  ;;  %v7198_v56 = vmax.f32 %v7166_v52, 0.0  ;;  %v7199_v6 = vmax.f32 %v7167_v20, 0.0 }
 0xa38   : > { %v7200_v57 = vmax.f32 %v7168_v10, 0.0  ;;  %v7201_v21 = vmax.f32 %v7169_v26, 0.0  ;;  %v7202_v54 = vmax.f32 %v7170_v61, 0.0  ;;  %v7203_v59 = vmax.f32 %v7171_v15, 0.0 }
 0xa39   : > { %v7204_v46 = vmax.f32 %v7172_v48, 0.0  ;;  %v7205_v8 = vmax.f32 %v7173_v2, 0.0  ;;  %v7206_v63 = vmax.f32 %v7174_v12, 0.0  ;;  %v7207_v44 = vmax.f32 %v7175_v30, 0.0 }
 0xa3a   : > { %v7208_v35 = vmax.f32 %v7176_v36, 0.0  ;;  %v7209_v23 = vmax.f32 %v7177_v3, 0.0  ;;  %v7210_v40 = vmax.f32 %v7178_v29, 0.0  ;;  %v7211_v1 = vmax.f32 %v7179_v60, 0.0 }
 0xa3b   : > { %v7212_v34 = vmax.f32 %v7180_v33, 0.0  ;;  %v7213_v14 = vmax.f32 %v7181_v32, 0.0  ;;  %v7214_v19 = vmax.f32 %v7182_v28, 0.0  ;;  %v7215_v51 = vmax.f32 %v7183_v17, 0.0 }
 0xa3c   : > { %v7216_v47 = vmax.f32 %v7184_v38, 0.0  ;;  %v7217_v0 = vmax.f32 %v7185_v50, 0.0  ;;  %v7218_v13 = vpack.c.bf16 %v7187_v7, %v7186_v24  ;;  %v7219_v4 = vpack.c.bf16 %v7189_v62, %v7188_v31  ;;  %v13315_v7 = vld [vmem:[#allocation9 + $0x4] ss:$12 sps:$4 sm:$0xff]   ;;  %v13306_v31 = vld [vmem:[#allocation9 + $0x20] ss:$12 sps:$4 sm:$0xff]  }
 0xa3d   : > { %v7220_v27 = vpack.c.bf16 %v7191_v25, %v7190_v18  ;;  %v7221_v37 = vpack.c.bf16 %v7193_v5, %v7192_v43  ;;  %v7222_v9 = vpack.c.bf16 %v7195_v22, %v7194_v55  ;;  %v7223_v58 = vpack.c.bf16 %v7197_v42, %v7196_v39  ;;  %8277 = vmatprep.subr.bf16.mxu0 %v13315_v7  ;;  %v13313_v25 = vld [vmem:[#allocation9] ss:$12 sps:$4 sm:$0xff]   ;;  %v13307_v55 = vld [vmem:[#allocation9 + $0x38] ss:$12 sps:$4 sm:$0xff]   ;;  %v13308_v22 = vld [vmem:[#allocation9 + $0x50] ss:$12 sps:$4 sm:$0xff]  }
 0xa3e   : > { %v7224_v11 = vpack.c.bf16 %v7199_v6, %v7198_v56  ;;  %v7225_v16 = vpack.c.bf16 %v7201_v21, %v7200_v57  ;;  %v7226_v49 = vpack.c.bf16 %v7203_v59, %v7202_v54  ;;  %v7227_v45 = vpack.c.bf16 %v7205_v8, %v7204_v46  ;;  %v17014_v5 = vld [vmem:[#allocation2] sm:$0xff]  ;;  %v13312_v54 = vld [vmem:[#allocation9 + $0xb0] ss:$12 sps:$4 sm:$0xff]  }
 0xa3f   : > { %v7228_v53 = vpack.c.bf16 %v7207_v44, %v7206_v63  ;;  %v7229_v52 = vpack.c.bf16 %v7209_v23, %v7208_v35  ;;  %v7230_v20 = vpack.c.bf16 %v7211_v1, %v7210_v40  ;;  %v7231_v10 = vpack.c.bf16 %v7213_v14, %v7212_v34  ;;  %v13310_v56 = vld [vmem:[#allocation9 + $0x80] ss:$12 sps:$4 sm:$0xff]   ;;  %v13311_v21 = vld [vmem:[#allocation9 + $0x98] ss:$12 sps:$4 sm:$0xff]   ;;  %v13324_v63 = vld [vmem:[#allocation9 + $0x1c] ss:$12 sps:$4 sm:$0xff]  }
 0xa40   : > { %v7232_v26 = vpack.c.bf16 %v7215_v51, %v7214_v19  ;;  %v7233_v61 = vpack.c.bf16 %v7217_v0, %v7216_v47  ;;  %v7250_v15 = vrot.slane %v7218_v13, 4  ;;  %v7251_v48 = vrot.slane %v7219_v4, 4  ;;  %v13322_v8 = vld [vmem:[#allocation9 + $0x18] ss:$12 sps:$4 sm:$0xff]   ;;  %v13331_v47 = vld [vmem:[#allocation9 + $0x30] ss:$12 sps:$4 sm:$0xff]  }
 0xa41   : > { %v7252_v2 = vrot.slane %v7220_v27, 4  ;;  %v7253_v12 = vrot.slane %v7221_v37, 4  ;;  %v7254_v30 = vrot.slane %v7222_v9, 4  ;;  %v7255_v36 = vrot.slane %v7223_v58, 4  ;;  %v13318_v44 = vld [vmem:[#allocation9 + $0x184] ss:$12 sps:$4 sm:$0xff]  }
 0xa42   : > { %v7256_v3 = vrot.slane %v7224_v11, 4  ;;  %v7257_v29 = vrot.slane %v7225_v16, 4  ;;  %v7258_v60 = vrot.slane %v7226_v49, 4  ;;  %v7259_v33 = vrot.slane %v7227_v45, 4  ;;  %7282 = vst [vmem:[#allocation2 + $0x18] ss:$-4 sps:$4 sm:$0xff] %v7250_v15  }
 0xa43   : > { %7284 = vst [vmem:[#allocation2 + $0x28] ss:$-4 sps:$4 sm:$0xff] %v7251_v48   ;;  %v7260_v32 = vrot.slane %v7228_v53, 4  ;;  %v7261_v28 = vrot.slane %v7229_v52, 4  ;;  %v7262_v17 = vrot.slane %v7230_v20, 4  ;;  %v7263_v38 = vrot.slane %v7231_v10, 4 }
 0xa44   : > { %7286 = vst [vmem:[#allocation2 + $0x38] ss:$-4 sps:$4 sm:$0xff] %v7252_v2   ;;  %7288 = vst [vmem:[#allocation2 + $0x48] ss:$-4 sps:$4 sm:$0xff] %v7253_v12   ;;  %v7264_v50 = vrot.slane %v7232_v26, 4  ;;  %v7265_v24 = vrot.slane %v7233_v61, 4 }
 0xa45   : > { %7290 = vst [vmem:[#allocation2 + $0x58] ss:$-4 sps:$4 sm:$0xff] %v7254_v30   ;;  %7292 = vst [vmem:[#allocation2 + $0x68] ss:$-4 sps:$4 sm:$0xff] %v7255_v36   ;;  %v13333_v0 = vld [vmem:[#allocation9 + $0x34] ss:$12 sps:$4 sm:$0xff]  }
 0xa46   : > { %7294 = vst [vmem:[#allocation2 + $0x78] ss:$-4 sps:$4 sm:$0xff] %v7256_v3   ;;  %7296 = vst [vmem:[#allocation2 + $0x88] ss:$-4 sps:$4 sm:$0xff] %v7257_v29   ;;  %v13342_v49 = vld [vmem:[#allocation9 + $0x4c] ss:$12 sps:$4 sm:$0xff]  }
 0xa47   : > { %7298 = vst [vmem:[#allocation2 + $0x98] ss:$-4 sps:$4 sm:$0xff] %v7258_v60   ;;  %7300 = vst [vmem:[#allocation2 + $0xa8] ss:$-4 sps:$4 sm:$0xff] %v7259_v33   ;;  %v13340_v45 = vld [vmem:[#allocation9 + $0x48] ss:$12 sps:$4 sm:$0xff]  }
 0xa48   : > { %7302 = vst [vmem:[#allocation2 + $0xb8] ss:$-4 sps:$4 sm:$0xff] %v7260_v32   ;;  %7304 = vst [vmem:[#allocation2 + $0xc8] ss:$-4 sps:$4 sm:$0xff] %v7261_v28   ;;  %v13346_v61 = vld [vmem:[#allocation9 + $0x60] ss:$12 sps:$4 sm:$0xff]  }
 0xa49   : > { %7306 = vst [vmem:[#allocation2 + $0xd8] ss:$-4 sps:$4 sm:$0xff] %v7262_v17   ;;  %7308 = vst [vmem:[#allocation2 + $0xe8] ss:$-4 sps:$4 sm:$0xff] %v7263_v38   ;;  %v17005_v62 = vld [vmem:[#allocation2 + $0x10] sm:$0xff]  ;;  %v17007_v18 = vld [vmem:[#allocation2 + $0x18] sm:$0xff] }
 0xa4a   : > { %7313 = vst [vmem:[#allocation2 + $0x108] ss:$-4 sps:$4 sm:$0xff] %v7265_v24   ;;  %7310 = vst [vmem:[#allocation2 + $0xf8] ss:$-4 sps:$4 sm:$0xff] %v7264_v50   ;;  %7604 = vmatmul.mubr.bf16.vlgmr.msra.gmra.mrb[88].mxu0 %v17005_v62  ;;  %12231 = vmatprep.mubr.bf16.mxu1 %v17005_v62  ;;  %v17012_v43 = vld [vmem:[#allocation2 + $0x20] sm:$0xff]  ;;  %v17020_v39 = vld [vmem:[#allocation2 + $0x28] sm:$0xff] }
 0xa4b   : > { %12232 = vmatmul.mubr.bf16.vlgmr.msra.gmra.mrb[0].mxu1 %v17007_v18  ;;  %7612 = vmatprep.mubr.bf16.mxu0 %v17014_v5  ;;  %v17023_v42 = vld [vmem:[#allocation2 + $0x30] sm:$0xff]  ;;  %v17028_v6 = vld [vmem:[#allocation2 + $0x38] sm:$0xff]  ;;  %v17031_v57 = vld [vmem:[#allocation2 + $0x40] sm:$0xff] }
 0xa4c   : > { %12296 = vmatpush3.bf16.msra.mxu1 %v16945_v41  ;;  %12235 = vmatprep.mubr.bf16.mxu1 %v17012_v43  ;;  %v13309_v41 = vld [vmem:[#allocation9 + $0x68] ss:$12 sps:$4 sm:$0xff]   ;;  %v17044_v35 = vld [vmem:[#allocation2 + $0x58] sm:$0xff]  ;;  %v17047_v23 = vld [vmem:[#allocation2 + $0x60] sm:$0xff] }
 0xa4d   : > { %12297 = vmatprep.subr.bf16.mxu1 %v13306_v31  ;;  %8278 = vmatpush1.bf16.msra.mxu0 %v13313_v25  ;;  %v17036_v59 = vld [vmem:[#allocation2 + $0x48] sm:$0xff]  ;;  %v17039_v46 = vld [vmem:[#allocation2 + $0x50] sm:$0xff]  ;;  %v17060_v34 = vld [vmem:[#allocation2 + $0x78] sm:$0xff] }
 0xa4e   : > { %8279 = vmatprep.subr.bf16.mxu0 %v13324_v63  ;;  %v17052_v40 = vld [vmem:[#allocation2 + $0x68] sm:$0xff]  ;;  %v17055_v1 = vld [vmem:[#allocation2 + $0x70] sm:$0xff]  ;;  %v17063_v14 = vld [vmem:[#allocation2 + $0x80] sm:$0xff] }
 0xa4f   : > { %v17068_v19 = vld [vmem:[#allocation2 + $0x88] sm:$0xff]  ;;  %v17071_v51 = vld [vmem:[#allocation2 + $0x90] sm:$0xff]  ;;  %v17076_v13 = vld [vmem:[#allocation2 + $0x98] sm:$0xff] }
 0xa50   : > { %12298 = vmatpush3.bf16.msra.mxu1 %v13306_v31  ;;  %v17079_v4 = vld [vmem:[#allocation2 + $0xa0] sm:$0xff]  ;;  %v17084_v27 = vld [vmem:[#allocation2 + $0xa8] sm:$0xff]  ;;  %v17087_v37 = vld [vmem:[#allocation2 + $0xb0] sm:$0xff] }
 0xa51   : > { %12299 = vmatprep.subr.bf16.mxu1 %v13307_v55  ;;  %8280 = vmatpush1.bf16.msra.mxu0 %v13322_v8  ;;  %v17092_v9 = vld [vmem:[#allocation2 + $0xb8] sm:$0xff]  ;;  %v17095_v58 = vld [vmem:[#allocation2 + $0xc0] sm:$0xff]  ;;  %v17100_v11 = vld [vmem:[#allocation2 + $0xc8] sm:$0xff] }
 0xa52   : > { %7613 = vmatmul.mubr.bf16.gmra.mrb[92].mxu0 %v17007_v18  ;;  %8281 = vmatprep.subr.bf16.mxu0 %v13333_v0  ;;  %v17103_v16 = vld [vmem:[#allocation2 + $0xd0] sm:$0xff]  ;;  %v17108_v53 = vld [vmem:[#allocation2 + $0xd8] sm:$0xff]  ;;  %v17111_v52 = vld [vmem:[#allocation2 + $0xe0] sm:$0xff] }
 0xa53   : > { %12236 = vmatmul.mubr.bf16.gmra.mrb[4].mxu1 %v17020_v39  ;;  %7620 = vmatprep.mubr.bf16.mxu0 %v17014_v5  ;;  %v17116_v20 = vld [vmem:[#allocation2 + $0xe8] sm:$0xff]  ;;  %v17119_v10 = vld [vmem:[#allocation2 + $0xf0] sm:$0xff]  ;;  %v17124_v26 = vld [vmem:[#allocation2 + $0xf8] sm:$0xff] }
 0xa54   : > { %12239 = vmatprep.mubr.bf16.mxu1 %v17023_v42  ;;  %12300 = vmatpush3.bf16.msra.mxu1 %v13307_v55  ;;  %v13348_v15 = vld [vmem:[#allocation9 + $0x64] ss:$12 sps:$4 sm:$0xff]   ;;  %v13354_v12 = vld [vmem:[#allocation9 + $0x7c] ss:$12 sps:$4 sm:$0xff]   ;;  %v13357_v3 = vld [vmem:[#allocation9 + $0x94] ss:$12 sps:$4 sm:$0xff]  }
 0xa55   : > { %12301 = vmatprep.subr.bf16.mxu1 %v13308_v22  ;;  %8282 = vmatpush1.bf16.msra.mxu0 %v13331_v47  ;;  %v17127_v48 = vld [vmem:[#allocation2 + $0x100] sm:$0xff]  ;;  %v17132_v30 = vld [vmem:[#allocation2 + $0x108] sm:$0xff]  ;;  %v13355_v36 = vld [vmem:[#allocation9 + $0x90] ss:$12 sps:$4 sm:$0xff]  }
 0xa56   : > { %8283 = vmatprep.subr.bf16.mxu0 %v13342_v49  ;;  %v13352_v2 = vld [vmem:[#allocation9 + $0x78] ss:$12 sps:$4 sm:$0xff]   ;;  %v13358_v29 = vld [vmem:[#allocation9 + $0xa8] ss:$12 sps:$4 sm:$0xff]   ;;  %v13316_v33 = vld [vmem:[#allocation9 + $0x180] ss:$12 sps:$4 sm:$0xff]  }
 0xa57   : > { %v13360_v60 = vld [vmem:[#allocation9 + $0xac] ss:$12 sps:$4 sm:$0xff]   ;;  %v13321_v32 = vld [vmem:[#allocation9 + $0x19c] ss:$12 sps:$4 sm:$0xff]   ;;  %v13327_v17 = vld [vmem:[#allocation9 + $0x1b4] ss:$12 sps:$4 sm:$0xff]  }
 0xa58   : > { %12302 = vmatpush3.bf16.msra.mxu1 %v13308_v22  ;;  %v13319_v28 = vld [vmem:[#allocation9 + $0x198] ss:$12 sps:$4 sm:$0xff]   ;;  %v13325_v38 = vld [vmem:[#allocation9 + $0x1b0] ss:$12 sps:$4 sm:$0xff]   ;;  %v13328_v24 = vld [vmem:[#allocation9 + $0x1c8] ss:$12 sps:$4 sm:$0xff]  }
 0xa59   : > { %12303 = vmatprep.subr.bf16.mxu1 %v13309_v41  ;;  %8284 = vmatpush1.bf16.msra.mxu0 %v13340_v45  ;;  %v13330_v50 = vld [vmem:[#allocation9 + $0x1cc] ss:$12 sps:$4 sm:$0xff]   ;;  %v13336_v7 = vld [vmem:[#allocation9 + $0x1e4] ss:$12 sps:$4 sm:$0xff]   ;;  %v13339_v25 = vld [vmem:[#allocation9 + $0x1fc] ss:$12 sps:$4 sm:$0xff]  }
 0xa5a   : > { %7621 = vmatmul.mubr.bf16.gmra.mrb[96].mxu0 %v17012_v43  ;;  %8285 = vmatprep.subr.bf16.mxu0 %v13348_v15  ;;  %v13334_v31 = vld [vmem:[#allocation9 + $0x1e0] ss:$12 sps:$4 sm:$0xff]   ;;  %v13337_v55 = vld [vmem:[#allocation9 + $0x1f8] ss:$12 sps:$4 sm:$0xff]  }
 0xa5b   : > { %12240 = vmatmul.mubr.bf16.gmra.mrb[8].mxu1 %v17028_v6  ;;  %7629 = vmatprep.mubr.bf16.mxu0 %v17014_v5  ;;  %v13345_v22 = vld [vmem:[#allocation9 + $0x214] ss:$12 sps:$4 sm:$0xff]  }
 0xa5c   : > { %12243 = vmatprep.mubr.bf16.mxu1 %v17031_v57  ;;  %12304 = vmatpush3.bf16.msra.mxu1 %v13309_v41  ;;  %v13343_v41 = vld [vmem:[#allocation9 + $0x210] ss:$12 sps:$4 sm:$0xff]  }
 0xa5d   : > { %12305 = vmatprep.subr.bf16.mxu1 %v13310_v56  ;;  %8286 = vmatpush1.bf16.msra.mxu0 %v13346_v61 }
 0xa5e   : > { %8287 = vmatprep.subr.bf16.mxu0 %v13354_v12 }
 0xa60   : > { %12306 = vmatpush3.bf16.msra.mxu1 %v13310_v56  ;;  %v13351_v56 = vld [vmem:[#allocation9 + $0x22c] ss:$12 sps:$4 sm:$0xff]  }
 0xa61   : > { %12307 = vmatprep.subr.bf16.mxu1 %v13311_v21  ;;  %8288 = vmatpush1.bf16.msra.mxu0 %v13352_v2 }
 0xa62   : > { %7630 = vmatmul.mubr.bf16.gmra.mrb[100].mxu0 %v17020_v39  ;;  %8289 = vmatprep.subr.bf16.mxu0 %v13357_v3 }
 0xa63   : > { %12244 = vmatmul.mubr.bf16.gmra.mrb[12].mxu1 %v17036_v59  ;;  %7637 = vmatprep.mubr.bf16.mxu0 %v17014_v5 }
 0xa64   : > { %12247 = vmatprep.mubr.bf16.mxu1 %v17039_v46  ;;  %12308 = vmatpush3.bf16.msra.mxu1 %v13311_v21  ;;  %v13349_v21 = vld [vmem:[#allocation9 + $0x228] ss:$12 sps:$4 sm:$0xff]  }
 0xa65   : > { %12309 = vmatprep.subr.bf16.mxu1 %v13312_v54  ;;  %8290 = vmatpush1.bf16.msra.mxu0 %v13355_v36 }
 0xa66   : > { %8291 = vmatprep.subr.bf16.mxu0 %v13360_v60 }
 0xa68   : > { %12310 = vmatpush3.bf16.msra.mxu1 %v13312_v54  ;;  %v17153_v54 = vld [vmem:[#allocation9 + $0x188] ss:$12 sps:$4 sm:$0xff]  }
 0xa69   : > { %9048 = vmatprep.subr.bf16.mxu1 %v13318_v44  ;;  %8292 = vmatpush1.bf16.msra.mxu0 %v13358_v29 }
 0xa6a   : > { %7638 = vmatmul.mubr.bf16.gmra.mrb[104].mxu0 %v17023_v42 }
 0xa6b   : > { %12248 = vmatmul.mubr.bf16.gmra.mrb[16].mxu1 %v17044_v35  ;;  %7646 = vmatprep.mubr.bf16.mxu0 %v17014_v5 }
 0xa6c   : > { %12251 = vmatprep.mubr.bf16.mxu1 %v17047_v23 }
 0xa72   : > { %7647 = vmatmul.mubr.bf16.gmra.mrb[108].mxu0 %v17028_v6 }
 0xa73   : > { %12252 = vmatmul.mubr.bf16.gmra.mrb[20].mxu1 %v17052_v40  ;;  %7654 = vmatprep.mubr.bf16.mxu0 %v17014_v5 }
 0xa74   : > { %12255 = vmatprep.mubr.bf16.mxu1 %v17055_v1 }
 0xa7a   : > { %7655 = vmatmul.mubr.bf16.gmra.mrb[112].mxu0 %v17031_v57 }
 0xa7b   : > { %12256 = vmatmul.mubr.bf16.gmra.mrb[24].mxu1 %v17060_v34  ;;  %7663 = vmatprep.mubr.bf16.mxu0 %v17014_v5 }
 0xa7c   : > { %12259 = vmatprep.mubr.bf16.mxu1 %v17063_v14 }
 0xa82   : > { %7664 = vmatmul.mubr.bf16.gmra.mrb[116].mxu0 %v17036_v59 }
 0xa83   : > { %12260 = vmatmul.mubr.bf16.gmra.mrb[28].mxu1 %v17068_v19  ;;  %7671 = vmatprep.mubr.bf16.mxu0 %v17014_v5 }
 0xa84   : > { %12263 = vmatprep.mubr.bf16.mxu1 %v17071_v51 }
 0xa8a   : > { %7672 = vmatmul.mubr.bf16.gmra.mrb[120].mxu0 %v17039_v46 }
 0xa8b   : > { %12264 = vmatmul.mubr.bf16.gmra.mrb[32].mxu1 %v17076_v13  ;;  %7680 = vmatprep.mubr.bf16.mxu0 %v17014_v5 }
 0xa8c   : > { %12267 = vmatprep.mubr.bf16.mxu1 %v17079_v4 }
 0xa92   : > { %7681 = vmatmul.mubr.bf16.gmra.mrb[124].mxu0 %v17044_v35 }
 0xa93   : > { %12268 = vmatmul.mubr.bf16.gmra.mrb[36].mxu1 %v17084_v27  ;;  %7688 = vmatprep.mubr.bf16.mxu0 %v17014_v5 }
 0xa94   : > { %12271 = vmatprep.mubr.bf16.mxu1 %v17087_v37 }
 0xa9a   : > { %7689 = vmatmul.mubr.bf16.gmra.mrb[128].mxu0 %v17047_v23 }
 0xa9b   : > { %12272 = vmatmul.mubr.bf16.gmra.mrb[40].mxu1 %v17092_v9  ;;  %7697 = vmatprep.mubr.bf16.mxu0 %v17014_v5 }
 0xa9c   : > { %12275 = vmatprep.mubr.bf16.mxu1 %v17095_v58 }
 0xaa2   : > { %7698 = vmatmul.mubr.bf16.gmra.mrb[132].mxu0 %v17052_v40 }
 0xaa3   : > { %12276 = vmatmul.mubr.bf16.gmra.mrb[44].mxu1 %v17100_v11  ;;  %7705 = vmatprep.mubr.bf16.mxu0 %v17014_v5 }
 0xaa4   : > { %12279 = vmatprep.mubr.bf16.mxu1 %v17103_v16 }
 0xaaa   : > { %7706 = vmatmul.mubr.bf16.gmra.mrb[136].mxu0 %v17055_v1 }
 0xaab   : > { %12280 = vmatmul.mubr.bf16.gmra.mrb[48].mxu1 %v17108_v53  ;;  %7714 = vmatprep.mubr.bf16.mxu0 %v17014_v5 }
 0xaac   : > { %12283 = vmatprep.mubr.bf16.mxu1 %v17111_v52 }
 0xab2   : > { %7715 = vmatmul.mubr.bf16.gmra.mrb[140].mxu0 %v17060_v34 }
 0xab3   : > { %12284 = vmatmul.mubr.bf16.gmra.mrb[52].mxu1 %v17116_v20  ;;  %7722 = vmatprep.mubr.bf16.mxu0 %v17014_v5 }
 0xab4   : > { %12287 = vmatprep.mubr.bf16.mxu1 %v17119_v10 }
 0xaba   : > { %7723 = vmatmul.mubr.bf16.gmra.mrb[144].mxu0 %v17063_v14 }
 0xabb   : > { %12288 = vmatmul.mubr.bf16.gmra.mrb[56].mxu1 %v17124_v26  ;;  %7731 = vmatprep.mubr.bf16.mxu0 %v17014_v5 }
 0xabc   : > { %12291 = vmatprep.mubr.bf16.mxu1 %v17127_v48 }
 0xac2   : > { %7732 = vmatmul.mubr.bf16.gmra.mrb[148].mxu0 %v17068_v19 }
 0xac3   : > { %12292 = vmatmul.mubr.bf16.gmra.mrb[60].mxu1 %v17132_v30  ;;  %7739 = vmatprep.mubr.bf16.mxu0 %v17014_v5 }
 0xac4   : > { %12311 = vmatprep.mubr.bf16.mxu1 %v17014_v5 }
 0xaca   : > { %7740 = vmatmul.mubr.bf16.gmra.mrb[152].mxu0 %v17071_v51 }
 0xacb   : > { %12312 = vmatmul.mubr.bf16.vlgmr.msra.gmra.mrb[0].mxu1 %v17014_v5  ;;  %7748 = vmatprep.mubr.bf16.mxu0 %v17014_v5 }
 0xacc   : > { %9049 = vmatpush1.bf16.msra.mxu1 %v13316_v33  ;;  %12315 = vmatprep.mubr.bf16.mxu1 %v17005_v62 }
 0xacd   : > { %9050 = vmatprep.subr.bf16.mxu1 %v13321_v32 }
 0xad0   : > { %9051 = vmatpush1.bf16.msra.mxu1 %v13319_v28 }
 0xad1   : > { %9052 = vmatprep.subr.bf16.mxu1 %v13327_v17 }
 0xad2   : > { %7749 = vmatmul.mubr.bf16.gmra.mrb[156].mxu0 %v17076_v13 }
 0xad3   : > { %12316 = vmatmul.mubr.bf16.gmra.mrb[4].mxu1 %v17007_v18  ;;  %7756 = vmatprep.mubr.bf16.mxu0 %v17014_v5 }
 0xad4   : > { %12319 = vmatprep.mubr.bf16.mxu1 %v17012_v43  ;;  %9053 = vmatpush1.bf16.msra.mxu1 %v13325_v38 }
 0xad5   : > { %9054 = vmatprep.subr.bf16.mxu1 %v13330_v50 }
 0xad8   : > { %9055 = vmatpush1.bf16.msra.mxu1 %v13328_v24 }
 0xad9   : > { %9056 = vmatprep.subr.bf16.mxu1 %v13336_v7 }
 0xada   : > { %7757 = vmatmul.mubr.bf16.gmra.mrb[160].mxu0 %v17079_v4 }
 0xadb   : > { %12320 = vmatmul.mubr.bf16.gmra.mrb[8].mxu1 %v17020_v39  ;;  %7765 = vmatprep.mubr.bf16.mxu0 %v17014_v5 }
 0xadc   : > { %12323 = vmatprep.mubr.bf16.mxu1 %v17023_v42  ;;  %9057 = vmatpush1.bf16.msra.mxu1 %v13334_v31  ;;  %v13362_v31 = vld [vmem:[#allocation9 + $0x1a0] ss:$12 sps:$4 sm:$0xff]  }
 0xadd   : > { %9058 = vmatprep.subr.bf16.mxu1 %v13339_v25  ;;  %v13363_v25 = vld [vmem:[#allocation9 + $0x1b8] ss:$12 sps:$4 sm:$0xff]  }
 0xae0   : > { %9059 = vmatpush1.bf16.msra.mxu1 %v13337_v55 }
 0xae1   : > { %9060 = vmatprep.subr.bf16.mxu1 %v13345_v22 }
 0xae2   : > { %7766 = vmatmul.mubr.bf16.gmra.mrb[164].mxu0 %v17084_v27 }
 0xae3   : > { %12324 = vmatmul.mubr.bf16.gmra.mrb[12].mxu1 %v17028_v6  ;;  %7773 = vmatprep.mubr.bf16.mxu0 %v17014_v5 }
 0xae4   : > { %12327 = vmatprep.mubr.bf16.mxu1 %v17031_v57  ;;  %9061 = vmatpush1.bf16.msra.mxu1 %v13343_v41 }
 0xae5   : > { %9062 = vmatprep.subr.bf16.mxu1 %v13351_v56  ;;  %v13364_v56 = vld [vmem:[#allocation9 + $0x1d0] ss:$12 sps:$4 sm:$0xff]  }
 0xae8   : > { %9063 = vmatpush1.bf16.msra.mxu1 %v13349_v21 }
 0xae9   : > { %12375 = vmatprep.subr.bf16.mxu1 %v17153_v54 }
 0xaea   : > { %7774 = vmatmul.mubr.bf16.gmra.mrb[168].mxu0 %v17087_v37 }
 0xaeb   : > { %12328 = vmatmul.mubr.bf16.gmra.mrb[16].mxu1 %v17036_v59  ;;  %7782 = vmatprep.mubr.bf16.mxu0 %v17014_v5 }
 0xaec   : > { %12331 = vmatprep.mubr.bf16.mxu1 %v17039_v46 }
 0xaf2   : > { %7783 = vmatmul.mubr.bf16.gmra.mrb[172].mxu0 %v17092_v9 }
 0xaf3   : > { %12332 = vmatmul.mubr.bf16.gmra.mrb[20].mxu1 %v17044_v35  ;;  %7790 = vmatprep.mubr.bf16.mxu0 %v17014_v5 }
 0xaf4   : > { %12335 = vmatprep.mubr.bf16.mxu1 %v17047_v23 }
 0xafa   : > { %7791 = vmatmul.mubr.bf16.gmra.mrb[176].mxu0 %v17095_v58 }
 0xafb   : > { %12336 = vmatmul.mubr.bf16.gmra.mrb[24].mxu1 %v17052_v40  ;;  %7799 = vmatprep.mubr.bf16.mxu0 %v17014_v5 }
 0xafc   : > { %12339 = vmatprep.mubr.bf16.mxu1 %v17055_v1 }
 0xb02   : > { %7800 = vmatmul.mubr.bf16.gmra.mrb[180].mxu0 %v17100_v11 }
 0xb03   : > { %12340 = vmatmul.mubr.bf16.gmra.mrb[28].mxu1 %v17060_v34  ;;  %7807 = vmatprep.mubr.bf16.mxu0 %v17014_v5 }
 0xb04   : > { %12343 = vmatprep.mubr.bf16.mxu1 %v17063_v14 }
 0xb0a   : > { %7808 = vmatmul.mubr.bf16.gmra.mrb[184].mxu0 %v17103_v16 }
 0xb0b   : > { %12344 = vmatmul.mubr.bf16.gmra.mrb[32].mxu1 %v17068_v19  ;;  %7816 = vmatprep.mubr.bf16.mxu0 %v17014_v5 }
 0xb0c   : > { %12347 = vmatprep.mubr.bf16.mxu1 %v17071_v51 }
 0xb12   : > { %7817 = vmatmul.mubr.bf16.gmra.mrb[188].mxu0 %v17108_v53 }
 0xb13   : > { %12348 = vmatmul.mubr.bf16.gmra.mrb[36].mxu1 %v17076_v13  ;;  %7824 = vmatprep.mubr.bf16.mxu0 %v17014_v5 }
 0xb14   : > { %12351 = vmatprep.mubr.bf16.mxu1 %v17079_v4 }
 0xb1a   : > { %7825 = vmatmul.mubr.bf16.gmra.mrb[192].mxu0 %v17111_v52 }
 0xb1b   : > { %12352 = vmatmul.mubr.bf16.gmra.mrb[40].mxu1 %v17084_v27  ;;  %7833 = vmatprep.mubr.bf16.mxu0 %v17014_v5 }
 0xb1c   : > { %12355 = vmatprep.mubr.bf16.mxu1 %v17087_v37 }
 0xb1d   : > { %v17184_v8 = vpop.f32.mrb[88].mxu0 }
 0xb1e   : > { %v7607_v63 = vpop.f32.mrb[89].mxu0 }
 0xb1f   : > { %v17186_v44 = vpop.f32.mrb[90].mxu0 }
 0xb20   : > { %v17188_v47 = vpop.f32.mrb[91].mxu0 }
 0xb22   : > { %7834 = vmatmul.mubr.bf16.gmra.mrb[196].mxu0 %v17116_v20 }
 0xb23   : > { %12356 = vmatmul.mubr.bf16.gmra.mrb[44].mxu1 %v17092_v9  ;;  %7841 = vmatprep.mubr.bf16.mxu0 %v17014_v5 }
 0xb24   : > { %12359 = vmatprep.mubr.bf16.mxu1 %v17095_v58 }
 0xb25   : > { %v17194_v0 = vpop.f32.mrb[92].mxu0 }
 0xb26   : > { %v17196_v49 = vpop.f32.mrb[93].mxu0 }
 0xb27   : > { %v7618_v45 = vpop.f32.mrb[94].mxu0 }
 0xb28   : > { %v7619_v61 = vpop.f32.mrb[95].mxu0 }
 0xb2a   : > { %7842 = vmatmul.mubr.bf16.gmra.mrb[200].mxu0 %v17119_v10 }
 0xb2b   : > { %12360 = vmatmul.mubr.bf16.gmra.mrb[48].mxu1 %v17100_v11  ;;  %7850 = vmatprep.mubr.bf16.mxu0 %v17014_v5 }
 0xb2c   : > { %12363 = vmatprep.mubr.bf16.mxu1 %v17103_v16 }
 0xb2d   : > { %v17202_v15 = vpop.f32.mrb[96].mxu0 }
 0xb2e   : > { %v7624_v2 = vpop.f32.mrb[97].mxu0 }
 0xb2f   : > { %v17204_v12 = vpop.f32.mrb[98].mxu0 }
 0xb30   : > { %v17206_v36 = vpop.f32.mrb[99].mxu0 }
 0xb32   : > { %7851 = vmatmul.mubr.bf16.gmra.mrb[204].mxu0 %v17124_v26 }
 0xb33   : > { %12364 = vmatmul.mubr.bf16.gmra.mrb[52].mxu1 %v17108_v53  ;;  %7858 = vmatprep.mubr.bf16.mxu0 %v17014_v5 }
 0xb34   : > { %12367 = vmatprep.mubr.bf16.mxu1 %v17111_v52 }
 0xb35   : > { %v17212_v3 = vpop.f32.mrb[100].mxu0 }
 0xb36   : > { %v17214_v29 = vpop.f32.mrb[101].mxu0 }
 0xb37   : > { %v7635_v60 = vpop.f32.mrb[102].mxu0 }
 0xb38   : > { %v7636_v33 = vpop.f32.mrb[103].mxu0 }
 0xb3a   : > { %7859 = vmatmul.mubr.bf16.gmra.mrb[208].mxu0 %v17127_v48 }
 0xb3b   : > { %12368 = vmatmul.mubr.bf16.gmra.mrb[56].mxu1 %v17116_v20  ;;  %7867 = vmatprep.mubr.bf16.mxu0 %v17014_v5 }
 0xb3c   : > { %12371 = vmatprep.mubr.bf16.mxu1 %v17119_v10 }
 0xb3d   : > { %v17220_v32 = vpop.f32.mrb[104].mxu0 }
 0xb3e   : > { %v7641_v28 = vpop.f32.mrb[105].mxu0 }
 0xb3f   : > { %v17222_v17 = vpop.f32.mrb[106].mxu0 }
 0xb40   : > { %v17224_v38 = vpop.f32.mrb[107].mxu0 }
 0xb42   : > { %7868 = vmatmul.mubr.bf16.gmra.mrb[212].mxu0 %v17132_v30 }
 0xb43   : > { %12372 = vmatmul.mubr.bf16.gmra.mrb[60].mxu1 %v17124_v26  ;;  %8309 = vmatprep.mubr.bf16.mxu0 %v17014_v5 }
 0xb44   : > { %9080 = vmatprep.mubr.bf16.mxu1 %v17014_v5 }
 0xb45   : > { %v17230_v48 = vpop.f32.mrb[108].mxu0 }
 0xb46   : > { %v17232_v50 = vpop.f32.mrb[109].mxu0 }
 0xb47   : > { %v7652_v24 = vpop.f32.mrb[110].mxu0 }
 0xb48   : > { %v7653_v7 = vpop.f32.mrb[111].mxu0 }
 0xb4a   : > { %8310 = vmatmul.mubr.bf16.vlgmr.msra.gmra.mrb[216].mxu0 %v17014_v5 }
 0xb4b   : > { %9081 = vmatmul.mubr.bf16.vlgmr.msra.gmra.mrb[176].mxu1 %v17012_v43  ;;  %8318 = vmatprep.mubr.bf16.mxu0 %v17014_v5 }
 0xb4c   : > { %12376 = vmatpush3.bf16.msra.mxu1 %v17153_v54  ;;  %9089 = vmatprep.mubr.bf16.mxu1 %v17014_v5  ;;  %v13365_v54 = vld [vmem:[#allocation9 + $0x1e8] ss:$12 sps:$4 sm:$0xff]  }
 0xb4d   : > { %v17239_v30 = vpop.f32.mrb[112].mxu0  ;;  %12377 = vmatprep.subr.bf16.mxu1 %v13362_v31 }
 0xb4e   : > { %v7658_v55 = vpop.f32.mrb[113].mxu0 }
 0xb4f   : > { %v17241_v22 = vpop.f32.mrb[114].mxu0 }
 0xb50   : > { %v17243_v41 = vpop.f32.mrb[115].mxu0  ;;  %12378 = vmatpush3.bf16.msra.mxu1 %v13362_v31 }
 0xb51   : > { %12379 = vmatprep.subr.bf16.mxu1 %v13363_v25 }
 0xb52   : > { %8319 = vmatmul.mubr.bf16.gmra.mrb[220].mxu0 %v17014_v5 }
 0xb53   : > { %9090 = vmatmul.mubr.bf16.gmra.mrb[180].mxu1 %v17020_v39  ;;  %8326 = vmatprep.mubr.bf16.mxu0 %v17014_v5 }
 0xb54   : > { %9097 = vmatprep.mubr.bf16.mxu1 %v17014_v5  ;;  %12380 = vmatpush3.bf16.msra.mxu1 %v13363_v25  ;;  %v13366_v25 = vld [vmem:[#allocation9 + $0x200] ss:$12 sps:$4 sm:$0xff]  }
 0xb55   : > { %v17249_v21 = vpop.f32.mrb[116].mxu0  ;;  %12381 = vmatprep.subr.bf16.mxu1 %v13364_v56 }
 0xb56   : > { %v17251_v63 = vpop.f32.mrb[117].mxu0 }
 0xb57   : > { %v7669_v45 = vpop.f32.mrb[118].mxu0 }
 0xb58   : > { %v7670_v61 = vpop.f32.mrb[119].mxu0  ;;  %12382 = vmatpush3.bf16.msra.mxu1 %v13364_v56 }
 0xb59   : > { %12383 = vmatprep.subr.bf16.mxu1 %v13365_v54 }
 0xb5a   : > { %8327 = vmatmul.mubr.bf16.gmra.mrb[224].mxu0 %v17005_v62 }
 0xb5b   : > { %9098 = vmatmul.mubr.bf16.gmra.mrb[184].mxu1 %v17023_v42  ;;  %8335 = vmatprep.mubr.bf16.mxu0 %v17014_v5 }
 0xb5c   : > { %9106 = vmatprep.mubr.bf16.mxu1 %v17014_v5  ;;  %12384 = vmatpush3.bf16.msra.mxu1 %v13365_v54 }
 0xb5d   : > { %v17257_v2 = vpop.f32.mrb[120].mxu0  ;;  %12385 = vmatprep.subr.bf16.mxu1 %v13366_v25 }
 0xb5e   : > { %v7675_v60 = vpop.f32.mrb[121].mxu0 }
 0xb5f   : > { %v17259_v33 = vpop.f32.mrb[122].mxu0 }
 0xb60   : > { %v17261_v28 = vpop.f32.mrb[123].mxu0  ;;  %12386 = vmatpush3.bf16.msra.mxu1 %v13366_v25 }
 0xb62   : > { %8336 = vmatmul.mubr.bf16.gmra.mrb[228].mxu0 %v17007_v18 }
 0xb63   : > { %9107 = vmatmul.mubr.bf16.gmra.mrb[188].mxu1 %v17028_v6  ;;  %8343 = vmatprep.mubr.bf16.mxu0 %v17014_v5 }
 0xb64   : > { %9114 = vmatprep.mubr.bf16.mxu1 %v17014_v5 }
 0xb65   : > { %v17267_v62 = vpop.f32.mrb[124].mxu0 }
 0xb66   : > { %v17269_v24 = vpop.f32.mrb[125].mxu0 }
 0xb67   : > { %v7686_v7 = vpop.f32.mrb[126].mxu0 }
 0xb68   : > { %v7687_v31 = vpop.f32.mrb[127].mxu0 }
 0xb6a   : > { %8344 = vmatmul.mubr.bf16.gmra.mrb[232].mxu0 %v17012_v43 }
 0xb6b   : > { %9115 = vmatmul.mubr.bf16.gmra.mrb[192].mxu1 %v17031_v57  ;;  %8352 = vmatprep.mubr.bf16.mxu0 %v17014_v5 }
 0xb6c   : > { %9123 = vmatprep.mubr.bf16.mxu1 %v17014_v5 }
 0xb6d   : > { %v17275_v18 = vpop.f32.mrb[128].mxu0 }
 0xb6e   : > { %v7692_v55 = vpop.f32.mrb[129].mxu0 }
 0xb6f   : > { %v17277_v56 = vpop.f32.mrb[130].mxu0 }
 0xb70   : > { %v17279_v54 = vpop.f32.mrb[131].mxu0 }
 0xb72   : > { %8353 = vmatmul.mubr.bf16.gmra.mrb[236].mxu0 %v17020_v39 }
 0xb73   : > { %9124 = vmatmul.mubr.bf16.gmra.mrb[196].mxu1 %v17036_v59  ;;  %8360 = vmatprep.mubr.bf16.mxu0 %v17014_v5 }
 0xb74   : > { %9131 = vmatprep.mubr.bf16.mxu1 %v17014_v5 }
 0xb75   : > { %v17285_v43 = vpop.f32.mrb[132].mxu0 }
 0xb76   : > { %v17287_v45 = vpop.f32.mrb[133].mxu0 }
 0xb77   : > { %v7703_v61 = vpop.f32.mrb[134].mxu0 }
 0xb78   : > { %v7704_v60 = vpop.f32.mrb[135].mxu0 }
 0xb7a   : > { %8361 = vmatmul.mubr.bf16.gmra.mrb[240].mxu0 %v17023_v42 }
 0xb7b   : > { %9132 = vmatmul.mubr.bf16.gmra.mrb[200].mxu1 %v17039_v46  ;;  %8369 = vmatprep.mubr.bf16.mxu0 %v17014_v5 }
 0xb7c   : > { %9140 = vmatprep.mubr.bf16.mxu1 %v17014_v5 }
 0xb7d   : > { %v17293_v39 = vpop.f32.mrb[136].mxu0 }
 0xb7e   : > { %v7709_v7 = vpop.f32.mrb[137].mxu0 }
 0xb7f   : > { %v17295_v31 = vpop.f32.mrb[138].mxu0  ;;  %v13367_v7 = vld [vmem:[#allocation9 + $0x218] ss:$12 sps:$4 sm:$0xff]  }
 0xb80   : > { %18616 = vst [vmem:[#allocation38_spill] sm:$0xff] %v17295_v31  ;;  %v17297_v25 = vpop.f32.mrb[139].mxu0  ;;  %12387 = vmatprep.subr.bf16.mxu1 %v13367_v7 }
 0xb81   : > { %18617 = vst [vmem:[#allocation37_spill] sm:$0xff] %v17297_v25  ;;  %12388 = vmatpush3.bf16.msra.mxu1 %v13367_v7 }
 0xb82   : > { %8370 = vmatmul.mubr.bf16.gmra.mrb[244].mxu0 %v17028_v6 }
 0xb83   : > { %9141 = vmatmul.mubr.bf16.gmra.mrb[204].mxu1 %v17044_v35  ;;  %8377 = vmatprep.mubr.bf16.mxu0 %v17014_v5 }
 0xb84   : > { %9148 = vmatprep.mubr.bf16.mxu1 %v17014_v5 }
 0xb85   : > { %v17303_v42 = vpop.f32.mrb[140].mxu0 }
 0xb86   : > { %18618 = vst [vmem:[#allocation39_spill] sm:$0xff] %v17303_v42  ;;  %v17305_v55 = vpop.f32.mrb[141].mxu0 }
 0xb87   : > { %v7720_v61 = vpop.f32.mrb[142].mxu0 }
 0xb88   : > { %v7721_v60 = vpop.f32.mrb[143].mxu0 }
 0xb8a   : > { %8378 = vmatmul.mubr.bf16.gmra.mrb[248].mxu0 %v17031_v57 }
 0xb8b   : > { %9149 = vmatmul.mubr.bf16.gmra.mrb[208].mxu1 %v17047_v23  ;;  %8386 = vmatprep.mubr.bf16.mxu0 %v17014_v5 }
 0xb8c   : > { %9157 = vmatprep.mubr.bf16.mxu1 %v17014_v5 }
 0xb8d   : > { %v17311_v6 = vpop.f32.mrb[144].mxu0 }
 0xb8e   : > { %18619 = vst [vmem:[#allocation41_spill] sm:$0xff] %v17311_v6  ;;  %v7726_v25 = vpop.f32.mrb[145].mxu0 }
 0xb8f   : > { %v17313_v31 = vpop.f32.mrb[146].mxu0 }
 0xb90   : > { %v17315_v42 = vpop.f32.mrb[147].mxu0 }
 0xb91   : > { %18620 = vst [vmem:[#allocation42_spill] sm:$0xff] %v17315_v42 }
 0xb92   : > { %8387 = vmatmul.mubr.bf16.gmra.mrb[252].mxu0 %v17036_v59 }
 0xb93   : > { %9158 = vmatmul.mubr.bf16.gmra.mrb[212].mxu1 %v17052_v40  ;;  %8394 = vmatprep.mubr.bf16.mxu0 %v17014_v5 }
 0xb94   : > { %9165 = vmatprep.mubr.bf16.mxu1 %v17014_v5 }
 0xb95   : > { %v17321_v57 = vpop.f32.mrb[148].mxu0 }
 0xb96   : > { %v17323_v61 = vpop.f32.mrb[149].mxu0 }
 0xb97   : > { %18621 = vst [vmem:[#allocation46_spill] sm:$0xff] %v17323_v61  ;;  %v7737_v60 = vpop.f32.mrb[150].mxu0 }
 0xb98   : > { %v7738_v6 = vpop.f32.mrb[151].mxu0 }
 0xb9a   : > { %8395 = vmatmul.mubr.bf16.gmra.mrb[0].mxu0 %v17039_v46 }
 0xb9b   : > { %9166 = vmatmul.mubr.bf16.gmra.mrb[216].mxu1 %v17055_v1  ;;  %8403 = vmatprep.mubr.bf16.mxu0 %v17014_v5 }
 0xb9c   : > { %9174 = vmatprep.mubr.bf16.mxu1 %v17014_v5 }
 0xb9d   : > { %v17329_v59 = vpop.f32.mrb[152].mxu0 }
 0xb9e   : > { %v7743_v25 = vpop.f32.mrb[153].mxu0 }
 0xb9f   : > { %v17331_v7 = vpop.f32.mrb[154].mxu0  ;;  %v13368_v25 = vld [vmem:[#allocation9 + $0x230] ss:$12 sps:$4 sm:$0xff]  }
 0xba0   : > { %18622 = vst [vmem:[#allocation47_spill] sm:$0xff] %v17331_v7  ;;  %v17333_v42 = vpop.f32.mrb[155].mxu0  ;;  %12389 = vmatprep.subr.bf16.mxu1 %v13368_v25 }
 0xba1   : > { %18623 = vst [vmem:[#allocation50_spill] sm:$0xff] %v17333_v42  ;;  %12390 = vmatpush3.bf16.msra.mxu1 %v13368_v25 }
 0xba2   : > { %8404 = vmatmul.mubr.bf16.gmra.mrb[4].mxu0 %v17044_v35 }
 0xba3   : > { %9175 = vmatmul.mubr.bf16.gmra.mrb[220].mxu1 %v17060_v34  ;;  %8411 = vmatprep.mubr.bf16.mxu0 %v17014_v5 }
 0xba4   : > { %9182 = vmatprep.mubr.bf16.mxu1 %v17014_v5 }
 0xba5   : > { %v17339_v46 = vpop.f32.mrb[156].mxu0 }
 0xba6   : > { %18624 = vst [vmem:[#allocation48_spill] sm:$0xff] %v17339_v46  ;;  %v17341_v6 = vpop.f32.mrb[157].mxu0 }
 0xba7   : > { %v7754_v60 = vpop.f32.mrb[158].mxu0 }
 0xba8   : > { %v7755_v61 = vpop.f32.mrb[159].mxu0 }
 0xbaa   : > { %8412 = vmatmul.mubr.bf16.gmra.mrb[8].mxu0 %v17047_v23 }
 0xbab   : > { %9183 = vmatmul.mubr.bf16.gmra.mrb[224].mxu1 %v17063_v14  ;;  %8420 = vmatprep.mubr.bf16.mxu0 %v17014_v5 }
 0xbac   : > { %9191 = vmatprep.mubr.bf16.mxu1 %v17014_v5 }
 0xbad   : > { %v17347_v35 = vpop.f32.mrb[160].mxu0 }
 0xbae   : > { %v7760_v42 = vpop.f32.mrb[161].mxu0 }
 0xbaf   : > { %v17349_v7 = vpop.f32.mrb[162].mxu0 }
 0xbb0   : > { %18625 = vst [vmem:[#allocation53_spill] sm:$0xff] %v17349_v7  ;;  %v17351_v46 = vpop.f32.mrb[163].mxu0 }
 0xbb1   : > { %18626 = vst [vmem:[#allocation51_spill] sm:$0xff] %v17351_v46 }
 0xbb2   : > { %8421 = vmatmul.mubr.bf16.gmra.mrb[12].mxu0 %v17052_v40 }
 0xbb3   : > { %9192 = vmatmul.mubr.bf16.gmra.mrb[228].mxu1 %v17068_v19  ;;  %8428 = vmatprep.mubr.bf16.mxu0 %v17014_v5 }
 0xbb4   : > { %9199 = vmatprep.mubr.bf16.mxu1 %v17014_v5 }
 0xbb5   : > { %v17357_v23 = vpop.f32.mrb[164].mxu0 }
 0xbb6   : > { %v17359_v61 = vpop.f32.mrb[165].mxu0 }
 0xbb7   : > { %18627 = vst [vmem:[#allocation54_spill] sm:$0xff] %v17359_v61  ;;  %v7771_v60 = vpop.f32.mrb[166].mxu0 }
 0xbb8   : > { %v7772_v42 = vpop.f32.mrb[167].mxu0 }
 0xbba   : > { %8429 = vmatmul.mubr.bf16.gmra.mrb[16].mxu0 %v17055_v1 }
 0xbbb   : > { %9200 = vmatmul.mubr.bf16.gmra.mrb[232].mxu1 %v17071_v51  ;;  %8437 = vmatprep.mubr.bf16.mxu0 %v17014_v5 }
 0xbbc   : > { %9208 = vmatprep.mubr.bf16.mxu1 %v17014_v5 }
 0xbbd   : > { %v17365_v40 = vpop.f32.mrb[168].mxu0 }
 0xbbe   : > { %v7777_v25 = vpop.f32.mrb[169].mxu0 }
 0xbbf   : > { %v17367_v46 = vpop.f32.mrb[170].mxu0 }
 0xbc0   : > { %18628 = vst [vmem:[#allocation52_spill] sm:$0xff] %v17367_v46  ;;  %v17369_v7 = vpop.f32.mrb[171].mxu0 }
 0xbc1   : > { %18629 = vst [vmem:[#allocation57_spill] sm:$0xff] %v17369_v7 }
 0xbc2   : > { %8438 = vmatmul.mubr.bf16.gmra.mrb[20].mxu0 %v17060_v34 }
 0xbc3   : > { %9209 = vmatmul.mubr.bf16.gmra.mrb[236].mxu1 %v17076_v13  ;;  %8445 = vmatprep.mubr.bf16.mxu0 %v17014_v5 }
 0xbc4   : > { %9216 = vmatprep.mubr.bf16.mxu1 %v17014_v5 }
 0xbc5   : > { %v17375_v1 = vpop.f32.mrb[172].mxu0 }
 0xbc6   : > { %v17377_v60 = vpop.f32.mrb[173].mxu0 }
 0xbc7   : > { %18630 = vst [vmem:[#allocation56_spill] sm:$0xff] %v17377_v60  ;;  %v7788_v42 = vpop.f32.mrb[174].mxu0 }
 0xbc8   : > { %v7789_v61 = vpop.f32.mrb[175].mxu0 }
 0xbca   : > { %8446 = vmatmul.mubr.bf16.gmra.mrb[24].mxu0 %v17063_v14 }
 0xbcb   : > { %9217 = vmatmul.mubr.bf16.gmra.mrb[240].mxu1 %v17079_v4  ;;  %8454 = vmatprep.mubr.bf16.mxu0 %v17014_v5 }
 0xbcc   : > { %9225 = vmatprep.mubr.bf16.mxu1 %v17014_v5 }
 0xbcd   : > { %v17383_v34 = vpop.f32.mrb[176].mxu0 }
 0xbce   : > { %v7794_v25 = vpop.f32.mrb[177].mxu0 }
 0xbcf   : > { %v17385_v7 = vpop.f32.mrb[178].mxu0 }
 0xbd0   : > { %18631 = vst [vmem:[#allocation61_spill] sm:$0xff] %v17385_v7  ;;  %v17387_v46 = vpop.f32.mrb[179].mxu0 }
 0xbd1   : > { %18632 = vst [vmem:[#allocation58_spill] sm:$0xff] %v17387_v46 }
 0xbd2   : > { %8455 = vmatmul.mubr.bf16.gmra.mrb[28].mxu0 %v17068_v19 }
 0xbd3   : > { %9226 = vmatmul.mubr.bf16.gmra.mrb[244].mxu1 %v17084_v27  ;;  %8462 = vmatprep.mubr.bf16.mxu0 %v17014_v5 }
 0xbd4   : > { %9233 = vmatprep.mubr.bf16.mxu1 %v17014_v5 }
 0xbd5   : > { %v17393_v14 = vpop.f32.mrb[180].mxu0 }
 0xbd6   : > { %v17395_v61 = vpop.f32.mrb[181].mxu0 }
 0xbd7   : > { %18633 = vst [vmem:[#allocation64_spill] sm:$0xff] %v17395_v61  ;;  %v7805_v42 = vpop.f32.mrb[182].mxu0 }
 0xbd8   : > { %v7806_v60 = vpop.f32.mrb[183].mxu0 }
 0xbda   : > { %8463 = vmatmul.mubr.bf16.gmra.mrb[32].mxu0 %v17071_v51 }
 0xbdb   : > { %9234 = vmatmul.mubr.bf16.gmra.mrb[248].mxu1 %v17087_v37  ;;  %8471 = vmatprep.mubr.bf16.mxu0 %v17014_v5 }
 0xbdc   : > { %9242 = vmatprep.mubr.bf16.mxu1 %v17014_v5 }
 0xbdd   : > { %v17401_v19 = vpop.f32.mrb[184].mxu0 }
 0xbde   : > { %18634 = vst [vmem:[#allocation60_spill] sm:$0xff] %v17401_v19  ;;  %v7811_v25 = vpop.f32.mrb[185].mxu0  ;;  %v17490_v19 = vld [vmem:[#allocation2 + $0x100] sm:$0xff] }
 0xbdf   : > { %v17403_v46 = vpop.f32.mrb[186].mxu0 }
 0xbe0   : > { %18635 = vst [vmem:[#allocation78_spill] sm:$0xff] %v17403_v46  ;;  %v17405_v7 = vpop.f32.mrb[187].mxu0 }
 0xbe1   : > { %18636 = vst [vmem:[#allocation79_spill] sm:$0xff] %v17405_v7 }
 0xbe2   : > { %8472 = vmatmul.mubr.bf16.gmra.mrb[36].mxu0 %v17076_v13 }
 0xbe3   : > { %9243 = vmatmul.mubr.bf16.gmra.mrb[252].mxu1 %v17092_v9  ;;  %8479 = vmatprep.mubr.bf16.mxu0 %v17014_v5 }
 0xbe4   : > { %9250 = vmatprep.mubr.bf16.mxu1 %v17014_v5 }
 0xbe5   : > { %v17411_v51 = vpop.f32.mrb[188].mxu0 }
 0xbe6   : > { %18637 = vst [vmem:[#allocation68_spill] sm:$0xff] %v17411_v51  ;;  %v17413_v60 = vpop.f32.mrb[189].mxu0 }
 0xbe7   : > { %18638 = vst [vmem:[#allocation65_spill] sm:$0xff] %v17413_v60  ;;  %v7822_v42 = vpop.f32.mrb[190].mxu0 }
 0xbe8   : > { %v7823_v61 = vpop.f32.mrb[191].mxu0 }
 0xbea   : > { %8480 = vmatmul.mubr.bf16.gmra.mrb[40].mxu0 %v17079_v4 }
 0xbeb   : > { %9251 = vmatmul.mubr.bf16.gmra.mrb[64].mxu1 %v17095_v58  ;;  %8488 = vmatprep.mubr.bf16.mxu0 %v17014_v5 }
 0xbec   : > { %9259 = vmatprep.mubr.bf16.mxu1 %v17014_v5 }
 0xbed   : > { %v17419_v13 = vpop.f32.mrb[192].mxu0 }
 0xbee   : > { %18639 = vst [vmem:[#allocation69_spill] sm:$0xff] %v17419_v13  ;;  %v7828_v25 = vpop.f32.mrb[193].mxu0  ;;  %v17477_v13 = vld [vmem:[#allocation2 + $0xf8] sm:$0xff] }
 0xbef   : > { %v17421_v7 = vpop.f32.mrb[194].mxu0 }
 0xbf0   : > { %18640 = vst [vmem:[#allocation67_spill] sm:$0xff] %v17421_v7  ;;  %v17423_v46 = vpop.f32.mrb[195].mxu0 }
 0xbf1   : > { %18641 = vst [vmem:[#allocation24_spill] sm:$0xff] %v17423_v46 }
 0xbf2   : > { %8489 = vmatmul.mubr.bf16.gmra.mrb[44].mxu0 %v17084_v27 }
 0xbf3   : > { %9260 = vmatmul.mubr.bf16.gmra.mrb[68].mxu1 %v17100_v11  ;;  %8496 = vmatprep.mubr.bf16.mxu0 %v17014_v5 }
 0xbf4   : > { %9267 = vmatprep.mubr.bf16.mxu1 %v17014_v5 }
 0xbf5   : > { %v17429_v4 = vpop.f32.mrb[196].mxu0 }
 0xbf6   : > { %18642 = vst [vmem:[#allocation25_spill] sm:$0xff] %v17429_v4  ;;  %v17431_v61 = vpop.f32.mrb[197].mxu0 }
 0xbf7   : > { %18643 = vst [vmem:[#allocation72_spill] sm:$0xff] %v17431_v61  ;;  %v7839_v42 = vpop.f32.mrb[198].mxu0 }
 0xbf8   : > { %v7840_v60 = vpop.f32.mrb[199].mxu0 }
 0xbfa   : > { %8497 = vmatmul.mubr.bf16.gmra.mrb[48].mxu0 %v17087_v37 }
 0xbfb   : > { %9268 = vmatmul.mubr.bf16.gmra.mrb[72].mxu1 %v17103_v16  ;;  %8505 = vmatprep.mubr.bf16.mxu0 %v17014_v5 }
 0xbfc   : > { %9276 = vmatprep.mubr.bf16.mxu1 %v17014_v5 }
 0xbfd   : > { %v17437_v27 = vpop.f32.mrb[200].mxu0 }
 0xbfe   : > { %18644 = vst [vmem:[#allocation71_spill] sm:$0xff] %v17437_v27  ;;  %v7845_v25 = vpop.f32.mrb[201].mxu0 }
 0xbff   : > { %v17439_v46 = vpop.f32.mrb[202].mxu0 }
 0xc00   : > { %18645 = vst [vmem:[#allocation75_spill] sm:$0xff] %v17439_v46  ;;  %v17441_v7 = vpop.f32.mrb[203].mxu0 }
 0xc01   : > { %18646 = vst [vmem:[#allocation73_spill] sm:$0xff] %v17441_v7 }
 0xc02   : > { %8506 = vmatmul.mubr.bf16.gmra.mrb[52].mxu0 %v17092_v9 }
 0xc03   : > { %9277 = vmatmul.mubr.bf16.gmra.mrb[76].mxu1 %v17108_v53  ;;  %8513 = vmatprep.mubr.bf16.mxu0 %v17014_v5 }
 0xc04   : > { %9284 = vmatprep.mubr.bf16.mxu1 %v17014_v5 }
 0xc05   : > { %v17447_v37 = vpop.f32.mrb[204].mxu0 }
 0xc06   : > { %18647 = vst [vmem:[#allocation77_spill] sm:$0xff] %v17447_v37  ;;  %v17449_v60 = vpop.f32.mrb[205].mxu0 }
 0xc07   : > { %18648 = vst [vmem:[#allocation74_spill] sm:$0xff] %v17449_v60  ;;  %v7856_v42 = vpop.f32.mrb[206].mxu0 }
 0xc08   : > { %v7857_v61 = vpop.f32.mrb[207].mxu0 }
 0xc0a   : > { %8514 = vmatmul.mubr.bf16.gmra.mrb[56].mxu0 %v17095_v58 }
 0xc0b   : > { %9285 = vmatmul.mubr.bf16.gmra.mrb[80].mxu1 %v17111_v52  ;;  %8522 = vmatprep.mubr.bf16.mxu0 %v17014_v5 }
 0xc0c   : > { %9293 = vmatprep.mubr.bf16.mxu1 %v17014_v5 }
 0xc0d   : > { %v17455_v9 = vpop.f32.mrb[208].mxu0 }
 0xc0e   : > { %18649 = vst [vmem:[#allocation43_spill] sm:$0xff] %v17455_v9  ;;  %v7862_v25 = vpop.f32.mrb[209].mxu0 }
 0xc0f   : > { %v17457_v7 = vpop.f32.mrb[210].mxu0 }
 0xc10   : > { %18650 = vst [vmem:[#allocation22_spill] sm:$0xff] %v17457_v7  ;;  %v17459_v46 = vpop.f32.mrb[211].mxu0 }
 0xc11   : > { %18651 = vst [vmem:[#allocation21_spill] sm:$0xff] %v17459_v46 }
 0xc12   : > { %8523 = vmatmul.mubr.bf16.gmra.mrb[60].mxu0 %v17100_v11 }
 0xc13   : > { %9294 = vmatmul.mubr.bf16.gmra.mrb[84].mxu1 %v17116_v20  ;;  %8530 = vmatprep.mubr.bf16.mxu0 %v17014_v5 }
 0xc14   : > { %9301 = vmatprep.mubr.bf16.mxu1 %v17014_v5 }
 0xc15   : > { %v17465_v58 = vpop.f32.mrb[212].mxu0 }
 0xc16   : > { %18652 = vst [vmem:[#allocation31_spill] sm:$0xff] %v17465_v58  ;;  %v17467_v61 = vpop.f32.mrb[213].mxu0 }
 0xc17   : > { %18653 = vst [vmem:[#allocation49_spill] sm:$0xff] %v17467_v61  ;;  %v7873_v42 = vpop.f32.mrb[214].mxu0 }
 0xc18   : > { %v7874_v60 = vpop.f32.mrb[215].mxu0 }
 0xc1a   : > { %8531 = vmatmul.mubr.bf16.gmra.mrb[64].mxu0 %v17103_v16 }
 0xc1b   : > { %9302 = vmatmul.mubr.bf16.gmra.mrb[88].mxu1 %v17119_v10  ;;  %8539 = vmatprep.mubr.bf16.mxu0 %v17014_v5 }
 0xc1c   : > { %9310 = vmatprep.mubr.bf16.mxu1 %v17014_v5 }
 0xc1d   : > { %v8311_v11 = vpop.f32.mrb[216].mxu0 }
 0xc1e   : > { %v8312_v25 = vadd.f32 %v8311_v11, %v17184_v8  ;;  %v8313_v46 = vpop.f32.mrb[217].mxu0  ;;  %v9082_v7 = vpop.f32.mrb[176].mxu1  ;;  %v17480_v8 = vld [vmem:[#allocation2] sm:$0xff] }
 0xc1f   : > { %v8314_v9 = vpop.f32.mrb[218].mxu0  ;;  %v9084_v37 = vpop.f32.mrb[177].mxu1 }
 0xc20   : > { %v9626_v58 = vadd.f32 %v9082_v7, %v8312_v25  ;;  %v8315_v61 = vadd.f32 %v8314_v9, %v17186_v44  ;;  %v8316_v42 = vpop.f32.mrb[219].mxu0  ;;  %v9085_v60 = vpop.f32.mrb[178].mxu1 }
 0xc21   : > { %v8317_v16 = vadd.f32 %v8316_v42, %v17188_v47  ;;  %v9087_v27 = vpop.f32.mrb[179].mxu1 }
 0xc22   : > { %v9627_v4 = vadd.f32 %v9085_v60, %v8315_v61  ;;  %8540 = vmatmul.mubr.bf16.gmra.mrb[68].mxu0 %v17108_v53  ;;  %v9802_v7 = vrot.slane %v9626_v58, 7 }
 0xc23   : > { %v9628_v5 = vadd.f32 %v9087_v27, %v8317_v16  ;;  %9311 = vmatmul.mubr.bf16.gmra.mrb[92].mxu1 %v17477_v13  ;;  %8547 = vmatprep.mubr.bf16.mxu0 %v17480_v8 }
 0xc24   : > { %v9803_v46 = vrot.slane %v9627_v4, 7  ;;  %9318 = vmatprep.mubr.bf16.mxu1 %v17480_v8 }
 0xc25   : > { %v8320_v44 = vpop.f32.mrb[220].mxu0 }
 0xc26   : > { %v9804_v47 = vsel %vm3246_vm2, %v9802_v7, %v9803_v46  ;;  %v8321_v37 = vadd.f32 %v8320_v44, %v17194_v0  ;;  %v8322_v9 = vpop.f32.mrb[221].mxu0  ;;  %v9091_v53 = vpop.f32.mrb[180].mxu1 }
 0xc27   : > { %v17486_v61 = vadd.f32 %v9804_v47, %v9628_v5  ;;  %v8323_v27 = vadd.f32 %v8322_v9, %v17196_v49  ;;  %v9093_v11 = vpop.f32.mrb[181].mxu1  ;;  %v8324_v25 = vpop.f32.mrb[222].mxu0 }
 0xc28   : > { %v9630_v42 = vadd.f32 %v9091_v53, %v8321_v37  ;;  %v9095_v60 = vpop.f32.mrb[182].mxu1  ;;  %v8325_v16 = vpop.f32.mrb[223].mxu0 }
 0xc29   : > { %v9631_v58 = vadd.f32 %v9093_v11, %v8323_v27  ;;  %v9096_v4 = vpop.f32.mrb[183].mxu1 }
 0xc2a   : > { %v9805_v51 = vrot.slane %v9630_v42, 7  ;;  %8548 = vmatmul.mubr.bf16.gmra.mrb[72].mxu0 %v17111_v52 }
 0xc2b   : > { %9319 = vmatmul.mubr.bf16.gmra.mrb[96].mxu1 %v17490_v19  ;;  %8556 = vmatprep.mubr.bf16.mxu0 %v17480_v8 }
 0xc2c   : > { %v9806_v0 = vsel %vm3246_vm2, %v9803_v46, %v9805_v51  ;;  %9327 = vmatprep.mubr.bf16.mxu1 %v17480_v8  ;;  %v17502_v46 = vld [vmem:[#allocation2 + $0x108] sm:$0xff] }
 0xc2d   : > { %v17496_v49 = vadd.f32 %v9806_v0, %v9631_v58  ;;  %v8328_v5 = vpop.f32.mrb[224].mxu0 }
 0xc2e   : > { %v8329_v7 = vadd.f32 %v8328_v5, %v17202_v15  ;;  %v8330_v44 = vpop.f32.mrb[225].mxu0  ;;  %v9099_v47 = vpop.f32.mrb[184].mxu1 }
 0xc2f   : > { %v8331_v37 = vpop.f32.mrb[226].mxu0  ;;  %v9101_v9 = vpop.f32.mrb[185].mxu1 }
 0xc30   : > { %v9634_v52 = vadd.f32 %v9099_v47, %v8329_v7  ;;  %v8332_v53 = vadd.f32 %v8331_v37, %v17204_v12  ;;  %v8333_v27 = vpop.f32.mrb[227].mxu0  ;;  %v9102_v11 = vpop.f32.mrb[186].mxu1 }
 0xc31   : > { %v8334_v25 = vadd.f32 %v8333_v27, %v17206_v36  ;;  %v9104_v42 = vpop.f32.mrb[187].mxu1 }
 0xc32   : > { %v9635_v51 = vadd.f32 %v9102_v11, %v8332_v53  ;;  %8557 = vmatmul.mubr.bf16.gmra.mrb[76].mxu0 %v17116_v20  ;;  %v9807_v15 = vrot.slane %v9634_v52, 7 }
 0xc33   : > { %v9636_v60 = vadd.f32 %v9104_v42, %v8334_v25  ;;  %9328 = vmatmul.mubr.bf16.gmra.mrb[100].mxu1 %v17502_v46  ;;  %8564 = vmatprep.mubr.bf16.mxu0 %v17480_v8 }
 0xc34   : > { %v9808_v16 = vrot.slane %v9635_v51, 7  ;;  %9335 = vmatprep.mubr.bf16.mxu1 %v17480_v8 }
 0xc35   : > { %v8337_v12 = vpop.f32.mrb[228].mxu0 }
 0xc36   : > { %v9809_v58 = vsel %vm3246_vm2, %v9807_v15, %v9808_v16  ;;  %v8338_v36 = vadd.f32 %v8337_v12, %v17212_v3  ;;  %v8339_v4 = vpop.f32.mrb[229].mxu0  ;;  %v9108_v0 = vpop.f32.mrb[188].mxu1 }
 0xc37   : > { %v17509_v5 = vadd.f32 %v9809_v58, %v9636_v60  ;;  %v8340_v20 = vadd.f32 %v8339_v4, %v17214_v29  ;;  %v8341_v7 = vpop.f32.mrb[230].mxu0  ;;  %v9110_v44 = vpop.f32.mrb[189].mxu1 }
 0xc38   : > { %v9638_v47 = vadd.f32 %v9108_v0, %v8338_v36  ;;  %v8342_v37 = vpop.f32.mrb[231].mxu0  ;;  %v9112_v9 = vpop.f32.mrb[190].mxu1 }
 0xc39   : > { %v9639_v52 = vadd.f32 %v9110_v44, %v8340_v20  ;;  %v9113_v53 = vpop.f32.mrb[191].mxu1  ;;  %v13536_v44 = vld [vmem:[#allocation2 + $0x20] sm:$0xff] }
 0xc3a   : > { %v9810_v27 = vrot.slane %v9638_v47, 7  ;;  %8565 = vmatmul.mubr.bf16.gmra.mrb[80].mxu0 %v17119_v10 }
 0xc3b   : > { %9336 = vmatmul.mubr.bf16.gmra.mrb[104].mxu1 %v17480_v8  ;;  %8573 = vmatprep.mubr.bf16.mxu0 %v17480_v8 }
 0xc3c   : > { %v9811_v3 = vsel %vm3246_vm2, %v9808_v16, %v9810_v27  ;;  %9344 = vmatprep.mubr.bf16.mxu1 %v17480_v8 }
 0xc3d   : > { %v17517_v11 = vadd.f32 %v9811_v3, %v9639_v52  ;;  %v8345_v29 = vpop.f32.mrb[232].mxu0 }
 0xc3e   : > { %v8346_v25 = vadd.f32 %v8345_v29, %v17220_v32  ;;  %v8347_v42 = vpop.f32.mrb[233].mxu0  ;;  %v9116_v51 = vpop.f32.mrb[192].mxu1 }
 0xc3f   : > { %v8348_v60 = vpop.f32.mrb[234].mxu0  ;;  %v9118_v15 = vpop.f32.mrb[193].mxu1 }
 0xc40   : > { %v9642_v12 = vadd.f32 %v9116_v51, %v8346_v25  ;;  %v8349_v10 = vadd.f32 %v8348_v60, %v17222_v17  ;;  %v8350_v58 = vpop.f32.mrb[235].mxu0  ;;  %v9119_v36 = vpop.f32.mrb[194].mxu1  ;;  %v13537_v15 = vld [vmem:[#allocation2 + $0x28] sm:$0xff] }
 0xc41   : > { %v8351_v4 = vadd.f32 %v8350_v58, %v17224_v38  ;;  %v9121_v0 = vpop.f32.mrb[195].mxu1 }
 0xc42   : > { %v9643_v16 = vadd.f32 %v9119_v36, %v8349_v10  ;;  %8574 = vmatmul.mubr.bf16.gmra.mrb[84].mxu0 %v17124_v26  ;;  %v9812_v7 = vrot.slane %v9642_v12, 7  ;;  %v13538_v10 = vld [vmem:[#allocation2 + $0x30] sm:$0xff] }
 0xc43   : > { %v9644_v20 = vadd.f32 %v9121_v0, %v8351_v4  ;;  %9345 = vmatmul.mubr.bf16.gmra.mrb[108].mxu1 %v17480_v8 }
 0xc44   : > { %v9813_v32 = vrot.slane %v9643_v16, 7  ;;  %12391 = vmatprep.mubr.bf16.mxu1 %v13536_v44 }
 0xc45   : > { %v8354_v47 = vpop.f32.mrb[236].mxu0 }
 0xc46   : > { %v9814_v37 = vsel %vm3246_vm2, %v9812_v7, %v9813_v32  ;;  %v8355_v17 = vadd.f32 %v8354_v47, %v17230_v48  ;;  %v8356_v9 = vpop.f32.mrb[237].mxu0  ;;  %v9125_v52 = vpop.f32.mrb[196].mxu1 }
 0xc47   : > { %v17526_v53 = vadd.f32 %v9814_v37, %v9644_v20  ;;  %v8357_v38 = vadd.f32 %v8356_v9, %v17232_v50  ;;  %v8358_v27 = vpop.f32.mrb[238].mxu0  ;;  %v9127_v26 = vpop.f32.mrb[197].mxu1 }
 0xc48   : > { %v9646_v3 = vadd.f32 %v9125_v52, %v8355_v17  ;;  %v8359_v29 = vpop.f32.mrb[239].mxu0  ;;  %v9129_v25 = vpop.f32.mrb[198].mxu1  ;;  %v13539_v52 = vld [vmem:[#allocation2 + $0x38] sm:$0xff] }
 0xc49   : > { %v9647_v42 = vadd.f32 %v9127_v26, %v8357_v38  ;;  %v9130_v51 = vpop.f32.mrb[199].mxu1  ;;  %v13540_v26 = vld [vmem:[#allocation2 + $0x40] sm:$0xff] }
 0xc4a   : > { %v9815_v60 = vrot.slane %v9646_v3, 7 }
 0xc4b   : > { %12392 = vmatmul.mubr.bf16.vlgmr.msra.gmra.mrb[0].mxu1 %v13537_v15 }
 0xc4c   : > { %v9816_v12 = vsel %vm3246_vm2, %v9813_v32, %v9815_v60  ;;  %12395 = vmatprep.mubr.bf16.mxu1 %v13538_v10 }
 0xc4d   : > { %v17530_v48 = vadd.f32 %v9816_v12, %v9647_v42  ;;  %v8362_v58 = vpop.f32.mrb[240].mxu0 }
 0xc4e   : > { %v8363_v36 = vadd.f32 %v8362_v58, %v17239_v30  ;;  %v8364_v50 = vpop.f32.mrb[241].mxu0  ;;  %v9133_v4 = vpop.f32.mrb[200].mxu1 }
 0xc4f   : > { %v8365_v0 = vpop.f32.mrb[242].mxu0  ;;  %v9135_v16 = vpop.f32.mrb[201].mxu1 }
 0xc50   : > { %v9650_v20 = vadd.f32 %v9133_v4, %v8363_v36  ;;  %v8366_v7 = vadd.f32 %v8365_v0, %v17241_v22  ;;  %v8367_v44 = vpop.f32.mrb[243].mxu0  ;;  %v9136_v47 = vpop.f32.mrb[202].mxu1  ;;  %v13541_v4 = vld [vmem:[#allocation2 + $0x48] sm:$0xff]  ;;  %v13542_v16 = vld [vmem:[#allocation2 + $0x50] sm:$0xff] }
 0xc51   : > { %v8368_v37 = vadd.f32 %v8367_v44, %v17243_v41  ;;  %v9138_v17 = vpop.f32.mrb[203].mxu1 }
 0xc52   : > { %v9651_v32 = vadd.f32 %v9136_v47, %v8366_v7  ;;  %v9817_v38 = vrot.slane %v9650_v20, 7 }
 0xc53   : > { %v9652_v9 = vadd.f32 %v9138_v17, %v8368_v37  ;;  %12396 = vmatmul.mubr.bf16.gmra.mrb[4].mxu1 %v13539_v52 }
 0xc54   : > { %v9818_v27 = vrot.slane %v9651_v32, 7  ;;  %12399 = vmatprep.mubr.bf16.mxu1 %v13540_v26 }
 0xc55   : > { %v8371_v30 = vpop.f32.mrb[244].mxu0 }
 0xc56   : > { %v9819_v3 = vsel %vm3246_vm2, %v9817_v38, %v9818_v27  ;;  %v8372_v29 = vadd.f32 %v8371_v30, %v17249_v21  ;;  %v8373_v25 = vpop.f32.mrb[245].mxu0  ;;  %v9142_v22 = vpop.f32.mrb[204].mxu1 }
 0xc57   : > { %v17537_v42 = vadd.f32 %v9819_v3, %v9652_v9  ;;  %v8374_v41 = vadd.f32 %v8373_v25, %v17251_v63  ;;  %v8375_v51 = vpop.f32.mrb[246].mxu0  ;;  %v9144_v60 = vpop.f32.mrb[205].mxu1  ;;  %v13543_v3 = vld [vmem:[#allocation2 + $0x58] sm:$0xff] }
 0xc58   : > { %v9654_v15 = vadd.f32 %v9142_v22, %v8372_v29  ;;  %v8376_v12 = vpop.f32.mrb[247].mxu0  ;;  %v9146_v10 = vpop.f32.mrb[206].mxu1  ;;  %v13544_v22 = vld [vmem:[#allocation2 + $0x60] sm:$0xff] }
 0xc59   : > { %v9655_v58 = vadd.f32 %v9144_v60, %v8374_v41  ;;  %v9147_v36 = vpop.f32.mrb[207].mxu1 }
 0xc5a   : > { %v9820_v50 = vrot.slane %v9654_v15, 7 }
 0xc5b   : > { %12400 = vmatmul.mubr.bf16.gmra.mrb[8].mxu1 %v13541_v4 }
 0xc5c   : > { %v9821_v0 = vsel %vm3246_vm2, %v9818_v27, %v9820_v50  ;;  %12403 = vmatprep.mubr.bf16.mxu1 %v13542_v16 }
 0xc5d   : > { %v17541_v21 = vadd.f32 %v9821_v0, %v9655_v58  ;;  %v8379_v20 = vpop.f32.mrb[248].mxu0 }
 0xc5e   : > { %v8380_v7 = vadd.f32 %v8379_v20, %v17257_v2  ;;  %v8381_v63 = vpop.f32.mrb[249].mxu0  ;;  %v9150_v44 = vpop.f32.mrb[208].mxu1  ;;  %v13545_v20 = vld [vmem:[#allocation2 + $0x68] sm:$0xff] }
 0xc5f   : > { %v8382_v47 = vpop.f32.mrb[250].mxu0  ;;  %v9152_v37 = vpop.f32.mrb[209].mxu1  ;;  %v13546_v63 = vld [vmem:[#allocation2 + $0x70] sm:$0xff] }
 0xc60   : > { %v9658_v17 = vadd.f32 %v9150_v44, %v8380_v7  ;;  %v8383_v32 = vadd.f32 %v8382_v47, %v17259_v33  ;;  %v8384_v9 = vpop.f32.mrb[251].mxu0  ;;  %v9153_v52 = vpop.f32.mrb[210].mxu1 }
 0xc61   : > { %v8385_v38 = vadd.f32 %v8384_v9, %v17261_v28  ;;  %v9155_v26 = vpop.f32.mrb[211].mxu1 }
 0xc62   : > { %v9659_v27 = vadd.f32 %v9153_v52, %v8383_v32  ;;  %v9822_v29 = vrot.slane %v9658_v17, 7 }
 0xc63   : > { %v9660_v30 = vadd.f32 %v9155_v26, %v8385_v38  ;;  %12404 = vmatmul.mubr.bf16.gmra.mrb[12].mxu1 %v13543_v3 }
 0xc64   : > { %v9823_v25 = vrot.slane %v9659_v27, 7  ;;  %12407 = vmatprep.mubr.bf16.mxu1 %v13544_v22 }
 0xc65   : > { %v8388_v2 = vpop.f32.mrb[252].mxu0 }
 0xc66   : > { %v9824_v41 = vsel %vm3246_vm2, %v9822_v29, %v9823_v25  ;;  %v8389_v51 = vadd.f32 %v8388_v2, %v17267_v62  ;;  %v8390_v60 = vpop.f32.mrb[253].mxu0  ;;  %v9159_v33 = vpop.f32.mrb[212].mxu1 }
 0xc67   : > { %v17548_v15 = vadd.f32 %v9824_v41, %v9660_v30  ;;  %v8391_v28 = vadd.f32 %v8390_v60, %v17269_v24  ;;  %v8392_v12 = vpop.f32.mrb[254].mxu0  ;;  %v9161_v10 = vpop.f32.mrb[213].mxu1  ;;  %v13548_v41 = vld [vmem:[#allocation2 + $0x80] sm:$0xff] }
 0xc68   : > { %v9662_v58 = vadd.f32 %v9159_v33, %v8389_v51  ;;  %v8393_v36 = vpop.f32.mrb[255].mxu0  ;;  %v9163_v50 = vpop.f32.mrb[214].mxu1 }
 0xc69   : > { %v9663_v4 = vadd.f32 %v9161_v10, %v8391_v28  ;;  %v9164_v0 = vpop.f32.mrb[215].mxu1 }
 0xc6a   : > { %v9825_v16 = vrot.slane %v9662_v58, 7 }
 0xc6b   : > { %12408 = vmatmul.mubr.bf16.gmra.mrb[16].mxu1 %v13545_v20  ;;  %v13549_v20 = vld [vmem:[#allocation2 + $0x88] sm:$0xff] }
 0xc6c   : > { %v9826_v7 = vsel %vm3246_vm2, %v9823_v25, %v9825_v16  ;;  %12411 = vmatprep.mubr.bf16.mxu1 %v13546_v63  ;;  %v13547_v25 = vld [vmem:[#allocation2 + $0x78] sm:$0xff]  ;;  %v13550_v63 = vld [vmem:[#allocation2 + $0x90] sm:$0xff] }
 0xc6d   : > { %v17552_v62 = vadd.f32 %v9826_v7, %v9663_v4  ;;  %v8396_v44 = vpop.f32.mrb[0].mxu0 }
 0xc6e   : > { %v8397_v47 = vadd.f32 %v8396_v44, %v17275_v18  ;;  %v8398_v24 = vpop.f32.mrb[1].mxu0  ;;  %v9167_v37 = vpop.f32.mrb[216].mxu1 }
 0xc6f   : > { %v8399_v17 = vpop.f32.mrb[2].mxu0  ;;  %v9169_v32 = vpop.f32.mrb[217].mxu1 }
 0xc70   : > { %v9666_v9 = vadd.f32 %v9167_v37, %v8397_v47  ;;  %v8400_v52 = vadd.f32 %v8399_v17, %v17277_v56  ;;  %v8401_v38 = vpop.f32.mrb[3].mxu0  ;;  %v9170_v26 = vpop.f32.mrb[218].mxu1 }
 0xc71   : > { %v8402_v27 = vadd.f32 %v8401_v38, %v17279_v54  ;;  %v9172_v30 = vpop.f32.mrb[219].mxu1 }
 0xc72   : > { %v9667_v3 = vadd.f32 %v9170_v26, %v8400_v52  ;;  %v9827_v22 = vrot.slane %v9666_v9, 7  ;;  %v18654_v9 = vld [vmem:[#allocation38_spill] sm:$0xff] }
 0xc73   : > { %v9668_v29 = vadd.f32 %v9172_v30, %v8402_v27  ;;  %12412 = vmatmul.mubr.bf16.gmra.mrb[20].mxu1 %v13547_v25  ;;  %v18655_v27 = vld [vmem:[#allocation37_spill] sm:$0xff] }
 0xc74   : > { %v9828_v2 = vrot.slane %v9667_v3, 7  ;;  %12415 = vmatprep.mubr.bf16.mxu1 %v13548_v41 }
 0xc75   : > { %v8405_v18 = vpop.f32.mrb[4].mxu0 }
 0xc76   : > { %v9829_v51 = vsel %vm3246_vm2, %v9827_v22, %v9828_v2  ;;  %v8406_v60 = vadd.f32 %v8405_v18, %v17285_v43  ;;  %v8407_v33 = vpop.f32.mrb[5].mxu0  ;;  %v9176_v56 = vpop.f32.mrb[220].mxu1  ;;  %v13551_v22 = vld [vmem:[#allocation2 + $0x98] sm:$0xff]  ;;  %v13552_v18 = vld [vmem:[#allocation2 + $0xa0] sm:$0xff] }
 0xc77   : > { %v17559_v28 = vadd.f32 %v9829_v51, %v9668_v29  ;;  %v8408_v54 = vadd.f32 %v8407_v33, %v17287_v45  ;;  %v8409_v12 = vpop.f32.mrb[6].mxu0  ;;  %v9178_v10 = vpop.f32.mrb[221].mxu1 }
 0xc78   : > { %v9670_v58 = vadd.f32 %v9176_v56, %v8406_v60  ;;  %v8410_v36 = vpop.f32.mrb[7].mxu0  ;;  %v9180_v50 = vpop.f32.mrb[222].mxu1  ;;  %v18656_v60 = vld [vmem:[#allocation39_spill] sm:$0xff] }
 0xc79   : > { %v9671_v4 = vadd.f32 %v9178_v10, %v8408_v54  ;;  %v9181_v0 = vpop.f32.mrb[223].mxu1 }
 0xc7a   : > { %v9830_v16 = vrot.slane %v9670_v58, 7 }
 0xc7b   : > { %12416 = vmatmul.mubr.bf16.gmra.mrb[24].mxu1 %v13549_v20 }
 0xc7c   : > { %v9831_v7 = vsel %vm3246_vm2, %v9828_v2, %v9830_v16  ;;  %12419 = vmatprep.mubr.bf16.mxu1 %v13550_v63  ;;  %v13553_v63 = vld [vmem:[#allocation2 + $0xa8] sm:$0xff] }
 0xc7d   : > { %v17563_v43 = vadd.f32 %v9831_v7, %v9671_v4  ;;  %v8413_v44 = vpop.f32.mrb[8].mxu0 }
 0xc7e   : > { %v8414_v47 = vadd.f32 %v8413_v44, %v17293_v39  ;;  %v8415_v45 = vpop.f32.mrb[9].mxu0  ;;  %v9184_v24 = vpop.f32.mrb[224].mxu1 }
 0xc7f   : > { %v8416_v37 = vpop.f32.mrb[10].mxu0  ;;  %v9186_v17 = vpop.f32.mrb[225].mxu1 }
 0xc80   : > { %v9674_v32 = vadd.f32 %v9184_v24, %v8414_v47  ;;  %v8417_v52 = vadd.f32 %v8416_v37, %v18654_v9  ;;  %v8418_v38 = vpop.f32.mrb[11].mxu0  ;;  %v9187_v26 = vpop.f32.mrb[226].mxu1  ;;  %v13554_v47 = vld [vmem:[#allocation2 + $0xb0] sm:$0xff]  ;;  %v18657_v37 = vld [vmem:[#allocation41_spill] sm:$0xff] }
 0xc81   : > { %v8419_v30 = vadd.f32 %v8418_v38, %v18655_v27  ;;  %v9189_v3 = vpop.f32.mrb[227].mxu1 }
 0xc82   : > { %v9675_v29 = vadd.f32 %v9187_v26, %v8417_v52  ;;  %v9832_v2 = vrot.slane %v9674_v32, 7 }
 0xc83   : > { %v9676_v25 = vadd.f32 %v9189_v3, %v8419_v30  ;;  %12420 = vmatmul.mubr.bf16.gmra.mrb[28].mxu1 %v13551_v22  ;;  %v18658_v3 = vld [vmem:[#allocation42_spill] sm:$0xff] }
 0xc84   : > { %v9833_v41 = vrot.slane %v9675_v29, 7  ;;  %12423 = vmatprep.mubr.bf16.mxu1 %v13552_v18 }
 0xc85   : > { %v8422_v39 = vpop.f32.mrb[12].mxu0 }
 0xc86   : > { %v9834_v51 = vsel %vm3246_vm2, %v9832_v2, %v9833_v41  ;;  %v8423_v33 = vadd.f32 %v8422_v39, %v18656_v60  ;;  %v8424_v56 = vpop.f32.mrb[13].mxu0  ;;  %v9193_v54 = vpop.f32.mrb[228].mxu1 }
 0xc87   : > { %v17570_v12 = vadd.f32 %v9834_v51, %v9676_v25  ;;  %v8425_v10 = vadd.f32 %v8424_v56, %v17305_v55  ;;  %v8426_v58 = vpop.f32.mrb[14].mxu0  ;;  %v9195_v36 = vpop.f32.mrb[229].mxu1  ;;  %v13556_v51 = vld [vmem:[#allocation2 + $0xc0] sm:$0xff] }
 0xc88   : > { %v9678_v50 = vadd.f32 %v9193_v54, %v8423_v33  ;;  %v8427_v4 = vpop.f32.mrb[15].mxu0  ;;  %v9197_v0 = vpop.f32.mrb[230].mxu1  ;;  %v18659_v58 = vld [vmem:[#allocation46_spill] sm:$0xff] }
 0xc89   : > { %v9679_v16 = vadd.f32 %v9195_v36, %v8425_v10  ;;  %v9198_v20 = vpop.f32.mrb[231].mxu1 }
 0xc8a   : > { %v9835_v7 = vrot.slane %v9678_v50, 7 }
 0xc8b   : > { %12424 = vmatmul.mubr.bf16.gmra.mrb[32].mxu1 %v13553_v63 }
 0xc8c   : > { %v9836_v44 = vsel %vm3246_vm2, %v9833_v41, %v9835_v7  ;;  %12427 = vmatprep.mubr.bf16.mxu1 %v13554_v47  ;;  %v13555_v41 = vld [vmem:[#allocation2 + $0xb8] sm:$0xff]  ;;  %v13557_v47 = vld [vmem:[#allocation2 + $0xc8] sm:$0xff] }
 0xc8d   : > { %v17574_v45 = vadd.f32 %v9836_v44, %v9679_v16  ;;  %v8430_v24 = vpop.f32.mrb[16].mxu0 }
 0xc8e   : > { %v8431_v17 = vadd.f32 %v8430_v24, %v18657_v37  ;;  %v8432_v55 = vpop.f32.mrb[17].mxu0  ;;  %v9201_v32 = vpop.f32.mrb[232].mxu1  ;;  %v13558_v37 = vld [vmem:[#allocation2 + $0xd0] sm:$0xff] }
 0xc8f   : > { %v8433_v9 = vpop.f32.mrb[18].mxu0  ;;  %v9203_v52 = vpop.f32.mrb[233].mxu1 }
 0xc90   : > { %v9682_v38 = vadd.f32 %v9201_v32, %v8431_v17  ;;  %v8434_v26 = vadd.f32 %v8433_v9, %v17313_v31  ;;  %v8435_v27 = vpop.f32.mrb[19].mxu0  ;;  %v9204_v30 = vpop.f32.mrb[234].mxu1 }
 0xc91   : > { %v8436_v29 = vadd.f32 %v8435_v27, %v18658_v3  ;;  %v9206_v25 = vpop.f32.mrb[235].mxu1  ;;  %v18660_v27 = vld [vmem:[#allocation47_spill] sm:$0xff] }
 0xc92   : > { %v9683_v22 = vadd.f32 %v9204_v30, %v8434_v26  ;;  %v9837_v18 = vrot.slane %v9682_v38, 7 }
 0xc93   : > { %v9684_v2 = vadd.f32 %v9206_v25, %v8436_v29  ;;  %12428 = vmatmul.mubr.bf16.gmra.mrb[36].mxu1 %v13555_v41  ;;  %v18661_v25 = vld [vmem:[#allocation50_spill] sm:$0xff] }
 0xc94   : > { %v9838_v39 = vrot.slane %v9683_v22, 7  ;;  %12431 = vmatprep.mubr.bf16.mxu1 %v13556_v51 }
 0xc95   : > { %v8439_v60 = vpop.f32.mrb[20].mxu0 }
 0xc96   : > { %v9839_v33 = vsel %vm3246_vm2, %v9837_v18, %v9838_v39  ;;  %v8440_v56 = vadd.f32 %v8439_v60, %v17321_v57  ;;  %v8441_v54 = vpop.f32.mrb[21].mxu0  ;;  %v9210_v31 = vpop.f32.mrb[236].mxu1 }
 0xc97   : > { %v17581_v10 = vadd.f32 %v9839_v33, %v9684_v2  ;;  %v8442_v36 = vadd.f32 %v8441_v54, %v18659_v58  ;;  %v8443_v50 = vpop.f32.mrb[22].mxu0  ;;  %v9212_v4 = vpop.f32.mrb[237].mxu1  ;;  %v13560_v33 = vld [vmem:[#allocation2 + $0xe0] sm:$0xff]  ;;  %v18662_v54 = vld [vmem:[#allocation48_spill] sm:$0xff] }
 0xc98   : > { %v9686_v0 = vadd.f32 %v9210_v31, %v8440_v56  ;;  %v8444_v16 = vpop.f32.mrb[23].mxu0  ;;  %v9214_v20 = vpop.f32.mrb[238].mxu1 }
 0xc99   : > { %v9687_v7 = vadd.f32 %v9212_v4, %v8442_v36  ;;  %v9215_v63 = vpop.f32.mrb[239].mxu1 }
 0xc9a   : > { %v9840_v44 = vrot.slane %v9686_v0, 7 }
 0xc9b   : > { %12432 = vmatmul.mubr.bf16.gmra.mrb[40].mxu1 %v13557_v47 }
 0xc9c   : > { %v9841_v24 = vsel %vm3246_vm2, %v9838_v39, %v9840_v44  ;;  %12435 = vmatprep.mubr.bf16.mxu1 %v13558_v37  ;;  %v13559_v39 = vld [vmem:[#allocation2 + $0xd8] sm:$0xff]  ;;  %v13561_v37 = vld [vmem:[#allocation2 + $0xe8] sm:$0xff] }
 0xc9d   : > { %v17585_v57 = vadd.f32 %v9841_v24, %v9687_v7  ;;  %v8447_v17 = vpop.f32.mrb[24].mxu0 }
 0xc9e   : > { %v8448_v55 = vadd.f32 %v8447_v17, %v17329_v59  ;;  %v8449_v32 = vpop.f32.mrb[25].mxu0  ;;  %v9218_v9 = vpop.f32.mrb[240].mxu1 }
 0xc9f   : > { %v8450_v52 = vpop.f32.mrb[26].mxu0  ;;  %v9220_v38 = vpop.f32.mrb[241].mxu1 }
 0xca0   : > { %v9690_v26 = vadd.f32 %v9218_v9, %v8448_v55  ;;  %v8451_v30 = vadd.f32 %v8450_v52, %v18660_v27  ;;  %v8452_v3 = vpop.f32.mrb[27].mxu0  ;;  %v9221_v29 = vpop.f32.mrb[242].mxu1  ;;  %v13562_v55 = vld [vmem:[#allocation2 + $0xf0] sm:$0xff] }
 0xca1   : > { %v8453_v22 = vadd.f32 %v8452_v3, %v18661_v25  ;;  %v9223_v2 = vpop.f32.mrb[243].mxu1  ;;  %v18663_v3 = vld [vmem:[#allocation53_spill] sm:$0xff] }
 0xca2   : > { %v9691_v41 = vadd.f32 %v9221_v29, %v8451_v30  ;;  %v9842_v51 = vrot.slane %v9690_v26, 7 }
 0xca3   : > { %v9692_v18 = vadd.f32 %v9223_v2, %v8453_v22  ;;  %12436 = vmatmul.mubr.bf16.gmra.mrb[44].mxu1 %v13559_v39  ;;  %v18664_v2 = vld [vmem:[#allocation51_spill] sm:$0xff] }
 0xca4   : > { %v9843_v60 = vrot.slane %v9691_v41, 7  ;;  %12439 = vmatprep.mubr.bf16.mxu1 %v13560_v33 }
 0xca5   : > { %v8456_v59 = vpop.f32.mrb[28].mxu0 }
 0xca6   : > { %v9844_v56 = vsel %vm3246_vm2, %v9842_v51, %v9843_v60  ;;  %v8457_v31 = vadd.f32 %v8456_v59, %v18662_v54  ;;  %v8458_v58 = vpop.f32.mrb[29].mxu0  ;;  %v9227_v36 = vpop.f32.mrb[244].mxu1 }
 0xca7   : > { %v17592_v50 = vadd.f32 %v9844_v56, %v9692_v18  ;;  %v8459_v4 = vadd.f32 %v8458_v58, %v17341_v6  ;;  %v8460_v0 = vpop.f32.mrb[30].mxu0  ;;  %v9229_v16 = vpop.f32.mrb[245].mxu1 }
 0xca8   : > { %v9694_v20 = vadd.f32 %v9227_v36, %v8457_v31  ;;  %v8461_v7 = vpop.f32.mrb[31].mxu0  ;;  %v9231_v63 = vpop.f32.mrb[246].mxu1  ;;  %v18665_v36 = vld [vmem:[#allocation54_spill] sm:$0xff] }
 0xca9   : > { %v9695_v44 = vadd.f32 %v9229_v16, %v8459_v4  ;;  %v9232_v47 = vpop.f32.mrb[247].mxu1 }
 0xcaa   : > { %v9845_v24 = vrot.slane %v9694_v20, 7 }
 0xcab   : > { %12440 = vmatmul.mubr.bf16.gmra.mrb[48].mxu1 %v13561_v37 }
 0xcac   : > { %v9846_v17 = vsel %vm3246_vm2, %v9843_v60, %v9845_v24  ;;  %12443 = vmatprep.mubr.bf16.mxu1 %v13562_v55 }
 0xcad   : > { %v17596_v32 = vadd.f32 %v9846_v17, %v9695_v44  ;;  %v8464_v9 = vpop.f32.mrb[32].mxu0 }
 0xcae   : > { %v8465_v52 = vadd.f32 %v8464_v9, %v17347_v35  ;;  %v8466_v6 = vpop.f32.mrb[33].mxu0  ;;  %v9235_v38 = vpop.f32.mrb[248].mxu1 }
 0xcaf   : > { %v8467_v26 = vpop.f32.mrb[34].mxu0  ;;  %v9237_v27 = vpop.f32.mrb[249].mxu1 }
 0xcb0   : > { %v9698_v30 = vadd.f32 %v9235_v38, %v8465_v52  ;;  %v8468_v29 = vadd.f32 %v8467_v26, %v18663_v3  ;;  %v8469_v25 = vpop.f32.mrb[35].mxu0  ;;  %v9238_v22 = vpop.f32.mrb[250].mxu1  ;;  %v18666_v38 = vld [vmem:[#allocation52_spill] sm:$0xff]  ;;  %v18667_v3 = vld [vmem:[#allocation57_spill] sm:$0xff] }
 0xcb1   : > { %v8470_v41 = vadd.f32 %v8469_v25, %v18664_v2  ;;  %v9240_v18 = vpop.f32.mrb[251].mxu1 }
 0xcb2   : > { %v9699_v39 = vadd.f32 %v9238_v22, %v8468_v29  ;;  %v9847_v60 = vrot.slane %v9698_v30, 7 }
 0xcb3   : > { %v9700_v51 = vadd.f32 %v9240_v18, %v8470_v41  ;;  %12444 = vmatmul.mubr.bf16.gmra.mrb[52].mxu1 %v17477_v13 }
 0xcb4   : > { %v9848_v33 = vrot.slane %v9699_v39, 7  ;;  %12447 = vmatprep.mubr.bf16.mxu1 %v17490_v19 }
 0xcb5   : > { %v8473_v35 = vpop.f32.mrb[36].mxu0 }
 0xcb6   : > { %v9849_v59 = vsel %vm3246_vm2, %v9847_v60, %v9848_v33  ;;  %v8474_v56 = vadd.f32 %v8473_v35, %v17357_v23  ;;  %v8475_v54 = vpop.f32.mrb[37].mxu0  ;;  %v9244_v31 = vpop.f32.mrb[252].mxu1  ;;  %v18668_v35 = vld [vmem:[#allocation56_spill] sm:$0xff] }
 0xcb7   : > { %v17605_v58 = vadd.f32 %v9849_v59, %v9700_v51  ;;  %v8476_v4 = vadd.f32 %v8475_v54, %v18665_v36  ;;  %v8477_v0 = vpop.f32.mrb[38].mxu0  ;;  %v9246_v16 = vpop.f32.mrb[253].mxu1 }
 0xcb8   : > { %v9702_v20 = vadd.f32 %v9244_v31, %v8474_v56  ;;  %v8478_v7 = vpop.f32.mrb[39].mxu0  ;;  %v9248_v13 = vpop.f32.mrb[254].mxu1 }
 0xcb9   : > { %v9703_v63 = vadd.f32 %v9246_v16, %v8476_v4  ;;  %v9249_v44 = vpop.f32.mrb[255].mxu1 }
 0xcba   : > { %v9850_v47 = vrot.slane %v9702_v20, 7 }
 0xcbb   : > { %12448 = vmatmul.mubr.bf16.gmra.mrb[56].mxu1 %v17502_v46 }
 0xcbc   : > { %v9851_v19 = vsel %vm3246_vm2, %v9848_v33, %v9850_v47  ;;  %12451 = vmatprep.mubr.bf16.mxu1 %v17480_v8 }
 0xcbd   : > { %v17611_v23 = vadd.f32 %v9851_v19, %v9703_v63  ;;  %v8481_v24 = vpop.f32.mrb[40].mxu0 }
 0xcbe   : > { %v8482_v37 = vadd.f32 %v8481_v24, %v17365_v40  ;;  %v8483_v17 = vpop.f32.mrb[41].mxu0  ;;  %v9252_v55 = vpop.f32.mrb[64].mxu1 }
 0xcbf   : > { %v8484_v9 = vpop.f32.mrb[42].mxu0  ;;  %v9254_v52 = vpop.f32.mrb[65].mxu1 }
 0xcc0   : > { %v9706_v6 = vadd.f32 %v9252_v55, %v8482_v37  ;;  %v8485_v26 = vadd.f32 %v8484_v9, %v18666_v38  ;;  %v8486_v27 = vpop.f32.mrb[43].mxu0  ;;  %v9255_v30 = vpop.f32.mrb[66].mxu1  ;;  %v18669_v37 = vld [vmem:[#allocation61_spill] sm:$0xff]  ;;  %v18670_v52 = vld [vmem:[#allocation58_spill] sm:$0xff] }
 0xcc1   : > { %v8487_v46 = vadd.f32 %v8486_v27, %v18667_v3  ;;  %v9257_v29 = vpop.f32.mrb[67].mxu1 }
 0xcc2   : > { %v9707_v25 = vadd.f32 %v9255_v30, %v8485_v26  ;;  %v9852_v2 = vrot.slane %v9706_v6, 7 }
 0xcc3   : > { %v9708_v22 = vadd.f32 %v9257_v29, %v8487_v46  ;;  %12452 = vmatmul.mubr.bf16.gmra.mrb[60].mxu1 %v17480_v8 }
 0xcc4   : > { %v9853_v41 = vrot.slane %v9707_v25, 7 }
 0xcc5   : > { %v8490_v18 = vpop.f32.mrb[44].mxu0 }
 0xcc6   : > { %v9854_v40 = vsel %vm3246_vm2, %v9852_v2, %v9853_v41  ;;  %v8491_v39 = vadd.f32 %v8490_v18, %v17375_v1  ;;  %v8492_v51 = vpop.f32.mrb[45].mxu0  ;;  %v9261_v60 = vpop.f32.mrb[68].mxu1 }
 0xcc7   : > { %v17619_v33 = vadd.f32 %v9854_v40, %v9708_v22  ;;  %v8493_v59 = vadd.f32 %v8492_v51, %v18668_v35  ;;  %v8494_v56 = vpop.f32.mrb[46].mxu0  ;;  %v9263_v54 = vpop.f32.mrb[69].mxu1 }
 0xcc8   : > { %v9710_v31 = vadd.f32 %v9261_v60, %v8491_v39  ;;  %v8495_v36 = vpop.f32.mrb[47].mxu0  ;;  %v9265_v4 = vpop.f32.mrb[70].mxu1 }
 0xcc9   : > { %v9711_v0 = vadd.f32 %v9263_v54, %v8493_v59  ;;  %v9266_v8 = vpop.f32.mrb[71].mxu1 }
 0xcca   : > { %v9855_v16 = vrot.slane %v9710_v31, 7 }
 0xccc   : > { %v9856_v20 = vsel %vm3246_vm2, %v9853_v41, %v9855_v16  ;;  %v18671_v41 = vld [vmem:[#allocation64_spill] sm:$0xff] }
 0xccd   : > { %v17623_v7 = vadd.f32 %v9856_v20, %v9711_v0  ;;  %v8498_v13 = vpop.f32.mrb[48].mxu0 }
 0xcce   : > { %v8499_v1 = vadd.f32 %v8498_v13, %v17383_v34  ;;  %v8500_v63 = vpop.f32.mrb[49].mxu0  ;;  %v9269_v44 = vpop.f32.mrb[72].mxu1 }
 0xccf   : > { %v8501_v47 = vpop.f32.mrb[50].mxu0  ;;  %v9271_v19 = vpop.f32.mrb[73].mxu1  ;;  %v18673_v63 = vld [vmem:[#allocation78_spill] sm:$0xff] }
 0xcd0   : > { %v9714_v24 = vadd.f32 %v9269_v44, %v8499_v1  ;;  %v8502_v17 = vadd.f32 %v8501_v47, %v18669_v37  ;;  %v8503_v55 = vpop.f32.mrb[51].mxu0  ;;  %v9272_v9 = vpop.f32.mrb[74].mxu1 }
 0xcd1   : > { %v8504_v6 = vadd.f32 %v8503_v55, %v18670_v52  ;;  %v9274_v38 = vpop.f32.mrb[75].mxu1 }
 0xcd2   : > { %v9715_v26 = vadd.f32 %v9272_v9, %v8502_v17  ;;  %v9857_v30 = vrot.slane %v9714_v24, 7  ;;  %v18674_v24 = vld [vmem:[#allocation79_spill] sm:$0xff] }
 0xcd3   : > { %v9716_v27 = vadd.f32 %v9274_v38, %v8504_v6 }
 0xcd4   : > { %v9858_v3 = vrot.slane %v9715_v26, 7 }
 0xcd5   : > { %v8507_v46 = vpop.f32.mrb[52].mxu0 }
 0xcd6   : > { %v9859_v29 = vsel %vm3246_vm2, %v9857_v30, %v9858_v3  ;;  %v8508_v34 = vadd.f32 %v8507_v46, %v17393_v14  ;;  %v8509_v25 = vpop.f32.mrb[53].mxu0  ;;  %v9278_v22 = vpop.f32.mrb[76].mxu1  ;;  %v18672_v14 = vld [vmem:[#allocation60_spill] sm:$0xff] }
 0xcd7   : > { %v17630_v2 = vadd.f32 %v9859_v29, %v9716_v27  ;;  %v8510_v18 = vadd.f32 %v8509_v25, %v18671_v41  ;;  %v8511_v40 = vpop.f32.mrb[54].mxu0  ;;  %v9280_v39 = vpop.f32.mrb[77].mxu1  ;;  %v18675_v27 = vld [vmem:[#allocation68_spill] sm:$0xff] }
 0xcd8   : > { %v9718_v51 = vadd.f32 %v9278_v22, %v8508_v34  ;;  %v8512_v60 = vpop.f32.mrb[55].mxu0  ;;  %v9282_v35 = vpop.f32.mrb[78].mxu1  ;;  %v18676_v34 = vld [vmem:[#allocation65_spill] sm:$0xff] }
 0xcd9   : > { %v9719_v59 = vadd.f32 %v9280_v39, %v8510_v18  ;;  %v9283_v56 = vpop.f32.mrb[79].mxu1 }
 0xcda   : > { %v9860_v54 = vrot.slane %v9718_v51, 7 }
 0xcdc   : > { %v9861_v31 = vsel %vm3246_vm2, %v9858_v3, %v9860_v54 }
 0xcdd   : > { %v17634_v36 = vadd.f32 %v9861_v31, %v9719_v59  ;;  %v8515_v4 = vpop.f32.mrb[56].mxu0  ;;  %v18677_v31 = vld [vmem:[#allocation69_spill] sm:$0xff] }
 0xcde   : > { %v8516_v0 = vadd.f32 %v8515_v4, %v18672_v14  ;;  %v8517_v8 = vpop.f32.mrb[57].mxu0  ;;  %v9286_v16 = vpop.f32.mrb[80].mxu1 }
 0xcdf   : > { %v8518_v20 = vpop.f32.mrb[58].mxu0  ;;  %v9288_v13 = vpop.f32.mrb[81].mxu1 }
 0xce0   : > { %v9722_v1 = vadd.f32 %v9286_v16, %v8516_v0  ;;  %v8519_v44 = vadd.f32 %v8518_v20, %v18673_v63  ;;  %v8520_v47 = vpop.f32.mrb[59].mxu0  ;;  %v9289_v19 = vpop.f32.mrb[82].mxu1  ;;  %v18678_v13 = vld [vmem:[#allocation67_spill] sm:$0xff] }
 0xce1   : > { %v8521_v37 = vadd.f32 %v8520_v47, %v18674_v24  ;;  %v9291_v17 = vpop.f32.mrb[83].mxu1  ;;  %v18679_v47 = vld [vmem:[#allocation24_spill] sm:$0xff] }
 0xce2   : > { %v9723_v55 = vadd.f32 %v9289_v19, %v8519_v44  ;;  %v9862_v52 = vrot.slane %v9722_v1, 7 }
 0xce3   : > { %v9724_v9 = vadd.f32 %v9291_v17, %v8521_v37 }
 0xce4   : > { %v9863_v6 = vrot.slane %v9723_v55, 7 }
 0xce5   : > { %v8524_v38 = vpop.f32.mrb[60].mxu0 }
 0xce6   : > { %v9864_v26 = vsel %vm3246_vm2, %v9862_v52, %v9863_v6  ;;  %v8525_v30 = vadd.f32 %v8524_v38, %v18675_v27  ;;  %v8526_v3 = vpop.f32.mrb[61].mxu0  ;;  %v9295_v46 = vpop.f32.mrb[84].mxu1  ;;  %v18680_v38 = vld [vmem:[#allocation25_spill] sm:$0xff] }
 0xce7   : > { %v17641_v29 = vadd.f32 %v9864_v26, %v9724_v9  ;;  %v8527_v25 = vadd.f32 %v8526_v3, %v18676_v34  ;;  %v8528_v22 = vpop.f32.mrb[62].mxu0  ;;  %v9297_v41 = vpop.f32.mrb[85].mxu1 }
 0xce8   : > { %v9726_v18 = vadd.f32 %v9295_v46, %v8525_v30  ;;  %v8529_v40 = vpop.f32.mrb[63].mxu0  ;;  %v9299_v39 = vpop.f32.mrb[86].mxu1  ;;  %v18681_v46 = vld [vmem:[#allocation72_spill] sm:$0xff] }
 0xce9   : > { %v9727_v51 = vadd.f32 %v9297_v41, %v8527_v25  ;;  %v9300_v60 = vpop.f32.mrb[87].mxu1 }
 0xcea   : > { %v9865_v35 = vrot.slane %v9726_v18, 7 }
 0xcec   : > { %v9866_v59 = vsel %vm3246_vm2, %v9863_v6, %v9865_v35 }
 0xced   : > { %v17645_v56 = vadd.f32 %v9866_v59, %v9727_v51  ;;  %v8532_v54 = vpop.f32.mrb[64].mxu0 }
 0xcee   : > { %v8533_v4 = vadd.f32 %v8532_v54, %v18677_v31  ;;  %v8534_v14 = vpop.f32.mrb[65].mxu0  ;;  %v9303_v0 = vpop.f32.mrb[88].mxu1  ;;  %v18682_v31 = vld [vmem:[#allocation71_spill] sm:$0xff] }
 0xcef   : > { %v8535_v8 = vpop.f32.mrb[66].mxu0  ;;  %v9305_v16 = vpop.f32.mrb[89].mxu1 }
 0xcf0   : > { %v9730_v20 = vadd.f32 %v9303_v0, %v8533_v4  ;;  %v8536_v1 = vadd.f32 %v8535_v8, %v18678_v13  ;;  %v8537_v63 = vpop.f32.mrb[67].mxu0  ;;  %v9306_v44 = vpop.f32.mrb[90].mxu1  ;;  %v18683_v13 = vld [vmem:[#allocation75_spill] sm:$0xff] }
 0xcf1   : > { %v8538_v19 = vadd.f32 %v8537_v63, %v18679_v47  ;;  %v9308_v24 = vpop.f32.mrb[91].mxu1  ;;  %v18684_v47 = vld [vmem:[#allocation73_spill] sm:$0xff] }
 0xcf2   : > { %v9731_v37 = vadd.f32 %v9306_v44, %v8536_v1  ;;  %v9867_v55 = vrot.slane %v9730_v20, 7 }
 0xcf3   : > { %v9732_v17 = vadd.f32 %v9308_v24, %v8538_v19 }
 0xcf4   : > { %v9868_v9 = vrot.slane %v9731_v37, 7 }
 0xcf5   : > { %v8541_v52 = vpop.f32.mrb[68].mxu0 }
 0xcf6   : > { %v9869_v6 = vsel %vm3246_vm2, %v9867_v55, %v9868_v9  ;;  %v8542_v26 = vadd.f32 %v8541_v52, %v18680_v38  ;;  %v8543_v27 = vpop.f32.mrb[69].mxu0  ;;  %v9312_v30 = vpop.f32.mrb[92].mxu1  ;;  %v18685_v38 = vld [vmem:[#allocation77_spill] sm:$0xff] }
 0xcf7   : > { %v17652_v3 = vadd.f32 %v9869_v6, %v9732_v17  ;;  %v8544_v34 = vadd.f32 %v8543_v27, %v18681_v46  ;;  %v8545_v25 = vpop.f32.mrb[70].mxu0  ;;  %v9314_v22 = vpop.f32.mrb[93].mxu1 }
 0xcf8   : > { %v9734_v41 = vadd.f32 %v9312_v30, %v8542_v26  ;;  %v8546_v18 = vpop.f32.mrb[71].mxu0  ;;  %v9316_v40 = vpop.f32.mrb[94].mxu1 }
 0xcf9   : > { %v9735_v39 = vadd.f32 %v9314_v22, %v8544_v34  ;;  %v9317_v51 = vpop.f32.mrb[95].mxu1  ;;  %v18686_v34 = vld [vmem:[#allocation74_spill] sm:$0xff] }
 0xcfa   : > { %v9870_v60 = vrot.slane %v9734_v41, 7 }
 0xcfc   : > { %v9871_v35 = vsel %vm3246_vm2, %v9868_v9, %v9870_v60 }
 0xcfd   : > { %v17656_v59 = vadd.f32 %v9871_v35, %v9735_v39  ;;  %v8549_v54 = vpop.f32.mrb[72].mxu0 }
 0xcfe   : > { %v8550_v4 = vadd.f32 %v8549_v54, %v18682_v31  ;;  %v8551_v14 = vpop.f32.mrb[73].mxu0  ;;  %v9320_v0 = vpop.f32.mrb[96].mxu1 }
 0xcff   : > { %v8552_v8 = vpop.f32.mrb[74].mxu0  ;;  %v9322_v16 = vpop.f32.mrb[97].mxu1  ;;  %v18687_v14 = vld [vmem:[#allocation43_spill] sm:$0xff] }
 0xd00   : > { %v9738_v20 = vadd.f32 %v9320_v0, %v8550_v4  ;;  %v8553_v1 = vadd.f32 %v8552_v8, %v18683_v13  ;;  %v8554_v63 = vpop.f32.mrb[75].mxu0  ;;  %v9323_v44 = vpop.f32.mrb[98].mxu1 }
 0xd01   : > { %v8555_v19 = vadd.f32 %v8554_v63, %v18684_v47  ;;  %v9325_v24 = vpop.f32.mrb[99].mxu1  ;;  %v18688_v63 = vld [vmem:[#allocation22_spill] sm:$0xff] }
 0xd02   : > { %v9739_v37 = vadd.f32 %v9323_v44, %v8553_v1  ;;  %v9872_v55 = vrot.slane %v9738_v20, 7 }
 0xd03   : > { %v9740_v17 = vadd.f32 %v9325_v24, %v8555_v19  ;;  %v18689_v24 = vld [vmem:[#allocation21_spill] sm:$0xff] }
 0xd04   : > { %v9873_v9 = vrot.slane %v9739_v37, 7 }
 0xd05   : > { %v8558_v52 = vpop.f32.mrb[76].mxu0 }
 0xd06   : > { %v9874_v6 = vsel %vm3246_vm2, %v9872_v55, %v9873_v9  ;;  %v8559_v26 = vadd.f32 %v8558_v52, %v18685_v38  ;;  %v8560_v27 = vpop.f32.mrb[77].mxu0  ;;  %v9329_v30 = vpop.f32.mrb[100].mxu1 }
 0xd07   : > { %v17663_v46 = vadd.f32 %v9874_v6, %v9740_v17  ;;  %v8561_v25 = vadd.f32 %v8560_v27, %v18686_v34  ;;  %v8562_v22 = vpop.f32.mrb[78].mxu0  ;;  %v9331_v41 = vpop.f32.mrb[101].mxu1  ;;  %v18690_v27 = vld [vmem:[#allocation31_spill] sm:$0xff] }
 0xd08   : > { %v9742_v18 = vadd.f32 %v9329_v30, %v8559_v26  ;;  %v8563_v40 = vpop.f32.mrb[79].mxu0  ;;  %v9333_v39 = vpop.f32.mrb[102].mxu1 }
 0xd09   : > { %v9743_v51 = vadd.f32 %v9331_v41, %v8561_v25  ;;  %v9334_v60 = vpop.f32.mrb[103].mxu1  ;;  %v18691_v41 = vld [vmem:[#allocation49_spill] sm:$0xff] }
 0xd0a   : > { %v9875_v35 = vrot.slane %v9742_v18, 7 }
 0xd0c   : > { %v9876_v54 = vsel %vm3246_vm2, %v9873_v9, %v9875_v35 }
 0xd0d   : > { %v17667_v31 = vadd.f32 %v9876_v54, %v9743_v51  ;;  %v8566_v4 = vpop.f32.mrb[80].mxu0 }
 0xd0e   : > { %v8567_v0 = vadd.f32 %v8566_v4, %v18687_v14  ;;  %v8568_v8 = vpop.f32.mrb[81].mxu0  ;;  %v9337_v16 = vpop.f32.mrb[104].mxu1 }
 0xd0f   : > { %v8569_v20 = vpop.f32.mrb[82].mxu0  ;;  %v9339_v13 = vpop.f32.mrb[105].mxu1 }
 0xd10   : > { %v9746_v1 = vadd.f32 %v9337_v16, %v8567_v0  ;;  %v8570_v44 = vadd.f32 %v8569_v20, %v18688_v63  ;;  %v8571_v47 = vpop.f32.mrb[83].mxu0  ;;  %v9340_v19 = vpop.f32.mrb[106].mxu1 }
 0xd11   : > { %v8572_v37 = vadd.f32 %v8571_v47, %v18689_v24  ;;  %v9342_v17 = vpop.f32.mrb[107].mxu1  ;;  %v17684_v24 = vld [vmem:[%s18232_s6] ss:$0 sm:$0xff] }
 0xd12   : > { %v9747_v55 = vadd.f32 %v9340_v19, %v8570_v44  ;;  %v9877_v9 = vrot.slane %v9746_v1, 7 }
 0xd13   : > { %v9748_v52 = vadd.f32 %v9342_v17, %v8572_v37 }
 0xd14   : > { %v9878_v6 = vrot.slane %v9747_v55, 7 }
 0xd15   : > { %v8575_v38 = vpop.f32.mrb[84].mxu0 }
 0xd16   : > { %v9879_v26 = vsel %vm3246_vm2, %v9877_v9, %v9878_v6  ;;  %v8576_v30 = vadd.f32 %v8575_v38, %v18690_v27  ;;  %v8577_v34 = vpop.f32.mrb[85].mxu0  ;;  %v9346_v25 = vpop.f32.mrb[108].mxu1 }
 0xd17   : > { %v17674_v22 = vadd.f32 %v9879_v26, %v9748_v52  ;;  %v8578_v18 = vadd.f32 %v8577_v34, %v18691_v41  ;;  %v8579_v40 = vpop.f32.mrb[86].mxu0  ;;  %v9348_v39 = vpop.f32.mrb[109].mxu1 }
 0xd18   : > { %v9750_v51 = vadd.f32 %v9346_v25, %v8576_v30  ;;  %v8580_v60 = vpop.f32.mrb[87].mxu0  ;;  %v9350_v35 = vpop.f32.mrb[110].mxu1 }
 0xd19   : > { %v9751_v54 = vadd.f32 %v9348_v39, %v8578_v18  ;;  %v9351_v4 = vpop.f32.mrb[111].mxu1 }
 0xd1a   : > { %v9880_v14 = vrot.slane %v9750_v51, 7 }
 0xd1c   : > { %v9881_v0 = vsel %vm3246_vm2, %v9878_v6, %v9880_v14 }
 0xd1d   : > { %v17678_v8 = vadd.f32 %v9881_v0, %v9751_v54 }
 0xd1e   : > { %v12393_v16 = vpop.f32.mrb[0].mxu1 }
 0xd1f   : > { %v9387_v20 = vpop.f32.mrb[1].mxu1  ;;  %v9995_v1 = vrot.slane %v12393_v16, 1 }
 0xd20   : > { %v12394_v13 = vpop.f32.mrb[2].mxu1 }
 0xd21   : > { %v9997_v63 = vrot.slane %v12394_v13, 1  ;;  %v9389_v44 = vpop.f32.mrb[3].mxu1 }
 0xd22   : > { %v9994_v47 = vrot.slane %v9389_v44, 1 }
 0xd23   : > { %v9998_v19 = vsel %vm3439_vm1, %v9995_v1, %v9997_v63 }
 0xd24   : > { %v10107_v37 = vadd.f32 %v9998_v19, %v17496_v49  ;;  %v9996_v17 = vsel %vm3439_vm1, %v9994_v47, %v9995_v1  ;;  %v17712_v19 = vstv %s10185_s25  ;;  %s13788_s25 = smov [#allocation13]  }
 0xd25   : > { %v10106_v55 = vadd.f32 %v9996_v17, %v17486_v61 }
 0xd26   : > { %v17690_v52 = vadd.f32 %v17684_v24, %v10107_v37  ;;  %v12397_v9 = vpop.f32.mrb[4].mxu1 }
 0xd27   : > { %v17693_v6 = vadd.f32 %v17684_v24, %v10106_v55  ;;  %v9402_v38 = vpop.f32.mrb[5].mxu1  ;;  %v10000_v34 = vrot.slane %v12397_v9, 1 }
 0xd28   : > { %v11074_v26 = vmul.f32 -1.442695, %v17690_v52  ;;  %v12398_v27 = vpop.f32.mrb[6].mxu1 }
 0xd29   : > { %v11073_v30 = vmul.f32 -1.442695, %v17693_v6  ;;  %v10002_v25 = vrot.slane %v12398_v27, 1  ;;  %v9404_v49 = vpop.f32.mrb[7].mxu1 }
 0xd2a   : > { %13373 = vpow2.f32 %v11074_v26  ;;  %v9999_v41 = vrot.slane %v9404_v49, 1  ;;  %v18692_v26 = vlaneseq  ;;  %v10187_v49 = vmul.f32 %v17712_v19, %v17693_v6 }
 0xd2b   : > { %13375 = vpow2.f32 %v11073_v30  ;;  %v10003_v61 = vsel %vm3439_vm1, %v10000_v34, %v10002_v25 }
 0xd2c   : > { %v10109_v18 = vadd.f32 %v10003_v61, %v17517_v11  ;;  %v10001_v40 = vsel %vm3439_vm1, %v9999_v41, %v10000_v34  ;;  %v10178_v27 = vand.u32 127, %v18692_v26  ;;  %v10188_v34 = vmul.f32 %v17712_v19, %v17690_v52 }
 0xd2d   : > { %v10108_v39 = vadd.f32 %v10001_v40, %v17509_v5 }
 0xd2e   : > { %v17702_v51 = vadd.f32 %v17684_v24, %v10109_v18  ;;  %v12401_v60 = vpop.f32.mrb[8].mxu1  ;;  %vm10179_vm4 = vcmp.ge.s32.totalorder %v10178_v27, 8  ;;  %vm10180_vm5 = vcmp.lt.s32.totalorder %v10178_v27, 9  ;;  %vm10182_vm6 = vcmp.ge.s32.totalorder %v10178_v27, 9 }
 0xd2f   : > { %v17705_v35 = vadd.f32 %v17684_v24, %v10108_v39  ;;  %v9417_v54 = vpop.f32.mrb[9].mxu1  ;;  %v10005_v16 = vrot.slane %v12401_v60, 1  ;;  %vm10183_vm7 = vcmp.lt.s32.totalorder %v10178_v27, 13  ;;  %vm17742_vm8 = vmand %vm10179_vm4, %vm10180_vm5 }
 0xd30   : > { %v11076_v4 = vmul.f32 -1.442695, %v17702_v51  ;;  %v12402_v14 = vpop.f32.mrb[10].mxu1  ;;  %vm17753_vm9 = vmand %vm10182_vm6, %vm10183_vm7 }
 0xd31   : > { %v11075_v0 = vmul.f32 -1.442695, %v17705_v35  ;;  %v10007_v11 = vrot.slane %v12402_v14, 1  ;;  %v9419_v20 = vpop.f32.mrb[11].mxu1 }
 0xd32   : > { %13377 = vpow2.f32 %v11076_v4  ;;  %v10004_v13 = vrot.slane %v9419_v20, 1 }
 0xd33   : > { %13379 = vpow2.f32 %v11075_v0  ;;  %v10008_v5 = vsel %vm3439_vm1, %v10005_v16, %v10007_v11  ;;  %v10219_v11 = vmax.f32 %v10187_v49, 0.0 }
 0xd34   : > { %v13374_v1 = vpop.eup %13373  ;;  %v10111_v63 = vadd.f32 %v10008_v5, %v17530_v48  ;;  %v10006_v44 = vsel %vm3439_vm1, %v10004_v13, %v10005_v16  ;;  %v10220_v16 = vmax.f32 %v10188_v34, 0.0  ;;  %v17735_v5 = vstv %s17715_s26  ;;  %s13697_s26 = sshll.u32 %s13788_s25, 4  ;;  %s13698_s26 = int_to_ptr.vmem [resolvable:$false] %s13697_s26 }
 0xd35   : > { %v13376_v47 = vpop.eup %13375  ;;  %v10382_v37 = vadd.f32 1.0, %v13374_v1  ;;  %v10110_v17 = vadd.f32 %v10006_v44, %v17526_v53  ;;  %s13699_s16 = scalar_lea.vmem %s13698_s26, 4096  ;;  %p13700_p7 = scmp.lt.s32.totalorder %s18179_s28, %s13698_s26 }
 0xd36   : > { %v10381_v55 = vadd.f32 1.0, %v13376_v47  ;;  %v17718_v9 = vadd.f32 %v17684_v24, %v10111_v63  ;;  %v12405_v38 = vpop.f32.mrb[12].mxu1  ;;  %v10190_v47 = vmul.f32 %v17712_v19, %v17702_v51  ;;  %v10254_v34 = vmul.f32 %v17735_v5, %v10220_v16  ;;  %p13701_p13 = scmp.lt.s32.totalorder %s13699_s16, %s13693_s17 }
 0xd37   : > { %13381 = vrcp.f32 %v10382_v37  ;;  %v17722_v48 = vadd.f32 %v17684_v24, %v10110_v17  ;;  %v9432_v30 = vpop.f32.mrb[13].mxu1  ;;  %v10010_v61 = vrot.slane %v12405_v38, 1 }
 0xd38   : > { %13383 = vrcp.f32 %v10381_v55  ;;  %v11078_v53 = vmul.f32 -1.442695, %v17718_v9  ;;  %v12406_v25 = vpop.f32.mrb[14].mxu1  ;;  %v10189_v55 = vmul.f32 %v17712_v19, %v17705_v35  ;;  %p13702_p3 = por %p13701_p13, %p13700_p7 }
 0xd39   : > { %v11077_v41 = vmul.f32 -1.442695, %v17722_v48  ;;  %v10012_v18 = vrot.slane %v12406_v25, 1  ;;  %v9434_v40 = vpop.f32.mrb[15].mxu1 }
 0xd3a   : > { %13385 = vpow2.f32 %v11078_v53  ;;  %v10009_v39 = vrot.slane %v9434_v40, 1  ;;  %v10253_v53 = vmul.f32 %v17735_v5, %v10219_v11  ;;  %p13703_p8 = pnand %p13702_p3, %p13696_p5 }
 0xd3b   : > { %13387 = vpow2.f32 %v11077_v41  ;;  %v10013_v60 = vsel %vm3439_vm1, %v10010_v61, %v10012_v18 }
 0xd3c   : > { %v13378_v54 = vpop.eup %13377  ;;  %v10113_v4 = vadd.f32 %v10013_v60, %v17541_v21  ;;  %v10011_v14 = vsel %vm3439_vm1, %v10009_v39, %v10010_v61 }
 0xd3d   : > { %v13380_v0 = vpop.eup %13379  ;;  %v10384_v20 = vadd.f32 1.0, %v13378_v54  ;;  %v10112_v13 = vadd.f32 %v10011_v14, %v17537_v42  ;;  %v10222_v54 = vmax.f32 %v10190_v47, 0.0 }
 0xd3e   : > { %v10383_v1 = vadd.f32 1.0, %v13380_v0  ;;  %v17738_v63 = vadd.f32 %v17684_v24, %v10113_v4  ;;  %v12409_v44 = vpop.f32.mrb[16].mxu1  ;;  %v10221_v0 = vmax.f32 %v10189_v55, 0.0 }
 0xd3f   : > { %13389 = vrcp.f32 %v10384_v20  ;;  %v17749_v42 = vadd.f32 %v17684_v24, %v10112_v13  ;;  %v9447_v37 = vpop.f32.mrb[17].mxu1  ;;  %v10015_v18 = vrot.slane %v12409_v44, 1 }
 0xd40   : > { %13391 = vrcp.f32 %v10383_v1  ;;  %v11080_v38 = vmul.f32 -1.442695, %v17738_v63  ;;  %v12410_v26 = vpop.f32.mrb[18].mxu1 }
 0xd41   : > { %v13382_v30 = vpop.eup %13381  ;;  %v11079_v25 = vmul.f32 -1.442695, %v17749_v42  ;;  %v10017_v27 = vrot.slane %v12410_v26, 1  ;;  %v9449_v49 = vpop.f32.mrb[19].mxu1  ;;  %v10255_v26 = vmul.f32 %v17735_v5, %v10221_v0 }
 0xd42   : > { %v13384_v41 = vpop.eup %13383  ;;  %v10480_v61 = vsel %vm17742_vm8, %v13382_v30, %v17690_v52  ;;  %13393 = vpow2.f32 %v11080_v38  ;;  %v10014_v40 = vrot.slane %v9449_v49, 1  ;;  %v10256_v38 = vmul.f32 %v17735_v5, %v10222_v54 }
 0xd43   : > { %v10514_v39 = vsel %vm17753_vm9, %v10254_v34, %v10480_v61  ;;  %v10479_v60 = vsel %vm17742_vm8, %v13384_v41, %v17693_v6  ;;  %13395 = vpow2.f32 %v11079_v25  ;;  %v10018_v16 = vsel %vm3439_vm1, %v10015_v18, %v10017_v27 }
 0xd44   : > { %v13386_v4 = vpop.eup %13385  ;;  %v10513_v14 = vsel %vm17753_vm9, %v10253_v53, %v10479_v60  ;;  %v10016_v52 = vsel %vm3439_vm1, %v10014_v40, %v10015_v18  ;;  %v10115_v1 = vadd.f32 %v10018_v16, %v17552_v62  ;;  %v10192_v34 = vmul.f32 %v17712_v19, %v17718_v9 }
 0xd45   : > { %v13388_v11 = vpop.eup %13387  ;;  %v11179_v20 = vpack.c.bf16 %v10514_v39, %v10513_v14  ;;  %v10386_v13 = vadd.f32 1.0, %v13386_v4  ;;  %v10114_v37 = vadd.f32 %v10016_v52, %v17548_v15  ;;  %v10191_v53 = vmul.f32 %v17712_v19, %v17722_v48 }
 0xd46   : > { %v10385_v44 = vadd.f32 1.0, %v13388_v11  ;;  %v12413_v6 = vpop.f32.mrb[20].mxu1  ;;  %v17782_v47 = vadd.f32 %v17684_v24, %v10115_v1  ;;  %v10224_v52 = vmax.f32 %v10192_v34, 0.0 }
 0xd47   : > { %11180 = vst [vmem:[%s17778_s29] sm:$0xff] %v11179_v20   ;;  %13397 = vrcp.f32 %v10386_v13  ;;  %v9462_v55 = vpop.f32.mrb[21].mxu1  ;;  %v17787_v62 = vadd.f32 %v17684_v24, %v10114_v37  ;;  %v10020_v40 = vrot.slane %v12413_v6, 1  ;;  %v10223_v13 = vmax.f32 %v10191_v53, 0.0 }
 0xd48   : > { %13399 = vrcp.f32 %v10385_v44  ;;  %v12414_v30 = vpop.f32.mrb[22].mxu1  ;;  %v11082_v25 = vmul.f32 -1.442695, %v17782_v47 }
 0xd49   : > { %v13390_v15 = vpop.eup %13389  ;;  %v10022_v27 = vrot.slane %v12414_v30, 1  ;;  %v9464_v49 = vpop.f32.mrb[23].mxu1  ;;  %v11081_v18 = vmul.f32 -1.442695, %v17787_v62 }
 0xd4a   : > { %v13392_v41 = vpop.eup %13391  ;;  %v10482_v61 = vsel %vm17742_vm8, %v13390_v15, %v17702_v51  ;;  %v10019_v39 = vrot.slane %v9464_v49, 1  ;;  %13401 = vpow2.f32 %v11082_v25  ;;  %v10258_v15 = vmul.f32 %v17735_v5, %v10224_v52 }
 0xd4b   : > { %v10516_v60 = vsel %vm17753_vm9, %v10256_v38, %v10482_v61  ;;  %v10481_v54 = vsel %vm17742_vm8, %v13392_v41, %v17705_v35  ;;  %13403 = vpow2.f32 %v11081_v18  ;;  %v10023_v51 = vsel %vm3439_vm1, %v10020_v40, %v10022_v27 }
 0xd4c   : > { %v13394_v4 = vpop.eup %13393  ;;  %v10515_v14 = vsel %vm17753_vm9, %v10255_v26, %v10481_v54  ;;  %v10117_v20 = vadd.f32 %v10023_v51, %v17563_v43  ;;  %v10021_v44 = vsel %vm3439_vm1, %v10019_v39, %v10020_v40  ;;  %v10194_v35 = vmul.f32 %v17712_v19, %v17738_v63 }
 0xd4d   : > { %v13396_v0 = vpop.eup %13395  ;;  %v11184_v16 = vpack.c.bf16 %v10516_v60, %v10515_v14  ;;  %v10388_v11 = vadd.f32 1.0, %v13394_v4  ;;  %v10116_v55 = vadd.f32 %v10021_v44, %v17559_v28  ;;  %v10193_v26 = vmul.f32 %v17712_v19, %v17749_v42 }
 0xd4e   : > { %v10387_v1 = vadd.f32 1.0, %v13396_v0  ;;  %v12417_v37 = vpop.f32.mrb[24].mxu1  ;;  %v17812_v6 = vadd.f32 %v17684_v24, %v10117_v20  ;;  %v10257_v41 = vmul.f32 %v17735_v5, %v10223_v13  ;;  %v10226_v60 = vmax.f32 %v10194_v35, 0.0 }
 0xd4f   : > { %11256 = vst [vmem:[%s17778_s29 + $0x8] sm:$0xff] %v11184_v16   ;;  %13405 = vrcp.f32 %v10388_v11  ;;  %v9477_v38 = vpop.f32.mrb[25].mxu1  ;;  %v17820_v53 = vadd.f32 %v17684_v24, %v10116_v55  ;;  %v10025_v61 = vrot.slane %v12417_v37, 1  ;;  %v10225_v4 = vmax.f32 %v10193_v26, 0.0 }
 0xd50   : > { %13407 = vrcp.f32 %v10387_v1  ;;  %v12418_v43 = vpop.f32.mrb[26].mxu1  ;;  %v11084_v34 = vmul.f32 -1.442695, %v17812_v6  ;;  %v10260_v1 = vmul.f32 %v17735_v5, %v10226_v60 }
 0xd51   : > { %v13398_v30 = vpop.eup %13397  ;;  %v10027_v25 = vrot.slane %v12418_v43, 1  ;;  %v9479_v27 = vpop.f32.mrb[27].mxu1  ;;  %v10259_v55 = vmul.f32 %v17735_v5, %v10225_v4  ;;  %v10195_v43 = vmul.f32 %v17712_v19, %v17787_v62 }
 0xd52   : > { %v13400_v49 = vpop.eup %13399  ;;  %v10484_v28 = vsel %vm17742_vm8, %v13398_v30, %v17718_v9  ;;  %v10024_v18 = vrot.slane %v9479_v27, 1  ;;  %13409 = vpow2.f32 %v11084_v34  ;;  %v11083_v9 = vmul.f32 -1.442695, %v17820_v53 }
 0xd53   : > { %v10518_v40 = vsel %vm17753_vm9, %v10258_v15, %v10484_v28  ;;  %v10483_v39 = vsel %vm17742_vm8, %v13400_v49, %v17722_v48  ;;  %v10028_v14 = vsel %vm3439_vm1, %v10025_v61, %v10027_v25 }
 0xd54   : > { %v10517_v54 = vsel %vm17753_vm9, %v10257_v41, %v10483_v39  ;;  %v13402_v51 = vpop.eup %13401  ;;  %v10119_v16 = vadd.f32 %v10028_v14, %v17574_v45  ;;  %v10026_v52 = vsel %vm3439_vm1, %v10024_v18, %v10025_v61  ;;  %13411 = vpow2.f32 %v11083_v9 }
 0xd55   : > { %v11189_v0 = vpack.c.bf16 %v10518_v40, %v10517_v54  ;;  %v13404_v11 = vpop.eup %13403  ;;  %v10390_v20 = vadd.f32 1.0, %v13402_v51  ;;  %v10118_v48 = vadd.f32 %v10026_v52, %v17570_v12  ;;  %v10196_v45 = vmul.f32 %v17712_v19, %v17782_v47 }
 0xd56   : > { %v12421_v13 = vpop.f32.mrb[28].mxu1  ;;  %v10389_v44 = vadd.f32 1.0, %v13404_v11  ;;  %v17841_v37 = vadd.f32 %v17684_v24, %v10119_v16  ;;  %v10227_v14 = vmax.f32 %v10195_v43, 0.0 }
 0xd57   : > { %11257 = vst [vmem:[%s17778_s29 + $0x10] sm:$0xff] %v11189_v0   ;;  %v9492_v35 = vpop.f32.mrb[29].mxu1  ;;  %13413 = vrcp.f32 %v10390_v20  ;;  %v17847_v38 = vadd.f32 %v17684_v24, %v10118_v48  ;;  %v10030_v28 = vrot.slane %v12421_v13, 1  ;;  %v10228_v9 = vmax.f32 %v10196_v45, 0.0 }
 0xd58   : > { %v12422_v26 = vpop.f32.mrb[30].mxu1  ;;  %13415 = vrcp.f32 %v10389_v44  ;;  %v11086_v30 = vmul.f32 -1.442695, %v17841_v37  ;;  %v10261_v45 = vmul.f32 %v17735_v5, %v10227_v14  ;;  %v10200_v14 = vmul.f32 %v17712_v19, %v17841_v37 }
 0xd59   : > { %v13406_v12 = vpop.eup %13405  ;;  %v10032_v15 = vrot.slane %v12422_v26, 1  ;;  %v9494_v34 = vpop.f32.mrb[31].mxu1  ;;  %v11085_v49 = vmul.f32 -1.442695, %v17847_v38 }
 0xd5a   : > { %v13408_v25 = vpop.eup %13407  ;;  %v10486_v27 = vsel %vm17742_vm8, %v13406_v12, %v17738_v63  ;;  %v10029_v41 = vrot.slane %v9494_v34, 1  ;;  %13417 = vpow2.f32 %v11086_v30 }
 0xd5b   : > { %v10520_v61 = vsel %vm17753_vm9, %v10260_v1, %v10486_v27  ;;  %v10485_v18 = vsel %vm17742_vm8, %v13408_v25, %v17749_v42  ;;  %13419 = vpow2.f32 %v11085_v49  ;;  %v10033_v39 = vsel %vm3439_vm1, %v10030_v28, %v10032_v15 }
 0xd5c   : > { %v10519_v40 = vsel %vm17753_vm9, %v10259_v55, %v10485_v18  ;;  %v13410_v63 = vpop.eup %13409  ;;  %v10121_v54 = vadd.f32 %v10033_v39, %v17585_v57  ;;  %v10031_v4 = vsel %vm3439_vm1, %v10029_v41, %v10030_v28  ;;  %v10198_v15 = vmul.f32 %v17712_v19, %v17812_v6 }
 0xd5d   : > { %v11194_v60 = vpack.c.bf16 %v10520_v61, %v10519_v40  ;;  %v10392_v51 = vadd.f32 1.0, %v13410_v63  ;;  %v10120_v0 = vadd.f32 %v10031_v4, %v17581_v10  ;;  %v10262_v10 = vmul.f32 %v17735_v5, %v10228_v9 }
 0xd5e   : > { %v12425_v16 = vpop.f32.mrb[32].mxu1  ;;  %v17869_v42 = vadd.f32 %v17684_v24, %v10121_v54  ;;  %v13412_v11 = vpop.eup %13411 }
 0xd5f   : > { %11258 = vst [vmem:[%s17778_s29 + $0x18] sm:$0xff] %v11194_v60   ;;  %v9507_v52 = vpop.f32.mrb[33].mxu1  ;;  %13421 = vrcp.f32 %v10392_v51  ;;  %v17872_v20 = vadd.f32 %v17684_v24, %v10120_v0  ;;  %v10391_v57 = vadd.f32 1.0, %v13412_v11  ;;  %v10035_v1 = vrot.slane %v12425_v16, 1 }
 0xd60   : > { %v12426_v48 = vpop.f32.mrb[34].mxu1  ;;  %v11088_v13 = vmul.f32 -1.442695, %v17869_v42  ;;  %v10230_v60 = vmax.f32 %v10198_v15, 0.0 }
 0xd61   : > { %v10037_v44 = vrot.slane %v12426_v48, 1  ;;  %v9509_v35 = vpop.f32.mrb[35].mxu1  ;;  %v13414_v55 = vpop.eup %13413  ;;  %v11087_v26 = vmul.f32 -1.442695, %v17872_v20  ;;  %13423 = vrcp.f32 %v10391_v57  ;;  %v10199_v48 = vmul.f32 %v17712_v19, %v17847_v38 }
 0xd62   : > { %v10034_v12 = vrot.slane %v9509_v35, 1  ;;  %v13416_v43 = vpop.eup %13415  ;;  %v10488_v30 = vsel %vm17742_vm8, %v13414_v55, %v17782_v47  ;;  %13425 = vpow2.f32 %v11088_v13  ;;  %v10197_v47 = vmul.f32 %v17712_v19, %v17820_v53 }
 0xd63   : > { %v10038_v34 = vsel %vm3439_vm1, %v10035_v1, %v10037_v44  ;;  %v10522_v25 = vsel %vm17753_vm9, %v10262_v10, %v10488_v30  ;;  %v10487_v27 = vsel %vm17742_vm8, %v13416_v43, %v17787_v62  ;;  %13427 = vpow2.f32 %v11087_v26 }
 0xd64   : > { %v13418_v49 = vpop.eup %13417  ;;  %v10521_v28 = vsel %vm17753_vm9, %v10261_v45, %v10487_v27  ;;  %v10123_v41 = vadd.f32 %v10038_v34, %v17596_v32  ;;  %v10036_v39 = vsel %vm3439_vm1, %v10034_v12, %v10035_v1  ;;  %v10229_v51 = vmax.f32 %v10197_v47, 0.0 }
 0xd65   : > { %v13420_v61 = vpop.eup %13419  ;;  %v11199_v18 = vpack.c.bf16 %v10522_v25, %v10521_v28  ;;  %v10394_v40 = vadd.f32 1.0, %v13418_v49  ;;  %v10122_v4 = vadd.f32 %v10036_v39, %v17592_v50  ;;  %v10264_v1 = vmul.f32 %v17735_v5, %v10230_v60 }
 0xd66   : > { %v12429_v63 = vpop.f32.mrb[36].mxu1  ;;  %v10393_v62 = vadd.f32 1.0, %v13420_v61  ;;  %v17896_v54 = vadd.f32 %v17684_v24, %v10123_v41  ;;  %v10232_v35 = vmax.f32 %v10200_v14, 0.0  ;;  %v10263_v43 = vmul.f32 %v17735_v5, %v10229_v51 }
 0xd67   : > { %v9522_v9 = vpop.f32.mrb[37].mxu1  ;;  %11259 = vst [vmem:[%s17778_s29 + $0x20] sm:$0xff] %v11199_v18   ;;  %13429 = vrcp.f32 %v10394_v40  ;;  %v17904_v16 = vadd.f32 %v17684_v24, %v10122_v4  ;;  %v10040_v50 = vrot.slane %v12429_v63, 1  ;;  %v10231_v25 = vmax.f32 %v10199_v48, 0.0 }
 0xd68   : > { %v12430_v32 = vpop.f32.mrb[38].mxu1  ;;  %13431 = vrcp.f32 %v10393_v62  ;;  %v11090_v0 = vmul.f32 -1.442695, %v17896_v54 }
 0xd69   : > { %v9524_v52 = vpop.f32.mrb[39].mxu1  ;;  %v13422_v11 = vpop.eup %13421  ;;  %v10042_v57 = vrot.slane %v12430_v32, 1  ;;  %v11089_v55 = vmul.f32 -1.442695, %v17904_v16  ;;  %v10265_v9 = vmul.f32 %v17735_v5, %v10231_v25 }
 0xd6a   : > { %v10039_v13 = vrot.slane %v9524_v52, 1  ;;  %v10490_v44 = vsel %vm17742_vm8, %v13422_v11, %v17812_v6  ;;  %13433 = vpow2.f32 %v11090_v0  ;;  %v10202_v52 = vmul.f32 %v17712_v19, %v17869_v42 }
 0xd6b   : > { %v10043_v10 = vsel %vm3439_vm1, %v10040_v50, %v10042_v57  ;;  %v13424_v26 = vpop.eup %13423  ;;  %v10524_v12 = vsel %vm17753_vm9, %v10264_v1, %v10490_v44  ;;  %13435 = vpow2.f32 %v11089_v55  ;;  %v10201_v57 = vmul.f32 %v17712_v19, %v17872_v20 }
 0xd6c   : > { %v10041_v45 = vsel %vm3439_vm1, %v10039_v13, %v10040_v50  ;;  %v10125_v30 = vadd.f32 %v10043_v10, %v17611_v23  ;;  %v13426_v34 = vpop.eup %13425  ;;  %v10489_v6 = vsel %vm17742_vm8, %v13424_v26, %v17820_v53  ;;  %v10234_v26 = vmax.f32 %v10202_v52, 0.0 }
 0xd6d   : > { %v10124_v15 = vadd.f32 %v10041_v45, %v17605_v58  ;;  %v13428_v49 = vpop.eup %13427  ;;  %v10523_v28 = vsel %vm17753_vm9, %v10263_v43, %v10489_v6  ;;  %v10396_v47 = vadd.f32 1.0, %v13426_v34  ;;  %v10266_v58 = vmul.f32 %v17735_v5, %v10232_v35 }
 0xd6e   : > { %v12433_v27 = vpop.f32.mrb[40].mxu1  ;;  %v17926_v41 = vadd.f32 %v17684_v24, %v10125_v30  ;;  %v11204_v61 = vpack.c.bf16 %v10524_v12, %v10523_v28  ;;  %v10395_v18 = vadd.f32 1.0, %v13428_v49  ;;  %v10233_v30 = vmax.f32 %v10201_v57, 0.0 }
 0xd6f   : > { %v9537_v23 = vpop.f32.mrb[41].mxu1  ;;  %v17930_v40 = vadd.f32 %v17684_v24, %v10124_v15  ;;  %13437 = vrcp.f32 %v10396_v47  ;;  %v10045_v63 = vrot.slane %v12433_v27, 1  ;;  %v10204_v49 = vmul.f32 %v17712_v19, %v17896_v54 }
 0xd70   : > { %v12434_v53 = vpop.f32.mrb[42].mxu1  ;;  %v11092_v39 = vmul.f32 -1.442695, %v17926_v41  ;;  %11260 = vst [vmem:[%s17778_s29 + $0x28] sm:$0xff] %v11204_v61   ;;  %13439 = vrcp.f32 %v10395_v18  ;;  %v10268_v23 = vmul.f32 %v17735_v5, %v10234_v26 }
 0xd71   : > { %v10047_v60 = vrot.slane %v12434_v53, 1  ;;  %v9539_v62 = vpop.f32.mrb[43].mxu1  ;;  %v13430_v4 = vpop.eup %13429  ;;  %v11091_v14 = vmul.f32 -1.442695, %v17930_v40 }
 0xd72   : > { %v10044_v32 = vrot.slane %v9539_v62, 1  ;;  %v13432_v51 = vpop.eup %13431  ;;  %v10492_v0 = vsel %vm17742_vm8, %v13430_v4, %v17841_v37  ;;  %13441 = vpow2.f32 %v11092_v39  ;;  %v10267_v39 = vmul.f32 %v17735_v5, %v10233_v30 }
 0xd73   : > { %v10048_v11 = vsel %vm3439_vm1, %v10045_v63, %v10047_v60  ;;  %v10526_v48 = vsel %vm17753_vm9, %v10266_v58, %v10492_v0  ;;  %v10491_v50 = vsel %vm17742_vm8, %v13432_v51, %v17847_v38  ;;  %13443 = vpow2.f32 %v11091_v14 }
 0xd74   : > { %v13434_v13 = vpop.eup %13433  ;;  %v10525_v37 = vsel %vm17753_vm9, %v10265_v9, %v10491_v50  ;;  %v10127_v1 = vadd.f32 %v10048_v11, %v17623_v7  ;;  %v10046_v44 = vsel %vm3439_vm1, %v10044_v32, %v10045_v63  ;;  %v10203_v9 = vmul.f32 %v17712_v19, %v17904_v16 }
 0xd75   : > { %v11209_v35 = vpack.c.bf16 %v10526_v48, %v10525_v37  ;;  %v10398_v55 = vadd.f32 1.0, %v13434_v13  ;;  %v10126_v10 = vadd.f32 %v10046_v44, %v17619_v33  ;;  %v13436_v43 = vpop.eup %13435  ;;  %v10236_v32 = vmax.f32 %v10204_v49, 0.0 }
 0xd76   : > { %v12437_v45 = vpop.f32.mrb[44].mxu1  ;;  %v17955_v38 = vadd.f32 %v17684_v24, %v10127_v1  ;;  %v10397_v34 = vadd.f32 1.0, %v13436_v43  ;;  %v10206_v11 = vmul.f32 %v17712_v19, %v17926_v41  ;;  %v10235_v1 = vmax.f32 %v10203_v9, 0.0 }
 0xd77   : > { %v9552_v12 = vpop.f32.mrb[45].mxu1  ;;  %11261 = vst [vmem:[%s17778_s29 + $0x30] sm:$0xff] %v11209_v35   ;;  %13445 = vrcp.f32 %v10398_v55  ;;  %v17959_v15 = vadd.f32 %v17684_v24, %v10126_v10  ;;  %v10050_v25 = vrot.slane %v12437_v45, 1  ;;  %v10205_v45 = vmul.f32 %v17712_v19, %v17930_v40 }
 0xd78   : > { %v12438_v7 = vpop.f32.mrb[46].mxu1  ;;  %v11094_v6 = vmul.f32 -1.442695, %v17955_v38  ;;  %13447 = vrcp.f32 %v10397_v34  ;;  %v10270_v43 = vmul.f32 %v17735_v5, %v10236_v32  ;;  %v10238_v30 = vmax.f32 %v10206_v11, 0.0 }
 0xd79   : > { %v10052_v27 = vrot.slane %v12438_v7, 1  ;;  %v9554_v33 = vpop.f32.mrb[47].mxu1  ;;  %v11093_v28 = vmul.f32 -1.442695, %v17959_v15  ;;  %v13438_v47 = vpop.eup %13437 }
 0xd7a   : > { %v10049_v58 = vrot.slane %v9554_v33, 1  ;;  %v13440_v18 = vpop.eup %13439  ;;  %v10494_v53 = vsel %vm17742_vm8, %v13438_v47, %v17869_v42  ;;  %13449 = vpow2.f32 %v11094_v6  ;;  %v10237_v47 = vmax.f32 %v10205_v45, 0.0 }
 0xd7b   : > { %v10053_v61 = vsel %vm3439_vm1, %v10050_v25, %v10052_v27  ;;  %v10528_v62 = vsel %vm17753_vm9, %v10268_v23, %v10494_v53  ;;  %v10493_v4 = vsel %vm17742_vm8, %v13440_v18, %v17872_v20  ;;  %13451 = vpow2.f32 %v11093_v28 }
 0xd7c   : > { %v10129_v63 = vadd.f32 %v10053_v61, %v17634_v36  ;;  %v13442_v60 = vpop.eup %13441  ;;  %v10527_v42 = vsel %vm17753_vm9, %v10267_v39, %v10493_v4  ;;  %v10051_v48 = vsel %vm3439_vm1, %v10049_v58, %v10050_v25  ;;  %v10269_v27 = vmul.f32 %v17735_v5, %v10235_v1 }
 0xd7d   : > { %v13444_v14 = vpop.eup %13443  ;;  %v10400_v51 = vadd.f32 1.0, %v13442_v60  ;;  %v11214_v52 = vpack.c.bf16 %v10528_v62, %v10527_v42  ;;  %v10128_v13 = vadd.f32 %v10051_v48, %v17630_v2  ;;  %v10272_v53 = vmul.f32 %v17735_v5, %v10238_v30 }
 0xd7e   : > { %v17982_v36 = vadd.f32 %v17684_v24, %v10129_v63  ;;  %v12441_v0 = vpop.f32.mrb[48].mxu1  ;;  %v10399_v20 = vadd.f32 1.0, %v13444_v14 }
 0xd7f   : > { %v9567_v50 = vpop.f32.mrb[49].mxu1  ;;  %13453 = vrcp.f32 %v10400_v51  ;;  %11262 = vst [vmem:[%s17778_s29 + $0x38] sm:$0xff] %v11214_v52   ;;  %v10055_v44 = vrot.slane %v12441_v0, 1  ;;  %v17993_v26 = vadd.f32 %v17684_v24, %v10128_v13  ;;  %v10207_v0 = vmul.f32 %v17712_v19, %v17959_v15 }
 0xd80   : > { %v11096_v57 = vmul.f32 -1.442695, %v17982_v36  ;;  %v12442_v37 = vpop.f32.mrb[50].mxu1  ;;  %13455 = vrcp.f32 %v10399_v20  ;;  %v10271_v50 = vmul.f32 %v17735_v5, %v10237_v47 }
 0xd81   : > { %v10057_v35 = vrot.slane %v12442_v37, 1  ;;  %v9569_v55 = vpop.f32.mrb[51].mxu1  ;;  %v13446_v10 = vpop.eup %13445  ;;  %v11095_v34 = vmul.f32 -1.442695, %v17993_v26  ;;  %v10239_v45 = vmax.f32 %v10207_v0, 0.0 }
 0xd82   : > { %13457 = vpow2.f32 %v11096_v57  ;;  %v10054_v12 = vrot.slane %v9569_v55, 1  ;;  %v10496_v2 = vsel %vm17742_vm8, %v13446_v10, %v17896_v54  ;;  %v13448_v6 = vpop.eup %13447 }
 0xd83   : > { %v10058_v7 = vsel %vm3439_vm1, %v10055_v44, %v10057_v35  ;;  %v10530_v25 = vsel %vm17753_vm9, %v10270_v43, %v10496_v2  ;;  %v10495_v54 = vsel %vm17742_vm8, %v13448_v6, %v17904_v16  ;;  %13459 = vpow2.f32 %v11095_v34 }
 0xd84   : > { %v10131_v33 = vadd.f32 %v10058_v7, %v17645_v56  ;;  %v10056_v49 = vsel %vm3439_vm1, %v10054_v12, %v10055_v44  ;;  %v13450_v28 = vpop.eup %13449  ;;  %v10529_v18 = vsel %vm17753_vm9, %v10269_v27, %v10495_v54  ;;  %v10208_v16 = vmul.f32 %v17712_v19, %v17955_v38 }
 0xd85   : > { %v10130_v23 = vadd.f32 %v10056_v49, %v17641_v29  ;;  %v13452_v58 = vpop.eup %13451  ;;  %v10402_v56 = vadd.f32 1.0, %v13450_v28  ;;  %v11219_v60 = vpack.c.bf16 %v10530_v25, %v10529_v18  ;;  %v10273_v49 = vmul.f32 %v17735_v5, %v10239_v45 }
 0xd86   : > { %v12445_v61 = vpop.f32.mrb[52].mxu1  ;;  %v18014_v39 = vadd.f32 %v17684_v24, %v10131_v33  ;;  %v10401_v62 = vadd.f32 1.0, %v13452_v58  ;;  %v10240_v35 = vmax.f32 %v10208_v16, 0.0 }
 0xd87   : > { %v9582_v63 = vpop.f32.mrb[53].mxu1  ;;  %v18019_v29 = vadd.f32 %v17684_v24, %v10130_v23  ;;  %13461 = vrcp.f32 %v10402_v56  ;;  %v10060_v14 = vrot.slane %v12445_v61, 1  ;;  %11263 = vst [vmem:[%s17778_s29 + $0x40] sm:$0xff] %v11219_v60   ;;  %v10209_v61 = vmul.f32 %v17712_v19, %v17993_v26 }
 0xd88   : > { %v12446_v4 = vpop.f32.mrb[54].mxu1  ;;  %v11098_v9 = vmul.f32 -1.442695, %v18014_v39  ;;  %13463 = vrcp.f32 %v10401_v62  ;;  %v10274_v6 = vmul.f32 %v17735_v5, %v10240_v35 }
 0xd89   : > { %v10062_v42 = vrot.slane %v12446_v4, 1  ;;  %v9584_v32 = vpop.f32.mrb[55].mxu1  ;;  %v13454_v51 = vpop.eup %13453  ;;  %v11097_v52 = vmul.f32 -1.442695, %v18019_v29 }
 0xd8a   : > { %v10059_v11 = vrot.slane %v9584_v32, 1  ;;  %v13456_v20 = vpop.eup %13455  ;;  %v10498_v48 = vsel %vm17742_vm8, %v13454_v51, %v17926_v41  ;;  %13465 = vpow2.f32 %v11098_v9 }
 0xd8b   : > { %v10063_v57 = vsel %vm3439_vm1, %v10060_v14, %v10062_v42  ;;  %v10532_v37 = vsel %vm17753_vm9, %v10272_v53, %v10498_v48  ;;  %v10497_v1 = vsel %vm17742_vm8, %v13456_v20, %v17930_v40  ;;  %13467 = vpow2.f32 %v11097_v52 }
 0xd8c   : > { %v13458_v13 = vpop.eup %13457  ;;  %v10531_v44 = vsel %vm17753_vm9, %v10271_v50, %v10497_v1  ;;  %v10133_v55 = vadd.f32 %v10063_v57, %v17656_v59  ;;  %v10061_v12 = vsel %vm3439_vm1, %v10059_v11, %v10060_v14  ;;  %v10241_v20 = vmax.f32 %v10209_v61, 0.0 }
 0xd8d   : > { %v10404_v41 = vadd.f32 1.0, %v13458_v13  ;;  %v11224_v10 = vpack.c.bf16 %v10532_v37, %v10531_v44  ;;  %v10132_v30 = vadd.f32 %v10061_v12, %v17652_v3  ;;  %v13460_v7 = vpop.eup %13459  ;;  %v10210_v3 = vmul.f32 %v17712_v19, %v17982_v36 }
 0xd8e   : > { %v12449_v43 = vpop.f32.mrb[56].mxu1  ;;  %v18041_v2 = vadd.f32 %v17684_v24, %v10133_v55  ;;  %v10403_v25 = vadd.f32 1.0, %v13460_v7  ;;  %v10212_v1 = vmul.f32 %v17712_v19, %v18014_v39  ;;  %v10211_v55 = vmul.f32 %v17712_v19, %v18019_v29 }
 0xd8f   : > { %13469 = vrcp.f32 %v10404_v41  ;;  %v9597_v40 = vpop.f32.mrb[57].mxu1  ;;  %11264 = vst [vmem:[%s17778_s29 + $0x48] sm:$0xff] %v11224_v10   ;;  %v18048_v27 = vadd.f32 %v17684_v24, %v10132_v30  ;;  %v10065_v28 = vrot.slane %v12449_v43, 1  ;;  %v10242_v51 = vmax.f32 %v10210_v3, 0.0 }
 0xd90   : > { %v12450_v34 = vpop.f32.mrb[58].mxu1  ;;  %v11100_v59 = vmul.f32 -1.442695, %v18041_v2  ;;  %13471 = vrcp.f32 %v10403_v25  ;;  %v10275_v30 = vmul.f32 %v17735_v5, %v10241_v20 }
 0xd91   : > { %v9599_v33 = vpop.f32.mrb[59].mxu1  ;;  %v10067_v54 = vrot.slane %v12450_v34, 1  ;;  %v13462_v23 = vpop.eup %13461  ;;  %v11099_v58 = vmul.f32 -1.442695, %v18048_v27  ;;  %v10276_v41 = vmul.f32 %v17735_v5, %v10242_v51 }
 0xd92   : > { %v10064_v47 = vrot.slane %v9599_v33, 1  ;;  %v13464_v18 = vpop.eup %13463  ;;  %v10500_v53 = vsel %vm17742_vm8, %v13462_v23, %v17955_v38  ;;  %13473 = vpow2.f32 %v11100_v59  ;;  %v10243_v33 = vmax.f32 %v10211_v55, 0.0 }
 0xd93   : > { %v10068_v56 = vsel %vm3439_vm1, %v10065_v28, %v10067_v54  ;;  %v10534_v16 = vsel %vm17753_vm9, %v10274_v6, %v10500_v53  ;;  %v10499_v62 = vsel %vm17742_vm8, %v13464_v18, %v17959_v15  ;;  %13475 = vpow2.f32 %v11099_v58 }
 0xd94   : > { %v10066_v63 = vsel %vm3439_vm1, %v10064_v47, %v10065_v28  ;;  %v13466_v60 = vpop.eup %13465  ;;  %v10533_v9 = vsel %vm17753_vm9, %v10273_v49, %v10499_v62  ;;  %v10135_v38 = vadd.f32 %v10068_v56, %v17667_v31  ;;  %v10244_v6 = vmax.f32 %v10212_v1, 0.0 }
 0xd95   : > { %v13468_v4 = vpop.eup %13467  ;;  %v10406_v14 = vadd.f32 1.0, %v13466_v60  ;;  %v11229_v32 = vpack.c.bf16 %v10534_v16, %v10533_v9  ;;  %v10134_v52 = vadd.f32 %v10066_v63, %v17663_v46  ;;  %v10277_v53 = vmul.f32 %v17735_v5, %v10243_v33 }
 0xd96   : > { %v12453_v42 = vpop.f32.mrb[60].mxu1  ;;  %v10405_v0 = vadd.f32 1.0, %v13468_v4  ;;  %v18071_v15 = vadd.f32 %v17684_v24, %v10135_v38  ;;  %v10278_v61 = vmul.f32 %v17735_v5, %v10244_v6  ;;  %v10214_v56 = vmul.f32 %v17712_v19, %v18041_v2 }
 0xd97   : > { %v9612_v11 = vpop.f32.mrb[61].mxu1  ;;  %13477 = vrcp.f32 %v10406_v14  ;;  %11265 = vst [vmem:[%s17778_s29 + $0x50] sm:$0xff] %v11229_v32   ;;  %v18075_v57 = vadd.f32 %v17684_v24, %v10134_v52  ;;  %v10070_v31 = vrot.slane %v12453_v42, 1 }
 0xd98   : > { %v12454_v48 = vpop.f32.mrb[62].mxu1  ;;  %13479 = vrcp.f32 %v10405_v0  ;;  %v11102_v44 = vmul.f32 -1.442695, %v18071_v15  ;;  %v10246_v14 = vmax.f32 %v10214_v56, 0.0  ;;  %v10216_v0 = vmul.f32 %v17712_v19, %v18071_v15 }
 0xd99   : > { %v13470_v50 = vpop.eup %13469  ;;  %v10072_v13 = vrot.slane %v12454_v48, 1  ;;  %v9614_v37 = vpop.f32.mrb[63].mxu1  ;;  %v11101_v24 = vmul.f32 -1.442695, %v18075_v57  ;;  %v10215_v20 = vmul.f32 %v17712_v19, %v18075_v57 }
 0xd9a   : > { %v10502_v46 = vsel %vm17742_vm8, %v13470_v50, %v17982_v36  ;;  %v10069_v35 = vrot.slane %v9614_v37, 1  ;;  %13481 = vpow2.f32 %v11102_v44  ;;  %v13472_v12 = vpop.eup %13471 }
 0xd9b   : > { %v10073_v10 = vsel %vm3439_vm1, %v10070_v31, %v10072_v13  ;;  %v10536_v43 = vsel %vm17753_vm9, %v10276_v41, %v10502_v46  ;;  %13483 = vpow2.f32 %v11101_v24  ;;  %v10501_v34 = vsel %vm17742_vm8, %v13472_v12, %v17993_v26 }
 0xd9c   : > { %v10137_v45 = vadd.f32 %v10073_v10, %v17678_v8  ;;  %v10071_v36 = vsel %vm3439_vm1, %v10069_v35, %v10070_v31  ;;  %v13474_v7 = vpop.eup %13473  ;;  %v13563_v8 = vld [vmem:[%s18232_s6] ss:$0 sm:$0xff]  ;;  %v10535_v59 = vsel %vm17753_vm9, %v10275_v30, %v10501_v34  ;;  %v10247_v41 = vmax.f32 %v10215_v20, 0.0 }
 0xd9d   : > { %v10136_v40 = vadd.f32 %v10071_v36, %v17674_v22  ;;  %v10408_v49 = vadd.f32 1.0, %v13474_v7  ;;  %v13476_v22 = vpop.eup %13475  ;;  %v11234_v54 = vpack.c.bf16 %v10536_v43, %v10535_v59 }
 0xd9e   : > { %v18100_v25 = vadd.f32 %v13563_v8, %v10137_v45  ;;  %v10407_v26 = vadd.f32 1.0, %v13476_v22  ;;  %v10281_v12 = vmul.f32 %v17735_v5, %v10247_v41 }
 0xd9f   : > { %v18104_v28 = vadd.f32 %v13563_v8, %v10136_v40  ;;  %13485 = vrcp.f32 %v10408_v49  ;;  %11266 = vst [vmem:[%s17778_s29 + $0x58] sm:$0xff] %v11234_v54  }
 0xda0   : > { %v11104_v47 = vmul.f32 -1.442695, %v18100_v25  ;;  %v10218_v55 = vmul.f32 %v17712_v19, %v18100_v25 }
 0xda1   : > { %v11103_v23 = vmul.f32 -1.442695, %v18104_v28  ;;  %v13478_v3 = vpop.eup %13477 }
 0xda2   : > { %13487 = vpow2.f32 %v11104_v47  ;;  %v13480_v58 = vpop.eup %13479  ;;  %v10504_v18 = vsel %vm17742_vm8, %v13478_v3, %v18014_v39  ;;  %v10213_v39 = vmul.f32 %v17712_v19, %v18048_v27  ;;  %v10250_v40 = vmax.f32 %v10218_v55, 0.0 }
 0xda3   : > { %13489 = vrcp.f32 %v10407_v26  ;;  %v10538_v63 = vsel %vm17753_vm9, %v10278_v61, %v10504_v18  ;;  %v10503_v60 = vsel %vm17742_vm8, %v13480_v58, %v18019_v29  ;;  %v10280_v29 = vmul.f32 %v17735_v5, %v10246_v14 }
 0xda4   : > { %13491 = vpow2.f32 %v11103_v23  ;;  %v10537_v16 = vsel %vm17753_vm9, %v10277_v53, %v10503_v60  ;;  %v13482_v62 = vpop.eup %13481  ;;  %v10245_v32 = vmax.f32 %v10213_v39, 0.0 }
 0xda5   : > { %v11239_v4 = vpack.c.bf16 %v10538_v63, %v10537_v16  ;;  %v13484_v9 = vpop.eup %13483  ;;  %v10410_v38 = vadd.f32 1.0, %v13482_v62 }
 0xda6   : > { %v10409_v42 = vadd.f32 1.0, %v13484_v9  ;;  %v10279_v31 = vmul.f32 %v17735_v5, %v10245_v32 }
 0xda7   : > { %11267 = vst [vmem:[%s17778_s29 + $0x60] sm:$0xff] %v11239_v4   ;;  %13493 = vrcp.f32 %v10410_v38 }
 0xda8   : > { %13495 = vrcp.f32 %v10409_v42 }
 0xda9   : > { %v13486_v51 = vpop.eup %13485 }
 0xdaa   : > { %v10506_v11 = vsel %vm17742_vm8, %v13486_v51, %v18041_v2  ;;  %v10248_v2 = vmax.f32 %v10216_v0, 0.0 }
 0xdab   : > { %v10540_v50 = vsel %vm17753_vm9, %v10280_v29, %v10506_v11 }
 0xdac   : > { %v13488_v52 = vpop.eup %13487  ;;  %v10282_v10 = vmul.f32 %v17735_v5, %v10248_v2 }
 0xdad   : > { %v13490_v48 = vpop.eup %13489  ;;  %v10412_v13 = vadd.f32 1.0, %v13488_v52 }
 0xdae   : > { %v13492_v37 = vpop.eup %13491  ;;  %v10505_v46 = vsel %vm17742_vm8, %v13490_v48, %v18048_v27  ;;  %v10217_v27 = vmul.f32 %v17712_v19, %v18104_v28 }
 0xdaf   : > { %v10539_v1 = vsel %vm17753_vm9, %v10279_v31, %v10505_v46  ;;  %13497 = vrcp.f32 %v10412_v13  ;;  %v10411_v44 = vadd.f32 1.0, %v13492_v37 }
 0xdb0   : > { %v11244_v35 = vpack.c.bf16 %v10540_v50, %v10539_v1  ;;  %v10249_v34 = vmax.f32 %v10217_v27, 0.0 }
 0xdb1   : > { %13499 = vrcp.f32 %v10411_v44  ;;  %v13494_v24 = vpop.eup %13493 }
 0xdb2   : > { %11268 = vst [vmem:[%s17778_s29 + $0x68] sm:$0xff] %v11244_v35   ;;  %v13496_v45 = vpop.eup %13495  ;;  %v10508_v36 = vsel %vm17742_vm8, %v13494_v24, %v18071_v15  ;;  %v10284_v15 = vmul.f32 %v17735_v5, %v10250_v40  ;;  %v10283_v33 = vmul.f32 %v17735_v5, %v10249_v34 }
 0xdb3   : > { %v10542_v43 = vsel %vm17753_vm9, %v10282_v10, %v10508_v36  ;;  %v10507_v30 = vsel %vm17742_vm8, %v13496_v45, %v18075_v57 }
 0xdb4   : > { %v10541_v7 = vsel %vm17753_vm9, %v10281_v12, %v10507_v30 }
 0xdb5   : > { %v11249_v19 = vpack.c.bf16 %v10542_v43, %v10541_v7 }
 0xdb7   : > { %11269 = vst [vmem:[%s17778_s29 + $0x70] sm:$0xff] %v11249_v19  }
 0xdb9   : > { %v13498_v6 = vpop.eup %13497 }
 0xdba   : > { %v10510_v8 = vsel %vm17742_vm8, %v13498_v6, %v18100_v25 }
 0xdbb   : > { %v13500_v59 = vpop.eup %13499  ;;  %v10544_v57 = vsel %vm17753_vm9, %v10284_v15, %v10510_v8 }
 0xdbc   : > { %v10509_v49 = vsel %vm17742_vm8, %v13500_v59, %v18104_v28 }
 0xdbd   : > { %v10543_v22 = vsel %vm17753_vm9, %v10283_v33, %v10509_v49 }
 0xdbe   : > { %v11254_v25 = vpack.c.bf16 %v10544_v57, %v10543_v22 }
 0xdc0   : > { %11270 = vst [vmem:[%s17778_s29 + $0x78] sm:$0xff] %v11254_v25  }
 0xdc1   : > { %13706 = shalt.err (!%p13703_p8)
}
 0xdc2   : > { %s13707_s29 = scalar_lea.hbm %s18177_s19, 2048  ;;  %s13711_s9 = scalar_lea.hbm %s18697_s27, 4096 }
 0xdc3   : > { %p13708_p11 = scmp.ne.s32.totalorder %s18177_s19, %s13707_s29  ;;  %p13712_p0 = scmp.lt.u32.totalorder %s18177_s19, %s18697_s27 }
 0xdc4   : > { %p13713_p2 = scmp.lt.u32.totalorder %s13711_s9, %s13707_s29  ;;  %p13715_p10 = scmp.lt.u32.totalorder %s13707_s29, %s18177_s19 }
 0xdc5   : > { %p13709_p9 = pnand %p13708_p11, %p13994_p1 }
 0xdc6   : > { %p13714_p6 = por %p13713_p2, %p13712_p0 }
 0xdc7   : > { %p13710_p12 = pneg %p13709_p9 }
 0xdc8   : > { %p13716_p4 = por %p13715_p10, %p13714_p6 }
 0xdca   : > { %p13717_p5 = pnand %p13716_p4, %p13710_p12 }
 0xdcc   : > { %13720 = shalt.err (!%p13717_p5)
}
 0xdcd   : > { %s13789_s17 = smov 4  }
 0xdce   : > { %12921 = dma.vmem_to_hbm [thread:$0]  (%p13994_p1), %s18179_s28, 2048, %s18177_s19, %s10706_s13, %s13783_s15, %s13783_s15, %s13789_s17  }
 0xdcf PF: > { %s18698_s25 = sld [smem:[#allocation19_spill]]  ;;  %s18699_s26 = sld [smem:[#allocation20_spill]] }
 0xdd0   : > { %p18701_p13 = scmp.ge.s32.totalorder %s13771_s12, 2 }
 0xdd5   : > { %s10734_s16 = sand.u32 1, %s18698_s25   ;;  %p18700_p7 = scmp.ne.s32.totalorder %s18699_s26, 0 }
 0xdd6   : > { %s10735_s29 = scalar_lea.sflag [#allocation5], %s10734_s16 }
 0xdd7   : > { %p12941_p3 = pnand %p18701_p13, %p18700_p7 }
 0xdd9   : > { %13754 = dma.done.wait (!%p12941_p3), %s10735_s29, 2048  }
 0xdda   : > { %13756 = vsyncadd (!%p12941_p3), %s10735_s29, 4294965248  ;;  %p25_p8 = scmp.ge.s32.totalorder %s13981_s24, 4   ;;  %s18702_s30 = smov %s13763_s10 }
 0xddb   : > { %s18703_s10 = smov %s13767_s11  ;;  %s18704_s11 = smov %s13990_s20 }
 0xddc   : > { %s18705_s12 = smov %s13981_s24  ;;  %27 = sbr.rel (!%p25_p8) target bundleno = 10 (0xa), region = 131 }
 0xde3   :  { %10740 = vsyncpa [#allocation4], 1 }
 0xde4   :  { %10742 = vsyncpa [#allocation4 + $0x1], 1 }
 0xde5   :  { %10743 = vsyncpa [#allocation8], 1 }
 0xde6   :  { %10744 = vsyncpa [#allocation11], 1 }
 0xde7   :  { %10745 = vsyncpa [#allocation5], 1 }
 0xde8   :  { %10747 = vsyncpa [#allocation5 + $0x1], 1 }
 0xde9   :  { %10748 = vsyncpa [#allocation6], 1 }
 0xdea   :  { %10750 = vsyncpa [#allocation6 + $0x1], 1 }

</bundles_post_ra>
